<compile_context>
chip_gen: v5e
topology: v5e:2x2
jax: 0.10.0
libtpu: 0.0.40
codegen_flags: <defaults>
</compile_context>

<pallas_src>
import functools
import math

import jax
import jax.numpy as jnp
from jax.experimental import pallas as pl
from jax.experimental.pallas import tpu as pltpu

HIDDEN_SIZES = [32, 64, 128, 256]
ACTIVATIONS = ["relu", "tanh", "sigmoid"]      # act_id 0 / 1 / 2
LAYER_NUMBERS = [2, 3, 4]
NPAD = 128                                     # num_classes (10) padded to one lane tile
BPAD = 8                                       # batch padded to one sublane tile


def _act_fn(name):
    if name == "relu":
        return lambda v: jnp.maximum(v, 0.0)
    if name == "tanh":
        return jnp.tanh
    if name == "sigmoid":
        return jax.nn.sigmoid
    return lambda v: v


def _select_act(v, act_id):
    """Runtime-select relu/tanh/sigmoid; all three are cheap VPU/EUP ops on a tiny tile."""
    r = jnp.maximum(v, 0.0)
    t = jnp.tanh(v)
    s = jax.nn.sigmoid(v)
    return jnp.where(act_id == 0, r, jnp.where(act_id == 1, t, s))


# ---------------------------------------------------------------------------
# Fused per-hidden-size kernel: grid over the 9 branches of the group; the
# output block index is constant so the f32 accumulator stays resident in VMEM.
# ---------------------------------------------------------------------------
def _group_kernel(scale_ref, act_ref, nl_ref,          # SMEM metadata, shape (9,)
                  x_ref,                               # (BPAD, IN) bf16 (fetched once)
                  w0_ref, b0_ref, w1_ref, b1_ref,      # per-branch weight blocks
                  w2_ref, b2_ref, wo_ref, bo_ref,
                  out_ref):                            # (BPAD, NPAD) f32 accumulator
    i = pl.program_id(0)

    @pl.when(i == 0)
    def _init():
        out_ref[...] = jnp.zeros_like(out_ref)

    scale = scale_ref[i]
    act_id = act_ref[i]
    nl = nl_ref[i]

    x = x_ref[...]
    # hidden layer 0 (always present)
    h = jnp.dot(x, w0_ref[...], preferred_element_type=jnp.float32) + b0_ref[...]
    h = _select_act(h, act_id)
    # hidden layer 1 (depth >= 3); unused branches carry zero weights, result discarded
    h1 = jnp.dot(h.astype(jnp.bfloat16), w1_ref[...],
                 preferred_element_type=jnp.float32) + b1_ref[...]
    h1 = _select_act(h1, act_id)
    h = jnp.where(nl >= 3, h1, h)
    # hidden layer 2 (depth == 4)
    h2 = jnp.dot(h.astype(jnp.bfloat16), w2_ref[...],
                 preferred_element_type=jnp.float32) + b2_ref[...]
    h2 = _select_act(h2, act_id)
    h = jnp.where(nl >= 4, h2, h)
    # output layer (no activation), architecture-weighted accumulate
    y = jnp.dot(h.astype(jnp.bfloat16), wo_ref[...],
                preferred_element_type=jnp.float32) + bo_ref[...]
    out_ref[...] += scale * y


def group_forward(xp, g, scales_g):
    w0s, b0s = g["W0s"], g["b0s"]
    w1s, b1s = g["W1s"], g["b1s"]
    w2s, b2s = g["W2s"], g["b2s"]
    wos, bos = g["Wos"], g["bos"]
    acts, nls = g["acts"], g["nls"]
    nb, in_f, h = w0s.shape
    bp = xp.shape[0]
    npad = wos.shape[-1]

    smem = pl.BlockSpec(memory_space=pltpu.MemorySpace.SMEM)
    in_specs = [
        smem, smem, smem,                                    # scales / act ids / #layers
        pl.BlockSpec((bp, in_f), lambda i: (0, 0)),          # x: constant block -> DMA'd once
        pl.BlockSpec((None, in_f, h), lambda i: (i, 0, 0)),  # W0 stack
        pl.BlockSpec((None, 1, h), lambda i: (i, 0, 0)),
        pl.BlockSpec((None, h, h), lambda i: (i, 0, 0)),     # W1 stack
        pl.BlockSpec((None, 1, h), lambda i: (i, 0, 0)),
        pl.BlockSpec((None, h, h), lambda i: (i, 0, 0)),     # W2 stack
        pl.BlockSpec((None, 1, h), lambda i: (i, 0, 0)),
        pl.BlockSpec((None, h, npad), lambda i: (i, 0, 0)),  # Wout stack (padded to 128 lanes)
        pl.BlockSpec((None, 1, npad), lambda i: (i, 0, 0)),
    ]
    out_specs = pl.BlockSpec((bp, npad), lambda i: (0, 0))   # same block each step -> resident

    return pl.pallas_call(
        _group_kernel,
        out_shape=jax.ShapeDtypeStruct((bp, npad), jnp.float32),
        grid=(nb,),
        in_specs=in_specs,
        out_specs=out_specs,
        compiler_params=pltpu.CompilerParams(dimension_semantics=("arbitrary",)),
    )(scales_g, acts, nls, xp, w0s, b0s, w1s, b1s, w2s, b2s, wos, bos)


# ---------------------------------------------------------------------------
# 37th op: plain Linear(in_features, num_classes)
# ---------------------------------------------------------------------------
def _linear_kernel(scale_ref, x_ref, w_ref, b_ref, out_ref):
    y = jnp.dot(x_ref[...], w_ref[...], preferred_element_type=jnp.float32) + b_ref[...]
    out_ref[...] = scale_ref[0] * y


def linear_forward(xp, lin, scale):
    bp = xp.shape[0]
    npad = lin["W"].shape[-1]
    vmem = pl.BlockSpec(memory_space=pltpu.MemorySpace.VMEM)
    smem = pl.BlockSpec(memory_space=pltpu.MemorySpace.SMEM)
    return pl.pallas_call(
        _linear_kernel,
        out_shape=jax.ShapeDtypeStruct((bp, npad), jnp.float32),
        in_specs=[smem, vmem, vmem, vmem],
        out_specs=vmem,
    )(scale, xp, lin["W"], lin["b"])


# ---------------------------------------------------------------------------
# Parameter construction (torch.nn.Linear-style init, then bf16 weights).
# ---------------------------------------------------------------------------
def _init_linear_params(key, fan_in, fan_out):
    kw, kb = jax.random.split(key)
    bound = 1.0 / math.sqrt(fan_in)
    w = jax.random.uniform(kw, (fan_in, fan_out), jnp.float32, -bound, bound)
    b = jax.random.uniform(kb, (fan_out,), jnp.float32, -bound, bound)
    return w, b


def build_params(key, in_features, num_classes):
    """Returns (groups, linear_branch, ref_branches).

    groups: per hidden size, stacked bf16 weights / f32 biases + branch metadata.
    ref_branches: flat per-op parameter list (global DARTS op order) for the reference.
    """
    groups = []
    ref_branches = []
    for h in HIDDEN_SIZES:
        w0l, b0l, w1l, b1l, w2l, b2l, wol, bol = ([] for _ in range(8))
        acts, nls = [], []
        zero_w = jnp.zeros((h, h), jnp.bfloat16)
        zero_b = jnp.zeros((1, h), jnp.float32)
        for ai, act in enumerate(ACTIVATIONS):
            for ln in LAYER_NUMBERS:
                dims = [in_features] + [h] * (ln - 1) + [num_classes]
                layers = []
                for li in range(len(dims) - 1):
                    key, sub = jax.random.split(key)
                    w, b = _init_linear_params(sub, dims[li], dims[li + 1])
                    layers.append((w.astype(jnp.bfloat16), b))   # bf16 weights, f32 biases
                ref_branches.append((layers, act))

                w0, b0 = layers[0]
                if ln >= 3:
                    w1, b1 = layers[1][0], layers[1][1].reshape(1, h)
                else:
                    w1, b1 = zero_w, zero_b
                if ln >= 4:
                    w2, b2 = layers[2][0], layers[2][1].reshape(1, h)
                else:
                    w2, b2 = zero_w, zero_b
                wo, bo = layers[-1]
                wo_p = jnp.zeros((h, NPAD), jnp.bfloat16).at[:, :num_classes].set(wo)
                bo_p = jnp.zeros((1, NPAD), jnp.float32).at[0, :num_classes].set(bo)

                w0l.append(w0); b0l.append(b0.reshape(1, h))
                w1l.append(w1); b1l.append(b1)
                w2l.append(w2); b2l.append(b2)
                wol.append(wo_p); bol.append(bo_p)
                acts.append(ai); nls.append(ln)
        groups.append(dict(
            W0s=jnp.stack(w0l), b0s=jnp.stack(b0l),
            W1s=jnp.stack(w1l), b1s=jnp.stack(b1l),
            W2s=jnp.stack(w2l), b2s=jnp.stack(b2l),
            Wos=jnp.stack(wol), bos=jnp.stack(bol),
            acts=jnp.array(acts, jnp.int32), nls=jnp.array(nls, jnp.int32),
        ))

    key, sub = jax.random.split(key)
    wl, bl = _init_linear_params(sub, in_features, num_classes)
    wl = wl.astype(jnp.bfloat16)
    ref_branches.append(([(wl, bl)], None))
    linear_branch = dict(
        W=jnp.zeros((in_features, NPAD), jnp.bfloat16).at[:, :num_classes].set(wl),
        b=jnp.zeros((1, NPAD), jnp.float32).at[0, :num_classes].set(bl),
    )
    return groups, linear_branch, ref_branches


# ---------------------------------------------------------------------------
# Forward pass (matches DARTS_Network.forward) and pure-JAX reference.
# ---------------------------------------------------------------------------
def darts_forward(x, groups, linear_branch, alphas, *, num_classes):
    b = x.shape[0]
    xf = x.reshape(b, -1)                                     # nn.Flatten()
    bp = max(BPAD, ((b + 7) // 8) * 8)                        # pad batch to sublane multiple
    xp = jnp.zeros((bp, xf.shape[1]), jnp.float32).at[:b].set(xf).astype(jnp.bfloat16)
    arch_w = jax.nn.softmax(alphas)                           # F.softmax(alphas[0], dim=-1)
    total = linear_forward(xp, linear_branch, arch_w[-1:])    # op 36: plain Linear
    for gi, g in enumerate(groups):                           # 4 fused group kernels
        total = total + group_forward(xp, g, arch_w[gi * 9:(gi + 1) * 9])
    return total[:b, :num_classes]


def darts_ref(x, ref_branches, alphas, num_classes):
    """Pure-JAX reference: f32 math on the same bf16-rounded weights and input."""
    b = x.shape[0]
    xf = x.reshape(b, -1).astype(jnp.bfloat16).astype(jnp.float32)
    arch_w = jax.nn.softmax(alphas)
    out = jnp.zeros((b, num_classes), jnp.float32)
    for i, (layers, act_name) in enumerate(ref_branches):
        act = _act_fn(act_name)
        h = xf
        for j, (w, bias) in enumerate(layers):
            h = h @ w.astype(jnp.float32) + bias
            if j < len(layers) - 1:
                h = act(h)
        out = out + arch_w[i] * h
    return out


if __name__ == "__main__":
    B, C, H, W = 2, 4, 16, 16
    in_features = C * H * W          # 1024
    num_classes = 10

    key = jax.random.PRNGKey(0)
    kx, kp, ka = jax.random.split(key, 3)
    x = jax.random.normal(kx, (B, C, H, W), jnp.float32)
    groups, linear_branch, ref_branches = build_params(kp, in_features, num_classes)

    fwd = jax.jit(functools.partial(darts_forward, num_classes=num_classes))

    # DARTS initialization: alphas = 0 -> uniform softmax over the 37 ops.
    alphas0 = jnp.zeros((37,), jnp.float32)
    out0 = jax.block_until_ready(fwd(x, groups, linear_branch, alphas0))
    assert out0.shape == (B, num_classes)
    err0 = float(jnp.max(jnp.abs(out0 - darts_ref(x, ref_branches, alphas0, num_classes))))
    assert err0 < 2e-2, f"mismatch (uniform alphas): max abs err = {err0}"

    # Non-uniform alphas to exercise per-branch scale / metadata indexing.
    alphas1 = 0.5 * jax.random.normal(ka, (37,), jnp.float32)
    out1 = jax.block_until_ready(fwd(x, groups, linear_branch, alphas1))
    err1 = float(jnp.max(jnp.abs(out1 - darts_ref(x, ref_branches, alphas1, num_classes))))
    assert err1 < 2e-2, f"mismatch (random alphas): max abs err = {err1}"

    print("KERNEL_OK")
</pallas_src>

<mosaic_0001>
module attributes {stable_mosaic.version = 11 : i64} {
  func.func @_group_kernel(%arg0: i32, %arg1: memref<9xf32, #tpu.memory_space<smem>>, %arg2: memref<9xi32, #tpu.memory_space<smem>>, %arg3: memref<9xi32, #tpu.memory_space<smem>>, %arg4: memref<8x1024xbf16, #tpu.memory_space<vmem>>, %arg5: memref<1x1024x64xbf16, #tpu.memory_space<vmem>>, %arg6: memref<1x1x64xf32, #tpu.memory_space<vmem>>, %arg7: memref<1x64x64xbf16, #tpu.memory_space<vmem>>, %arg8: memref<1x1x64xf32, #tpu.memory_space<vmem>>, %arg9: memref<1x64x64xbf16, #tpu.memory_space<vmem>>, %arg10: memref<1x1x64xf32, #tpu.memory_space<vmem>>, %arg11: memref<1x64x128xbf16, #tpu.memory_space<vmem>>, %arg12: memref<1x1x128xf32, #tpu.memory_space<vmem>>, %arg13: memref<8x128xf32, #tpu.memory_space<vmem>>) attributes {dimension_semantics = [#tpu.dimension_semantics<arbitrary>], iteration_bounds = array<i64: 9>, scalar_prefetch = 0 : i64, scratch_operands = 0 : i64, tpu.core_type = #tpu.core_type<tc>, window_params = [{transform_indices = @transform_0, window_bounds = array<i64: 9>}, {transform_indices = @transform_1, window_bounds = array<i64: 9>}, {transform_indices = @transform_2, window_bounds = array<i64: 9>}, {pipeline_mode = #tpu.pipeline_mode<synchronous>, transform_indices = @transform_3, window_bounds = array<i64: 8, 1024>}, {transform_indices = @transform_4, window_bounds = array<i64: 1, 1024, 64>}, {transform_indices = @transform_5, window_bounds = array<i64: 1, 1, 64>}, {transform_indices = @transform_6, window_bounds = array<i64: 1, 64, 64>}, {transform_indices = @transform_7, window_bounds = array<i64: 1, 1, 64>}, {transform_indices = @transform_8, window_bounds = array<i64: 1, 64, 64>}, {transform_indices = @transform_9, window_bounds = array<i64: 1, 1, 64>}, {transform_indices = @transform_10, window_bounds = array<i64: 1, 64, 128>}, {transform_indices = @transform_11, window_bounds = array<i64: 1, 1, 128>}, {pipeline_mode = #tpu.pipeline_mode<synchronous>, transform_indices = @transform_12, window_bounds = array<i64: 8, 128>}]} {
    %c0_i32 = arith.constant 0 : i32
    %0 = arith.cmpi eq, %arg0, %c0_i32 : i32
    %1 = arith.extui %0 : i1 to i32
    %c0_i32_0 = arith.constant 0 : i32
    %2 = arith.cmpi ne, %1, %c0_i32_0 : i32
    scf.if %2 {
      %cst_44 = arith.constant 0.000000e+00 : f32
      %86 = vector.broadcast %cst_44 : f32 to vector<8x128xf32>
      %c0_45 = arith.constant 0 : index
      %c0_46 = arith.constant 0 : index
      %87 = vector.load %arg13[%c0_45, %c0_46] : memref<8x128xf32, #tpu.memory_space<vmem>>, vector<8x128xf32>
      tpu.vector_store %arg13[%c0_45, %c0_46], %86 {strides = array<i32>} : memref<8x128xf32, #tpu.memory_space<vmem>>, vector<8x128xf32>,
    } else {
    }
    %3 = arith.index_cast %arg0 : i32 to index
    %4 = memref.load %arg1[%3] : memref<9xf32, #tpu.memory_space<smem>>
    %5 = arith.index_cast %arg0 : i32 to index
    %6 = memref.load %arg2[%5] : memref<9xi32, #tpu.memory_space<smem>>
    %7 = arith.index_cast %arg0 : i32 to index
    %8 = memref.load %arg3[%7] : memref<9xi32, #tpu.memory_space<smem>>
    %c0 = arith.constant 0 : index
    %c0_1 = arith.constant 0 : index
    %9 = vector.load %arg4[%c0, %c0_1] : memref<8x1024xbf16, #tpu.memory_space<vmem>>, vector<8x1024xbf16>
    %c0_2 = arith.constant 0 : index
    %c0_3 = arith.constant 0 : index
    %c0_4 = arith.constant 0 : index
    %10 = vector.load %arg5[%c0_2, %c0_3, %c0_4] : memref<1x1024x64xbf16, #tpu.memory_space<vmem>>, vector<1x1024x64xbf16>
    %11 = vector.shape_cast %10 : vector<1x1024x64xbf16> to vector<1024x64xbf16>
    %cst = arith.constant dense<0.000000e+00> : vector<8x64xf32>
    %12 = tpu.matmul %9, %11, %cst {dimension_numbers = #tpu.dot_dimension_numbers<[1], [0], [0], [1], [0, 0, 1, 1], [], []>} : vector<8x1024xbf16>, vector<1024x64xbf16>, vector<8x64xf32> -> vector<8x64xf32>
    %c0_5 = arith.constant 0 : index
    %c0_6 = arith.constant 0 : index
    %c0_7 = arith.constant 0 : index
    %13 = vector.load %arg6[%c0_5, %c0_6, %c0_7] : memref<1x1x64xf32, #tpu.memory_space<vmem>>, vector<1x1x64xf32>
    %14 = vector.shape_cast %13 : vector<1x1x64xf32> to vector<1x64xf32>
    %15 = vector.broadcast %14 : vector<1x64xf32> to vector<8x64xf32>
    %16 = arith.addf %12, %15 : vector<8x64xf32>
    %cst_8 = arith.constant 0.000000e+00 : f32
    %17 = vector.broadcast %cst_8 : f32 to vector<8x64xf32>
    %18 = arith.maximumf %16, %17 : vector<8x64xf32>
    %19 = math.tanh %16 : vector<8x64xf32>
    %20 = arith.negf %16 : vector<8x64xf32>
    %21 = math.exp %20 : vector<8x64xf32>
    %cst_9 = arith.constant 1.000000e+00 : f32
    %22 = vector.broadcast %cst_9 : f32 to vector<8x64xf32>
    %23 = arith.addf %22, %21 : vector<8x64xf32>
    %24 = arith.divf %22, %23 : vector<8x64xf32>
    %c0_i32_10 = arith.constant 0 : i32
    %25 = arith.cmpi eq, %6, %c0_i32_10 : i32
    %c1_i32 = arith.constant 1 : i32
    %26 = arith.cmpi eq, %6, %c1_i32 : i32
    %27 = arith.select %26, %19, %24 : vector<8x64xf32>
    %28 = arith.select %25, %18, %27 : vector<8x64xf32>
    %29 = arith.truncf %28 : vector<8x64xf32> to vector<8x64xbf16>
    %c0_11 = arith.constant 0 : index
    %c0_12 = arith.constant 0 : index
    %c0_13 = arith.constant 0 : index
    %30 = vector.load %arg7[%c0_11, %c0_12, %c0_13] : memref<1x64x64xbf16, #tpu.memory_space<vmem>>, vector<1x64x64xbf16>
    %31 = vector.shape_cast %30 : vector<1x64x64xbf16> to vector<64x64xbf16>
    %cst_14 = arith.constant dense<0.000000e+00> : vector<8x64xf32>
    %32 = tpu.matmul %29, %31, %cst_14 {dimension_numbers = #tpu.dot_dimension_numbers<[1], [0], [0], [1], [0, 0, 1, 1], [], []>} : vector<8x64xbf16>, vector<64x64xbf16>, vector<8x64xf32> -> vector<8x64xf32>
    %c0_15 = arith.constant 0 : index
    %c0_16 = arith.constant 0 : index
    %c0_17 = arith.constant 0 : index
    %33 = vector.load %arg8[%c0_15, %c0_16, %c0_17] : memref<1x1x64xf32, #tpu.memory_space<vmem>>, vector<1x1x64xf32>
    %34 = vector.shape_cast %33 : vector<1x1x64xf32> to vector<1x64xf32>
    %35 = vector.broadcast %34 : vector<1x64xf32> to vector<8x64xf32>
    %36 = arith.addf %32, %35 : vector<8x64xf32>
    %cst_18 = arith.constant 0.000000e+00 : f32
    %37 = vector.broadcast %cst_18 : f32 to vector<8x64xf32>
    %38 = arith.maximumf %36, %37 : vector<8x64xf32>
    %39 = math.tanh %36 : vector<8x64xf32>
    %40 = arith.negf %36 : vector<8x64xf32>
    %41 = math.exp %40 : vector<8x64xf32>
    %cst_19 = arith.constant 1.000000e+00 : f32
    %42 = vector.broadcast %cst_19 : f32 to vector<8x64xf32>
    %43 = arith.addf %42, %41 : vector<8x64xf32>
    %44 = arith.divf %42, %43 : vector<8x64xf32>
    %c0_i32_20 = arith.constant 0 : i32
    %45 = arith.cmpi eq, %6, %c0_i32_20 : i32
    %c1_i32_21 = arith.constant 1 : i32
    %46 = arith.cmpi eq, %6, %c1_i32_21 : i32
    %47 = arith.select %46, %39, %44 : vector<8x64xf32>
    %48 = arith.select %45, %38, %47 : vector<8x64xf32>
    %c3_i32 = arith.constant 3 : i32
    %49 = arith.cmpi sge, %8, %c3_i32 : i32
    %50 = arith.select %49, %48, %28 : vector<8x64xf32>
    %51 = arith.truncf %50 : vector<8x64xf32> to vector<8x64xbf16>
    %c0_22 = arith.constant 0 : index
    %c0_23 = arith.constant 0 : index
    %c0_24 = arith.constant 0 : index
    %52 = vector.load %arg9[%c0_22, %c0_23, %c0_24] : memref<1x64x64xbf16, #tpu.memory_space<vmem>>, vector<1x64x64xbf16>
    %53 = vector.shape_cast %52 : vector<1x64x64xbf16> to vector<64x64xbf16>
    %cst_25 = arith.constant dense<0.000000e+00> : vector<8x64xf32>
    %54 = tpu.matmul %51, %53, %cst_25 {dimension_numbers = #tpu.dot_dimension_numbers<[1], [0], [0], [1], [0, 0, 1, 1], [], []>} : vector<8x64xbf16>, vector<64x64xbf16>, vector<8x64xf32> -> vector<8x64xf32>
    %c0_26 = arith.constant 0 : index
    %c0_27 = arith.constant 0 : index
    %c0_28 = arith.constant 0 : index
    %55 = vector.load %arg10[%c0_26, %c0_27, %c0_28] : memref<1x1x64xf32, #tpu.memory_space<vmem>>, vector<1x1x64xf32>
    %56 = vector.shape_cast %55 : vector<1x1x64xf32> to vector<1x64xf32>
    %57 = vector.broadcast %56 : vector<1x64xf32> to vector<8x64xf32>
    %58 = arith.addf %54, %57 : vector<8x64xf32>
    %cst_29 = arith.constant 0.000000e+00 : f32
    %59 = vector.broadcast %cst_29 : f32 to vector<8x64xf32>
    %60 = arith.maximumf %58, %59 : vector<8x64xf32>
    %61 = math.tanh %58 : vector<8x64xf32>
    %62 = arith.negf %58 : vector<8x64xf32>
    %63 = math.exp %62 : vector<8x64xf32>
    %cst_30 = arith.constant 1.000000e+00 : f32
    %64 = vector.broadcast %cst_30 : f32 to vector<8x64xf32>
    %65 = arith.addf %64, %63 : vector<8x64xf32>
    %66 = arith.divf %64, %65 : vector<8x64xf32>
    %c0_i32_31 = arith.constant 0 : i32
    %67 = arith.cmpi eq, %6, %c0_i32_31 : i32
    %c1_i32_32 = arith.constant 1 : i32
    %68 = arith.cmpi eq, %6, %c1_i32_32 : i32
    %69 = arith.select %68, %61, %66 : vector<8x64xf32>
    %70 = arith.select %67, %60, %69 : vector<8x64xf32>
    %c4_i32 = arith.constant 4 : i32
    %71 = arith.cmpi sge, %8, %c4_i32 : i32
    %72 = arith.select %71, %70, %50 : vector<8x64xf32>
    %73 = arith.truncf %72 : vector<8x64xf32> to vector<8x64xbf16>
    %c0_33 = arith.constant 0 : index
    %c0_34 = arith.constant 0 : index
    %c0_35 = arith.constant 0 : index
    %74 = vector.load %arg11[%c0_33, %c0_34, %c0_35] : memref<1x64x128xbf16, #tpu.memory_space<vmem>>, vector<1x64x128xbf16>
    %75 = vector.shape_cast %74 : vector<1x64x128xbf16> to vector<64x128xbf16>
    %cst_36 = arith.constant dense<0.000000e+00> : vector<8x128xf32>
    %76 = tpu.matmul %73, %75, %cst_36 {dimension_numbers = #tpu.dot_dimension_numbers<[1], [0], [0], [1], [0, 0, 1, 1], [], []>} : vector<8x64xbf16>, vector<64x128xbf16>, vector<8x128xf32> -> vector<8x128xf32>
    %c0_37 = arith.constant 0 : index
    %c0_38 = arith.constant 0 : index
    %c0_39 = arith.constant 0 : index
    %77 = vector.load %arg12[%c0_37, %c0_38, %c0_39] : memref<1x1x128xf32, #tpu.memory_space<vmem>>, vector<1x1x128xf32>
    %78 = vector.shape_cast %77 : vector<1x1x128xf32> to vector<1x128xf32>
    %79 = vector.broadcast %78 : vector<1x128xf32> to vector<8x128xf32>
    %80 = arith.addf %76, %79 : vector<8x128xf32>
    %c0_40 = arith.constant 0 : index
    %c0_41 = arith.constant 0 : index
    %81 = vector.load %arg13[%c0_40, %c0_41] : memref<8x128xf32, #tpu.memory_space<vmem>>, vector<8x128xf32>
    %82 = vector.broadcast %4 : f32 to vector<8x128xf32>
    %83 = arith.mulf %82, %80 : vector<8x128xf32>
    %84 = arith.addf %81, %83 : vector<8x128xf32>
    %c0_42 = arith.constant 0 : index
    %c0_43 = arith.constant 0 : index
    %85 = vector.load %arg13[%c0_42, %c0_43] : memref<8x128xf32, #tpu.memory_space<vmem>>, vector<8x128xf32>
    tpu.vector_store %arg13[%c0_42, %c0_43], %84 {strides = array<i32>} : memref<8x128xf32, #tpu.memory_space<vmem>>, vector<8x128xf32>,
    return
  }
  func.func @transform_0(%arg0: i32) -> i32 {
    %c0_i32 = arith.constant 0 : i32
    %c0_i32_0 = arith.constant 0 : i32
    return %c0_i32 : i32
  }
  func.func @transform_1(%arg0: i32) -> i32 {
    %c0_i32 = arith.constant 0 : i32
    %c0_i32_0 = arith.constant 0 : i32
    return %c0_i32 : i32
  }
  func.func @transform_2(%arg0: i32) -> i32 {
    %c0_i32 = arith.constant 0 : i32
    %c0_i32_0 = arith.constant 0 : i32
    return %c0_i32 : i32
  }
  func.func @transform_3(%arg0: i32) -> (i32, i32) {
    %c0_i32 = arith.constant 0 : i32
    %c0_i32_0 = arith.constant 0 : i32
    %c0_i32_1 = arith.constant 0 : i32
    return %c0_i32, %c0_i32_0 : i32, i32
  }
  func.func @transform_4(%arg0: i32) -> (i32, i32, i32) {
    %c0_i32 = arith.constant 0 : i32
    %c0_i32_0 = arith.constant 0 : i32
    %c0_i32_1 = arith.constant 0 : i32
    return %arg0, %c0_i32, %c0_i32_0 : i32, i32, i32
  }
  func.func @transform_5(%arg0: i32) -> (i32, i32, i32) {
    %c0_i32 = arith.constant 0 : i32
    %c0_i32_0 = arith.constant 0 : i32
    %c0_i32_1 = arith.constant 0 : i32
    return %arg0, %c0_i32, %c0_i32_0 : i32, i32, i32
  }
  func.func @transform_6(%arg0: i32) -> (i32, i32, i32) {
    %c0_i32 = arith.constant 0 : i32
    %c0_i32_0 = arith.constant 0 : i32
    %c0_i32_1 = arith.constant 0 : i32
    return %arg0, %c0_i32, %c0_i32_0 : i32, i32, i32
  }
  func.func @transform_7(%arg0: i32) -> (i32, i32, i32) {
    %c0_i32 = arith.constant 0 : i32
    %c0_i32_0 = arith.constant 0 : i32
    %c0_i32_1 = arith.constant 0 : i32
    return %arg0, %c0_i32, %c0_i32_0 : i32, i32, i32
  }
  func.func @transform_8(%arg0: i32) -> (i32, i32, i32) {
    %c0_i32 = arith.constant 0 : i32
    %c0_i32_0 = arith.constant 0 : i32
    %c0_i32_1 = arith.constant 0 : i32
    return %arg0, %c0_i32, %c0_i32_0 : i32, i32, i32
  }
  func.func @transform_9(%arg0: i32) -> (i32, i32, i32) {
    %c0_i32 = arith.constant 0 : i32
    %c0_i32_0 = arith.constant 0 : i32
    %c0_i32_1 = arith.constant 0 : i32
    return %arg0, %c0_i32, %c0_i32_0 : i32, i32, i32
  }
  func.func @transform_10(%arg0: i32) -> (i32, i32, i32) {
    %c0_i32 = arith.constant 0 : i32
    %c0_i32_0 = arith.constant 0 : i32
    %c0_i32_1 = arith.constant 0 : i32
    return %arg0, %c0_i32, %c0_i32_0 : i32, i32, i32
  }
  func.func @transform_11(%arg0: i32) -> (i32, i32, i32) {
    %c0_i32 = arith.constant 0 : i32
    %c0_i32_0 = arith.constant 0 : i32
    %c0_i32_1 = arith.constant 0 : i32
    return %arg0, %c0_i32, %c0_i32_0 : i32, i32, i32
  }
  func.func @transform_12(%arg0: i32) -> (i32, i32) {
    %c0_i32 = arith.constant 0 : i32
    %c0_i32_0 = arith.constant 0 : i32
    %c0_i32_1 = arith.constant 0 : i32
    return %c0_i32, %c0_i32_0 : i32, i32
  }
}

module attributes {stable_mosaic.version = 11 : i64} {
  func.func @_group_kernel(%arg0: i32, %arg1: memref<9xf32, #tpu.memory_space<smem>>, %arg2: memref<9xi32, #tpu.memory_space<smem>>, %arg3: memref<9xi32, #tpu.memory_space<smem>>, %arg4: memref<8x1024xbf16, #tpu.memory_space<vmem>>, %arg5: memref<1x1024x32xbf16, #tpu.memory_space<vmem>>, %arg6: memref<1x1x32xf32, #tpu.memory_space<vmem>>, %arg7: memref<1x32x32xbf16, #tpu.memory_space<vmem>>, %arg8: memref<1x1x32xf32, #tpu.memory_space<vmem>>, %arg9: memref<1x32x32xbf16, #tpu.memory_space<vmem>>, %arg10: memref<1x1x32xf32, #tpu.memory_space<vmem>>, %arg11: memref<1x32x128xbf16, #tpu.memory_space<vmem>>, %arg12: memref<1x1x128xf32, #tpu.memory_space<vmem>>, %arg13: memref<8x128xf32, #tpu.memory_space<vmem>>) attributes {dimension_semantics = [#tpu.dimension_semantics<arbitrary>], iteration_bounds = array<i64: 9>, scalar_prefetch = 0 : i64, scratch_operands = 0 : i64, tpu.core_type = #tpu.core_type<tc>, window_params = [{transform_indices = @transform_0, window_bounds = array<i64: 9>}, {transform_indices = @transform_1, window_bounds = array<i64: 9>}, {transform_indices = @transform_2, window_bounds = array<i64: 9>}, {pipeline_mode = #tpu.pipeline_mode<synchronous>, transform_indices = @transform_3, window_bounds = array<i64: 8, 1024>}, {transform_indices = @transform_4, window_bounds = array<i64: 1, 1024, 32>}, {transform_indices = @transform_5, window_bounds = array<i64: 1, 1, 32>}, {transform_indices = @transform_6, window_bounds = array<i64: 1, 32, 32>}, {transform_indices = @transform_7, window_bounds = array<i64: 1, 1, 32>}, {transform_indices = @transform_8, window_bounds = array<i64: 1, 32, 32>}, {transform_indices = @transform_9, window_bounds = array<i64: 1, 1, 32>}, {transform_indices = @transform_10, window_bounds = array<i64: 1, 32, 128>}, {transform_indices = @transform_11, window_bounds = array<i64: 1, 1, 128>}, {pipeline_mode = #tpu.pipeline_mode<synchronous>, transform_indices = @transform_12, window_bounds = array<i64: 8, 128>}]} {
    %c0_i32 = arith.constant 0 : i32
    %0 = arith.cmpi eq, %arg0, %c0_i32 : i32
    %1 = arith.extui %0 : i1 to i32
    %c0_i32_0 = arith.constant 0 : i32
    %2 = arith.cmpi ne, %1, %c0_i32_0 : i32
    scf.if %2 {
      %cst_44 = arith.constant 0.000000e+00 : f32
      %86 = vector.broadcast %cst_44 : f32 to vector<8x128xf32>
      %c0_45 = arith.constant 0 : index
      %c0_46 = arith.constant 0 : index
      %87 = vector.load %arg13[%c0_45, %c0_46] : memref<8x128xf32, #tpu.memory_space<vmem>>, vector<8x128xf32>
      tpu.vector_store %arg13[%c0_45, %c0_46], %86 {strides = array<i32>} : memref<8x128xf32, #tpu.memory_space<vmem>>, vector<8x128xf32>,
    } else {
    }
    %3 = arith.index_cast %arg0 : i32 to index
    %4 = memref.load %arg1[%3] : memref<9xf32, #tpu.memory_space<smem>>
    %5 = arith.index_cast %arg0 : i32 to index
    %6 = memref.load %arg2[%5] : memref<9xi32, #tpu.memory_space<smem>>
    %7 = arith.index_cast %arg0 : i32 to index
    %8 = memref.load %arg3[%7] : memref<9xi32, #tpu.memory_space<smem>>
    %c0 = arith.constant 0 : index
    %c0_1 = arith.constant 0 : index
    %9 = vector.load %arg4[%c0, %c0_1] : memref<8x1024xbf16, #tpu.memory_space<vmem>>, vector<8x1024xbf16>
    %c0_2 = arith.constant 0 : index
    %c0_3 = arith.constant 0 : index
    %c0_4 = arith.constant 0 : index
    %10 = vector.load %arg5[%c0_2, %c0_3, %c0_4] : memref<1x1024x32xbf16, #tpu.memory_space<vmem>>, vector<1x1024x32xbf16>
    %11 = vector.shape_cast %10 : vector<1x1024x32xbf16> to vector<1024x32xbf16>
    %cst = arith.constant dense<0.000000e+00> : vector<8x32xf32>
    %12 = tpu.matmul %9, %11, %cst {dimension_numbers = #tpu.dot_dimension_numbers<[1], [0], [0], [1], [0, 0, 1, 1], [], []>} : vector<8x1024xbf16>, vector<1024x32xbf16>, vector<8x32xf32> -> vector<8x32xf32>
    %c0_5 = arith.constant 0 : index
    %c0_6 = arith.constant 0 : index
    %c0_7 = arith.constant 0 : index
    %13 = vector.load %arg6[%c0_5, %c0_6, %c0_7] : memref<1x1x32xf32, #tpu.memory_space<vmem>>, vector<1x1x32xf32>
    %14 = vector.shape_cast %13 : vector<1x1x32xf32> to vector<1x32xf32>
    %15 = vector.broadcast %14 : vector<1x32xf32> to vector<8x32xf32>
    %16 = arith.addf %12, %15 : vector<8x32xf32>
    %cst_8 = arith.constant 0.000000e+00 : f32
    %17 = vector.broadcast %cst_8 : f32 to vector<8x32xf32>
    %18 = arith.maximumf %16, %17 : vector<8x32xf32>
    %19 = math.tanh %16 : vector<8x32xf32>
    %20 = arith.negf %16 : vector<8x32xf32>
    %21 = math.exp %20 : vector<8x32xf32>
    %cst_9 = arith.constant 1.000000e+00 : f32
    %22 = vector.broadcast %cst_9 : f32 to vector<8x32xf32>
    %23 = arith.addf %22, %21 : vector<8x32xf32>
    %24 = arith.divf %22, %23 : vector<8x32xf32>
    %c0_i32_10 = arith.constant 0 : i32
    %25 = arith.cmpi eq, %6, %c0_i32_10 : i32
    %c1_i32 = arith.constant 1 : i32
    %26 = arith.cmpi eq, %6, %c1_i32 : i32
    %27 = arith.select %26, %19, %24 : vector<8x32xf32>
    %28 = arith.select %25, %18, %27 : vector<8x32xf32>
    %29 = arith.truncf %28 : vector<8x32xf32> to vector<8x32xbf16>
    %c0_11 = arith.constant 0 : index
    %c0_12 = arith.constant 0 : index
    %c0_13 = arith.constant 0 : index
    %30 = vector.load %arg7[%c0_11, %c0_12, %c0_13] : memref<1x32x32xbf16, #tpu.memory_space<vmem>>, vector<1x32x32xbf16>
    %31 = vector.shape_cast %30 : vector<1x32x32xbf16> to vector<32x32xbf16>
    %cst_14 = arith.constant dense<0.000000e+00> : vector<8x32xf32>
    %32 = tpu.matmul %29, %31, %cst_14 {dimension_numbers = #tpu.dot_dimension_numbers<[1], [0], [0], [1], [0, 0, 1, 1], [], []>} : vector<8x32xbf16>, vector<32x32xbf16>, vector<8x32xf32> -> vector<8x32xf32>
    %c0_15 = arith.constant 0 : index
    %c0_16 = arith.constant 0 : index
    %c0_17 = arith.constant 0 : index
    %33 = vector.load %arg8[%c0_15, %c0_16, %c0_17] : memref<1x1x32xf32, #tpu.memory_space<vmem>>, vector<1x1x32xf32>
    %34 = vector.shape_cast %33 : vector<1x1x32xf32> to vector<1x32xf32>
    %35 = vector.broadcast %34 : vector<1x32xf32> to vector<8x32xf32>
    %36 = arith.addf %32, %35 : vector<8x32xf32>
    %cst_18 = arith.constant 0.000000e+00 : f32
    %37 = vector.broadcast %cst_18 : f32 to vector<8x32xf32>
    %38 = arith.maximumf %36, %37 : vector<8x32xf32>
    %39 = math.tanh %36 : vector<8x32xf32>
    %40 = arith.negf %36 : vector<8x32xf32>
    %41 = math.exp %40 : vector<8x32xf32>
    %cst_19 = arith.constant 1.000000e+00 : f32
    %42 = vector.broadcast %cst_19 : f32 to vector<8x32xf32>
    %43 = arith.addf %42, %41 : vector<8x32xf32>
    %44 = arith.divf %42, %43 : vector<8x32xf32>
    %c0_i32_20 = arith.constant 0 : i32
    %45 = arith.cmpi eq, %6, %c0_i32_20 : i32
    %c1_i32_21 = arith.constant 1 : i32
    %46 = arith.cmpi eq, %6, %c1_i32_21 : i32
    %47 = arith.select %46, %39, %44 : vector<8x32xf32>
    %48 = arith.select %45, %38, %47 : vector<8x32xf32>
    %c3_i32 = arith.constant 3 : i32
    %49 = arith.cmpi sge, %8, %c3_i32 : i32
    %50 = arith.select %49, %48, %28 : vector<8x32xf32>
    %51 = arith.truncf %50 : vector<8x32xf32> to vector<8x32xbf16>
    %c0_22 = arith.constant 0 : index
    %c0_23 = arith.constant 0 : index
    %c0_24 = arith.constant 0 : index
    %52 = vector.load %arg9[%c0_22, %c0_23, %c0_24] : memref<1x32x32xbf16, #tpu.memory_space<vmem>>, vector<1x32x32xbf16>
    %53 = vector.shape_cast %52 : vector<1x32x32xbf16> to vector<32x32xbf16>
    %cst_25 = arith.constant dense<0.000000e+00> : vector<8x32xf32>
    %54 = tpu.matmul %51, %53, %cst_25 {dimension_numbers = #tpu.dot_dimension_numbers<[1], [0], [0], [1], [0, 0, 1, 1], [], []>} : vector<8x32xbf16>, vector<32x32xbf16>, vector<8x32xf32> -> vector<8x32xf32>
    %c0_26 = arith.constant 0 : index
    %c0_27 = arith.constant 0 : index
    %c0_28 = arith.constant 0 : index
    %55 = vector.load %arg10[%c0_26, %c0_27, %c0_28] : memref<1x1x32xf32, #tpu.memory_space<vmem>>, vector<1x1x32xf32>
    %56 = vector.shape_cast %55 : vector<1x1x32xf32> to vector<1x32xf32>
    %57 = vector.broadcast %56 : vector<1x32xf32> to vector<8x32xf32>
    %58 = arith.addf %54, %57 : vector<8x32xf32>
    %cst_29 = arith.constant 0.000000e+00 : f32
    %59 = vector.broadcast %cst_29 : f32 to vector<8x32xf32>
    %60 = arith.maximumf %58, %59 : vector<8x32xf32>
    %61 = math.tanh %58 : vector<8x32xf32>
    %62 = arith.negf %58 : vector<8x32xf32>
    %63 = math.exp %62 : vector<8x32xf32>
    %cst_30 = arith.constant 1.000000e+00 : f32
    %64 = vector.broadcast %cst_30 : f32 to vector<8x32xf32>
    %65 = arith.addf %64, %63 : vector<8x32xf32>
    %66 = arith.divf %64, %65 : vector<8x32xf32>
    %c0_i32_31 = arith.constant 0 : i32
    %67 = arith.cmpi eq, %6, %c0_i32_31 : i32
    %c1_i32_32 = arith.constant 1 : i32
    %68 = arith.cmpi eq, %6, %c1_i32_32 : i32
    %69 = arith.select %68, %61, %66 : vector<8x32xf32>
    %70 = arith.select %67, %60, %69 : vector<8x32xf32>
    %c4_i32 = arith.constant 4 : i32
    %71 = arith.cmpi sge, %8, %c4_i32 : i32
    %72 = arith.select %71, %70, %50 : vector<8x32xf32>
    %73 = arith.truncf %72 : vector<8x32xf32> to vector<8x32xbf16>
    %c0_33 = arith.constant 0 : index
    %c0_34 = arith.constant 0 : index
    %c0_35 = arith.constant 0 : index
    %74 = vector.load %arg11[%c0_33, %c0_34, %c0_35] : memref<1x32x128xbf16, #tpu.memory_space<vmem>>, vector<1x32x128xbf16>
    %75 = vector.shape_cast %74 : vector<1x32x128xbf16> to vector<32x128xbf16>
    %cst_36 = arith.constant dense<0.000000e+00> : vector<8x128xf32>
    %76 = tpu.matmul %73, %75, %cst_36 {dimension_numbers = #tpu.dot_dimension_numbers<[1], [0], [0], [1], [0, 0, 1, 1], [], []>} : vector<8x32xbf16>, vector<32x128xbf16>, vector<8x128xf32> -> vector<8x128xf32>
    %c0_37 = arith.constant 0 : index
    %c0_38 = arith.constant 0 : index
    %c0_39 = arith.constant 0 : index
    %77 = vector.load %arg12[%c0_37, %c0_38, %c0_39] : memref<1x1x128xf32, #tpu.memory_space<vmem>>, vector<1x1x128xf32>
    %78 = vector.shape_cast %77 : vector<1x1x128xf32> to vector<1x128xf32>
    %79 = vector.broadcast %78 : vector<1x128xf32> to vector<8x128xf32>
    %80 = arith.addf %76, %79 : vector<8x128xf32>
    %c0_40 = arith.constant 0 : index
    %c0_41 = arith.constant 0 : index
    %81 = vector.load %arg13[%c0_40, %c0_41] : memref<8x128xf32, #tpu.memory_space<vmem>>, vector<8x128xf32>
    %82 = vector.broadcast %4 : f32 to vector<8x128xf32>
    %83 = arith.mulf %82, %80 : vector<8x128xf32>
    %84 = arith.addf %81, %83 : vector<8x128xf32>
    %c0_42 = arith.constant 0 : index
    %c0_43 = arith.constant 0 : index
    %85 = vector.load %arg13[%c0_42, %c0_43] : memref<8x128xf32, #tpu.memory_space<vmem>>, vector<8x128xf32>
    tpu.vector_store %arg13[%c0_42, %c0_43], %84 {strides = array<i32>} : memref<8x128xf32, #tpu.memory_space<vmem>>, vector<8x128xf32>,
    return
  }
  func.func @transform_0(%arg0: i32) -> i32 {
    %c0_i32 = arith.constant 0 : i32
    %c0_i32_0 = arith.constant 0 : i32
    return %c0_i32 : i32
  }
  func.func @transform_1(%arg0: i32) -> i32 {
    %c0_i32 = arith.constant 0 : i32
    %c0_i32_0 = arith.constant 0 : i32
    return %c0_i32 : i32
  }
  func.func @transform_2(%arg0: i32) -> i32 {
    %c0_i32 = arith.constant 0 : i32
    %c0_i32_0 = arith.constant 0 : i32
    return %c0_i32 : i32
  }
  func.func @transform_3(%arg0: i32) -> (i32, i32) {
    %c0_i32 = arith.constant 0 : i32
    %c0_i32_0 = arith.constant 0 : i32
    %c0_i32_1 = arith.constant 0 : i32
    return %c0_i32, %c0_i32_0 : i32, i32
  }
  func.func @transform_4(%arg0: i32) -> (i32, i32, i32) {
    %c0_i32 = arith.constant 0 : i32
    %c0_i32_0 = arith.constant 0 : i32
    %c0_i32_1 = arith.constant 0 : i32
    return %arg0, %c0_i32, %c0_i32_0 : i32, i32, i32
  }
  func.func @transform_5(%arg0: i32) -> (i32, i32, i32) {
    %c0_i32 = arith.constant 0 : i32
    %c0_i32_0 = arith.constant 0 : i32
    %c0_i32_1 = arith.constant 0 : i32
    return %arg0, %c0_i32, %c0_i32_0 : i32, i32, i32
  }
  func.func @transform_6(%arg0: i32) -> (i32, i32, i32) {
    %c0_i32 = arith.constant 0 : i32
    %c0_i32_0 = arith.constant 0 : i32
    %c0_i32_1 = arith.constant 0 : i32
    return %arg0, %c0_i32, %c0_i32_0 : i32, i32, i32
  }
  func.func @transform_7(%arg0: i32) -> (i32, i32, i32) {
    %c0_i32 = arith.constant 0 : i32
    %c0_i32_0 = arith.constant 0 : i32
    %c0_i32_1 = arith.constant 0 : i32
    return %arg0, %c0_i32, %c0_i32_0 : i32, i32, i32
  }
  func.func @transform_8(%arg0: i32) -> (i32, i32, i32) {
    %c0_i32 = arith.constant 0 : i32
    %c0_i32_0 = arith.constant 0 : i32
    %c0_i32_1 = arith.constant 0 : i32
    return %arg0, %c0_i32, %c0_i32_0 : i32, i32, i32
  }
  func.func @transform_9(%arg0: i32) -> (i32, i32, i32) {
    %c0_i32 = arith.constant 0 : i32
    %c0_i32_0 = arith.constant 0 : i32
    %c0_i32_1 = arith.constant 0 : i32
    return %arg0, %c0_i32, %c0_i32_0 : i32, i32, i32
  }
  func.func @transform_10(%arg0: i32) -> (i32, i32, i32) {
    %c0_i32 = arith.constant 0 : i32
    %c0_i32_0 = arith.constant 0 : i32
    %c0_i32_1 = arith.constant 0 : i32
    return %arg0, %c0_i32, %c0_i32_0 : i32, i32, i32
  }
  func.func @transform_11(%arg0: i32) -> (i32, i32, i32) {
    %c0_i32 = arith.constant 0 : i32
    %c0_i32_0 = arith.constant 0 : i32
    %c0_i32_1 = arith.constant 0 : i32
    return %arg0, %c0_i32, %c0_i32_0 : i32, i32, i32
  }
  func.func @transform_12(%arg0: i32) -> (i32, i32) {
    %c0_i32 = arith.constant 0 : i32
    %c0_i32_0 = arith.constant 0 : i32
    %c0_i32_1 = arith.constant 0 : i32
    return %c0_i32, %c0_i32_0 : i32, i32
  }
}

module attributes {stable_mosaic.version = 11 : i64} {
  func.func @_group_kernel(%arg0: i32, %arg1: memref<9xf32, #tpu.memory_space<smem>>, %arg2: memref<9xi32, #tpu.memory_space<smem>>, %arg3: memref<9xi32, #tpu.memory_space<smem>>, %arg4: memref<8x1024xbf16, #tpu.memory_space<vmem>>, %arg5: memref<1x1024x256xbf16, #tpu.memory_space<vmem>>, %arg6: memref<1x1x256xf32, #tpu.memory_space<vmem>>, %arg7: memref<1x256x256xbf16, #tpu.memory_space<vmem>>, %arg8: memref<1x1x256xf32, #tpu.memory_space<vmem>>, %arg9: memref<1x256x256xbf16, #tpu.memory_space<vmem>>, %arg10: memref<1x1x256xf32, #tpu.memory_space<vmem>>, %arg11: memref<1x256x128xbf16, #tpu.memory_space<vmem>>, %arg12: memref<1x1x128xf32, #tpu.memory_space<vmem>>, %arg13: memref<8x128xf32, #tpu.memory_space<vmem>>) attributes {dimension_semantics = [#tpu.dimension_semantics<arbitrary>], iteration_bounds = array<i64: 9>, scalar_prefetch = 0 : i64, scratch_operands = 0 : i64, tpu.core_type = #tpu.core_type<tc>, window_params = [{transform_indices = @transform_0, window_bounds = array<i64: 9>}, {transform_indices = @transform_1, window_bounds = array<i64: 9>}, {transform_indices = @transform_2, window_bounds = array<i64: 9>}, {pipeline_mode = #tpu.pipeline_mode<synchronous>, transform_indices = @transform_3, window_bounds = array<i64: 8, 1024>}, {transform_indices = @transform_4, window_bounds = array<i64: 1, 1024, 256>}, {transform_indices = @transform_5, window_bounds = array<i64: 1, 1, 256>}, {transform_indices = @transform_6, window_bounds = array<i64: 1, 256, 256>}, {transform_indices = @transform_7, window_bounds = array<i64: 1, 1, 256>}, {transform_indices = @transform_8, window_bounds = array<i64: 1, 256, 256>}, {transform_indices = @transform_9, window_bounds = array<i64: 1, 1, 256>}, {transform_indices = @transform_10, window_bounds = array<i64: 1, 256, 128>}, {transform_indices = @transform_11, window_bounds = array<i64: 1, 1, 128>}, {pipeline_mode = #tpu.pipeline_mode<synchronous>, transform_indices = @transform_12, window_bounds = array<i64: 8, 128>}]} {
    %c0_i32 = arith.constant 0 : i32
    %0 = arith.cmpi eq, %arg0, %c0_i32 : i32
    %1 = arith.extui %0 : i1 to i32
    %c0_i32_0 = arith.constant 0 : i32
    %2 = arith.cmpi ne, %1, %c0_i32_0 : i32
    scf.if %2 {
      %cst_44 = arith.constant 0.000000e+00 : f32
      %86 = vector.broadcast %cst_44 : f32 to vector<8x128xf32>
      %c0_45 = arith.constant 0 : index
      %c0_46 = arith.constant 0 : index
      %87 = vector.load %arg13[%c0_45, %c0_46] : memref<8x128xf32, #tpu.memory_space<vmem>>, vector<8x128xf32>
      tpu.vector_store %arg13[%c0_45, %c0_46], %86 {strides = array<i32>} : memref<8x128xf32, #tpu.memory_space<vmem>>, vector<8x128xf32>,
    } else {
    }
    %3 = arith.index_cast %arg0 : i32 to index
    %4 = memref.load %arg1[%3] : memref<9xf32, #tpu.memory_space<smem>>
    %5 = arith.index_cast %arg0 : i32 to index
    %6 = memref.load %arg2[%5] : memref<9xi32, #tpu.memory_space<smem>>
    %7 = arith.index_cast %arg0 : i32 to index
    %8 = memref.load %arg3[%7] : memref<9xi32, #tpu.memory_space<smem>>
    %c0 = arith.constant 0 : index
    %c0_1 = arith.constant 0 : index
    %9 = vector.load %arg4[%c0, %c0_1] : memref<8x1024xbf16, #tpu.memory_space<vmem>>, vector<8x1024xbf16>
    %c0_2 = arith.constant 0 : index
    %c0_3 = arith.constant 0 : index
    %c0_4 = arith.constant 0 : index
    %10 = vector.load %arg5[%c0_2, %c0_3, %c0_4] : memref<1x1024x256xbf16, #tpu.memory_space<vmem>>, vector<1x1024x256xbf16>
    %11 = vector.shape_cast %10 : vector<1x1024x256xbf16> to vector<1024x256xbf16>
    %cst = arith.constant dense<0.000000e+00> : vector<8x256xf32>
    %12 = tpu.matmul %9, %11, %cst {dimension_numbers = #tpu.dot_dimension_numbers<[1], [0], [0], [1], [0, 0, 1, 1], [], []>} : vector<8x1024xbf16>, vector<1024x256xbf16>, vector<8x256xf32> -> vector<8x256xf32>
    %c0_5 = arith.constant 0 : index
    %c0_6 = arith.constant 0 : index
    %c0_7 = arith.constant 0 : index
    %13 = vector.load %arg6[%c0_5, %c0_6, %c0_7] : memref<1x1x256xf32, #tpu.memory_space<vmem>>, vector<1x1x256xf32>
    %14 = vector.shape_cast %13 : vector<1x1x256xf32> to vector<1x256xf32>
    %15 = vector.broadcast %14 : vector<1x256xf32> to vector<8x256xf32>
    %16 = arith.addf %12, %15 : vector<8x256xf32>
    %cst_8 = arith.constant 0.000000e+00 : f32
    %17 = vector.broadcast %cst_8 : f32 to vector<8x256xf32>
    %18 = arith.maximumf %16, %17 : vector<8x256xf32>
    %19 = math.tanh %16 : vector<8x256xf32>
    %20 = arith.negf %16 : vector<8x256xf32>
    %21 = math.exp %20 : vector<8x256xf32>
    %cst_9 = arith.constant 1.000000e+00 : f32
    %22 = vector.broadcast %cst_9 : f32 to vector<8x256xf32>
    %23 = arith.addf %22, %21 : vector<8x256xf32>
    %24 = arith.divf %22, %23 : vector<8x256xf32>
    %c0_i32_10 = arith.constant 0 : i32
    %25 = arith.cmpi eq, %6, %c0_i32_10 : i32
    %c1_i32 = arith.constant 1 : i32
    %26 = arith.cmpi eq, %6, %c1_i32 : i32
    %27 = arith.select %26, %19, %24 : vector<8x256xf32>
    %28 = arith.select %25, %18, %27 : vector<8x256xf32>
    %29 = arith.truncf %28 : vector<8x256xf32> to vector<8x256xbf16>
    %c0_11 = arith.constant 0 : index
    %c0_12 = arith.constant 0 : index
    %c0_13 = arith.constant 0 : index
    %30 = vector.load %arg7[%c0_11, %c0_12, %c0_13] : memref<1x256x256xbf16, #tpu.memory_space<vmem>>, vector<1x256x256xbf16>
    %31 = vector.shape_cast %30 : vector<1x256x256xbf16> to vector<256x256xbf16>
    %cst_14 = arith.constant dense<0.000000e+00> : vector<8x256xf32>
    %32 = tpu.matmul %29, %31, %cst_14 {dimension_numbers = #tpu.dot_dimension_numbers<[1], [0], [0], [1], [0, 0, 1, 1], [], []>} : vector<8x256xbf16>, vector<256x256xbf16>, vector<8x256xf32> -> vector<8x256xf32>
    %c0_15 = arith.constant 0 : index
    %c0_16 = arith.constant 0 : index
    %c0_17 = arith.constant 0 : index
    %33 = vector.load %arg8[%c0_15, %c0_16, %c0_17] : memref<1x1x256xf32, #tpu.memory_space<vmem>>, vector<1x1x256xf32>
    %34 = vector.shape_cast %33 : vector<1x1x256xf32> to vector<1x256xf32>
    %35 = vector.broadcast %34 : vector<1x256xf32> to vector<8x256xf32>
    %36 = arith.addf %32, %35 : vector<8x256xf32>
    %cst_18 = arith.constant 0.000000e+00 : f32
    %37 = vector.broadcast %cst_18 : f32 to vector<8x256xf32>
    %38 = arith.maximumf %36, %37 : vector<8x256xf32>
    %39 = math.tanh %36 : vector<8x256xf32>
    %40 = arith.negf %36 : vector<8x256xf32>
    %41 = math.exp %40 : vector<8x256xf32>
    %cst_19 = arith.constant 1.000000e+00 : f32
    %42 = vector.broadcast %cst_19 : f32 to vector<8x256xf32>
    %43 = arith.addf %42, %41 : vector<8x256xf32>
    %44 = arith.divf %42, %43 : vector<8x256xf32>
    %c0_i32_20 = arith.constant 0 : i32
    %45 = arith.cmpi eq, %6, %c0_i32_20 : i32
    %c1_i32_21 = arith.constant 1 : i32
    %46 = arith.cmpi eq, %6, %c1_i32_21 : i32
    %47 = arith.select %46, %39, %44 : vector<8x256xf32>
    %48 = arith.select %45, %38, %47 : vector<8x256xf32>
    %c3_i32 = arith.constant 3 : i32
    %49 = arith.cmpi sge, %8, %c3_i32 : i32
    %50 = arith.select %49, %48, %28 : vector<8x256xf32>
    %51 = arith.truncf %50 : vector<8x256xf32> to vector<8x256xbf16>
    %c0_22 = arith.constant 0 : index
    %c0_23 = arith.constant 0 : index
    %c0_24 = arith.constant 0 : index
    %52 = vector.load %arg9[%c0_22, %c0_23, %c0_24] : memref<1x256x256xbf16, #tpu.memory_space<vmem>>, vector<1x256x256xbf16>
    %53 = vector.shape_cast %52 : vector<1x256x256xbf16> to vector<256x256xbf16>
    %cst_25 = arith.constant dense<0.000000e+00> : vector<8x256xf32>
    %54 = tpu.matmul %51, %53, %cst_25 {dimension_numbers = #tpu.dot_dimension_numbers<[1], [0], [0], [1], [0, 0, 1, 1], [], []>} : vector<8x256xbf16>, vector<256x256xbf16>, vector<8x256xf32> -> vector<8x256xf32>
    %c0_26 = arith.constant 0 : index
    %c0_27 = arith.constant 0 : index
    %c0_28 = arith.constant 0 : index
    %55 = vector.load %arg10[%c0_26, %c0_27, %c0_28] : memref<1x1x256xf32, #tpu.memory_space<vmem>>, vector<1x1x256xf32>
    %56 = vector.shape_cast %55 : vector<1x1x256xf32> to vector<1x256xf32>
    %57 = vector.broadcast %56 : vector<1x256xf32> to vector<8x256xf32>
    %58 = arith.addf %54, %57 : vector<8x256xf32>
    %cst_29 = arith.constant 0.000000e+00 : f32
    %59 = vector.broadcast %cst_29 : f32 to vector<8x256xf32>
    %60 = arith.maximumf %58, %59 : vector<8x256xf32>
    %61 = math.tanh %58 : vector<8x256xf32>
    %62 = arith.negf %58 : vector<8x256xf32>
    %63 = math.exp %62 : vector<8x256xf32>
    %cst_30 = arith.constant 1.000000e+00 : f32
    %64 = vector.broadcast %cst_30 : f32 to vector<8x256xf32>
    %65 = arith.addf %64, %63 : vector<8x256xf32>
    %66 = arith.divf %64, %65 : vector<8x256xf32>
    %c0_i32_31 = arith.constant 0 : i32
    %67 = arith.cmpi eq, %6, %c0_i32_31 : i32
    %c1_i32_32 = arith.constant 1 : i32
    %68 = arith.cmpi eq, %6, %c1_i32_32 : i32
    %69 = arith.select %68, %61, %66 : vector<8x256xf32>
    %70 = arith.select %67, %60, %69 : vector<8x256xf32>
    %c4_i32 = arith.constant 4 : i32
    %71 = arith.cmpi sge, %8, %c4_i32 : i32
    %72 = arith.select %71, %70, %50 : vector<8x256xf32>
    %73 = arith.truncf %72 : vector<8x256xf32> to vector<8x256xbf16>
    %c0_33 = arith.constant 0 : index
    %c0_34 = arith.constant 0 : index
    %c0_35 = arith.constant 0 : index
    %74 = vector.load %arg11[%c0_33, %c0_34, %c0_35] : memref<1x256x128xbf16, #tpu.memory_space<vmem>>, vector<1x256x128xbf16>
    %75 = vector.shape_cast %74 : vector<1x256x128xbf16> to vector<256x128xbf16>
    %cst_36 = arith.constant dense<0.000000e+00> : vector<8x128xf32>
    %76 = tpu.matmul %73, %75, %cst_36 {dimension_numbers = #tpu.dot_dimension_numbers<[1], [0], [0], [1], [0, 0, 1, 1], [], []>} : vector<8x256xbf16>, vector<256x128xbf16>, vector<8x128xf32> -> vector<8x128xf32>
    %c0_37 = arith.constant 0 : index
    %c0_38 = arith.constant 0 : index
    %c0_39 = arith.constant 0 : index
    %77 = vector.load %arg12[%c0_37, %c0_38, %c0_39] : memref<1x1x128xf32, #tpu.memory_space<vmem>>, vector<1x1x128xf32>
    %78 = vector.shape_cast %77 : vector<1x1x128xf32> to vector<1x128xf32>
    %79 = vector.broadcast %78 : vector<1x128xf32> to vector<8x128xf32>
    %80 = arith.addf %76, %79 : vector<8x128xf32>
    %c0_40 = arith.constant 0 : index
    %c0_41 = arith.constant 0 : index
    %81 = vector.load %arg13[%c0_40, %c0_41] : memref<8x128xf32, #tpu.memory_space<vmem>>, vector<8x128xf32>
    %82 = vector.broadcast %4 : f32 to vector<8x128xf32>
    %83 = arith.mulf %82, %80 : vector<8x128xf32>
    %84 = arith.addf %81, %83 : vector<8x128xf32>
    %c0_42 = arith.constant 0 : index
    %c0_43 = arith.constant 0 : index
    %85 = vector.load %arg13[%c0_42, %c0_43] : memref<8x128xf32, #tpu.memory_space<vmem>>, vector<8x128xf32>
    tpu.vector_store %arg13[%c0_42, %c0_43], %84 {strides = array<i32>} : memref<8x128xf32, #tpu.memory_space<vmem>>, vector<8x128xf32>,
    return
  }
  func.func @transform_0(%arg0: i32) -> i32 {
    %c0_i32 = arith.constant 0 : i32
    %c0_i32_0 = arith.constant 0 : i32
    return %c0_i32 : i32
  }
  func.func @transform_1(%arg0: i32) -> i32 {
    %c0_i32 = arith.constant 0 : i32
    %c0_i32_0 = arith.constant 0 : i32
    return %c0_i32 : i32
  }
  func.func @transform_2(%arg0: i32) -> i32 {
    %c0_i32 = arith.constant 0 : i32
    %c0_i32_0 = arith.constant 0 : i32
    return %c0_i32 : i32
  }
  func.func @transform_3(%arg0: i32) -> (i32, i32) {
    %c0_i32 = arith.constant 0 : i32
    %c0_i32_0 = arith.constant 0 : i32
    %c0_i32_1 = arith.constant 0 : i32
    return %c0_i32, %c0_i32_0 : i32, i32
  }
  func.func @transform_4(%arg0: i32) -> (i32, i32, i32) {
    %c0_i32 = arith.constant 0 : i32
    %c0_i32_0 = arith.constant 0 : i32
    %c0_i32_1 = arith.constant 0 : i32
    return %arg0, %c0_i32, %c0_i32_0 : i32, i32, i32
  }
  func.func @transform_5(%arg0: i32) -> (i32, i32, i32) {
    %c0_i32 = arith.constant 0 : i32
    %c0_i32_0 = arith.constant 0 : i32
    %c0_i32_1 = arith.constant 0 : i32
    return %arg0, %c0_i32, %c0_i32_0 : i32, i32, i32
  }
  func.func @transform_6(%arg0: i32) -> (i32, i32, i32) {
    %c0_i32 = arith.constant 0 : i32
    %c0_i32_0 = arith.constant 0 : i32
    %c0_i32_1 = arith.constant 0 : i32
    return %arg0, %c0_i32, %c0_i32_0 : i32, i32, i32
  }
  func.func @transform_7(%arg0: i32) -> (i32, i32, i32) {
    %c0_i32 = arith.constant 0 : i32
    %c0_i32_0 = arith.constant 0 : i32
    %c0_i32_1 = arith.constant 0 : i32
    return %arg0, %c0_i32, %c0_i32_0 : i32, i32, i32
  }
  func.func @transform_8(%arg0: i32) -> (i32, i32, i32) {
    %c0_i32 = arith.constant 0 : i32
    %c0_i32_0 = arith.constant 0 : i32
    %c0_i32_1 = arith.constant 0 : i32
    return %arg0, %c0_i32, %c0_i32_0 : i32, i32, i32
  }
  func.func @transform_9(%arg0: i32) -> (i32, i32, i32) {
    %c0_i32 = arith.constant 0 : i32
    %c0_i32_0 = arith.constant 0 : i32
    %c0_i32_1 = arith.constant 0 : i32
    return %arg0, %c0_i32, %c0_i32_0 : i32, i32, i32
  }
  func.func @transform_10(%arg0: i32) -> (i32, i32, i32) {
    %c0_i32 = arith.constant 0 : i32
    %c0_i32_0 = arith.constant 0 : i32
    %c0_i32_1 = arith.constant 0 : i32
    return %arg0, %c0_i32, %c0_i32_0 : i32, i32, i32
  }
  func.func @transform_11(%arg0: i32) -> (i32, i32, i32) {
    %c0_i32 = arith.constant 0 : i32
    %c0_i32_0 = arith.constant 0 : i32
    %c0_i32_1 = arith.constant 0 : i32
    return %arg0, %c0_i32, %c0_i32_0 : i32, i32, i32
  }
  func.func @transform_12(%arg0: i32) -> (i32, i32) {
    %c0_i32 = arith.constant 0 : i32
    %c0_i32_0 = arith.constant 0 : i32
    %c0_i32_1 = arith.constant 0 : i32
    return %c0_i32, %c0_i32_0 : i32, i32
  }
}

module attributes {stable_mosaic.version = 11 : i64} {
  func.func @_group_kernel(%arg0: i32, %arg1: memref<9xf32, #tpu.memory_space<smem>>, %arg2: memref<9xi32, #tpu.memory_space<smem>>, %arg3: memref<9xi32, #tpu.memory_space<smem>>, %arg4: memref<8x1024xbf16, #tpu.memory_space<vmem>>, %arg5: memref<1x1024x128xbf16, #tpu.memory_space<vmem>>, %arg6: memref<1x1x128xf32, #tpu.memory_space<vmem>>, %arg7: memref<1x128x128xbf16, #tpu.memory_space<vmem>>, %arg8: memref<1x1x128xf32, #tpu.memory_space<vmem>>, %arg9: memref<1x128x128xbf16, #tpu.memory_space<vmem>>, %arg10: memref<1x1x128xf32, #tpu.memory_space<vmem>>, %arg11: memref<1x128x128xbf16, #tpu.memory_space<vmem>>, %arg12: memref<1x1x128xf32, #tpu.memory_space<vmem>>, %arg13: memref<8x128xf32, #tpu.memory_space<vmem>>) attributes {dimension_semantics = [#tpu.dimension_semantics<arbitrary>], iteration_bounds = array<i64: 9>, scalar_prefetch = 0 : i64, scratch_operands = 0 : i64, tpu.core_type = #tpu.core_type<tc>, window_params = [{transform_indices = @transform_0, window_bounds = array<i64: 9>}, {transform_indices = @transform_1, window_bounds = array<i64: 9>}, {transform_indices = @transform_2, window_bounds = array<i64: 9>}, {pipeline_mode = #tpu.pipeline_mode<synchronous>, transform_indices = @transform_3, window_bounds = array<i64: 8, 1024>}, {transform_indices = @transform_4, window_bounds = array<i64: 1, 1024, 128>}, {transform_indices = @transform_5, window_bounds = array<i64: 1, 1, 128>}, {transform_indices = @transform_6, window_bounds = array<i64: 1, 128, 128>}, {transform_indices = @transform_7, window_bounds = array<i64: 1, 1, 128>}, {transform_indices = @transform_8, window_bounds = array<i64: 1, 128, 128>}, {transform_indices = @transform_9, window_bounds = array<i64: 1, 1, 128>}, {transform_indices = @transform_10, window_bounds = array<i64: 1, 128, 128>}, {transform_indices = @transform_11, window_bounds = array<i64: 1, 1, 128>}, {pipeline_mode = #tpu.pipeline_mode<synchronous>, transform_indices = @transform_12, window_bounds = array<i64: 8, 128>}]} {
    %c0_i32 = arith.constant 0 : i32
    %0 = arith.cmpi eq, %arg0, %c0_i32 : i32
    %1 = arith.extui %0 : i1 to i32
    %c0_i32_0 = arith.constant 0 : i32
    %2 = arith.cmpi ne, %1, %c0_i32_0 : i32
    scf.if %2 {
      %cst_44 = arith.constant 0.000000e+00 : f32
      %86 = vector.broadcast %cst_44 : f32 to vector<8x128xf32>
      %c0_45 = arith.constant 0 : index
      %c0_46 = arith.constant 0 : index
      %87 = vector.load %arg13[%c0_45, %c0_46] : memref<8x128xf32, #tpu.memory_space<vmem>>, vector<8x128xf32>
      tpu.vector_store %arg13[%c0_45, %c0_46], %86 {strides = array<i32>} : memref<8x128xf32, #tpu.memory_space<vmem>>, vector<8x128xf32>,
    } else {
    }
    %3 = arith.index_cast %arg0 : i32 to index
    %4 = memref.load %arg1[%3] : memref<9xf32, #tpu.memory_space<smem>>
    %5 = arith.index_cast %arg0 : i32 to index
    %6 = memref.load %arg2[%5] : memref<9xi32, #tpu.memory_space<smem>>
    %7 = arith.index_cast %arg0 : i32 to index
    %8 = memref.load %arg3[%7] : memref<9xi32, #tpu.memory_space<smem>>
    %c0 = arith.constant 0 : index
    %c0_1 = arith.constant 0 : index
    %9 = vector.load %arg4[%c0, %c0_1] : memref<8x1024xbf16, #tpu.memory_space<vmem>>, vector<8x1024xbf16>
    %c0_2 = arith.constant 0 : index
    %c0_3 = arith.constant 0 : index
    %c0_4 = arith.constant 0 : index
    %10 = vector.load %arg5[%c0_2, %c0_3, %c0_4] : memref<1x1024x128xbf16, #tpu.memory_space<vmem>>, vector<1x1024x128xbf16>
    %11 = vector.shape_cast %10 : vector<1x1024x128xbf16> to vector<1024x128xbf16>
    %cst = arith.constant dense<0.000000e+00> : vector<8x128xf32>
    %12 = tpu.matmul %9, %11, %cst {dimension_numbers = #tpu.dot_dimension_numbers<[1], [0], [0], [1], [0, 0, 1, 1], [], []>} : vector<8x1024xbf16>, vector<1024x128xbf16>, vector<8x128xf32> -> vector<8x128xf32>
    %c0_5 = arith.constant 0 : index
    %c0_6 = arith.constant 0 : index
    %c0_7 = arith.constant 0 : index
    %13 = vector.load %arg6[%c0_5, %c0_6, %c0_7] : memref<1x1x128xf32, #tpu.memory_space<vmem>>, vector<1x1x128xf32>
    %14 = vector.shape_cast %13 : vector<1x1x128xf32> to vector<1x128xf32>
    %15 = vector.broadcast %14 : vector<1x128xf32> to vector<8x128xf32>
    %16 = arith.addf %12, %15 : vector<8x128xf32>
    %cst_8 = arith.constant 0.000000e+00 : f32
    %17 = vector.broadcast %cst_8 : f32 to vector<8x128xf32>
    %18 = arith.maximumf %16, %17 : vector<8x128xf32>
    %19 = math.tanh %16 : vector<8x128xf32>
    %20 = arith.negf %16 : vector<8x128xf32>
    %21 = math.exp %20 : vector<8x128xf32>
    %cst_9 = arith.constant 1.000000e+00 : f32
    %22 = vector.broadcast %cst_9 : f32 to vector<8x128xf32>
    %23 = arith.addf %22, %21 : vector<8x128xf32>
    %24 = arith.divf %22, %23 : vector<8x128xf32>
    %c0_i32_10 = arith.constant 0 : i32
    %25 = arith.cmpi eq, %6, %c0_i32_10 : i32
    %c1_i32 = arith.constant 1 : i32
    %26 = arith.cmpi eq, %6, %c1_i32 : i32
    %27 = arith.select %26, %19, %24 : vector<8x128xf32>
    %28 = arith.select %25, %18, %27 : vector<8x128xf32>
    %29 = arith.truncf %28 : vector<8x128xf32> to vector<8x128xbf16>
    %c0_11 = arith.constant 0 : index
    %c0_12 = arith.constant 0 : index
    %c0_13 = arith.constant 0 : index
    %30 = vector.load %arg7[%c0_11, %c0_12, %c0_13] : memref<1x128x128xbf16, #tpu.memory_space<vmem>>, vector<1x128x128xbf16>
    %31 = vector.shape_cast %30 : vector<1x128x128xbf16> to vector<128x128xbf16>
    %cst_14 = arith.constant dense<0.000000e+00> : vector<8x128xf32>
    %32 = tpu.matmul %29, %31, %cst_14 {dimension_numbers = #tpu.dot_dimension_numbers<[1], [0], [0], [1], [0, 0, 1, 1], [], []>} : vector<8x128xbf16>, vector<128x128xbf16>, vector<8x128xf32> -> vector<8x128xf32>
    %c0_15 = arith.constant 0 : index
    %c0_16 = arith.constant 0 : index
    %c0_17 = arith.constant 0 : index
    %33 = vector.load %arg8[%c0_15, %c0_16, %c0_17] : memref<1x1x128xf32, #tpu.memory_space<vmem>>, vector<1x1x128xf32>
    %34 = vector.shape_cast %33 : vector<1x1x128xf32> to vector<1x128xf32>
    %35 = vector.broadcast %34 : vector<1x128xf32> to vector<8x128xf32>
    %36 = arith.addf %32, %35 : vector<8x128xf32>
    %cst_18 = arith.constant 0.000000e+00 : f32
    %37 = vector.broadcast %cst_18 : f32 to vector<8x128xf32>
    %38 = arith.maximumf %36, %37 : vector<8x128xf32>
    %39 = math.tanh %36 : vector<8x128xf32>
    %40 = arith.negf %36 : vector<8x128xf32>
    %41 = math.exp %40 : vector<8x128xf32>
    %cst_19 = arith.constant 1.000000e+00 : f32
    %42 = vector.broadcast %cst_19 : f32 to vector<8x128xf32>
    %43 = arith.addf %42, %41 : vector<8x128xf32>
    %44 = arith.divf %42, %43 : vector<8x128xf32>
    %c0_i32_20 = arith.constant 0 : i32
    %45 = arith.cmpi eq, %6, %c0_i32_20 : i32
    %c1_i32_21 = arith.constant 1 : i32
    %46 = arith.cmpi eq, %6, %c1_i32_21 : i32
    %47 = arith.select %46, %39, %44 : vector<8x128xf32>
    %48 = arith.select %45, %38, %47 : vector<8x128xf32>
    %c3_i32 = arith.constant 3 : i32
    %49 = arith.cmpi sge, %8, %c3_i32 : i32
    %50 = arith.select %49, %48, %28 : vector<8x128xf32>
    %51 = arith.truncf %50 : vector<8x128xf32> to vector<8x128xbf16>
    %c0_22 = arith.constant 0 : index
    %c0_23 = arith.constant 0 : index
    %c0_24 = arith.constant 0 : index
    %52 = vector.load %arg9[%c0_22, %c0_23, %c0_24] : memref<1x128x128xbf16, #tpu.memory_space<vmem>>, vector<1x128x128xbf16>
    %53 = vector.shape_cast %52 : vector<1x128x128xbf16> to vector<128x128xbf16>
    %cst_25 = arith.constant dense<0.000000e+00> : vector<8x128xf32>
    %54 = tpu.matmul %51, %53, %cst_25 {dimension_numbers = #tpu.dot_dimension_numbers<[1], [0], [0], [1], [0, 0, 1, 1], [], []>} : vector<8x128xbf16>, vector<128x128xbf16>, vector<8x128xf32> -> vector<8x128xf32>
    %c0_26 = arith.constant 0 : index
    %c0_27 = arith.constant 0 : index
    %c0_28 = arith.constant 0 : index
    %55 = vector.load %arg10[%c0_26, %c0_27, %c0_28] : memref<1x1x128xf32, #tpu.memory_space<vmem>>, vector<1x1x128xf32>
    %56 = vector.shape_cast %55 : vector<1x1x128xf32> to vector<1x128xf32>
    %57 = vector.broadcast %56 : vector<1x128xf32> to vector<8x128xf32>
    %58 = arith.addf %54, %57 : vector<8x128xf32>
    %cst_29 = arith.constant 0.000000e+00 : f32
    %59 = vector.broadcast %cst_29 : f32 to vector<8x128xf32>
    %60 = arith.maximumf %58, %59 : vector<8x128xf32>
    %61 = math.tanh %58 : vector<8x128xf32>
    %62 = arith.negf %58 : vector<8x128xf32>
    %63 = math.exp %62 : vector<8x128xf32>
    %cst_30 = arith.constant 1.000000e+00 : f32
    %64 = vector.broadcast %cst_30 : f32 to vector<8x128xf32>
    %65 = arith.addf %64, %63 : vector<8x128xf32>
    %66 = arith.divf %64, %65 : vector<8x128xf32>
    %c0_i32_31 = arith.constant 0 : i32
    %67 = arith.cmpi eq, %6, %c0_i32_31 : i32
    %c1_i32_32 = arith.constant 1 : i32
    %68 = arith.cmpi eq, %6, %c1_i32_32 : i32
    %69 = arith.select %68, %61, %66 : vector<8x128xf32>
    %70 = arith.select %67, %60, %69 : vector<8x128xf32>
    %c4_i32 = arith.constant 4 : i32
    %71 = arith.cmpi sge, %8, %c4_i32 : i32
    %72 = arith.select %71, %70, %50 : vector<8x128xf32>
    %73 = arith.truncf %72 : vector<8x128xf32> to vector<8x128xbf16>
    %c0_33 = arith.constant 0 : index
    %c0_34 = arith.constant 0 : index
    %c0_35 = arith.constant 0 : index
    %74 = vector.load %arg11[%c0_33, %c0_34, %c0_35] : memref<1x128x128xbf16, #tpu.memory_space<vmem>>, vector<1x128x128xbf16>
    %75 = vector.shape_cast %74 : vector<1x128x128xbf16> to vector<128x128xbf16>
    %cst_36 = arith.constant dense<0.000000e+00> : vector<8x128xf32>
    %76 = tpu.matmul %73, %75, %cst_36 {dimension_numbers = #tpu.dot_dimension_numbers<[1], [0], [0], [1], [0, 0, 1, 1], [], []>} : vector<8x128xbf16>, vector<128x128xbf16>, vector<8x128xf32> -> vector<8x128xf32>
    %c0_37 = arith.constant 0 : index
    %c0_38 = arith.constant 0 : index
    %c0_39 = arith.constant 0 : index
    %77 = vector.load %arg12[%c0_37, %c0_38, %c0_39] : memref<1x1x128xf32, #tpu.memory_space<vmem>>, vector<1x1x128xf32>
    %78 = vector.shape_cast %77 : vector<1x1x128xf32> to vector<1x128xf32>
    %79 = vector.broadcast %78 : vector<1x128xf32> to vector<8x128xf32>
    %80 = arith.addf %76, %79 : vector<8x128xf32>
    %c0_40 = arith.constant 0 : index
    %c0_41 = arith.constant 0 : index
    %81 = vector.load %arg13[%c0_40, %c0_41] : memref<8x128xf32, #tpu.memory_space<vmem>>, vector<8x128xf32>
    %82 = vector.broadcast %4 : f32 to vector<8x128xf32>
    %83 = arith.mulf %82, %80 : vector<8x128xf32>
    %84 = arith.addf %81, %83 : vector<8x128xf32>
    %c0_42 = arith.constant 0 : index
    %c0_43 = arith.constant 0 : index
    %85 = vector.load %arg13[%c0_42, %c0_43] : memref<8x128xf32, #tpu.memory_space<vmem>>, vector<8x128xf32>
    tpu.vector_store %arg13[%c0_42, %c0_43], %84 {strides = array<i32>} : memref<8x128xf32, #tpu.memory_space<vmem>>, vector<8x128xf32>,
    return
  }
  func.func @transform_0(%arg0: i32) -> i32 {
    %c0_i32 = arith.constant 0 : i32
    %c0_i32_0 = arith.constant 0 : i32
    return %c0_i32 : i32
  }
  func.func @transform_1(%arg0: i32) -> i32 {
    %c0_i32 = arith.constant 0 : i32
    %c0_i32_0 = arith.constant 0 : i32
    return %c0_i32 : i32
  }
  func.func @transform_2(%arg0: i32) -> i32 {
    %c0_i32 = arith.constant 0 : i32
    %c0_i32_0 = arith.constant 0 : i32
    return %c0_i32 : i32
  }
  func.func @transform_3(%arg0: i32) -> (i32, i32) {
    %c0_i32 = arith.constant 0 : i32
    %c0_i32_0 = arith.constant 0 : i32
    %c0_i32_1 = arith.constant 0 : i32
    return %c0_i32, %c0_i32_0 : i32, i32
  }
  func.func @transform_4(%arg0: i32) -> (i32, i32, i32) {
    %c0_i32 = arith.constant 0 : i32
    %c0_i32_0 = arith.constant 0 : i32
    %c0_i32_1 = arith.constant 0 : i32
    return %arg0, %c0_i32, %c0_i32_0 : i32, i32, i32
  }
  func.func @transform_5(%arg0: i32) -> (i32, i32, i32) {
    %c0_i32 = arith.constant 0 : i32
    %c0_i32_0 = arith.constant 0 : i32
    %c0_i32_1 = arith.constant 0 : i32
    return %arg0, %c0_i32, %c0_i32_0 : i32, i32, i32
  }
  func.func @transform_6(%arg0: i32) -> (i32, i32, i32) {
    %c0_i32 = arith.constant 0 : i32
    %c0_i32_0 = arith.constant 0 : i32
    %c0_i32_1 = arith.constant 0 : i32
    return %arg0, %c0_i32, %c0_i32_0 : i32, i32, i32
  }
  func.func @transform_7(%arg0: i32) -> (i32, i32, i32) {
    %c0_i32 = arith.constant 0 : i32
    %c0_i32_0 = arith.constant 0 : i32
    %c0_i32_1 = arith.constant 0 : i32
    return %arg0, %c0_i32, %c0_i32_0 : i32, i32, i32
  }
  func.func @transform_8(%arg0: i32) -> (i32, i32, i32) {
    %c0_i32 = arith.constant 0 : i32
    %c0_i32_0 = arith.constant 0 : i32
    %c0_i32_1 = arith.constant 0 : i32
    return %arg0, %c0_i32, %c0_i32_0 : i32, i32, i32
  }
  func.func @transform_9(%arg0: i32) -> (i32, i32, i32) {
    %c0_i32 = arith.constant 0 : i32
    %c0_i32_0 = arith.constant 0 : i32
    %c0_i32_1 = arith.constant 0 : i32
    return %arg0, %c0_i32, %c0_i32_0 : i32, i32, i32
  }
  func.func @transform_10(%arg0: i32) -> (i32, i32, i32) {
    %c0_i32 = arith.constant 0 : i32
    %c0_i32_0 = arith.constant 0 : i32
    %c0_i32_1 = arith.constant 0 : i32
    return %arg0, %c0_i32, %c0_i32_0 : i32, i32, i32
  }
  func.func @transform_11(%arg0: i32) -> (i32, i32, i32) {
    %c0_i32 = arith.constant 0 : i32
    %c0_i32_0 = arith.constant 0 : i32
    %c0_i32_1 = arith.constant 0 : i32
    return %arg0, %c0_i32, %c0_i32_0 : i32, i32, i32
  }
  func.func @transform_12(%arg0: i32) -> (i32, i32) {
    %c0_i32 = arith.constant 0 : i32
    %c0_i32_0 = arith.constant 0 : i32
    %c0_i32_1 = arith.constant 0 : i32
    return %c0_i32, %c0_i32_0 : i32, i32
  }
}

module attributes {stable_mosaic.version = 11 : i64} {
  func.func @_linear_kernel(%arg0: memref<1xf32, #tpu.memory_space<smem>>, %arg1: memref<8x1024xbf16, #tpu.memory_space<vmem>>, %arg2: memref<1024x128xbf16, #tpu.memory_space<vmem>>, %arg3: memref<1x128xf32, #tpu.memory_space<vmem>>, %arg4: memref<8x128xf32, #tpu.memory_space<vmem>>) attributes {dimension_semantics = [], scalar_prefetch = 0 : i64, scratch_operands = 0 : i64, tpu.core_type = #tpu.core_type<tc>} {
    %c0 = arith.constant 0 : index
    %c0_0 = arith.constant 0 : index
    %0 = vector.load %arg1[%c0, %c0_0] : memref<8x1024xbf16, #tpu.memory_space<vmem>>, vector<8x1024xbf16>
    %c0_1 = arith.constant 0 : index
    %c0_2 = arith.constant 0 : index
    %1 = vector.load %arg2[%c0_1, %c0_2] : memref<1024x128xbf16, #tpu.memory_space<vmem>>, vector<1024x128xbf16>
    %cst = arith.constant dense<0.000000e+00> : vector<8x128xf32>
    %2 = tpu.matmul %0, %1, %cst {dimension_numbers = #tpu.dot_dimension_numbers<[1], [0], [0], [1], [0, 0, 1, 1], [], []>} : vector<8x1024xbf16>, vector<1024x128xbf16>, vector<8x128xf32> -> vector<8x128xf32>
    %c0_3 = arith.constant 0 : index
    %c0_4 = arith.constant 0 : index
    %3 = vector.load %arg3[%c0_3, %c0_4] : memref<1x128xf32, #tpu.memory_space<vmem>>, vector<1x128xf32>
    %4 = vector.broadcast %3 : vector<1x128xf32> to vector<8x128xf32>
    %5 = arith.addf %2, %4 : vector<8x128xf32>
    %c0_5 = arith.constant 0 : index
    %6 = memref.load %arg0[%c0_5] : memref<1xf32, #tpu.memory_space<smem>>
    %7 = vector.broadcast %6 : f32 to vector<8x128xf32>
    %8 = arith.mulf %7, %5 : vector<8x128xf32>
    %c0_6 = arith.constant 0 : index
    %c0_7 = arith.constant 0 : index
    %9 = vector.load %arg4[%c0_6, %c0_7] : memref<8x128xf32, #tpu.memory_space<vmem>>, vector<8x128xf32>
    tpu.vector_store %arg4[%c0_6, %c0_7], %8 {strides = array<i32>} : memref<8x128xf32, #tpu.memory_space<vmem>>, vector<8x128xf32>,
    return
  }
}

</mosaic_0001>

<bundles_post_ra>
// kernel: darts_forward.7
= control target key start
LH: loop header
LB: loop body
LE: loop exit
PB: predicated region body
PF: predicated region fallthrough
CT: control target
= control target key end

     0   :  { %s3060_s0 = inlined_call_operand.vmem [shape: f32[9], index: 0, kind: input, shape index: {}]   ;;  %s3061_s1 = inlined_call_operand.vmem [shape: s32[9], index: 1, kind: input, shape index: {}]   ;;  %s3062_s2 = inlined_call_operand.vmem [shape: s32[9], index: 2, kind: input, shape index: {}]   ;;  %s3063_s3 = inlined_call_operand.vmem [shape: bf16[8,1024], index: 3, kind: input, shape index: {}]   ;;  %s3064_s4 = inlined_call_operand.vmem [shape: bf16[9,1024,64], index: 4, kind: input, shape index: {}]   ;;  %s3065_s5 = inlined_call_operand.hbm [shape: f32[9,1,64], index: 5, kind: input, shape index: {}]   ;;  %s3066_s6 = inlined_call_operand.vmem [shape: bf16[9,64,64], index: 6, kind: input, shape index: {}]   ;;  %s3067_s7 = inlined_call_operand.hbm [shape: f32[9,1,64], index: 7, kind: input, shape index: {}]   ;;  %s3068_s8 = inlined_call_operand.hbm [shape: bf16[9,64,64], index: 8, kind: input, shape index: {}]   ;;  %s3069_s9 = inlined_call_operand.hbm [shape: f32[9,1,64], index: 9, kind: input, shape index: {}]   ;;  %s3070_s10 = inlined_call_operand.hbm [shape: bf16[9,64,128], index: 10, kind: input, shape index: {}]   ;;  %s3071_s11 = inlined_call_operand.hbm [shape: f32[9,1,128], index: 11, kind: input, shape index: {}]   ;;  %s3072_s12 = inlined_call_operand.vmem [shape: f32[8,128], index: 12, kind: output, shape index: {}]  }
   0x1   :  { %3081 = sst [smem:[#allocation27_spill]] %s3060_s0 }
   0x2   :  { %3082 = sst [smem:[#allocation28_spill]] %s3061_s1 }
   0x3   :  { %3083 = sst [smem:[#allocation29_spill]] %s3062_s2 }
   0x4   :  { %3084 = sst [smem:[#allocation30_spill]] %s3063_s3 }
   0x5   :  { %3085 = sst [smem:[#allocation31_spill]] %s3064_s4 }
   0x6   :  { %3086 = sst [smem:[#allocation32_spill]] %s3066_s6 }
   0x7   :  { %3087 = sst [smem:[#allocation33_spill]] %s3067_s7 }
   0x8   :  { %3088 = sst [smem:[#allocation34_spill]] %s3072_s12 }
   0x9   :  { %17 = vsyncpa [#allocation4], 0 }
   0xa   :  { %18 = vsyncpa [#allocation6], 0 }
   0xb   :  { %19 = vsyncpa [#allocation3], 0 }
   0xc   :  { %21 = vsyncpa [#allocation3 + $0x1], 0 }
   0xd   :  { %22 = vsyncpa [#allocation10], 0 }
   0xe   :  { %24 = vsyncpa [#allocation10 + $0x1], 0 }
   0xf   :  { %25 = vsyncpa [#allocation13], 0 }
  0x10   :  { %27 = vsyncpa [#allocation13 + $0x1], 0 }
  0x11   :  { %28 = vsyncpa [#allocation16], 0 }
  0x12   :  { %30 = vsyncpa [#allocation16 + $0x1], 0  ;;  %s2663_s21 = smov 0   ;;  %s2665_s22 = smov 0  }
  0x13   :  { %s2667_s23 = smov 0   ;;  %s2669_s24 = smov 0  }
  0x14 LB: > { %3089 = sst [smem:[#allocation23_spill]] %s2586_s23  ;;  %s2682_s25 = sadd.s32 4294967295, %s2590_s24   ;;  %s2590_s24 = sphi %s2669_s24, %s3114_s24   ;;  %s2586_s23 = sphi %s2667_s23, %s3116_s23   ;;  %s2582_s22 = sphi %s2665_s22, %s3118_s22   ;;  %s2578_s21 = sphi %s2663_s21, %s3117_s21  }
  0x15   : > { %s2685_s26 = sadd.s32 1, %s2590_s24   ;;  %s153_s28 = sadd.s32 1, %s2586_s23 }
  0x16   : > { %3090 = sst [smem:[#allocation24_spill]] %s2685_s26  ;;  %s150_s27 = ssub.s32 %s2590_s24, %s2685_s26 }
  0x17   : > { %p151_p0 = scmp.eq.s32.totalorder %s150_s27, 0  ;;  %p160_p1 = scmp.ne.s32.totalorder %s2586_s23, %s2582_s22 }
  0x18   : > { %p161_p2 = scmp.eq.s32.totalorder %s2590_s24, 0  ;;  %p166_p3 = scmp.ne.s32.totalorder %s2582_s22, %s2578_s21 }
  0x19   : > { %s2695_s29 = scalar_select %p151_p0, %s2586_s23, %s153_s28  }
  0x1a   : > { %p2697_p4 = por %p161_p2, %p160_p1  ;;  %p167_p5 = scmp.eq.s32.totalorder %s2682_s25, 0 }
  0x1b   : > { %3091 = sst [smem:[#allocation25_spill]] %s2695_s29  ;;  %p1777_p6 = scmp.ge.s32.totalorder %s2590_s24, 1 }
  0x1c   : > { %p354_p7 = scmp.lt.s32.totalorder %s2590_s24, 10  ;;  %p2706_p8 = por %p167_p5, %p166_p3 }
  0x1d   : > { %p1778_p9 = scmp.ne.s32.totalorder %s2682_s25, 0  ;;  %s3096_s1 = sld [smem:[#allocation28_spill]] }
  0x1e   : > { %s3093_s13 = scalar_select %p2706_p8, 1, 0 }
  0x1f   : > { %p2711_p10 = pnand %p1777_p6, %p354_p7  ;;  %p2247_p12 = scmp.lt.s32.totalorder %s2590_s24, 9 }
  0x20   : > { %3094 = sst [smem:[#allocation26_spill]] %s3093_s13  ;;  %s2722_s18 = sand.u32 1, %s2586_s23  }
  0x21   : > { %p2215_p11 = pneg %p2711_p10  ;;  %s3078_s20 = sand.u32 1, %s2590_s24  }
  0x22   : > { %p2733_p0 = pnand %p2247_p12, %p2697_p4  ;;  %s2592_s27 = smov [#allocation5]  }
  0x23   : > { %s376_s17 = sshll.u32 %s3096_s1, 4  ;;  %p2726_p13 = pnand %p2215_p11, %p167_p5  ;;  %s377_s17 = int_to_ptr.vmem [resolvable:$true] %s376_s17 }
  0x24   : > { %s3099_s7 = sld [smem:[#allocation33_spill]]  ;;  %s436_s29 = scalar_lea.vmem [#allocation9], %s2722_s18 }
  0x25   : > { %2221 = dma.vmem_to_smem (!%p2726_p13), %s377_s17, 16, %s2592_s27, [#allocation6]  }
  0x26   : > { %s443_s23 = sshll.u32 %s436_s29, 4  ;;  %s2746_s26 = scalar_lea.sflag [#allocation10], %s3078_s20  ;;  %s444_s23 = int_to_ptr.vmem [resolvable:$true] %s443_s23 }
  0x27   : > { %p2750_p2 = pneg %p2733_p0 }
  0x2a   : > { %s439_s16 = scalar_lea.hbm %s3099_s7, %s2590_s24  ;;  %s2333_s27 = scalar_lea.hbm %s3099_s7, 9 }
  0x2b   : > { %s441_s1 = sshll.u32 %s439_s16, 4  ;;  %s442_s1 = int_to_ptr.hbm [resolvable:$true] %s441_s1 }
  0x2c   : > { %s2326_s30 = sshra.s32 %s442_s1, 4  ;;  %s2327_s30 = int_to_ptr.hbm [resolvable:$true] %s2326_s30 }
  0x2d   : > { %s2328_s3 = scalar_lea.hbm %s2327_s30, 1  ;;  %p2334_p6 = scmp.lt.s32.totalorder %s2327_s30, %s3099_s7 }
  0x2e   : > { %p2329_p1 = scmp.ne.s32.totalorder %s2327_s30, %s2328_s3  ;;  %p2335_p7 = scmp.lt.s32.totalorder %s2333_s27, %s2328_s3 }
  0x30   : > { %p2331_p3 = pnand %p2750_p2, %p2329_p1  ;;  %p2336_p11 = por %p2335_p7, %p2334_p6 }
  0x32   : > { %p2332_p4 = pneg %p2331_p3 }
  0x34   : > { %p2337_p12 = pnand %p2336_p11, %p2332_p4 }
  0x36   : > { %2340 = shalt.err (!%p2337_p12)
}
  0x37   : > { %2231 = dma.hbm_to_vmem [thread:$0]  (!%p2733_p0), %s442_s1, 16, %s444_s23, %s2746_s26  }
  0x38   : > { %s478_s17 = scalar_lea.hbm %s3069_s9, %s2590_s24  ;;  %s475_s29 = scalar_lea.vmem [#allocation12], %s2722_s18 }
  0x39   : > { %s482_s6 = sshll.u32 %s475_s29, 4  ;;  %s480_s28 = sshll.u32 %s478_s17, 4  ;;  %s483_s6 = int_to_ptr.vmem [resolvable:$true] %s482_s6  ;;  %s481_s28 = int_to_ptr.hbm [resolvable:$true] %s480_s28 }
  0x3a   : > { %s3101_s0 = sld [smem:[#allocation27_spill]]  ;;  %s3102_s15 = sand.u32 1, %s2590_s24  }
  0x3b   : > { %s2775_s7 = scalar_lea.sflag [#allocation13], %s3102_s15  ;;  %s2356_s4 = sshra.s32 %s481_s28, 4  ;;  %s2357_s4 = int_to_ptr.hbm [resolvable:$true] %s2356_s4 }
  0x3c   : > { %s2358_s13 = scalar_lea.hbm %s2357_s4, 1  ;;  %s2363_s20 = scalar_lea.hbm %s3069_s9, 9 }
  0x3d   : > { %p2359_p1 = scmp.ne.s32.totalorder %s2357_s4, %s2358_s13  ;;  %p2364_p6 = scmp.lt.s32.totalorder %s2357_s4, %s3069_s9 }
  0x3e   : > { %p2365_p7 = scmp.lt.s32.totalorder %s2363_s20, %s2358_s13 }
  0x3f   : > { %p2361_p3 = pnand %p2359_p1, %p2750_p2 }
  0x40   : > { %s366_s27 = sshll.u32 %s3101_s0, 4  ;;  %p2366_p11 = por %p2365_p7, %p2364_p6  ;;  %s367_s27 = int_to_ptr.vmem [resolvable:$true] %s366_s27 }
  0x41   : > { %p2362_p4 = pneg %p2361_p3 }
  0x43   : > { %p2367_p12 = pnand %p2366_p11, %p2362_p4 }
  0x45   : > { %2370 = shalt.err (!%p2367_p12)
}
  0x46   : > { %2237 = dma.hbm_to_vmem [thread:$0]  (!%p2733_p0), %s481_s28, 16, %s483_s6, %s2775_s7  }
  0x47   : > { %s2593_s29 = smov [#allocation2]   ;;  %s3103_s2 = sld [smem:[#allocation29_spill]] }
  0x48   : > { %2218 = dma.vmem_to_smem (!%p2726_p13), %s367_s27, 16, %s2593_s29, [#allocation4]  }
  0x49   : > { %s2594_s13 = smov [#allocation7]   ;;  %s414_s23 = scalar_lea.hbm %s3065_s5, %s2590_s24 }
  0x4a   : > { %s416_s20 = sshll.u32 %s414_s23, 4  ;;  %s411_s16 = scalar_lea.vmem [#allocation8], %s2722_s18  ;;  %s417_s20 = int_to_ptr.hbm [resolvable:$true] %s416_s20 }
  0x4b   : > { %s418_s6 = sshll.u32 %s411_s16, 4  ;;  %s409_s28 = scalar_lea.sflag [#allocation3], %s2722_s18  ;;  %s419_s6 = int_to_ptr.vmem [resolvable:$true] %s418_s6 }
  0x4c   : > { %s2416_s27 = sshra.s32 %s417_s20, 4  ;;  %s2423_s3 = scalar_lea.hbm %s3065_s5, 9  ;;  %s2417_s27 = int_to_ptr.hbm [resolvable:$true] %s2416_s27 }
  0x4d   : > { %s386_s4 = sshll.u32 %s3103_s2, 4  ;;  %s2418_s17 = scalar_lea.hbm %s2417_s27, 1  ;;  %s387_s4 = int_to_ptr.vmem [resolvable:$true] %s386_s4 }
  0x4e   : > { %2224 = dma.vmem_to_smem (!%p2726_p13), %s387_s4, 16, %s2594_s13, [#allocation6]  }
  0x4f   : > { %p2419_p1 = scmp.ne.s32.totalorder %s2417_s27, %s2418_s17  ;;  %p2424_p13 = scmp.lt.s32.totalorder %s2417_s27, %s3065_s5 }
  0x50   : > { %p2425_p6 = scmp.lt.s32.totalorder %s2423_s3, %s2418_s17 }
  0x51   : > { %p2421_p3 = pnand %p2419_p1, %p2750_p2 }
  0x52   : > { %p2426_p7 = por %p2425_p6, %p2424_p13 }
  0x53   : > { %p2422_p4 = pneg %p2421_p3 }
  0x55   : > { %p2427_p11 = pnand %p2426_p7, %p2422_p4 }
  0x57   : > { %2430 = shalt.err (!%p2427_p11)
}
  0x58   : > { %2228 = dma.hbm_to_vmem [thread:$0]  (!%p2733_p0), %s417_s20, 16, %s419_s6, %s409_s28  }
  0x59   : > { %s1782_s13 = sshll.u32 %s2722_s18, 5  ;;  %s2111_s15 = sshll.u32 %s2590_s24, 5 }
  0x5a   : > { %s459_s16 = scalar_lea.hbm %s3068_s8, %s2111_s15  ;;  %s454_s19 = scalar_lea.vmem [#allocation11], %s1782_s13 }
  0x5b   : > { %s460_s29 = sshll.u32 %s459_s16, 4  ;;  %s462_s30 = sshll.u32 %s454_s19, 4  ;;  %s461_s29 = int_to_ptr.hbm [resolvable:$true] %s460_s29  ;;  %s463_s30 = int_to_ptr.vmem [resolvable:$true] %s462_s30 }
  0x5c   : > { %s2446_s27 = sshra.s32 %s461_s29, 4  ;;  %s2453_s6 = scalar_lea.hbm %s3068_s8, 288  ;;  %s2447_s27 = int_to_ptr.hbm [resolvable:$true] %s2446_s27 }
  0x5d   : > { %s2448_s17 = scalar_lea.hbm %s2447_s27, 32  ;;  %p2454_p4 = scmp.lt.s32.totalorder %s2447_s27, %s3068_s8 }
  0x5e   : > { %p2449_p12 = scmp.ne.s32.totalorder %s2447_s27, %s2448_s17  ;;  %p2455_p13 = scmp.lt.s32.totalorder %s2453_s6, %s2448_s17 }
  0x60   : > { %p2451_p1 = pnand %p2449_p12, %p2750_p2  ;;  %p2456_p6 = por %p2455_p13, %p2454_p4 }
  0x62   : > { %p2452_p3 = pneg %p2451_p1 }
  0x64   : > { %p2457_p7 = pnand %p2456_p6, %p2452_p3 }
  0x66   : > { %2460 = shalt.err (!%p2457_p7)
}
  0x67   : > { %s2595_s1 = smov 64   ;;  %s2596_s23 = smov 4  }
  0x68   : > { %2234 = dma.hbm_to_vmem [thread:$0]  (!%p2733_p0), %s461_s29, 512, %s463_s30, %s2746_s26, %s2595_s1, %s2595_s1, %s2596_s23  }
  0x69   : > { %s498_s3 = scalar_lea.hbm %s3070_s10, %s2111_s15  ;;  %s493_s0 = scalar_lea.vmem [#allocation14], %s1782_s13 }
  0x6a   : > { %s499_s20 = sshll.u32 %s498_s3, 4  ;;  %s501_s2 = sshll.u32 %s493_s0, 4  ;;  %s500_s20 = int_to_ptr.hbm [resolvable:$true] %s499_s20  ;;  %s502_s2 = int_to_ptr.vmem [resolvable:$true] %s501_s2 }
  0x6b   : > { %s2476_s27 = sshra.s32 %s500_s20, 4  ;;  %s2483_s26 = scalar_lea.hbm %s3070_s10, 288  ;;  %s2477_s27 = int_to_ptr.hbm [resolvable:$true] %s2476_s27 }
  0x6c   : > { %s2478_s17 = scalar_lea.hbm %s2477_s27, 32  ;;  %p2484_p3 = scmp.lt.s32.totalorder %s2477_s27, %s3070_s10 }
  0x6d   : > { %p2479_p11 = scmp.ne.s32.totalorder %s2477_s27, %s2478_s17  ;;  %p2485_p4 = scmp.lt.s32.totalorder %s2483_s26, %s2478_s17 }
  0x6f   : > { %p2481_p12 = pnand %p2479_p11, %p2750_p2  ;;  %p2486_p13 = por %p2485_p4, %p2484_p3 }
  0x71   : > { %p2482_p1 = pneg %p2481_p12 }
  0x73   : > { %p2487_p6 = pnand %p2486_p13, %p2482_p1 }
  0x75   : > { %2490 = shalt.err (!%p2487_p6)
}
  0x76   : > { %2240 = dma.hbm_to_vmem [thread:$0]  (!%p2733_p0), %s500_s20, 512, %s502_s2, %s2775_s7, %s2595_s1, %s2595_s1, %s2596_s23  }
  0x77   : > { %s517_s15 = scalar_lea.hbm %s3071_s11, %s2590_s24  ;;  %s514_s4 = scalar_lea.vmem [#allocation15], %s2722_s18 }
  0x78   : > { %s521_s16 = sshll.u32 %s514_s4, 4  ;;  %s519_s19 = sshll.u32 %s517_s15, 4  ;;  %s522_s16 = int_to_ptr.vmem [resolvable:$true] %s521_s16  ;;  %s520_s19 = int_to_ptr.hbm [resolvable:$true] %s519_s19 }
  0x79   : > { %s512_s3 = scalar_lea.sflag [#allocation16], %s2722_s18  ;;  %s2506_s27 = sshra.s32 %s520_s19, 4  ;;  %s2507_s27 = int_to_ptr.hbm [resolvable:$true] %s2506_s27 }
  0x7a   : > { %s2508_s17 = scalar_lea.hbm %s2507_s27, 1  ;;  %s2513_s2 = scalar_lea.hbm %s3071_s11, 9 }
  0x7b   : > { %p2509_p7 = scmp.ne.s32.totalorder %s2507_s27, %s2508_s17  ;;  %p2514_p1 = scmp.lt.s32.totalorder %s2507_s27, %s3071_s11 }
  0x7c   : > { %p2515_p3 = scmp.lt.s32.totalorder %s2513_s2, %s2508_s17 }
  0x7d   : > { %p2511_p11 = pnand %p2509_p7, %p2750_p2 }
  0x7e   : > { %p2516_p4 = por %p2515_p3, %p2514_p1 }
  0x7f   : > { %p2512_p12 = pneg %p2511_p11 }
  0x81   : > { %p2517_p13 = pnand %p2516_p4, %p2512_p12 }
  0x83   : > { %2520 = shalt.err (!%p2517_p13)
}
  0x84   : > { %2243 = dma.hbm_to_vmem [thread:$0]  (!%p2733_p0), %s520_s19, 16, %s522_s16, %s512_s3  }
  0x85   : > { %530 = sbr.rel (%p2711_p10) target bundleno = 861 (0x35d), region = 68 }
  0x8a   : > { %2553 = dma.done.wait (%p167_p5), [#allocation4], 16  }
  0x8b   : > { %2555 = vsyncadd (%p167_p5), [#allocation4], 4294967280 }
  0x8c   : > { %2557 = dma.done.wait (%p167_p5), [#allocation6], 32  }
  0x8d   : > { %2559 = vsyncadd (%p167_p5), [#allocation6], 4294967264  ;;  %s2868_s24 = sand.u32 1, %s2582_s22  }
  0x8e   : > { %s548_s14 = scalar_lea.sflag [#allocation3], %s2868_s24  ;;  %s550_s18 = scalar_lea.vmem [#allocation8], %s2868_s24 }
  0x8f   : > { %2561 = dma.done.wait (%p2706_p8), %s548_s14, 16  }
  0x90   : > { %2563 = vsyncadd (%p2706_p8), %s548_s14, 4294967280  ;;  %s556_s21 = sand.u32 1, %s2682_s25   ;;  %s559_s20 = scalar_lea.vmem [#allocation9], %s2868_s24 }
  0x91   : > { %s557_s23 = scalar_lea.sflag [#allocation10], %s556_s21 }
  0x92   : > { %2565 = dma.done.wait (%p2706_p8), %s557_s23, 528  }
  0x93   : > { %2567 = vsyncadd (%p2706_p8), %s557_s23, 4294966768  ;;  %s1792_s26 = sshll.u32 %s2868_s24, 5  ;;  %s576_s30 = scalar_lea.sflag [#allocation13], %s556_s21 }
  0x94   : > { %s2883_s29 = scalar_lea.vmem [#allocation11], %s1792_s26  ;;  %s578_s0 = scalar_lea.vmem [#allocation12], %s2868_s24 }
  0x95   : > { %2569 = dma.done.wait (%p2706_p8), %s576_s30, 528  }
  0x96   : > { %2571 = vsyncadd (%p2706_p8), %s576_s30, 4294966768  ;;  %s2890_s13 = scalar_lea.vmem [#allocation14], %s1792_s26  ;;  %s595_s15 = scalar_lea.sflag [#allocation16], %s2868_s24 }
  0x97   : > { %s597_s4 = scalar_lea.vmem [#allocation15], %s2868_s24 }
  0x98   : > { %2573 = dma.done.wait (%p2706_p8), %s595_s15, 16  }
  0x99   : > { %2575 = vsyncadd (%p2706_p8), %s595_s15, 4294967280 }
  0x9a   : > { %603 = sfence }
  0x9b   : > { %p666_p5 = scmp.lt.s32.totalorder %s2682_s25, 8  ;;  %s3105_s6 = sld [smem:[#allocation31_spill]] }
  0x9c   : > { %s3106_s1 = sld [smem:[#allocation32_spill]] }
  0x9d   : > { %s667_s16 = scalar_select %p666_p5, %s2682_s25, 8 }
  0x9e   : > { %680 = sbr.rel (%p1778_p9) target bundleno = 165 (0xa5), region = 108  ;;  %s3107_s23 = sld [smem:[#allocation34_spill]] (!%p1778_p9) }
  0x9f   : > { %s2113_s19 = sshll.u32 %s667_s16, 9  ;;  %s2114_s3 = sshll.u32 %s667_s16, 5 }
  0xa1   : > { %s2903_s28 = scalar_lea.vmem %s3105_s6, %s2113_s19 }
  0xa2   : > { %s2908_s14 = scalar_lea.vmem %s3106_s1, %s2114_s3 }
  0xa3   : > { %v2597_v0 = vmov 0.0  }
  0xa4   : > { %681 = vst [vmem:[%s3107_s23] sm:$0xff] %v2597_v0 }
  0xa5 PF: > { %v2122_v1 = vld [vmem:[%s2903_s28 + $0x38] sm:$0xff]  ;;  %v2121_v5 = vld [vmem:[%s2903_s28 + $0x30] sm:$0xff]  ;;  %v2120_v9 = vld [vmem:[%s2903_s28 + $0x28] sm:$0xff]  ;;  %s3108_s15 = sld [smem:[#allocation30_spill]]  ;;  %vm1405_vm6 = vcmask 523264  }
  0xa6   : > { %v2130_v2 = vld [vmem:[%s2903_s28 + $0x78] sm:$0xff]  ;;  %1233 = vmatpush.bf16.msra.mxu0 %v2122_v1  ;;  %v2129_v6 = vld [vmem:[%s2903_s28 + $0x70] sm:$0xff]  ;;  %v2128_v10 = vld [vmem:[%s2903_s28 + $0x68] sm:$0xff]  ;;  %s3018_s7 = sld [smem:[#allocation7 + %s2682_s25]] }
  0xa7   : > { %v2138_v3 = vld [vmem:[%s2903_s28 + $0xb8] sm:$0xff]  ;;  %1246 = vmatpush.bf16.msra.mxu1 %v2130_v2  ;;  %v2137_v7 = vld [vmem:[%s2903_s28 + $0xb0] sm:$0xff]  ;;  %v2136_v11 = vld [vmem:[%s2903_s28 + $0xa8] sm:$0xff] }
  0xa8   : > { %v2146_v4 = vld [vmem:[%s2903_s28 + $0xf8] sm:$0xff]  ;;  %1259 = vmatpush.bf16.msra.mxu2 %v2138_v3  ;;  %v2145_v8 = vld [vmem:[%s2903_s28 + $0xf0] sm:$0xff]  ;;  %v2144_v12 = vld [vmem:[%s2903_s28 + $0xe8] sm:$0xff] }
  0xa9   : > { %1272 = vmatpush.bf16.msra.mxu3 %v2146_v4  ;;  %v2119_v13 = vld [vmem:[%s2903_s28 + $0x20] sm:$0xff]  ;;  %v2118_v17 = vld [vmem:[%s2903_s28 + $0x18] sm:$0xff]  ;;  %v2117_v21 = vld [vmem:[%s2903_s28 + $0x10] sm:$0xff] }
  0xaa   : > { %1234 = vmatpush.bf16.msra.mxu0 %v2121_v5  ;;  %v2127_v14 = vld [vmem:[%s2903_s28 + $0x60] sm:$0xff]  ;;  %v2126_v18 = vld [vmem:[%s2903_s28 + $0x58] sm:$0xff]  ;;  %v2125_v22 = vld [vmem:[%s2903_s28 + $0x50] sm:$0xff] }
  0xab   : > { %1247 = vmatpush.bf16.msra.mxu1 %v2129_v6  ;;  %v2135_v15 = vld [vmem:[%s2903_s28 + $0xa0] sm:$0xff]  ;;  %v2134_v19 = vld [vmem:[%s2903_s28 + $0x98] sm:$0xff]  ;;  %v2133_v23 = vld [vmem:[%s2903_s28 + $0x90] sm:$0xff] }
  0xac   : > { %1260 = vmatpush.bf16.msra.mxu2 %v2137_v7  ;;  %v2143_v16 = vld [vmem:[%s2903_s28 + $0xe0] sm:$0xff]  ;;  %v2142_v20 = vld [vmem:[%s2903_s28 + $0xd8] sm:$0xff]  ;;  %v2141_v24 = vld [vmem:[%s2903_s28 + $0xd0] sm:$0xff]  ;;  %p1445_p10 = scmp.ge.s32.totalorder %s3018_s7, 3  ;;  %p1526_p0 = scmp.ge.s32.totalorder %s3018_s7, 4 }
  0xad   : > { %1273 = vmatpush.bf16.msra.mxu3 %v2145_v8  ;;  %v2116_v25 = vld [vmem:[%s2903_s28 + $0x8] sm:$0xff]  ;;  %v685_v30 = vld [vmem:[%s3108_s15] sm:$0xff]  ;;  %v2154_v39 = vld [vmem:[%s2903_s28 + $0x138] sm:$0xff] }
  0xae   : > { %1235 = vmatpush.bf16.msra.mxu0 %v2120_v9  ;;  %v2124_v26 = vld [vmem:[%s2903_s28 + $0x48] sm:$0xff]  ;;  %v2115_v31 = vld [vmem:[%s2903_s28] sm:$0xff]  ;;  %v825_v34 = vunpack.c.l.b16 %v685_v30  ;;  %v826_v38 = vunpack.c.h.b16 %v685_v30  ;;  %v2162_v40 = vld [vmem:[%s2903_s28 + $0x178] sm:$0xff]  ;;  %s1446_s1 = scalar_select %p1445_p10, 1, 0 }
  0xaf   : > { %1248 = vmatpush.bf16.msra.mxu1 %v2128_v10  ;;  %v2132_v27 = vld [vmem:[%s2903_s28 + $0x88] sm:$0xff]  ;;  %v2123_v32 = vld [vmem:[%s2903_s28 + $0x40] sm:$0xff]  ;;  %v2170_v41 = vld [vmem:[%s2903_s28 + $0x1b8] sm:$0xff] }
  0xb0   : > { %1261 = vmatpush.bf16.msra.mxu2 %v2136_v11  ;;  %v2140_v28 = vld [vmem:[%s2903_s28 + $0xc8] sm:$0xff]  ;;  %v2131_v35 = vld [vmem:[%s2903_s28 + $0x80] sm:$0xff]  ;;  %v2178_v42 = vld [vmem:[%s2903_s28 + $0x1f8] sm:$0xff]  ;;  %v833_v44 = vpack.c.b16 %v825_v34, %v825_v34  ;;  %v834_v46 = vpack.c.b16 %v826_v38, %v826_v38 }
  0xb1   : > { %1274 = vmatpush.bf16.msra.mxu3 %v2144_v12  ;;  %v686_v29 = vld [vmem:[%s3108_s15 + $0x8] sm:$0xff]  ;;  %v2139_v36 = vld [vmem:[%s2903_s28 + $0xc0] sm:$0xff]  ;;  %v2153_v47 = vld [vmem:[%s2903_s28 + $0x130] sm:$0xff] }
  0xb2   : > { %1236 = vmatpush.bf16.msra.mxu0 %v2119_v13  ;;  %v827_v33 = vunpack.c.l.b16 %v686_v29  ;;  %v828_v37 = vunpack.c.h.b16 %v686_v29  ;;  %v2161_v48 = vld [vmem:[%s2903_s28 + $0x170] sm:$0xff]  ;;  %v2152_v51 = vld [vmem:[%s2903_s28 + $0x128] sm:$0xff]  ;;  %v2151_v55 = vld [vmem:[%s2903_s28 + $0x120] sm:$0xff] }
  0xb3   : > { %1249 = vmatpush.bf16.msra.mxu1 %v2127_v14  ;;  %v2169_v49 = vld [vmem:[%s2903_s28 + $0x1b0] sm:$0xff]  ;;  %v2160_v52 = vld [vmem:[%s2903_s28 + $0x168] sm:$0xff]  ;;  %v2159_v56 = vld [vmem:[%s2903_s28 + $0x160] sm:$0xff] }
  0xb4   : > { %1262 = vmatpush.bf16.msra.mxu2 %v2135_v15  ;;  %v835_v43 = vpack.c.b16 %v827_v33, %v827_v33  ;;  %v836_v45 = vpack.c.b16 %v828_v37, %v828_v37  ;;  %v2177_v50 = vld [vmem:[%s2903_s28 + $0x1f0] sm:$0xff]  ;;  %v2168_v53 = vld [vmem:[%s2903_s28 + $0x1a8] sm:$0xff]  ;;  %v2167_v57 = vld [vmem:[%s2903_s28 + $0x1a0] sm:$0xff] }
  0xb5   : > { %1275 = vmatpush.bf16.msra.mxu3 %v2143_v16  ;;  %v2176_v54 = vld [vmem:[%s2903_s28 + $0x1e8] sm:$0xff]  ;;  %v2175_v58 = vld [vmem:[%s2903_s28 + $0x1e0] sm:$0xff]  ;;  %v2150_v59 = vld [vmem:[%s2903_s28 + $0x118] sm:$0xff] }
  0xb6   : > { %1237 = vmatpush.bf16.msra.mxu0 %v2118_v17  ;;  %v2158_v60 = vld [vmem:[%s2903_s28 + $0x158] sm:$0xff]  ;;  %v2149_v63 = vld [vmem:[%s2903_s28 + $0x110] sm:$0xff]  ;;  %v2148_v3 = vld [vmem:[%s2903_s28 + $0x108] sm:$0xff] }
  0xb7   : > { %1250 = vmatpush.bf16.msra.mxu1 %v2126_v18  ;;  %v2166_v61 = vld [vmem:[%s2903_s28 + $0x198] sm:$0xff]  ;;  %v2157_v0 = vld [vmem:[%s2903_s28 + $0x150] sm:$0xff]  ;;  %v2156_v4 = vld [vmem:[%s2903_s28 + $0x148] sm:$0xff] }
  0xb8   : > { %1263 = vmatpush.bf16.msra.mxu2 %v2134_v19  ;;  %v2174_v62 = vld [vmem:[%s2903_s28 + $0x1d8] sm:$0xff]  ;;  %v2165_v1 = vld [vmem:[%s2903_s28 + $0x190] sm:$0xff]  ;;  %v2164_v6 = vld [vmem:[%s2903_s28 + $0x188] sm:$0xff] }
  0xb9   : > { %1276 = vmatpush.bf16.msra.mxu3 %v2142_v20  ;;  %v2173_v2 = vld [vmem:[%s2903_s28 + $0x1d0] sm:$0xff]  ;;  %v2172_v7 = vld [vmem:[%s2903_s28 + $0x1c8] sm:$0xff]  ;;  %v688_v8 = vld [vmem:[%s3108_s15 + $0x18] sm:$0xff] }
  0xba   : > { %1238 = vmatpush.bf16.msra.mxu0 %v2117_v21  ;;  %v687_v5 = vld [vmem:[%s3108_s15 + $0x10] sm:$0xff]  ;;  %v2147_v11 = vld [vmem:[%s2903_s28 + $0x100] sm:$0xff]  ;;  %v831_v13 = vunpack.c.l.b16 %v688_v8  ;;  %v832_v14 = vunpack.c.h.b16 %v688_v8 }
  0xbb   : > { %1251 = vmatpush.bf16.msra.mxu1 %v2125_v22  ;;  %v829_v9 = vunpack.c.l.b16 %v687_v5  ;;  %v830_v10 = vunpack.c.h.b16 %v687_v5  ;;  %v2155_v12 = vld [vmem:[%s2903_s28 + $0x140] sm:$0xff]  ;;  %v2181_v34 = vld [vmem:[%s2908_s14 + $0x10] sm:$0xff] }
  0xbc   : > { %1264 = vmatpush.bf16.msra.mxu2 %v2133_v23  ;;  %v2163_v15 = vld [vmem:[%s2903_s28 + $0x180] sm:$0xff]  ;;  %v839_v19 = vpack.c.b16 %v831_v13, %v831_v13  ;;  %v840_v20 = vpack.c.b16 %v832_v14, %v832_v14 }
  0xbd   : > { %1277 = vmatpush.bf16.msra.mxu3 %v2141_v24  ;;  %v2171_v16 = vld [vmem:[%s2903_s28 + $0x1c0] sm:$0xff]  ;;  %v837_v17 = vpack.c.b16 %v829_v9, %v829_v9  ;;  %v838_v18 = vpack.c.b16 %v830_v10, %v830_v10  ;;  %v2185_v9 = vld [vmem:[%s2883_s29 + $0x10] sm:$0xff]  ;;  %v2184_v10 = vld [vmem:[%s2883_s29 + $0x8] sm:$0xff] }
  0xbe   : > { %1239 = vmatpush.bf16.msra.mxu0 %v2116_v25  ;;  %v2186_v8 = vld [vmem:[%s2883_s29 + $0x18] sm:$0xff] }
  0xbf   : > { %1252 = vmatpush.bf16.msra.mxu1 %v2124_v26 }
  0xc0   : > { %1265 = vmatpush.bf16.msra.mxu2 %v2132_v27  ;;  %v2289_v27 = vld [vmem:[%s550_s18] ss:$0 sm:$0xff]  ;;  %s683_s18 = sld [smem:[#allocation5 + %s2682_s25]] }
  0xc1   : > { %1278 = vmatpush.bf16.msra.mxu3 %v2140_v28 }
  0xc2   : > { %1240 = vmatpush.bf16.msra.mxu0 %v2115_v31 }
  0xc3   : > { %1253 = vmatpush.bf16.msra.mxu1 %v2123_v32  ;;  %v2182_v32 = vld [vmem:[%s2908_s14 + $0x18] sm:$0xff] }
  0xc4   : > { %1266 = vmatpush.bf16.msra.mxu2 %v2131_v35 }
  0xc5   : > { %1279 = vmatpush.bf16.msra.mxu3 %v2139_v36  ;;  %1241 = vmatmul.bf16.vlgmr.msra.gmra.mxu0 %v833_v44 }
  0xc6   : > { %1285 = vmatpush.bf16.msrb.mxu0 %v2154_v39  ;;  %1254 = vmatmul.bf16.vlgmr.msra.gmra.mxu1 %v834_v46  ;;  %v2180_v39 = vld [vmem:[%s2908_s14 + $0x8] sm:$0xff]  ;;  %p1359_p8 = scmp.eq.s32.totalorder %s683_s18, 1  ;;  %p1358_p9 = scmp.eq.s32.totalorder %s683_s18, 0 }
  0xc7   : > { %1298 = vmatpush.bf16.msrb.mxu1 %v2162_v40  ;;  %1267 = vmatmul.bf16.vlgmr.msra.gmra.mxu2 %v835_v43  ;;  %v2179_v43 = vld [vmem:[%s2908_s14] sm:$0xff]  ;;  %s3113_s14 = sld [smem:[#allocation34_spill]] }
  0xc8   : > { %1311 = vmatpush.bf16.msrb.mxu2 %v2170_v41  ;;  %1280 = vmatmul.bf16.vlgmr.msra.gmra.mxu3 %v836_v45  ;;  %s1360_s28 = scalar_select %p1359_p8, 1, 0 }
  0xc9   : > { %1324 = vmatpush.bf16.msrb.mxu3 %v2178_v42  ;;  %s1364_s2 = scalar_select %p1358_p9, 1, 0 }
  0xca   : > { %1286 = vmatpush.bf16.msrb.mxu0 %v2153_v47 }
  0xcb   : > { %1299 = vmatpush.bf16.msrb.mxu1 %v2161_v48 }
  0xcc   : > { %1312 = vmatpush.bf16.msrb.mxu2 %v2169_v49 }
  0xcd   : > { %1325 = vmatpush.bf16.msrb.mxu3 %v2177_v50 }
  0xce   : > { %1287 = vmatpush.bf16.msrb.mxu0 %v2152_v51 }
  0xcf   : > { %1300 = vmatpush.bf16.msrb.mxu1 %v2160_v52 }
  0xd0   : > { %1313 = vmatpush.bf16.msrb.mxu2 %v2168_v53 }
  0xd1   : > { %1326 = vmatpush.bf16.msrb.mxu3 %v2176_v54 }
  0xd2   : > { %1288 = vmatpush.bf16.msrb.mxu0 %v2151_v55 }
  0xd3   : > { %1301 = vmatpush.bf16.msrb.mxu1 %v2159_v56 }
  0xd4   : > { %1314 = vmatpush.bf16.msrb.mxu2 %v2167_v57 }
  0xd5   : > { %1327 = vmatpush.bf16.msrb.mxu3 %v2175_v58 }
  0xd6   : > { %1289 = vmatpush.bf16.msrb.mxu0 %v2150_v59  ;;  %v1361_v59 = vstv %s1360_s28 }
  0xd7   : > { %1302 = vmatpush.bf16.msrb.mxu1 %v2158_v60  ;;  %v1365_v60 = vstv %s1364_s2  ;;  %vm2998_vm3 = vcmp.eq.s32.totalorder %v1361_v59, 1 }
  0xd8   : > { %1315 = vmatpush.bf16.msrb.mxu2 %v2166_v61  ;;  %vm3002_vm5 = vcmp.eq.s32.totalorder %v1365_v60, 1 }
  0xd9   : > { %1328 = vmatpush.bf16.msrb.mxu3 %v2174_v62 }
  0xda   : > { %1290 = vmatpush.bf16.msrb.mxu0 %v2149_v63 }
  0xdb   : > { %1303 = vmatpush.bf16.msrb.mxu1 %v2157_v0 }
  0xdc   : > { %1316 = vmatpush.bf16.msrb.mxu2 %v2165_v1 }
  0xdd   : > { %1329 = vmatpush.bf16.msrb.mxu3 %v2173_v2 }
  0xde   : > { %1291 = vmatpush.bf16.msrb.mxu0 %v2148_v3 }
  0xdf   : > { %1304 = vmatpush.bf16.msrb.mxu1 %v2156_v4 }
  0xe0   : > { %1317 = vmatpush.bf16.msrb.mxu2 %v2164_v6 }
  0xe1   : > { %1330 = vmatpush.bf16.msrb.mxu3 %v2172_v7 }
  0xe2   : > { %1292 = vmatpush.bf16.msrb.mxu0 %v2147_v11  ;;  %v2290_v11 = vld [vmem:[%s559_s20] ss:$0 sm:$0xff]  ;;  %s1527_s20 = scalar_select %p1526_p0, 1, 0 }
  0xe3   : > { %1305 = vmatpush.bf16.msrb.mxu1 %v2155_v12  ;;  %v2183_v12 = vld [vmem:[%s2883_s29] sm:$0xff]  ;;  %s682_s29 = sld [smem:[#allocation2 + %s2682_s25]] }
  0xe4   : > { %1318 = vmatpush.bf16.msrb.mxu2 %v2163_v15 }
  0xe5   : > { %1331 = vmatpush.bf16.msrb.mxu3 %v2171_v16  ;;  %1293 = vmatmul.bf16.vlgmr.msrb.gmra.mxu0 %v837_v17 }
  0xe6   : > { %1306 = vmatmul.bf16.vlgmr.msrb.gmra.mxu1 %v838_v18  ;;  %1413 = vmatpush.bf16.msra.mxu0 %v2182_v32 }
  0xe7   : > { %1319 = vmatmul.bf16.vlgmr.msrb.gmra.mxu2 %v839_v19  ;;  %1494 = vmatpush.bf16.msra.mxu1 %v2186_v8 }
  0xe8   : > { %1332 = vmatmul.bf16.vlgmr.msrb.gmra.mxu3 %v840_v20 }
  0xea   : > { %1414 = vmatpush.bf16.msra.mxu0 %v2181_v34 }
  0xeb   : > { %1495 = vmatpush.bf16.msra.mxu1 %v2185_v9 }
  0xee   : > { %1415 = vmatpush.bf16.msra.mxu0 %v2180_v39  ;;  %v2291_v39 = vld [vmem:[%s578_s0] ss:$0 sm:$0xff] }
  0xef   : > { %1496 = vmatpush.bf16.msra.mxu1 %v2184_v10 }
  0xf2   : > { %1416 = vmatpush.bf16.msra.mxu0 %v2179_v43 }
  0xf3   : > { %1497 = vmatpush.bf16.msra.mxu1 %v2183_v12 }
 0x142   : > { %v1242_v21 = vpop.f32.mrf.mxu0 }
 0x143   : > { %v1255_v22 = vpop.f32.mrf.mxu1  ;;  %v1243_v30 = vadd.f32 %v2289_v27, %v1242_v21 }
 0x145   : > { %v1256_v31 = vadd.f32 %v1255_v22, %v1243_v30 }
 0x14a   : > { %v1268_v23 = vpop.f32.mrf.mxu2  ;;  %v1244_v25 = vpop.f32.mrf.mxu0 }
 0x14b   : > { %v1281_v24 = vpop.f32.mrf.mxu3  ;;  %v1257_v26 = vpop.f32.mrf.mxu1  ;;  %v1269_v33 = vadd.f32 %v1268_v23, %v1256_v31 }
 0x14c   : > { %v1447_v26 = vstv %s1446_s1 }
 0x14d   : > { %v1282_v35 = vadd.f32 %v1281_v24, %v1269_v33  ;;  %vm1448_vm11 = vcmp.eq.s32.totalorder %v1447_v26, 1 }
 0x152   : > { %v1270_v28 = vpop.f32.mrf.mxu2 }
 0x153   : > { %v1283_v29 = vpop.f32.mrf.mxu3 }
 0x162   : > { %v1294_v36 = vpop.f32.mrf.mxu0 }
 0x163   : > { %v1307_v37 = vpop.f32.mrf.mxu1  ;;  %v1295_v38 = vadd.f32 %v1294_v36, %v1282_v35  ;;  %v2190_v36 = vld [vmem:[%s2890_s13 + $0x18] sm:$0xff] }
 0x164   : > { %1575 = vmatpush.bf16.msra.mxu2 %v2190_v36 }
 0x165   : > { %v1308_v40 = vadd.f32 %v1307_v37, %v1295_v38  ;;  %v2189_v37 = vld [vmem:[%s2890_s13 + $0x10] sm:$0xff]  ;;  %v2188_v38 = vld [vmem:[%s2890_s13 + $0x8] sm:$0xff] }
 0x168   : > { %1576 = vmatpush.bf16.msra.mxu2 %v2189_v37 }
 0x16a   : > { %v1320_v41 = vpop.f32.mrf.mxu2  ;;  %v1296_v45 = vpop.f32.mrf.mxu0 }
 0x16b   : > { %v1333_v42 = vpop.f32.mrf.mxu3  ;;  %v1321_v44 = vadd.f32 %v1320_v41, %v1308_v40  ;;  %v1309_v46 = vpop.f32.mrf.mxu1  ;;  %v2187_v40 = vld [vmem:[%s2890_s13] sm:$0xff] }
 0x16c   : > { %1577 = vmatpush.bf16.msra.mxu2 %v2188_v38 }
 0x16d   : > { %v1334_v47 = vadd.f32 %v1333_v42, %v1321_v44 }
 0x16f   : > { %v2055_v48 = vmul.f32 -1.442695, %v1334_v47  ;;  %v1337_v3 = vmax.f32 %v1334_v47, 0.0 }
 0x170   : > { %1578 = vmatpush.bf16.msra.mxu2 %v2187_v40 }
 0x171   : > { %2293 = vpow2.f32 %v2055_v48 }
 0x172   : > { %v1322_v49 = vpop.f32.mrf.mxu2 }
 0x173   : > { %v1335_v50 = vpop.f32.mrf.mxu3 }
 0x177   : > { %v2294_v51 = vpop.eup %2293 }
 0x178   : > { %v1342_v52 = vadd.f32 1.0, %v2294_v51 }
 0x17a   : > { %2295 = vrcp.f32 %v1342_v52  ;;  %v1354_v56 = vand.u32 2147483648, %v1342_v52  ;;  %v1352_v58 = vand.u32 2147483647, %v1342_v52  ;;  %vm1348_vm1 = vweird.f32 %v1342_v52 }
 0x17b   : > { %2297 = vtanh.f32 %v1334_v47 }
 0x17c   : > { %v1355_v62 = vor.u32 1.1754944e-38, %v1354_v56  ;;  %vm1353_vm4 = vcmp.eq.f32.partialorder %v1352_v58, 8.507059e+37 }
 0x180   : > { %v2296_v53 = vpop.eup %2295 }
 0x181   : > { %v1344_v54 = vmul.f32 %v2296_v53, %v1342_v52  ;;  %vm1349_vm0 = vweird.f32 %v2296_v53  ;;  %v2298_v2 = vpop.eup %2297 }
 0x182   : > { %vm1350_vm2 = vmor %vm1348_vm1, %vm1349_vm0 }
 0x183   : > { %v1345_v55 = vsub.f32 1.0, %v1344_v54  ;;  %v1528_v54 = vstv %s1527_s20 }
 0x184   : > { %vm1529_vm0 = vcmp.eq.s32.totalorder %v1528_v54, 1 }
 0x185   : > { %v1346_v57 = vmul.f32 %v2296_v53, %v1345_v55 }
 0x187   : > { %v1347_v61 = vadd.f32 %v2296_v53, %v1346_v57 }
 0x189   : > { %v1351_v0 = vsel %vm1350_vm2, %v2296_v53, %v1347_v61 }
 0x18a   : > { %v1356_v4 = vsel %vm1353_vm4, %v1355_v62, %v1351_v0 }
 0x18b   : > { %v1363_v5 = vsel %vm2998_vm3, %v2298_v2, %v1356_v4  ;;  %v2292_v2 = vld [vmem:[%s597_s4] ss:$0 sm:$0xff]  ;;  %v1585_v4 = vstv %s682_s29 }
 0x18c   : > { %v1367_v6 = vsel %vm3002_vm5, %v1337_v3, %v1363_v5 }
 0x18d   : > { %v1368_v7 = vpack.c.bf16 %v1367_v6, %v1367_v6 }
 0x18f   : > { %2072 = vmatmul.msk.bf16.vlgmr.msra.gmra.mxu0 %vm1405_vm6, %v1368_v7 }
 0x20c   : > { %v1418_v13 = vpop.f32.mrf.mxu0 }
 0x20d   : > { %v1419_v14 = vadd.f32 %v2290_v11, %v1418_v13 }
 0x20f   : > { %v2073_v15 = vmul.f32 -1.442695, %v1419_v14  ;;  %v1422_v30 = vmax.f32 %v1419_v14, 0.0 }
 0x211   : > { %2299 = vpow2.f32 %v2073_v15 }
 0x214   : > { %v1420_v16 = vpop.f32.mrf.mxu0 }
 0x217   : > { %v2300_v17 = vpop.eup %2299 }
 0x218   : > { %v1427_v18 = vadd.f32 1.0, %v2300_v17 }
 0x21a   : > { %2301 = vrcp.f32 %v1427_v18  ;;  %v1439_v22 = vand.u32 2147483648, %v1427_v18  ;;  %v1437_v24 = vand.u32 2147483647, %v1427_v18  ;;  %vm1433_vm8 = vweird.f32 %v1427_v18 }
 0x21b   : > { %2303 = vtanh.f32 %v1419_v14 }
 0x21c   : > { %v1440_v27 = vor.u32 1.1754944e-38, %v1439_v22  ;;  %vm1438_vm10 = vcmp.eq.f32.partialorder %v1437_v24, 8.507059e+37 }
 0x220   : > { %v2302_v19 = vpop.eup %2301 }
 0x221   : > { %v1429_v20 = vmul.f32 %v2302_v19, %v1427_v18  ;;  %vm1434_vm7 = vweird.f32 %v2302_v19  ;;  %v2304_v29 = vpop.eup %2303 }
 0x222   : > { %vm1435_vm9 = vmor %vm1433_vm8, %vm1434_vm7 }
 0x223   : > { %v1430_v21 = vsub.f32 1.0, %v1429_v20 }
 0x225   : > { %v1431_v23 = vmul.f32 %v2302_v19, %v1430_v21 }
 0x227   : > { %v1432_v25 = vadd.f32 %v2302_v19, %v1431_v23 }
 0x229   : > { %v1436_v28 = vsel %vm1435_vm9, %v2302_v19, %v1432_v25 }
 0x22a   : > { %v1441_v31 = vsel %vm1438_vm10, %v1440_v27, %v1436_v28 }
 0x22b   : > { %v1443_v32 = vsel %vm2998_vm3, %v2304_v29, %v1441_v31 }
 0x22c   : > { %v1444_v33 = vsel %vm3002_vm5, %v1422_v30, %v1443_v32 }
 0x22d   : > { %v1449_v34 = vsel %vm1448_vm11, %v1444_v33, %v1367_v6  ;;  %v1584_v6 = vld [vmem:[%s3113_s14] sm:$0xff] }
 0x22e   : > { %v1450_v35 = vpack.c.bf16 %v1449_v34, %v1449_v34 }
 0x230   : > { %2090 = vmatmul.msk.bf16.vlgmr.msra.gmra.mxu1 %vm1405_vm6, %v1450_v35 }
 0x2ad   : > { %v1499_v41 = vpop.f32.mrf.mxu1 }
 0x2ae   : > { %v1500_v42 = vadd.f32 %v2291_v39, %v1499_v41 }
 0x2b0   : > { %v2091_v43 = vmul.f32 -1.442695, %v1500_v42  ;;  %v1503_v58 = vmax.f32 %v1500_v42, 0.0 }
 0x2b2   : > { %2305 = vpow2.f32 %v2091_v43 }
 0x2b5   : > { %v1501_v44 = vpop.f32.mrf.mxu1 }
 0x2b8   : > { %v2306_v45 = vpop.eup %2305 }
 0x2b9   : > { %v1508_v46 = vadd.f32 1.0, %v2306_v45 }
 0x2bb   : > { %2307 = vrcp.f32 %v1508_v46  ;;  %v1520_v50 = vand.u32 2147483648, %v1508_v46  ;;  %v1518_v52 = vand.u32 2147483647, %v1508_v46  ;;  %vm1514_vm13 = vweird.f32 %v1508_v46 }
 0x2bc   : > { %2309 = vtanh.f32 %v1500_v42 }
 0x2bd   : > { %v1521_v55 = vor.u32 1.1754944e-38, %v1520_v50  ;;  %vm1519_vm15 = vcmp.eq.f32.partialorder %v1518_v52, 8.507059e+37 }
 0x2c1   : > { %v2308_v47 = vpop.eup %2307 }
 0x2c2   : > { %v1510_v48 = vmul.f32 %v2308_v47, %v1508_v46  ;;  %vm1515_vm12 = vweird.f32 %v2308_v47  ;;  %v2310_v57 = vpop.eup %2309 }
 0x2c3   : > { %vm1516_vm14 = vmor %vm1514_vm13, %vm1515_vm12 }
 0x2c4   : > { %v1511_v49 = vsub.f32 1.0, %v1510_v48 }
 0x2c6   : > { %v1512_v51 = vmul.f32 %v2308_v47, %v1511_v49 }
 0x2c8   : > { %v1513_v53 = vadd.f32 %v2308_v47, %v1512_v51 }
 0x2ca   : > { %v1517_v56 = vsel %vm1516_vm14, %v2308_v47, %v1513_v53 }
 0x2cb   : > { %v1522_v59 = vsel %vm1519_vm15, %v1521_v55, %v1517_v56 }
 0x2cc   : > { %v1524_v60 = vsel %vm2998_vm3, %v2310_v57, %v1522_v59 }
 0x2cd   : > { %v1525_v61 = vsel %vm3002_vm5, %v1503_v58, %v1524_v60 }
 0x2ce   : > { %v1530_v62 = vsel %vm1529_vm0, %v1525_v61, %v1449_v34 }
 0x2cf   : > { %v1531_v0 = vpack.c.bf16 %v1530_v62, %v1530_v62 }
 0x2d1   : > { %2108 = vmatmul.msk.bf16.vlgmr.msra.gmra.mxu2 %vm1405_vm6, %v1531_v0 }
 0x354   : > { %v1580_v3 = vpop.f32.mrf.mxu2 }
 0x355   : > { %v1581_v5 = vadd.f32 %v2292_v2, %v1580_v3 }
 0x357   : > { %v1586_v7 = vmul.f32 %v1585_v4, %v1581_v5 }
 0x359   : > { %v1587_v63 = vadd.f32 %v1586_v7, %v1584_v6 }
 0x35b   : > { %1588 = vst [vmem:[%s3113_s14] sm:$0xff] %v1587_v63 }
 0x35c   : > { %v1582_v1 = vpop.f32.mrf.mxu2 }
 0x35d PF: > { %s3114_s24 = sld [smem:[#allocation24_spill]]  ;;  %s3117_s21 = smov %s2582_s22 }
 0x35e   : > { %s3115_s25 = sld [smem:[#allocation23_spill]] }
 0x35f   : > { %s3116_s23 = sld [smem:[#allocation25_spill]] }
 0x363   : > { %p33_p2 = scmp.ge.s32.totalorder %s3114_s24, 11  }
 0x364   : > { %s3118_s22 = smov %s3115_s25 }
 0x365   :  { %35 = sbr.rel (!%p33_p2) target bundleno = 20 (0x14), region = 188 }
 0x36a   :  { %1600 = vsyncpa [#allocation3], 1 }
 0x36b   :  { %1602 = vsyncpa [#allocation3 + $0x1], 1 }
 0x36c   :  { %1603 = vsyncpa [#allocation10], 1 }
 0x36d   :  { %1605 = vsyncpa [#allocation10 + $0x1], 1 }
 0x36e   :  { %1606 = vsyncpa [#allocation13], 1 }
 0x36f   :  { %1608 = vsyncpa [#allocation13 + $0x1], 1 }
 0x370   :  { %1609 = vsyncpa [#allocation16], 1 }
 0x371   :  { %1611 = vsyncpa [#allocation16 + $0x1], 1 }
 0x372   :  { %1612 = vsyncpa [#allocation4], 1 }
 0x373   :  { %1614 = vsyncpa [#allocation4 + $0x1], 1 }
 0x374   :  { %1615 = vsyncpa [#allocation6], 1 }

// kernel: darts_forward.6
= control target key start
LH: loop header
LB: loop body
LE: loop exit
PB: predicated region body
PF: predicated region fallthrough
CT: control target
= control target key end

     0   :  { %s2923_s0 = inlined_call_operand.vmem [shape: f32[9], index: 0, kind: input, shape index: {}]   ;;  %s2924_s1 = inlined_call_operand.vmem [shape: s32[9], index: 1, kind: input, shape index: {}]   ;;  %s2925_s2 = inlined_call_operand.vmem [shape: s32[9], index: 2, kind: input, shape index: {}]   ;;  %s2926_s3 = inlined_call_operand.vmem [shape: bf16[8,1024], index: 3, kind: input, shape index: {}]   ;;  %s2927_s4 = inlined_call_operand.vmem [shape: bf16[9,1024,32], index: 4, kind: input, shape index: {}]   ;;  %s2928_s5 = inlined_call_operand.vmem [shape: f32[9,1,32], index: 5, kind: input, shape index: {}]   ;;  %s2929_s6 = inlined_call_operand.hbm [shape: bf16[9,32,32], index: 6, kind: input, shape index: {}]   ;;  %s2930_s7 = inlined_call_operand.vmem [shape: f32[9,1,32], index: 7, kind: input, shape index: {}]   ;;  %s2931_s8 = inlined_call_operand.hbm [shape: bf16[9,32,32], index: 8, kind: input, shape index: {}]   ;;  %s2932_s9 = inlined_call_operand.hbm [shape: f32[9,1,32], index: 9, kind: input, shape index: {}]   ;;  %s2933_s10 = inlined_call_operand.hbm [shape: bf16[9,32,128], index: 10, kind: input, shape index: {}]   ;;  %s2934_s11 = inlined_call_operand.hbm [shape: f32[9,1,128], index: 11, kind: input, shape index: {}]   ;;  %s2935_s12 = inlined_call_operand.vmem [shape: f32[8,128], index: 12, kind: output, shape index: {}]  }
   0x1   :  { %2949 = sst [smem:[#allocation27_spill]] %s2924_s1 }
   0x2   :  { %2950 = sst [smem:[#allocation28_spill]] %s2926_s3 }
   0x3   :  { %2951 = sst [smem:[#allocation29_spill]] %s2927_s4 }
   0x4   :  { %2952 = sst [smem:[#allocation30_spill]] %s2928_s5 }
   0x5   :  { %2953 = sst [smem:[#allocation31_spill]] %s2930_s7 }
   0x6   :  { %2954 = sst [smem:[#allocation32_spill]] %s2931_s8 }
   0x7   :  { %2955 = sst [smem:[#allocation33_spill]] %s2935_s12 }
   0x8   :  { %17 = vsyncpa [#allocation4], 0 }
   0x9   :  { %18 = vsyncpa [#allocation6], 0 }
   0xa   :  { %19 = vsyncpa [#allocation3], 0 }
   0xb   :  { %21 = vsyncpa [#allocation3 + $0x1], 0 }
   0xc   :  { %22 = vsyncpa [#allocation10], 0 }
   0xd   :  { %24 = vsyncpa [#allocation10 + $0x1], 0 }
   0xe   :  { %25 = vsyncpa [#allocation13], 0 }
   0xf   :  { %27 = vsyncpa [#allocation13 + $0x1], 0  ;;  %s2519_s21 = smov 0   ;;  %s2521_s22 = smov 0  }
  0x10   :  { %s2523_s23 = smov 0   ;;  %s2525_s24 = smov 0  }
  0x11 LB: > { %2956 = sst [smem:[#allocation20_spill]] %s2438_s22  ;;  %s2538_s25 = sadd.s32 4294967295, %s2446_s24   ;;  %s2446_s24 = sphi %s2525_s24, %s2989_s24   ;;  %s2442_s23 = sphi %s2523_s23, %s2992_s23   ;;  %s2438_s22 = sphi %s2521_s22, %s2991_s22   ;;  %s2434_s21 = sphi %s2519_s21, %s2990_s21  }
  0x12   : > { %2957 = sst [smem:[#allocation21_spill]] %s2442_s23  ;;  %s2541_s26 = sadd.s32 1, %s2446_s24  }
  0x13   : > { %2958 = sst [smem:[#allocation22_spill]] %s2538_s25  ;;  %s173_s27 = ssub.s32 %s2446_s24, %s2541_s26 }
  0x14   : > { %2959 = sst [smem:[#allocation23_spill]] %s2541_s26  ;;  %s176_s28 = sadd.s32 1, %s2442_s23 }
  0x15   : > { %p174_p0 = scmp.eq.s32.totalorder %s173_s27, 0  ;;  %p183_p1 = scmp.ne.s32.totalorder %s2442_s23, %s2438_s22 }
  0x16   : > { %p184_p2 = scmp.eq.s32.totalorder %s2446_s24, 0  ;;  %p189_p3 = scmp.ne.s32.totalorder %s2438_s22, %s2434_s21 }
  0x17   : > { %s2551_s29 = scalar_select %p174_p0, %s2442_s23, %s176_s28  }
  0x18   : > { %p2553_p4 = por %p184_p2, %p183_p1  ;;  %p190_p5 = scmp.eq.s32.totalorder %s2538_s25, 0 }
  0x19   : > { %2960 = sst [smem:[#allocation24_spill]] %s2551_s29  ;;  %p1700_p6 = scmp.ge.s32.totalorder %s2446_s24, 1 }
  0x1a   : > { %p351_p7 = scmp.lt.s32.totalorder %s2446_s24, 10  ;;  %p2562_p8 = por %p190_p5, %p189_p3 }
  0x1b   : > { %p1701_p9 = scmp.ne.s32.totalorder %s2538_s25, 0  ;;  %s2966_s1 = sld [smem:[#allocation27_spill]] }
  0x1c   : > { %s2962_s13 = scalar_select %p2562_p8, 1, 0 }
  0x1d   : > { %p2567_p10 = pnand %p1700_p6, %p351_p7  ;;  %p2137_p12 = scmp.lt.s32.totalorder %s2446_s24, 9 }
  0x1e   : > { %2963 = sst [smem:[#allocation25_spill]] %s2962_s13  ;;  %s2578_s18 = sand.u32 1, %s2442_s23  }
  0x1f   : > { %s2964_s14 = scalar_select %p2567_p10, 1, 0 }
  0x20   : > { %p2108_p11 = pneg %p2567_p10  ;;  %s2587_s20 = sshll.u32 %s2578_s18, 4 }
  0x21   : > { %2965 = sst [smem:[#allocation26_spill]] %s2964_s14  ;;  %s373_s17 = sshll.u32 %s2966_s1, 4  ;;  %s374_s17 = int_to_ptr.vmem [resolvable:$true] %s373_s17 }
  0x22   : > { %p2582_p13 = pnand %p2108_p11, %p190_p5  ;;  %s2590_s21 = sshll.u32 %s2446_s24, 4 }
  0x23   : > { %p2594_p0 = pnand %p2137_p12, %p2553_p4  ;;  %s2448_s28 = smov [#allocation5]  }
  0x24   : > { %2114 = dma.vmem_to_smem (!%p2582_p13), %s374_s17, 16, %s2448_s28, [#allocation6]  }
  0x25   : > { %s2941_s15 = sand.u32 1, %s2446_s24   ;;  %s2969_s8 = sld [smem:[#allocation32_spill]] }
  0x26   : > { %s443_s26 = scalar_lea.vmem [#allocation9], %s2587_s20  ;;  %s2608_s30 = scalar_lea.sflag [#allocation10], %s2941_s15 }
  0x27   : > { %s451_s3 = sshll.u32 %s443_s26, 4  ;;  %p2612_p2 = pneg %p2594_p0  ;;  %s452_s3 = int_to_ptr.vmem [resolvable:$true] %s451_s3 }
  0x2b   : > { %s448_s29 = scalar_lea.hbm %s2969_s8, %s2590_s21 }
  0x2c   : > { %s449_s23 = sshll.u32 %s448_s29, 4  ;;  %s2223_s29 = scalar_lea.hbm %s2969_s8, 144  ;;  %s450_s23 = int_to_ptr.hbm [resolvable:$true] %s449_s23 }
  0x2d   : > { %s2216_s12 = sshra.s32 %s450_s23, 4  ;;  %s2217_s12 = int_to_ptr.hbm [resolvable:$true] %s2216_s12 }
  0x2e   : > { %s2218_s7 = scalar_lea.hbm %s2217_s12, 16  ;;  %p2224_p6 = scmp.lt.s32.totalorder %s2217_s12, %s2969_s8 }
  0x2f   : > { %p2219_p1 = scmp.ne.s32.totalorder %s2217_s12, %s2218_s7  ;;  %p2225_p7 = scmp.lt.s32.totalorder %s2223_s29, %s2218_s7 }
  0x31   : > { %p2221_p3 = pnand %p2612_p2, %p2219_p1  ;;  %p2226_p11 = por %p2225_p7, %p2224_p6 }
  0x33   : > { %p2222_p4 = pneg %p2221_p3 }
  0x35   : > { %p2227_p12 = pnand %p2226_p11, %p2222_p4 }
  0x37   : > { %2230 = shalt.err (!%p2227_p12)
}
  0x38   : > { %s2449_s15 = smov 64   ;;  %s2450_s4 = smov 4  }
  0x39   : > { %2124 = dma.hbm_to_vmem [thread:$0]  (!%p2594_p0), %s450_s23, 256, %s452_s3, %s2608_s30, %s2449_s15, %s2449_s15, %s2450_s4  }
  0x3a   : > { %s487_s7 = scalar_lea.hbm %s2933_s10, %s2590_s21  ;;  %s482_s12 = scalar_lea.vmem [#allocation12], %s2587_s20 }
  0x3b   : > { %s490_s29 = sshll.u32 %s482_s12, 4  ;;  %s488_s28 = sshll.u32 %s487_s7, 4  ;;  %s491_s29 = int_to_ptr.vmem [resolvable:$true] %s490_s29  ;;  %s489_s28 = int_to_ptr.hbm [resolvable:$true] %s488_s28 }
  0x3c   : > { %s363_s5 = sshll.u32 %s2923_s0, 4  ;;  %s2971_s13 = sand.u32 1, %s2446_s24   ;;  %s364_s5 = int_to_ptr.vmem [resolvable:$true] %s363_s5 }
  0x3d   : > { %s2640_s22 = scalar_lea.sflag [#allocation13], %s2971_s13  ;;  %s2246_s25 = sshra.s32 %s489_s28, 4  ;;  %s2247_s25 = int_to_ptr.hbm [resolvable:$true] %s2246_s25 }
  0x3e   : > { %s2248_s14 = scalar_lea.hbm %s2247_s25, 16  ;;  %s2253_s1 = scalar_lea.hbm %s2933_s10, 144 }
  0x3f   : > { %p2249_p1 = scmp.ne.s32.totalorder %s2247_s25, %s2248_s14  ;;  %p2254_p6 = scmp.lt.s32.totalorder %s2247_s25, %s2933_s10 }
  0x40   : > { %p2255_p7 = scmp.lt.s32.totalorder %s2253_s1, %s2248_s14 }
  0x41   : > { %p2251_p3 = pnand %p2249_p1, %p2612_p2 }
  0x42   : > { %p2256_p11 = por %p2255_p7, %p2254_p6 }
  0x43   : > { %p2252_p4 = pneg %p2251_p3 }
  0x45   : > { %p2257_p12 = pnand %p2256_p11, %p2252_p4 }
  0x47   : > { %2260 = shalt.err (!%p2257_p12)
}
  0x48   : > { %2130 = dma.hbm_to_vmem [thread:$0]  (!%p2594_p0), %s489_s28, 256, %s491_s29, %s2640_s22, %s2449_s15, %s2449_s15, %s2450_s4  }
  0x49   : > { %s2451_s8 = smov [#allocation2]   ;;  %s383_s14 = sshll.u32 %s2925_s2, 4  ;;  %s384_s14 = int_to_ptr.vmem [resolvable:$true] %s383_s14 }
  0x4a   : > { %2111 = dma.vmem_to_smem (!%p2582_p13), %s364_s5, 16, %s2451_s8, [#allocation4]  }
  0x4b   : > { %s2452_s12 = smov [#allocation7]   ;;  %s420_s23 = scalar_lea.hbm %s2929_s6, %s2590_s21 }
  0x4c   : > { %2117 = dma.vmem_to_smem (!%p2582_p13), %s384_s14, 16, %s2452_s12, [#allocation6]  }
  0x4d   : > { %s421_s1 = sshll.u32 %s420_s23, 4  ;;  %s415_s26 = scalar_lea.vmem [#allocation8], %s2587_s20  ;;  %s422_s1 = int_to_ptr.hbm [resolvable:$true] %s421_s1 }
  0x4e   : > { %s423_s29 = sshll.u32 %s415_s26, 4  ;;  %s412_s28 = scalar_lea.sflag [#allocation3], %s2578_s18  ;;  %s424_s29 = int_to_ptr.vmem [resolvable:$true] %s423_s29 }
  0x4f   : > { %s2306_s5 = sshra.s32 %s422_s1, 4  ;;  %s2313_s25 = scalar_lea.hbm %s2929_s6, 144  ;;  %s2307_s5 = int_to_ptr.hbm [resolvable:$true] %s2306_s5 }
  0x50   : > { %s2308_s7 = scalar_lea.hbm %s2307_s5, 16  ;;  %p2314_p13 = scmp.lt.s32.totalorder %s2307_s5, %s2929_s6 }
  0x51   : > { %p2309_p1 = scmp.ne.s32.totalorder %s2307_s5, %s2308_s7  ;;  %p2315_p6 = scmp.lt.s32.totalorder %s2313_s25, %s2308_s7 }
  0x53   : > { %p2311_p3 = pnand %p2309_p1, %p2612_p2  ;;  %p2316_p7 = por %p2315_p6, %p2314_p13 }
  0x55   : > { %p2312_p4 = pneg %p2311_p3 }
  0x57   : > { %p2317_p11 = pnand %p2316_p7, %p2312_p4 }
  0x59   : > { %2320 = shalt.err (!%p2317_p11)
}
  0x5a   : > { %2121 = dma.hbm_to_vmem [thread:$0]  (!%p2594_p0), %s422_s1, 256, %s424_s29, %s412_s28, %s2449_s15, %s2449_s15, %s2450_s4  }
  0x5b   : > { %s467_s12 = scalar_lea.hbm %s2932_s9, %s2446_s24  ;;  %s464_s3 = scalar_lea.vmem [#allocation11], %s2578_s18 }
  0x5c   : > { %s469_s16 = sshll.u32 %s467_s12, 4  ;;  %s471_s23 = sshll.u32 %s464_s3, 4  ;;  %s470_s16 = int_to_ptr.hbm [resolvable:$true] %s469_s16  ;;  %s472_s23 = int_to_ptr.vmem [resolvable:$true] %s471_s23 }
  0x5d   : > { %s2336_s26 = sshra.s32 %s470_s16, 4  ;;  %s2343_s4 = scalar_lea.hbm %s2932_s9, 9  ;;  %s2337_s26 = int_to_ptr.hbm [resolvable:$true] %s2336_s26 }
  0x5e   : > { %s2338_s5 = scalar_lea.hbm %s2337_s26, 1  ;;  %p2344_p4 = scmp.lt.s32.totalorder %s2337_s26, %s2932_s9 }
  0x5f   : > { %p2339_p12 = scmp.ne.s32.totalorder %s2337_s26, %s2338_s5  ;;  %p2345_p13 = scmp.lt.s32.totalorder %s2343_s4, %s2338_s5 }
  0x61   : > { %p2341_p1 = pnand %p2339_p12, %p2612_p2  ;;  %p2346_p6 = por %p2345_p13, %p2344_p4 }
  0x63   : > { %p2342_p3 = pneg %p2341_p1 }
  0x65   : > { %p2347_p7 = pnand %p2346_p6, %p2342_p3 }
  0x67   : > { %2350 = shalt.err (!%p2347_p7)
}
  0x68   : > { %2127 = dma.hbm_to_vmem [thread:$0]  (!%p2594_p0), %s470_s16, 16, %s472_s23, %s2608_s30  }
  0x69   : > { %s506_s19 = scalar_lea.hbm %s2934_s11, %s2446_s24  ;;  %s503_s13 = scalar_lea.vmem [#allocation14], %s2578_s18 }
  0x6a   : > { %s508_s25 = sshll.u32 %s506_s19, 4  ;;  %s510_s14 = sshll.u32 %s503_s13, 4  ;;  %s509_s25 = int_to_ptr.hbm [resolvable:$true] %s508_s25  ;;  %s511_s14 = int_to_ptr.vmem [resolvable:$true] %s510_s14 }
  0x6b   : > { %s2366_s20 = sshra.s32 %s509_s25, 4  ;;  %s2373_s30 = scalar_lea.hbm %s2934_s11, 9  ;;  %s2367_s20 = int_to_ptr.hbm [resolvable:$true] %s2366_s20 }
  0x6c   : > { %s2368_s21 = scalar_lea.hbm %s2367_s20, 1  ;;  %p2374_p3 = scmp.lt.s32.totalorder %s2367_s20, %s2934_s11 }
  0x6d   : > { %p2369_p11 = scmp.ne.s32.totalorder %s2367_s20, %s2368_s21  ;;  %p2375_p4 = scmp.lt.s32.totalorder %s2373_s30, %s2368_s21 }
  0x6f   : > { %p2371_p12 = pnand %p2369_p11, %p2612_p2  ;;  %p2376_p13 = por %p2375_p4, %p2374_p3 }
  0x71   : > { %p2372_p1 = pneg %p2371_p12 }
  0x73   : > { %p2377_p6 = pnand %p2376_p13, %p2372_p1 }
  0x75   : > { %2380 = shalt.err (!%p2377_p6)
}
  0x76   : > { %2133 = dma.hbm_to_vmem [thread:$0]  (!%p2594_p0), %s509_s25, 16, %s511_s14, %s2640_s22  }
  0x77   : > { %519 = sbr.rel (%p2567_p10) target bundleno = 853 (0x355), region = 68  ;;  %s2973_s18 = sld [smem:[#allocation22_spill]] (!%p2567_p10) }
  0x7c   : > { %2413 = dma.done.wait (%p190_p5), [#allocation4], 16  }
  0x7d   : > { %2415 = vsyncadd (%p190_p5), [#allocation4], 4294967280 }
  0x7e   : > { %2417 = dma.done.wait (%p190_p5), [#allocation6], 32  }
  0x7f   : > { %2419 = vsyncadd (%p190_p5), [#allocation6], 4294967264  ;;  %s2974_s17 = sld [smem:[#allocation20_spill]] }
  0x85   : > { %s2725_s27 = sand.u32 1, %s2974_s17  }
  0x86   : > { %s2728_s22 = sshll.u32 %s2725_s27, 4  ;;  %s537_s5 = scalar_lea.sflag [#allocation3], %s2725_s27 }
  0x87   : > { %s540_s7 = scalar_lea.vmem [#allocation8], %s2728_s22 }
  0x88   : > { %2421 = dma.done.wait (%p2562_p8), %s537_s5, 256  }
  0x89   : > { %2423 = vsyncadd (%p2562_p8), %s537_s5, 4294967040  ;;  %s546_s8 = sand.u32 1, %s2973_s18   ;;  %s550_s15 = scalar_lea.vmem [#allocation9], %s2728_s22 }
  0x8a   : > { %s547_s4 = scalar_lea.sflag [#allocation10], %s546_s8 }
  0x8b   : > { %2425 = dma.done.wait (%p2562_p8), %s547_s4, 272  }
  0x8c   : > { %2427 = vsyncadd (%p2562_p8), %s547_s4, 4294967024  ;;  %s559_s1 = scalar_lea.vmem [#allocation11], %s2725_s27  ;;  %s566_s29 = scalar_lea.sflag [#allocation13], %s546_s8 }
  0x8d   : > { %s569_s28 = scalar_lea.vmem [#allocation12], %s2728_s22 }
  0x8e   : > { %2429 = dma.done.wait (%p2562_p8), %s566_s29, 272  }
  0x8f   : > { %2431 = vsyncadd (%p2562_p8), %s566_s29, 4294967024  ;;  %s578_s19 = scalar_lea.vmem [#allocation14], %s2725_s27 }
  0x90   : > { %584 = sfence }
  0x91   : > { %p645_p5 = scmp.lt.s32.totalorder %s2973_s18, 8  ;;  %s2976_s21 = sld [smem:[#allocation30_spill]] }
  0x92   : > { %s2977_s16 = sld [smem:[#allocation29_spill]] }
  0x93   : > { %s2751_s25 = scalar_select %p645_p5, %s2973_s18, 8 }
  0x94   : > { %s2978_s26 = sld [smem:[#allocation31_spill]] }
  0x95   : > { %s2015_s13 = sshll.u32 %s2751_s25, 9  ;;  %s2979_s29 = sld [smem:[#allocation33_spill]] (!%p1701_p9) }
  0x96   : > { %660 = sbr.rel (%p1701_p9) target bundleno = 157 (0x9d), region = 104 }
  0x97   : > { %s652_s12 = scalar_lea.vmem %s2976_s21, %s2751_s25 }
  0x98   : > { %s2761_s23 = scalar_lea.vmem %s2977_s16, %s2015_s13 }
  0x9a   : > { %s655_s5 = scalar_lea.vmem %s2978_s26, %s2751_s25 }
  0x9b   : > { %v2453_v0 = vmov 0.0  }
  0x9c   : > { %661 = vst [vmem:[%s2979_s29] sm:$0xff] %v2453_v0 }
  0x9d PF: > { %v2023_v1 = vld [vmem:[%s2761_s23 + $0x38] sm:$0xff]  ;;  %v2022_v5 = vld [vmem:[%s2761_s23 + $0x30] sm:$0xff]  ;;  %v2021_v9 = vld [vmem:[%s2761_s23 + $0x28] sm:$0xff]  ;;  %s2980_s14 = sld [smem:[#allocation28_spill]]  ;;  %vm1369_vm6 = vcmask 261120  }
  0x9e   : > { %v2031_v2 = vld [vmem:[%s2761_s23 + $0x78] sm:$0xff]  ;;  %1213 = vmatpush.bf16.msra.mxu0 %v2023_v1  ;;  %v2030_v6 = vld [vmem:[%s2761_s23 + $0x70] sm:$0xff]  ;;  %v2029_v10 = vld [vmem:[%s2761_s23 + $0x68] sm:$0xff]  ;;  %s2982_s8 = sld [smem:[#allocation22_spill]] }
  0x9f   : > { %v2039_v3 = vld [vmem:[%s2761_s23 + $0xb8] sm:$0xff]  ;;  %1226 = vmatpush.bf16.msra.mxu1 %v2031_v2  ;;  %v2038_v7 = vld [vmem:[%s2761_s23 + $0xb0] sm:$0xff]  ;;  %v2037_v11 = vld [vmem:[%s2761_s23 + $0xa8] sm:$0xff] }
  0xa0   : > { %v2047_v4 = vld [vmem:[%s2761_s23 + $0xf8] sm:$0xff]  ;;  %1239 = vmatpush.bf16.msra.mxu2 %v2039_v3  ;;  %v2046_v8 = vld [vmem:[%s2761_s23 + $0xf0] sm:$0xff]  ;;  %v2045_v12 = vld [vmem:[%s2761_s23 + $0xe8] sm:$0xff] }
  0xa1   : > { %1252 = vmatpush.bf16.msra.mxu3 %v2047_v4  ;;  %v2020_v13 = vld [vmem:[%s2761_s23 + $0x20] sm:$0xff]  ;;  %v2019_v17 = vld [vmem:[%s2761_s23 + $0x18] sm:$0xff]  ;;  %v2018_v21 = vld [vmem:[%s2761_s23 + $0x10] sm:$0xff] }
  0xa2   : > { %1214 = vmatpush.bf16.msra.mxu0 %v2022_v5  ;;  %v2028_v14 = vld [vmem:[%s2761_s23 + $0x60] sm:$0xff]  ;;  %v2027_v18 = vld [vmem:[%s2761_s23 + $0x58] sm:$0xff]  ;;  %v2026_v22 = vld [vmem:[%s2761_s23 + $0x50] sm:$0xff] }
  0xa3   : > { %1227 = vmatpush.bf16.msra.mxu1 %v2030_v6  ;;  %v2036_v15 = vld [vmem:[%s2761_s23 + $0xa0] sm:$0xff]  ;;  %v2035_v19 = vld [vmem:[%s2761_s23 + $0x98] sm:$0xff]  ;;  %v2034_v23 = vld [vmem:[%s2761_s23 + $0x90] sm:$0xff] }
  0xa4   : > { %1240 = vmatpush.bf16.msra.mxu2 %v2038_v7  ;;  %v2044_v16 = vld [vmem:[%s2761_s23 + $0xe0] sm:$0xff]  ;;  %v2043_v20 = vld [vmem:[%s2761_s23 + $0xd8] sm:$0xff]  ;;  %v2042_v24 = vld [vmem:[%s2761_s23 + $0xd0] sm:$0xff]  ;;  %s2881_s20 = sld [smem:[#allocation7 + %s2982_s8]] }
  0xa5   : > { %1253 = vmatpush.bf16.msra.mxu3 %v2046_v8  ;;  %v2017_v25 = vld [vmem:[%s2761_s23 + $0x8] sm:$0xff]  ;;  %v665_v30 = vld [vmem:[%s2980_s14] sm:$0xff]  ;;  %v2055_v39 = vld [vmem:[%s2761_s23 + $0x138] sm:$0xff]  ;;  %s662_s22 = sld [smem:[#allocation2 + %s2982_s8]] }
  0xa6   : > { %1215 = vmatpush.bf16.msra.mxu0 %v2021_v9  ;;  %v2025_v26 = vld [vmem:[%s2761_s23 + $0x48] sm:$0xff]  ;;  %v2016_v31 = vld [vmem:[%s2761_s23] sm:$0xff]  ;;  %v805_v34 = vunpack.c.l.b16 %v665_v30  ;;  %v806_v38 = vunpack.c.h.b16 %v665_v30  ;;  %v2063_v40 = vld [vmem:[%s2761_s23 + $0x178] sm:$0xff] }
  0xa7   : > { %1228 = vmatpush.bf16.msra.mxu1 %v2029_v10  ;;  %v2033_v27 = vld [vmem:[%s2761_s23 + $0x88] sm:$0xff]  ;;  %v2024_v32 = vld [vmem:[%s2761_s23 + $0x40] sm:$0xff]  ;;  %v2071_v41 = vld [vmem:[%s2761_s23 + $0x1b8] sm:$0xff] }
  0xa8   : > { %1241 = vmatpush.bf16.msra.mxu2 %v2037_v11  ;;  %v2041_v28 = vld [vmem:[%s2761_s23 + $0xc8] sm:$0xff]  ;;  %v2032_v35 = vld [vmem:[%s2761_s23 + $0x80] sm:$0xff]  ;;  %v2079_v42 = vld [vmem:[%s2761_s23 + $0x1f8] sm:$0xff]  ;;  %v813_v44 = vpack.c.b16 %v805_v34, %v805_v34  ;;  %v814_v46 = vpack.c.b16 %v806_v38, %v806_v38 }
  0xa9   : > { %1254 = vmatpush.bf16.msra.mxu3 %v2045_v12  ;;  %v666_v29 = vld [vmem:[%s2980_s14 + $0x8] sm:$0xff]  ;;  %v2040_v36 = vld [vmem:[%s2761_s23 + $0xc0] sm:$0xff]  ;;  %v2054_v47 = vld [vmem:[%s2761_s23 + $0x130] sm:$0xff] }
  0xaa   : > { %1216 = vmatpush.bf16.msra.mxu0 %v2020_v13  ;;  %v807_v33 = vunpack.c.l.b16 %v666_v29  ;;  %v808_v37 = vunpack.c.h.b16 %v666_v29  ;;  %v2062_v48 = vld [vmem:[%s2761_s23 + $0x170] sm:$0xff]  ;;  %v2053_v51 = vld [vmem:[%s2761_s23 + $0x128] sm:$0xff]  ;;  %v2052_v55 = vld [vmem:[%s2761_s23 + $0x120] sm:$0xff]  ;;  %p1409_p10 = scmp.ge.s32.totalorder %s2881_s20, 3  ;;  %p1474_p0 = scmp.ge.s32.totalorder %s2881_s20, 4 }
  0xab   : > { %1229 = vmatpush.bf16.msra.mxu1 %v2028_v14  ;;  %v2070_v49 = vld [vmem:[%s2761_s23 + $0x1b0] sm:$0xff]  ;;  %v2061_v52 = vld [vmem:[%s2761_s23 + $0x168] sm:$0xff]  ;;  %v2060_v56 = vld [vmem:[%s2761_s23 + $0x160] sm:$0xff] }
  0xac   : > { %1242 = vmatpush.bf16.msra.mxu2 %v2036_v15  ;;  %v815_v43 = vpack.c.b16 %v807_v33, %v807_v33  ;;  %v816_v45 = vpack.c.b16 %v808_v37, %v808_v37  ;;  %v2078_v50 = vld [vmem:[%s2761_s23 + $0x1f0] sm:$0xff]  ;;  %v2069_v53 = vld [vmem:[%s2761_s23 + $0x1a8] sm:$0xff]  ;;  %v2068_v57 = vld [vmem:[%s2761_s23 + $0x1a0] sm:$0xff]  ;;  %s1410_s25 = scalar_select %p1409_p10, 1, 0 }
  0xad   : > { %1255 = vmatpush.bf16.msra.mxu3 %v2044_v16  ;;  %v2077_v54 = vld [vmem:[%s2761_s23 + $0x1e8] sm:$0xff]  ;;  %v2076_v58 = vld [vmem:[%s2761_s23 + $0x1e0] sm:$0xff]  ;;  %v2051_v59 = vld [vmem:[%s2761_s23 + $0x118] sm:$0xff] }
  0xae   : > { %1217 = vmatpush.bf16.msra.mxu0 %v2019_v17  ;;  %v2059_v60 = vld [vmem:[%s2761_s23 + $0x158] sm:$0xff]  ;;  %v2050_v63 = vld [vmem:[%s2761_s23 + $0x110] sm:$0xff]  ;;  %v2049_v3 = vld [vmem:[%s2761_s23 + $0x108] sm:$0xff] }
  0xaf   : > { %1230 = vmatpush.bf16.msra.mxu1 %v2027_v18  ;;  %v2067_v61 = vld [vmem:[%s2761_s23 + $0x198] sm:$0xff]  ;;  %v2058_v0 = vld [vmem:[%s2761_s23 + $0x150] sm:$0xff]  ;;  %v2057_v4 = vld [vmem:[%s2761_s23 + $0x148] sm:$0xff] }
  0xb0   : > { %1243 = vmatpush.bf16.msra.mxu2 %v2035_v19  ;;  %v2075_v62 = vld [vmem:[%s2761_s23 + $0x1d8] sm:$0xff]  ;;  %v2066_v1 = vld [vmem:[%s2761_s23 + $0x190] sm:$0xff]  ;;  %v2065_v6 = vld [vmem:[%s2761_s23 + $0x188] sm:$0xff] }
  0xb1   : > { %1256 = vmatpush.bf16.msra.mxu3 %v2043_v20  ;;  %v2074_v2 = vld [vmem:[%s2761_s23 + $0x1d0] sm:$0xff]  ;;  %v2073_v7 = vld [vmem:[%s2761_s23 + $0x1c8] sm:$0xff]  ;;  %v668_v8 = vld [vmem:[%s2980_s14 + $0x18] sm:$0xff] }
  0xb2   : > { %1218 = vmatpush.bf16.msra.mxu0 %v2018_v21  ;;  %v667_v5 = vld [vmem:[%s2980_s14 + $0x10] sm:$0xff]  ;;  %v2048_v11 = vld [vmem:[%s2761_s23 + $0x100] sm:$0xff]  ;;  %v811_v13 = vunpack.c.l.b16 %v668_v8  ;;  %v812_v14 = vunpack.c.h.b16 %v668_v8  ;;  %v2081_v37 = vld [vmem:[%s540_s7 + $0x8] sm:$0xff] }
  0xb3   : > { %1231 = vmatpush.bf16.msra.mxu1 %v2026_v22  ;;  %v809_v9 = vunpack.c.l.b16 %v667_v5  ;;  %v810_v10 = vunpack.c.h.b16 %v667_v5  ;;  %v2056_v12 = vld [vmem:[%s2761_s23 + $0x140] sm:$0xff] }
  0xb4   : > { %1244 = vmatpush.bf16.msra.mxu2 %v2034_v23  ;;  %v2064_v15 = vld [vmem:[%s2761_s23 + $0x180] sm:$0xff]  ;;  %v819_v19 = vpack.c.b16 %v811_v13, %v811_v13  ;;  %v820_v20 = vpack.c.b16 %v812_v14, %v812_v14 }
  0xb5   : > { %1257 = vmatpush.bf16.msra.mxu3 %v2042_v24  ;;  %v2072_v16 = vld [vmem:[%s2761_s23 + $0x1c0] sm:$0xff]  ;;  %v817_v17 = vpack.c.b16 %v809_v9, %v809_v9  ;;  %v818_v18 = vpack.c.b16 %v810_v10, %v810_v10 }
  0xb6   : > { %1219 = vmatpush.bf16.msra.mxu0 %v2017_v25  ;;  %v2082_v8 = vld [vmem:[%s550_s15] sm:$0xff] }
  0xb7   : > { %1232 = vmatpush.bf16.msra.mxu1 %v2025_v26 }
  0xb8   : > { %1245 = vmatpush.bf16.msra.mxu2 %v2033_v27  ;;  %v2179_v27 = vld [vmem:[%s652_s12] ss:$0 sm:$0xff]  ;;  %s663_s12 = sld [smem:[#allocation5 + %s2982_s8]] }
  0xb9   : > { %1258 = vmatpush.bf16.msra.mxu3 %v2041_v28 }
  0xba   : > { %1220 = vmatpush.bf16.msra.mxu0 %v2016_v31 }
  0xbb   : > { %1233 = vmatpush.bf16.msra.mxu1 %v2024_v32 }
  0xbc   : > { %1246 = vmatpush.bf16.msra.mxu2 %v2032_v35 }
  0xbd   : > { %1259 = vmatpush.bf16.msra.mxu3 %v2040_v36  ;;  %1221 = vmatmul.bf16.vlgmr.msra.gmra.mxu0 %v813_v44 }
  0xbe   : > { %1265 = vmatpush.bf16.msrb.mxu0 %v2055_v39  ;;  %1234 = vmatmul.bf16.vlgmr.msra.gmra.mxu1 %v814_v46  ;;  %p1339_p8 = scmp.eq.s32.totalorder %s663_s12, 1  ;;  %p1338_p9 = scmp.eq.s32.totalorder %s663_s12, 0 }
  0xbf   : > { %1278 = vmatpush.bf16.msrb.mxu1 %v2063_v40  ;;  %1247 = vmatmul.bf16.vlgmr.msra.gmra.mxu2 %v815_v43 }
  0xc0   : > { %1291 = vmatpush.bf16.msrb.mxu2 %v2071_v41  ;;  %1260 = vmatmul.bf16.vlgmr.msra.gmra.mxu3 %v816_v45  ;;  %v2080_v41 = vld [vmem:[%s540_s7] sm:$0xff]  ;;  %s1340_s4 = scalar_select %p1339_p8, 1, 0 }
  0xc1   : > { %1304 = vmatpush.bf16.msrb.mxu3 %v2079_v42  ;;  %s1344_s29 = scalar_select %p1338_p9, 1, 0 }
  0xc2   : > { %1266 = vmatpush.bf16.msrb.mxu0 %v2054_v47 }
  0xc3   : > { %1279 = vmatpush.bf16.msrb.mxu1 %v2062_v48 }
  0xc4   : > { %1292 = vmatpush.bf16.msrb.mxu2 %v2070_v49 }
  0xc5   : > { %1305 = vmatpush.bf16.msrb.mxu3 %v2078_v50 }
  0xc6   : > { %1267 = vmatpush.bf16.msrb.mxu0 %v2053_v51 }
  0xc7   : > { %1280 = vmatpush.bf16.msrb.mxu1 %v2061_v52 }
  0xc8   : > { %1293 = vmatpush.bf16.msrb.mxu2 %v2069_v53 }
  0xc9   : > { %1306 = vmatpush.bf16.msrb.mxu3 %v2077_v54 }
  0xca   : > { %1268 = vmatpush.bf16.msrb.mxu0 %v2052_v55 }
  0xcb   : > { %1281 = vmatpush.bf16.msrb.mxu1 %v2060_v56 }
  0xcc   : > { %1294 = vmatpush.bf16.msrb.mxu2 %v2068_v57  ;;  %v1341_v57 = vstv %s1340_s4 }
  0xcd   : > { %1307 = vmatpush.bf16.msrb.mxu3 %v2076_v58  ;;  %v1345_v58 = vstv %s1344_s29  ;;  %vm2858_vm3 = vcmp.eq.s32.totalorder %v1341_v57, 1 }
  0xce   : > { %1269 = vmatpush.bf16.msrb.mxu0 %v2051_v59  ;;  %vm2862_vm5 = vcmp.eq.s32.totalorder %v1345_v58, 1  ;;  %v2182_v58 = vld [vmem:[%s578_s19] ss:$0 sm:$0xff] }
  0xcf   : > { %1282 = vmatpush.bf16.msrb.mxu1 %v2059_v60 }
  0xd0   : > { %1295 = vmatpush.bf16.msrb.mxu2 %v2067_v61 }
  0xd1   : > { %1308 = vmatpush.bf16.msrb.mxu3 %v2075_v62 }
  0xd2   : > { %1270 = vmatpush.bf16.msrb.mxu0 %v2050_v63 }
  0xd3   : > { %1283 = vmatpush.bf16.msrb.mxu1 %v2058_v0 }
  0xd4   : > { %1296 = vmatpush.bf16.msrb.mxu2 %v2066_v1 }
  0xd5   : > { %1309 = vmatpush.bf16.msrb.mxu3 %v2074_v2 }
  0xd6   : > { %1271 = vmatpush.bf16.msrb.mxu0 %v2049_v3 }
  0xd7   : > { %1284 = vmatpush.bf16.msrb.mxu1 %v2057_v4 }
  0xd8   : > { %1297 = vmatpush.bf16.msrb.mxu2 %v2065_v6  ;;  %v2083_v6 = vld [vmem:[%s550_s15 + $0x8] sm:$0xff]  ;;  %s1475_s15 = scalar_select %p1474_p0, 1, 0 }
  0xd9   : > { %1310 = vmatpush.bf16.msrb.mxu3 %v2073_v7  ;;  %v2180_v7 = vld [vmem:[%s655_s5] ss:$0 sm:$0xff]  ;;  %s2988_s5 = sld [smem:[#allocation33_spill]] }
  0xda   : > { %1272 = vmatpush.bf16.msrb.mxu0 %v2048_v11 }
  0xdb   : > { %1285 = vmatpush.bf16.msrb.mxu1 %v2056_v12 }
  0xdc   : > { %1298 = vmatpush.bf16.msrb.mxu2 %v2064_v15 }
  0xdd   : > { %1311 = vmatpush.bf16.msrb.mxu3 %v2072_v16  ;;  %1273 = vmatmul.bf16.vlgmr.msrb.gmra.mxu0 %v817_v17 }
  0xde   : > { %1286 = vmatmul.bf16.vlgmr.msrb.gmra.mxu1 %v818_v18  ;;  %1379 = vmatpush.bf16.msra.mxu0 %v2081_v37 }
  0xdf   : > { %1299 = vmatmul.bf16.vlgmr.msrb.gmra.mxu2 %v819_v19  ;;  %1444 = vmatpush.bf16.msra.mxu1 %v2083_v6 }
  0xe0   : > { %1312 = vmatmul.bf16.vlgmr.msrb.gmra.mxu3 %v820_v20 }
  0xe2   : > { %1380 = vmatpush.bf16.msra.mxu0 %v2080_v41 }
  0xe3   : > { %1445 = vmatpush.bf16.msra.mxu1 %v2082_v8 }
 0x13a   : > { %v1222_v21 = vpop.f32.mrf.mxu0 }
 0x13b   : > { %v1235_v22 = vpop.f32.mrf.mxu1  ;;  %v1223_v30 = vadd.f32 %v2179_v27, %v1222_v21 }
 0x13d   : > { %v1236_v31 = vadd.f32 %v1235_v22, %v1223_v30  ;;  %v1411_v22 = vstv %s1410_s25 }
 0x13e   : > { %vm1412_vm11 = vcmp.eq.s32.totalorder %v1411_v22, 1 }
 0x142   : > { %v1248_v23 = vpop.f32.mrf.mxu2  ;;  %v1224_v25 = vpop.f32.mrf.mxu0 }
 0x143   : > { %v1261_v24 = vpop.f32.mrf.mxu3  ;;  %v1237_v26 = vpop.f32.mrf.mxu1  ;;  %v1249_v32 = vadd.f32 %v1248_v23, %v1236_v31 }
 0x145   : > { %v1262_v33 = vadd.f32 %v1261_v24, %v1249_v32  ;;  %v2085_v32 = vld [vmem:[%s569_s28 + $0x8] sm:$0xff] }
 0x146   : > { %1509 = vmatpush.bf16.msra.mxu2 %v2085_v32 }
 0x14a   : > { %v1250_v28 = vpop.f32.mrf.mxu2 }
 0x14b   : > { %v1263_v29 = vpop.f32.mrf.mxu3 }
 0x15a   : > { %v1274_v34 = vpop.f32.mrf.mxu0 }
 0x15b   : > { %v1287_v35 = vpop.f32.mrf.mxu1  ;;  %v1275_v36 = vadd.f32 %v1274_v34, %v1262_v33  ;;  %v2181_v33 = vld [vmem:[%s559_s1] ss:$0 sm:$0xff]  ;;  %v2084_v34 = vld [vmem:[%s569_s28] sm:$0xff] }
 0x15c   : > { %1510 = vmatpush.bf16.msra.mxu2 %v2084_v34 }
 0x15d   : > { %v1288_v38 = vadd.f32 %v1287_v35, %v1275_v36 }
 0x162   : > { %v1300_v39 = vpop.f32.mrf.mxu2  ;;  %v1276_v43 = vpop.f32.mrf.mxu0 }
 0x163   : > { %v1313_v40 = vpop.f32.mrf.mxu3  ;;  %v1301_v42 = vadd.f32 %v1300_v39, %v1288_v38  ;;  %v1289_v44 = vpop.f32.mrf.mxu1 }
 0x165   : > { %v1314_v45 = vadd.f32 %v1313_v40, %v1301_v42 }
 0x167   : > { %v1980_v46 = vmul.f32 -1.442695, %v1314_v45  ;;  %v1317_v1 = vmax.f32 %v1314_v45, 0.0 }
 0x169   : > { %2183 = vpow2.f32 %v1980_v46 }
 0x16a   : > { %v1302_v47 = vpop.f32.mrf.mxu2 }
 0x16b   : > { %v1315_v48 = vpop.f32.mrf.mxu3 }
 0x16c   : > { %v1476_v48 = vstv %s1475_s15 }
 0x16f   : > { %v2184_v49 = vpop.eup %2183 }
 0x170   : > { %v1322_v50 = vadd.f32 1.0, %v2184_v49 }
 0x172   : > { %2185 = vrcp.f32 %v1322_v50  ;;  %v1334_v54 = vand.u32 2147483648, %v1322_v50  ;;  %v1332_v56 = vand.u32 2147483647, %v1322_v50  ;;  %vm1328_vm1 = vweird.f32 %v1322_v50 }
 0x173   : > { %2187 = vtanh.f32 %v1314_v45 }
 0x174   : > { %v1335_v60 = vor.u32 1.1754944e-38, %v1334_v54  ;;  %vm1333_vm4 = vcmp.eq.f32.partialorder %v1332_v56, 8.507059e+37 }
 0x178   : > { %v2186_v51 = vpop.eup %2185 }
 0x179   : > { %v1324_v52 = vmul.f32 %v2186_v51, %v1322_v50  ;;  %vm1329_vm0 = vweird.f32 %v2186_v51  ;;  %v2188_v0 = vpop.eup %2187 }
 0x17a   : > { %vm1330_vm2 = vmor %vm1328_vm1, %vm1329_vm0  ;;  %vm1477_vm0 = vcmp.eq.s32.totalorder %v1476_v48, 1 }
 0x17b   : > { %v1325_v53 = vsub.f32 1.0, %v1324_v52 }
 0x17d   : > { %v1326_v55 = vmul.f32 %v2186_v51, %v1325_v53 }
 0x17f   : > { %v1327_v59 = vadd.f32 %v2186_v51, %v1326_v55 }
 0x181   : > { %v1331_v62 = vsel %vm1330_vm2, %v2186_v51, %v1327_v59 }
 0x182   : > { %v1336_v2 = vsel %vm1333_vm4, %v1335_v60, %v1331_v62  ;;  %v1517_v60 = vstv %s662_s22 }
 0x183   : > { %v1343_v3 = vsel %vm2858_vm3, %v2188_v0, %v1336_v2  ;;  %v1516_v0 = vld [vmem:[%s2988_s5] sm:$0xff] }
 0x184   : > { %v1347_v4 = vsel %vm2862_vm5, %v1317_v1, %v1343_v3 }
 0x185   : > { %v1348_v5 = vpack.c.bf16 %v1347_v4, %v1347_v4 }
 0x187   : > { %1989 = vmatmul.msk.bf16.vlgmr.msra.gmra.mxu0 %vm1369_vm6, %v1348_v5 }
 0x204   : > { %v1382_v9 = vpop.f32.mrf.mxu0 }
 0x205   : > { %v1383_v10 = vadd.f32 %v2180_v7, %v1382_v9 }
 0x207   : > { %v1990_v11 = vmul.f32 -1.442695, %v1383_v10  ;;  %v1386_v26 = vmax.f32 %v1383_v10, 0.0 }
 0x209   : > { %2189 = vpow2.f32 %v1990_v11 }
 0x20c   : > { %v1384_v12 = vpop.f32.mrf.mxu0 }
 0x20f   : > { %v2190_v13 = vpop.eup %2189 }
 0x210   : > { %v1391_v14 = vadd.f32 1.0, %v2190_v13 }
 0x212   : > { %2191 = vrcp.f32 %v1391_v14  ;;  %v1403_v18 = vand.u32 2147483648, %v1391_v14  ;;  %v1401_v20 = vand.u32 2147483647, %v1391_v14  ;;  %vm1397_vm8 = vweird.f32 %v1391_v14 }
 0x213   : > { %2193 = vtanh.f32 %v1383_v10 }
 0x214   : > { %v1404_v23 = vor.u32 1.1754944e-38, %v1403_v18  ;;  %vm1402_vm10 = vcmp.eq.f32.partialorder %v1401_v20, 8.507059e+37 }
 0x218   : > { %v2192_v15 = vpop.eup %2191 }
 0x219   : > { %v1393_v16 = vmul.f32 %v2192_v15, %v1391_v14  ;;  %vm1398_vm7 = vweird.f32 %v2192_v15  ;;  %v2194_v25 = vpop.eup %2193 }
 0x21a   : > { %vm1399_vm9 = vmor %vm1397_vm8, %vm1398_vm7 }
 0x21b   : > { %v1394_v17 = vsub.f32 1.0, %v1393_v16 }
 0x21d   : > { %v1395_v19 = vmul.f32 %v2192_v15, %v1394_v17 }
 0x21f   : > { %v1396_v21 = vadd.f32 %v2192_v15, %v1395_v19 }
 0x221   : > { %v1400_v24 = vsel %vm1399_vm9, %v2192_v15, %v1396_v21 }
 0x222   : > { %v1405_v27 = vsel %vm1402_vm10, %v1404_v23, %v1400_v24 }
 0x223   : > { %v1407_v28 = vsel %vm2858_vm3, %v2194_v25, %v1405_v27 }
 0x224   : > { %v1408_v29 = vsel %vm2862_vm5, %v1386_v26, %v1407_v28 }
 0x225   : > { %v1413_v30 = vsel %vm1412_vm11, %v1408_v29, %v1347_v4 }
 0x226   : > { %v1414_v31 = vpack.c.bf16 %v1413_v30, %v1413_v30 }
 0x228   : > { %1999 = vmatmul.msk.bf16.vlgmr.msra.gmra.mxu1 %vm1369_vm6, %v1414_v31 }
 0x2a5   : > { %v1447_v35 = vpop.f32.mrf.mxu1 }
 0x2a6   : > { %v1448_v36 = vadd.f32 %v2181_v33, %v1447_v35 }
 0x2a8   : > { %v2000_v37 = vmul.f32 -1.442695, %v1448_v36  ;;  %v1451_v52 = vmax.f32 %v1448_v36, 0.0 }
 0x2aa   : > { %2195 = vpow2.f32 %v2000_v37 }
 0x2ad   : > { %v1449_v38 = vpop.f32.mrf.mxu1 }
 0x2b0   : > { %v2196_v39 = vpop.eup %2195 }
 0x2b1   : > { %v1456_v40 = vadd.f32 1.0, %v2196_v39 }
 0x2b3   : > { %2197 = vrcp.f32 %v1456_v40  ;;  %v1468_v44 = vand.u32 2147483648, %v1456_v40  ;;  %v1466_v46 = vand.u32 2147483647, %v1456_v40  ;;  %vm1462_vm13 = vweird.f32 %v1456_v40 }
 0x2b4   : > { %2199 = vtanh.f32 %v1448_v36 }
 0x2b5   : > { %v1469_v49 = vor.u32 1.1754944e-38, %v1468_v44  ;;  %vm1467_vm15 = vcmp.eq.f32.partialorder %v1466_v46, 8.507059e+37 }
 0x2b9   : > { %v2198_v41 = vpop.eup %2197 }
 0x2ba   : > { %v1458_v42 = vmul.f32 %v2198_v41, %v1456_v40  ;;  %vm1463_vm12 = vweird.f32 %v2198_v41  ;;  %v2200_v51 = vpop.eup %2199 }
 0x2bb   : > { %vm1464_vm14 = vmor %vm1462_vm13, %vm1463_vm12 }
 0x2bc   : > { %v1459_v43 = vsub.f32 1.0, %v1458_v42 }
 0x2be   : > { %v1460_v45 = vmul.f32 %v2198_v41, %v1459_v43 }
 0x2c0   : > { %v1461_v47 = vadd.f32 %v2198_v41, %v1460_v45 }
 0x2c2   : > { %v1465_v50 = vsel %vm1464_vm14, %v2198_v41, %v1461_v47 }
 0x2c3   : > { %v1470_v53 = vsel %vm1467_vm15, %v1469_v49, %v1465_v50 }
 0x2c4   : > { %v1472_v54 = vsel %vm2858_vm3, %v2200_v51, %v1470_v53 }
 0x2c5   : > { %v1473_v55 = vsel %vm2862_vm5, %v1451_v52, %v1472_v54 }
 0x2c6   : > { %v1478_v56 = vsel %vm1477_vm0, %v1473_v55, %v1413_v30 }
 0x2c7   : > { %v1479_v57 = vpack.c.bf16 %v1478_v56, %v1478_v56 }
 0x2c9   : > { %2009 = vmatmul.msk.bf16.vlgmr.msra.gmra.mxu2 %vm1369_vm6, %v1479_v57 }
 0x34c   : > { %v1512_v59 = vpop.f32.mrf.mxu2 }
 0x34d   : > { %v1513_v62 = vadd.f32 %v2182_v58, %v1512_v59 }
 0x34f   : > { %v1518_v1 = vmul.f32 %v1517_v60, %v1513_v62 }
 0x351   : > { %v1519_v61 = vadd.f32 %v1518_v1, %v1516_v0 }
 0x353   : > { %1520 = vst [vmem:[%s2988_s5] sm:$0xff] %v1519_v61 }
 0x354   : > { %v1514_v63 = vpop.f32.mrf.mxu2 }
 0x355 PF: > { %s2989_s24 = sld [smem:[#allocation23_spill]] }
 0x356   : > { %s2990_s21 = sld [smem:[#allocation20_spill]] }
 0x357   : > { %s2991_s22 = sld [smem:[#allocation21_spill]] }
 0x358   : > { %s2992_s23 = sld [smem:[#allocation24_spill]] }
 0x35b   : > { %p30_p2 = scmp.ge.s32.totalorder %s2989_s24, 11  }
 0x35d   :  { %32 = sbr.rel (!%p30_p2) target bundleno = 17 (0x11), region = 178 }
 0x362   :  { %1532 = vsyncpa [#allocation3], 1 }
 0x363   :  { %1534 = vsyncpa [#allocation3 + $0x1], 1 }
 0x364   :  { %1535 = vsyncpa [#allocation10], 1 }
 0x365   :  { %1537 = vsyncpa [#allocation10 + $0x1], 1 }
 0x366   :  { %1538 = vsyncpa [#allocation13], 1 }
 0x367   :  { %1540 = vsyncpa [#allocation13 + $0x1], 1 }
 0x368   :  { %1541 = vsyncpa [#allocation4], 1 }
 0x369   :  { %1543 = vsyncpa [#allocation4 + $0x1], 1 }
 0x36a   :  { %1544 = vsyncpa [#allocation6], 1 }

// kernel: darts_forward.5
= control target key start
LH: loop header
LB: loop body
LE: loop exit
PB: predicated region body
PF: predicated region fallthrough
CT: control target
= control target key end

     0   :  { %10 = vsyncpa [#allocation4], 0  ;;  %s1045_s18 = smov [#allocation3]   ;;  %s1046_s20 = smov 64   ;;  %s1097_s0 = inlined_call_operand.<no memory space> [shape: f32[1], index: 0, kind: input, shape index: {}]   ;;  %s1098_s1 = inlined_call_operand.vmem [shape: bf16[8,1024], index: 1, kind: input, shape index: {}]   ;;  %s1099_s2 = inlined_call_operand.hbm [shape: bf16[1024,128], index: 2, kind: input, shape index: {}]   ;;  %s1100_s3 = inlined_call_operand.vmem [shape: f32[1,128], index: 3, kind: input, shape index: {}]   ;;  %s1101_s4 = inlined_call_operand.vmem [shape: f32[8,128], index: 4, kind: output, shape index: {}]  }
   0x1   :  { %s19_s17 = sshll.u32 %s1099_s2, 4  ;;  %s21_s19 = sshll.u32 %s1045_s18, 4  ;;  %s20_s17 = int_to_ptr.hbm [resolvable:$true] %s19_s17  ;;  %s22_s19 = int_to_ptr.vmem [resolvable:$true] %s21_s19 }
   0x2   :  { %s1047_s21 = smov 4  }
   0x3   :  { %27 = dma.hbm_to_vmem [thread:$0]  %s20_s17, 8192, %s22_s19, [#allocation4], %s1046_s20, %s1046_s20, %s1047_s21  }
   0x4   :  { %1043 = dma.done.wait [#allocation4], 8192  }
   0x5   :  { %1044 = vsyncadd [#allocation4], 4294959104  ;;  %v958_v0 = vld [vmem:[#allocation3 + $0x38] sm:$0xff]  ;;  %v957_v4 = vld [vmem:[#allocation3 + $0x30] sm:$0xff] }
   0x6   :  { %v966_v1 = vld [vmem:[#allocation3 + $0x78] sm:$0xff]  ;;  %582 = vmatpush.bf16.msra.mxu0 %v958_v0  ;;  %v965_v5 = vld [vmem:[#allocation3 + $0x70] sm:$0xff]  ;;  %v956_v8 = vld [vmem:[#allocation3 + $0x28] sm:$0xff] }
   0x7   :  { %v974_v2 = vld [vmem:[#allocation3 + $0xb8] sm:$0xff]  ;;  %595 = vmatpush.bf16.msra.mxu1 %v966_v1  ;;  %v973_v6 = vld [vmem:[#allocation3 + $0xb0] sm:$0xff]  ;;  %v964_v9 = vld [vmem:[#allocation3 + $0x68] sm:$0xff] }
   0x8   :  { %v982_v3 = vld [vmem:[#allocation3 + $0xf8] sm:$0xff]  ;;  %608 = vmatpush.bf16.msra.mxu2 %v974_v2  ;;  %v981_v7 = vld [vmem:[#allocation3 + $0xf0] sm:$0xff]  ;;  %v972_v10 = vld [vmem:[#allocation3 + $0xa8] sm:$0xff] }
   0x9   :  { %621 = vmatpush.bf16.msra.mxu3 %v982_v3  ;;  %v980_v11 = vld [vmem:[#allocation3 + $0xe8] sm:$0xff]  ;;  %v955_v12 = vld [vmem:[#allocation3 + $0x20] sm:$0xff]  ;;  %v954_v16 = vld [vmem:[#allocation3 + $0x18] sm:$0xff] }
   0xa   :  { %583 = vmatpush.bf16.msra.mxu0 %v957_v4  ;;  %v963_v13 = vld [vmem:[#allocation3 + $0x60] sm:$0xff]  ;;  %v962_v17 = vld [vmem:[#allocation3 + $0x58] sm:$0xff]  ;;  %v953_v20 = vld [vmem:[#allocation3 + $0x10] sm:$0xff] }
   0xb   :  { %596 = vmatpush.bf16.msra.mxu1 %v965_v5  ;;  %v971_v14 = vld [vmem:[#allocation3 + $0xa0] sm:$0xff]  ;;  %v970_v18 = vld [vmem:[#allocation3 + $0x98] sm:$0xff]  ;;  %v961_v21 = vld [vmem:[#allocation3 + $0x50] sm:$0xff] }
   0xc   :  { %609 = vmatpush.bf16.msra.mxu2 %v973_v6  ;;  %v979_v15 = vld [vmem:[#allocation3 + $0xe0] sm:$0xff]  ;;  %v978_v19 = vld [vmem:[#allocation3 + $0xd8] sm:$0xff]  ;;  %v969_v22 = vld [vmem:[#allocation3 + $0x90] sm:$0xff] }
   0xd   :  { %622 = vmatpush.bf16.msra.mxu3 %v981_v7  ;;  %v977_v23 = vld [vmem:[#allocation3 + $0xd0] sm:$0xff]  ;;  %v952_v24 = vld [vmem:[#allocation3 + $0x8] sm:$0xff]  ;;  %v34_v29 = vld [vmem:[%s1098_s1] sm:$0xff] }
   0xe   :  { %584 = vmatpush.bf16.msra.mxu0 %v956_v8  ;;  %v960_v25 = vld [vmem:[#allocation3 + $0x48] sm:$0xff]  ;;  %v951_v30 = vld [vmem:[#allocation3] sm:$0xff]  ;;  %v174_v36 = vunpack.c.l.b16 %v34_v29  ;;  %v175_v37 = vunpack.c.h.b16 %v34_v29  ;;  %v990_v38 = vld [vmem:[#allocation3 + $0x138] sm:$0xff] }
   0xf   :  { %597 = vmatpush.bf16.msra.mxu1 %v964_v9  ;;  %v968_v26 = vld [vmem:[#allocation3 + $0x88] sm:$0xff]  ;;  %v959_v31 = vld [vmem:[#allocation3 + $0x40] sm:$0xff]  ;;  %v998_v39 = vld [vmem:[#allocation3 + $0x178] sm:$0xff] }
  0x10   :  { %610 = vmatpush.bf16.msra.mxu2 %v972_v10  ;;  %v976_v27 = vld [vmem:[#allocation3 + $0xc8] sm:$0xff]  ;;  %v967_v34 = vld [vmem:[#allocation3 + $0x80] sm:$0xff]  ;;  %v1006_v40 = vld [vmem:[#allocation3 + $0x1b8] sm:$0xff]  ;;  %v182_v44 = vpack.c.b16 %v174_v36, %v174_v36  ;;  %v183_v45 = vpack.c.b16 %v175_v37, %v175_v37 }
  0x11   :  { %623 = vmatpush.bf16.msra.mxu3 %v980_v11  ;;  %v35_v28 = vld [vmem:[%s1098_s1 + $0x8] sm:$0xff]  ;;  %v975_v35 = vld [vmem:[#allocation3 + $0xc0] sm:$0xff]  ;;  %v1014_v41 = vld [vmem:[#allocation3 + $0x1f8] sm:$0xff] }
  0x12   :  { %585 = vmatpush.bf16.msra.mxu0 %v955_v12  ;;  %v176_v32 = vunpack.c.l.b16 %v35_v28  ;;  %v177_v33 = vunpack.c.h.b16 %v35_v28  ;;  %v989_v46 = vld [vmem:[#allocation3 + $0x130] sm:$0xff]  ;;  %v988_v50 = vld [vmem:[#allocation3 + $0x128] sm:$0xff]  ;;  %v987_v54 = vld [vmem:[#allocation3 + $0x120] sm:$0xff] }
  0x13   :  { %598 = vmatpush.bf16.msra.mxu1 %v963_v13  ;;  %v997_v47 = vld [vmem:[#allocation3 + $0x170] sm:$0xff]  ;;  %v996_v51 = vld [vmem:[#allocation3 + $0x168] sm:$0xff]  ;;  %v995_v55 = vld [vmem:[#allocation3 + $0x160] sm:$0xff] }
  0x14   :  { %611 = vmatpush.bf16.msra.mxu2 %v971_v14  ;;  %v184_v42 = vpack.c.b16 %v176_v32, %v176_v32  ;;  %v185_v43 = vpack.c.b16 %v177_v33, %v177_v33  ;;  %v1005_v48 = vld [vmem:[#allocation3 + $0x1b0] sm:$0xff]  ;;  %v1004_v52 = vld [vmem:[#allocation3 + $0x1a8] sm:$0xff]  ;;  %v1003_v56 = vld [vmem:[#allocation3 + $0x1a0] sm:$0xff] }
  0x15   :  { %624 = vmatpush.bf16.msra.mxu3 %v979_v15  ;;  %v1013_v49 = vld [vmem:[#allocation3 + $0x1f0] sm:$0xff]  ;;  %v1012_v53 = vld [vmem:[#allocation3 + $0x1e8] sm:$0xff]  ;;  %v1011_v57 = vld [vmem:[#allocation3 + $0x1e0] sm:$0xff] }
  0x16   :  { %586 = vmatpush.bf16.msra.mxu0 %v954_v16  ;;  %v986_v58 = vld [vmem:[#allocation3 + $0x118] sm:$0xff]  ;;  %v985_v62 = vld [vmem:[#allocation3 + $0x110] sm:$0xff]  ;;  %v984_v2 = vld [vmem:[#allocation3 + $0x108] sm:$0xff] }
  0x17   :  { %599 = vmatpush.bf16.msra.mxu1 %v962_v17  ;;  %v994_v59 = vld [vmem:[#allocation3 + $0x158] sm:$0xff]  ;;  %v993_v63 = vld [vmem:[#allocation3 + $0x150] sm:$0xff]  ;;  %v992_v3 = vld [vmem:[#allocation3 + $0x148] sm:$0xff] }
  0x18   :  { %612 = vmatpush.bf16.msra.mxu2 %v970_v18  ;;  %v1002_v60 = vld [vmem:[#allocation3 + $0x198] sm:$0xff]  ;;  %v1001_v0 = vld [vmem:[#allocation3 + $0x190] sm:$0xff]  ;;  %v1000_v5 = vld [vmem:[#allocation3 + $0x188] sm:$0xff] }
  0x19   :  { %625 = vmatpush.bf16.msra.mxu3 %v978_v19  ;;  %v1010_v61 = vld [vmem:[#allocation3 + $0x1d8] sm:$0xff]  ;;  %v1009_v1 = vld [vmem:[#allocation3 + $0x1d0] sm:$0xff]  ;;  %v1008_v6 = vld [vmem:[#allocation3 + $0x1c8] sm:$0xff] }
  0x1a   :  { %587 = vmatpush.bf16.msra.mxu0 %v953_v20  ;;  %v36_v4 = vld [vmem:[%s1098_s1 + $0x10] sm:$0xff]  ;;  %v37_v7 = vld [vmem:[%s1098_s1 + $0x18] sm:$0xff]  ;;  %v983_v10 = vld [vmem:[#allocation3 + $0x100] sm:$0xff] }
  0x1b   :  { %600 = vmatpush.bf16.msra.mxu1 %v961_v21  ;;  %v178_v8 = vunpack.c.l.b16 %v36_v4  ;;  %v179_v9 = vunpack.c.h.b16 %v36_v4  ;;  %v991_v11 = vld [vmem:[#allocation3 + $0x140] sm:$0xff]  ;;  %v180_v12 = vunpack.c.l.b16 %v37_v7  ;;  %v181_v13 = vunpack.c.h.b16 %v37_v7 }
  0x1c   :  { %613 = vmatpush.bf16.msra.mxu2 %v969_v22  ;;  %v999_v14 = vld [vmem:[#allocation3 + $0x180] sm:$0xff] }
  0x1d   :  { %626 = vmatpush.bf16.msra.mxu3 %v977_v23  ;;  %v1007_v15 = vld [vmem:[#allocation3 + $0x1c0] sm:$0xff]  ;;  %v186_v16 = vpack.c.b16 %v178_v8, %v178_v8  ;;  %v187_v17 = vpack.c.b16 %v179_v9, %v179_v9  ;;  %v188_v18 = vpack.c.b16 %v180_v12, %v180_v12  ;;  %v189_v19 = vpack.c.b16 %v181_v13, %v181_v13 }
  0x1e   :  { %588 = vmatpush.bf16.msra.mxu0 %v952_v24 }
  0x1f   :  { %601 = vmatpush.bf16.msra.mxu1 %v960_v25 }
  0x20   :  { %614 = vmatpush.bf16.msra.mxu2 %v968_v26  ;;  %v1018_v26 = vld [vmem:[%s1100_s3] ss:$0 sm:$0xff] }
  0x21   :  { %627 = vmatpush.bf16.msra.mxu3 %v976_v27 }
  0x22   :  { %589 = vmatpush.bf16.msra.mxu0 %v951_v30 }
  0x23   :  { %602 = vmatpush.bf16.msra.mxu1 %v959_v31 }
  0x24   :  { %615 = vmatpush.bf16.msra.mxu2 %v967_v34 }
  0x25   :  { %628 = vmatpush.bf16.msra.mxu3 %v975_v35  ;;  %590 = vmatmul.bf16.vlgmr.msra.gmra.mxu0 %v182_v44 }
  0x26   :  { %634 = vmatpush.bf16.msrb.mxu0 %v990_v38  ;;  %603 = vmatmul.bf16.vlgmr.msra.gmra.mxu1 %v183_v45 }
  0x27   :  { %647 = vmatpush.bf16.msrb.mxu1 %v998_v39  ;;  %616 = vmatmul.bf16.vlgmr.msra.gmra.mxu2 %v184_v42  ;;  %v687_v42 = vstv %s1097_s0 }
  0x28   :  { %660 = vmatpush.bf16.msrb.mxu2 %v1006_v40  ;;  %629 = vmatmul.bf16.vlgmr.msra.gmra.mxu3 %v185_v43 }
  0x29   :  { %673 = vmatpush.bf16.msrb.mxu3 %v1014_v41 }
  0x2a   :  { %635 = vmatpush.bf16.msrb.mxu0 %v989_v46 }
  0x2b   :  { %648 = vmatpush.bf16.msrb.mxu1 %v997_v47 }
  0x2c   :  { %661 = vmatpush.bf16.msrb.mxu2 %v1005_v48 }
  0x2d   :  { %674 = vmatpush.bf16.msrb.mxu3 %v1013_v49 }
  0x2e   :  { %636 = vmatpush.bf16.msrb.mxu0 %v988_v50 }
  0x2f   :  { %649 = vmatpush.bf16.msrb.mxu1 %v996_v51 }
  0x30   :  { %662 = vmatpush.bf16.msrb.mxu2 %v1004_v52 }
  0x31   :  { %675 = vmatpush.bf16.msrb.mxu3 %v1012_v53 }
  0x32   :  { %637 = vmatpush.bf16.msrb.mxu0 %v987_v54 }
  0x33   :  { %650 = vmatpush.bf16.msrb.mxu1 %v995_v55 }
  0x34   :  { %663 = vmatpush.bf16.msrb.mxu2 %v1003_v56 }
  0x35   :  { %676 = vmatpush.bf16.msrb.mxu3 %v1011_v57 }
  0x36   :  { %638 = vmatpush.bf16.msrb.mxu0 %v986_v58 }
  0x37   :  { %651 = vmatpush.bf16.msrb.mxu1 %v994_v59 }
  0x38   :  { %664 = vmatpush.bf16.msrb.mxu2 %v1002_v60 }
  0x39   :  { %677 = vmatpush.bf16.msrb.mxu3 %v1010_v61 }
  0x3a   :  { %639 = vmatpush.bf16.msrb.mxu0 %v985_v62 }
  0x3b   :  { %652 = vmatpush.bf16.msrb.mxu1 %v993_v63 }
  0x3c   :  { %665 = vmatpush.bf16.msrb.mxu2 %v1001_v0 }
  0x3d   :  { %678 = vmatpush.bf16.msrb.mxu3 %v1009_v1 }
  0x3e   :  { %640 = vmatpush.bf16.msrb.mxu0 %v984_v2 }
  0x3f   :  { %653 = vmatpush.bf16.msrb.mxu1 %v992_v3 }
  0x40   :  { %666 = vmatpush.bf16.msrb.mxu2 %v1000_v5 }
  0x41   :  { %679 = vmatpush.bf16.msrb.mxu3 %v1008_v6 }
  0x42   :  { %641 = vmatpush.bf16.msrb.mxu0 %v983_v10 }
  0x43   :  { %654 = vmatpush.bf16.msrb.mxu1 %v991_v11 }
  0x44   :  { %667 = vmatpush.bf16.msrb.mxu2 %v999_v14 }
  0x45   :  { %680 = vmatpush.bf16.msrb.mxu3 %v1007_v15  ;;  %642 = vmatmul.bf16.vlgmr.msrb.gmra.mxu0 %v186_v16 }
  0x46   :  { %655 = vmatmul.bf16.vlgmr.msrb.gmra.mxu1 %v187_v17 }
  0x47   :  { %668 = vmatmul.bf16.vlgmr.msrb.gmra.mxu2 %v188_v18 }
  0x48   :  { %681 = vmatmul.bf16.vlgmr.msrb.gmra.mxu3 %v189_v19 }
  0xa2   :  { %v591_v20 = vpop.f32.mrf.mxu0 }
  0xa3   :  { %v604_v21 = vpop.f32.mrf.mxu1  ;;  %v592_v29 = vadd.f32 %v1018_v26, %v591_v20 }
  0xa5   :  { %v605_v30 = vadd.f32 %v604_v21, %v592_v29 }
  0xaa   :  { %v617_v22 = vpop.f32.mrf.mxu2  ;;  %v593_v24 = vpop.f32.mrf.mxu0 }
  0xab   :  { %v630_v23 = vpop.f32.mrf.mxu3  ;;  %v606_v25 = vpop.f32.mrf.mxu1  ;;  %v618_v31 = vadd.f32 %v617_v22, %v605_v30 }
  0xad   :  { %v631_v32 = vadd.f32 %v630_v23, %v618_v31 }
  0xb2   :  { %v619_v27 = vpop.f32.mrf.mxu2 }
  0xb3   :  { %v632_v28 = vpop.f32.mrf.mxu3 }
  0xc2   :  { %v643_v33 = vpop.f32.mrf.mxu0 }
  0xc3   :  { %v656_v34 = vpop.f32.mrf.mxu1  ;;  %v644_v35 = vadd.f32 %v643_v33, %v631_v32 }
  0xc5   :  { %v657_v36 = vadd.f32 %v656_v34, %v644_v35 }
  0xca   :  { %v669_v37 = vpop.f32.mrf.mxu2  ;;  %v645_v40 = vpop.f32.mrf.mxu0 }
  0xcb   :  { %v682_v38 = vpop.f32.mrf.mxu3  ;;  %v670_v39 = vadd.f32 %v669_v37, %v657_v36  ;;  %v658_v41 = vpop.f32.mrf.mxu1 }
  0xcd   :  { %v683_v43 = vadd.f32 %v682_v38, %v670_v39 }
  0xcf   :  { %v688_v44 = vmul.f32 %v687_v42, %v683_v43 }
  0xd1   :  { %689 = vst [vmem:[%s1101_s4] sm:$0xff] %v688_v44 }
  0xd2   :  { %v671_v45 = vpop.f32.mrf.mxu2 }
  0xd3   :  { %v684_v46 = vpop.f32.mrf.mxu3 }
  0xd4   :  { %694 = vsyncpa [#allocation4], 1 }

// kernel: darts_forward.8
= control target key start
LH: loop header
LB: loop body
LE: loop exit
PB: predicated region body
PF: predicated region fallthrough
CT: control target
= control target key end

     0   :  { %s3400_s0 = inlined_call_operand.vmem [shape: f32[9], index: 0, kind: input, shape index: {}]   ;;  %s3401_s1 = inlined_call_operand.vmem [shape: s32[9], index: 1, kind: input, shape index: {}]   ;;  %s3402_s2 = inlined_call_operand.hbm [shape: s32[9], index: 2, kind: input, shape index: {}]   ;;  %s3403_s3 = inlined_call_operand.vmem [shape: bf16[8,1024], index: 3, kind: input, shape index: {}]   ;;  %s3404_s4 = inlined_call_operand.hbm [shape: bf16[9,1024,128], index: 4, kind: input, shape index: {}]   ;;  %s3405_s5 = inlined_call_operand.hbm [shape: f32[9,1,128], index: 5, kind: input, shape index: {}]   ;;  %s3406_s6 = inlined_call_operand.hbm [shape: bf16[9,128,128], index: 6, kind: input, shape index: {}]   ;;  %s3407_s7 = inlined_call_operand.hbm [shape: f32[9,1,128], index: 7, kind: input, shape index: {}]   ;;  %s3408_s8 = inlined_call_operand.hbm [shape: bf16[9,128,128], index: 8, kind: input, shape index: {}]   ;;  %s3409_s9 = inlined_call_operand.hbm [shape: f32[9,1,128], index: 9, kind: input, shape index: {}]   ;;  %s3410_s10 = inlined_call_operand.hbm [shape: bf16[9,128,128], index: 10, kind: input, shape index: {}]   ;;  %s3411_s11 = inlined_call_operand.hbm [shape: f32[9,1,128], index: 11, kind: input, shape index: {}]   ;;  %s3412_s12 = inlined_call_operand.vmem [shape: f32[8,128], index: 12, kind: output, shape index: {}]  }
   0x1   :  { %3421 = sst [smem:[#allocation32_spill]] %s3400_s0 }
   0x2   :  { %3422 = sst [smem:[#allocation33_spill]] %s3401_s1 }
   0x3   :  { %3423 = sst [smem:[#allocation34_spill]] %s3402_s2 }
   0x4   :  { %3424 = sst [smem:[#allocation35_spill]] %s3403_s3 }
   0x5   :  { %3425 = sst [smem:[#allocation36_spill]] %s3405_s5 }
   0x6   :  { %3426 = sst [smem:[#allocation37_spill]] %s3407_s7 }
   0x7   :  { %3427 = sst [smem:[#allocation38_spill]] %s3409_s9 }
   0x8   :  { %3428 = sst [smem:[#allocation39_spill]] %s3412_s12 }
   0x9   :  { %17 = vsyncpa [#allocation5], 0 }
   0xa   :  { %18 = vsyncpa [#allocation7], 0 }
   0xb   :  { %19 = vsyncpa [#allocation4], 0 }
   0xc   :  { %20 = vsyncpa [#allocation3], 0 }
   0xd   :  { %22 = vsyncpa [#allocation3 + $0x1], 0 }
   0xe   :  { %23 = vsyncpa [#allocation11], 0 }
   0xf   :  { %25 = vsyncpa [#allocation11 + $0x1], 0 }
  0x10   :  { %26 = vsyncpa [#allocation14], 0 }
  0x11   :  { %28 = vsyncpa [#allocation14 + $0x1], 0 }
  0x12   :  { %29 = vsyncpa [#allocation17], 0 }
  0x13   :  { %31 = vsyncpa [#allocation17 + $0x1], 0 }
  0x14   :  { %32 = vsyncpa [#allocation20], 0 }
  0x15   :  { %34 = vsyncpa [#allocation20 + $0x1], 0  ;;  %s2951_s21 = smov 0   ;;  %s2953_s22 = smov 0  }
  0x16   :  { %s2955_s23 = smov 0   ;;  %s2957_s24 = smov 0  }
  0x17 LB: > { %3429 = sst [smem:[#allocation29_spill]] %s2874_s23  ;;  %s2972_s25 = sadd.s32 1, %s2878_s24   ;;  %s2878_s24 = sphi %s2957_s24, %s3452_s24   ;;  %s2874_s23 = sphi %s2955_s23, %s3454_s23   ;;  %s2870_s22 = sphi %s2953_s22, %s3456_s22   ;;  %s2866_s21 = sphi %s2951_s21, %s3455_s21  }
  0x18   : > { %3430 = sst [smem:[#allocation30_spill]] %s2972_s25  ;;  %s131_s26 = sadd.s32 1, %s2874_s23 }
  0x19   : > { %s128_s27 = ssub.s32 %s2878_s24, %s2972_s25  ;;  %p138_p0 = scmp.ne.s32.totalorder %s2874_s23, %s2870_s22 }
  0x1a   : > { %p129_p1 = scmp.eq.s32.totalorder %s128_s27, 0  ;;  %p139_p2 = scmp.eq.s32.totalorder %s2878_s24, 0 }
  0x1b   : > { %p2467_p3 = scmp.lt.s32.totalorder %s2878_s24, 9  ;;  %s2985_s29 = sand.u32 1, %s2874_s23  }
  0x1c   : > { %s2982_s28 = scalar_select %p129_p1, %s2874_s23, %s131_s26  }
  0x1d   : > { %p140_p4 = por %p139_p2, %p138_p0  ;;  %s2988_s30 = sand.u32 1, %s2878_s24  }
  0x1e   : > { %3431 = sst [smem:[#allocation31_spill]] %s2982_s28  ;;  %s429_s17 = scalar_lea.vmem [#allocation10], %s2985_s29 }
  0x1f   : > { %p2990_p5 = pnand %p2467_p3, %p140_p4  ;;  %s3433_s5 = sld [smem:[#allocation36_spill]] }
  0x20   : > { %s436_s18 = sshll.u32 %s429_s17, 4  ;;  %s3418_s20 = scalar_lea.sflag [#allocation11], %s2988_s30  ;;  %s437_s18 = int_to_ptr.vmem [resolvable:$true] %s436_s18 }
  0x21   : > { %p3002_p7 = pneg %p2990_p5 }
  0x25   : > { %s432_s16 = scalar_lea.hbm %s3433_s5, %s2878_s24 }
  0x26   : > { %s434_s19 = sshll.u32 %s432_s16, 4  ;;  %s2538_s16 = scalar_lea.hbm %s3433_s5, 9  ;;  %s435_s19 = int_to_ptr.hbm [resolvable:$true] %s434_s19 }
  0x27   : > { %s2531_s26 = sshra.s32 %s435_s19, 4  ;;  %s2532_s26 = int_to_ptr.hbm [resolvable:$true] %s2531_s26 }
  0x28   : > { %s2533_s27 = scalar_lea.hbm %s2532_s26, 1  ;;  %p2539_p10 = scmp.lt.s32.totalorder %s2532_s26, %s3433_s5 }
  0x29   : > { %p2534_p6 = scmp.ne.s32.totalorder %s2532_s26, %s2533_s27  ;;  %p2540_p11 = scmp.lt.s32.totalorder %s2538_s16, %s2533_s27 }
  0x2b   : > { %p2536_p8 = pnand %p3002_p7, %p2534_p6  ;;  %p2541_p12 = por %p2540_p11, %p2539_p10 }
  0x2d   : > { %p2537_p9 = pneg %p2536_p8 }
  0x2f   : > { %p2542_p13 = pnand %p2541_p12, %p2537_p9 }
  0x31   : > { %2545 = shalt.err (!%p2542_p13)
}
  0x32   : > { %2445 = dma.hbm_to_vmem [thread:$0]  (!%p2990_p5), %s435_s19, 16, %s437_s18, %s3418_s20  }
  0x33   : > { %s3435_s7 = sld [smem:[#allocation37_spill]]  ;;  %s468_s3 = scalar_lea.vmem [#allocation13], %s2985_s29 }
  0x34   : > { %s475_s23 = sshll.u32 %s468_s3, 4  ;;  %s3420_s27 = scalar_lea.sflag [#allocation14], %s2988_s30  ;;  %s476_s23 = int_to_ptr.vmem [resolvable:$true] %s475_s23 }
  0x39   : > { %s471_s15 = scalar_lea.hbm %s3435_s7, %s2878_s24  ;;  %s2568_s18 = scalar_lea.hbm %s3435_s7, 9 }
  0x3a   : > { %s473_s26 = sshll.u32 %s471_s15, 4  ;;  %s474_s26 = int_to_ptr.hbm [resolvable:$true] %s473_s26 }
  0x3b   : > { %s2561_s16 = sshra.s32 %s474_s26, 4  ;;  %s2562_s16 = int_to_ptr.hbm [resolvable:$true] %s2561_s16 }
  0x3c   : > { %s2563_s17 = scalar_lea.hbm %s2562_s16, 1  ;;  %p2569_p3 = scmp.lt.s32.totalorder %s2562_s16, %s3435_s7 }
  0x3d   : > { %p2564_p0 = scmp.ne.s32.totalorder %s2562_s16, %s2563_s17  ;;  %p2570_p4 = scmp.lt.s32.totalorder %s2568_s18, %s2563_s17 }
  0x3f   : > { %p2566_p1 = pnand %p2564_p0, %p3002_p7  ;;  %p2571_p6 = por %p2570_p4, %p2569_p3 }
  0x41   : > { %p2567_p2 = pneg %p2566_p1 }
  0x43   : > { %p2572_p8 = pnand %p2571_p6, %p2567_p2 }
  0x45   : > { %2575 = shalt.err (!%p2572_p8)
}
  0x46   : > { %2451 = dma.hbm_to_vmem [thread:$0]  (!%p2990_p5), %s474_s26, 16, %s476_s23, %s3420_s27  }
  0x47   : > { %s3436_s9 = sld [smem:[#allocation38_spill]]  ;;  %s507_s15 = scalar_lea.vmem [#allocation16], %s2985_s29 }
  0x48   : > { %s514_s16 = sshll.u32 %s507_s15, 4  ;;  %s3419_s17 = scalar_lea.sflag [#allocation17], %s2988_s30  ;;  %s515_s16 = int_to_ptr.vmem [resolvable:$true] %s514_s16 }
  0x4d   : > { %s510_s12 = scalar_lea.hbm %s3436_s9, %s2878_s24  ;;  %s2598_s23 = scalar_lea.hbm %s3436_s9, 9 }
  0x4e   : > { %s512_s14 = sshll.u32 %s510_s12, 4  ;;  %s513_s14 = int_to_ptr.hbm [resolvable:$true] %s512_s14 }
  0x4f   : > { %s2591_s18 = sshra.s32 %s513_s14, 4  ;;  %s2592_s18 = int_to_ptr.hbm [resolvable:$true] %s2591_s18 }
  0x50   : > { %s2593_s19 = scalar_lea.hbm %s2592_s18, 1  ;;  %p2599_p12 = scmp.lt.s32.totalorder %s2592_s18, %s3436_s9 }
  0x51   : > { %p2594_p9 = scmp.ne.s32.totalorder %s2592_s18, %s2593_s19  ;;  %p2600_p13 = scmp.lt.s32.totalorder %s2598_s23, %s2593_s19 }
  0x53   : > { %p2596_p10 = pnand %p2594_p9, %p3002_p7  ;;  %p2601_p0 = por %p2600_p13, %p2599_p12 }
  0x55   : > { %p2597_p11 = pneg %p2596_p10 }
  0x57   : > { %p2602_p1 = pnand %p2601_p0, %p2597_p11 }
  0x59   : > { %2605 = shalt.err (!%p2602_p1)
}
  0x5a   : > { %2457 = dma.hbm_to_vmem [thread:$0]  (!%p2990_p5), %s513_s14, 16, %s515_s16, %s3419_s17  }
  0x5b   : > { %s3055_s20 = sadd.s32 4294967295, %s2878_s24   ;;  %p144_p3 = scmp.ne.s32.totalorder %s2870_s22, %s2866_s21 }
  0x5c   : > { %p145_p2 = scmp.eq.s32.totalorder %s3055_s20, 0  ;;  %p1926_p4 = scmp.ge.s32.totalorder %s2878_s24, 1 }
  0x5d   : > { %p358_p6 = scmp.lt.s32.totalorder %s2878_s24, 10  ;;  %p1927_p8 = scmp.ne.s32.totalorder %s3055_s20, 0 }
  0x5e   : > { %p3065_p9 = por %p145_p2, %p144_p3  ;;  %s3438_s0 = sld [smem:[#allocation32_spill]] }
  0x5f   : > { %p3072_p10 = pnand %p1926_p4, %p358_p6  ;;  %s3440_s1 = sld [smem:[#allocation33_spill]] }
  0x60   : > { %s3441_s2 = sld [smem:[#allocation34_spill]]  ;;  %s1931_s3 = sshll.u32 %s2985_s29, 9 }
  0x61   : > { %p2429_p11 = pneg %p3072_p10  ;;  %s2880_s12 = smov [#allocation2]  }
  0x62   : > { %s2881_s15 = smov [#allocation6]   ;;  %s2882_s21 = smov [#allocation8]  }
  0x63   : > { %p2430_p12 = pnand %p2429_p11, %p145_p2  ;;  %s2309_s18 = sshll.u32 %s2878_s24, 9 }
  0x64   : > { %s370_s14 = sshll.u32 %s3438_s0, 4  ;;  %s413_s0 = scalar_lea.hbm %s3404_s4, %s2309_s18  ;;  %s371_s14 = int_to_ptr.vmem [resolvable:$true] %s370_s14 }
  0x65   : > { %s380_s19 = sshll.u32 %s3440_s1, 4  ;;  %s408_s25 = scalar_lea.vmem [#allocation9], %s1931_s3  ;;  %s381_s19 = int_to_ptr.vmem [resolvable:$true] %s380_s19 }
  0x66   : > { %s390_s26 = sshll.u32 %s3441_s2, 4  ;;  %s416_s23 = sshll.u32 %s408_s25, 4  ;;  %s391_s26 = int_to_ptr.hbm [resolvable:$true] %s390_s26  ;;  %s417_s23 = int_to_ptr.vmem [resolvable:$true] %s416_s23 }
  0x67   : > { %2432 = dma.vmem_to_smem (!%p2430_p12), %s371_s14, 16, %s2880_s12, [#allocation5]  }
  0x68   : > { %2435 = dma.vmem_to_smem (!%p2430_p12), %s381_s19, 16, %s2881_s15, [#allocation7]  }
  0x69   : > { %2438 = dma.hbm_to_smem (!%p2430_p12), %s391_s26, 16, %s2882_s21, [#allocation4]  }
  0x6a   : > { %s414_s1 = sshll.u32 %s413_s0, 4  ;;  %s3092_s2 = sshll.u32 %s2985_s29, 6  ;;  %s415_s1 = int_to_ptr.hbm [resolvable:$true] %s414_s1 }
  0x6b   : > { %s405_s7 = scalar_lea.sflag [#allocation3], %s2985_s29  ;;  %s2666_s9 = sshra.s32 %s415_s1, 4  ;;  %s2667_s9 = int_to_ptr.hbm [resolvable:$true] %s2666_s9 }
  0x6c   : > { %s2668_s14 = scalar_lea.hbm %s2667_s9, 512  ;;  %s2673_s27 = scalar_lea.hbm %s3404_s4, 4608 }
  0x6d   : > { %p2669_p13 = scmp.ne.s32.totalorder %s2667_s9, %s2668_s14  ;;  %p2674_p3 = scmp.lt.s32.totalorder %s2667_s9, %s3404_s4 }
  0x6e   : > { %p2675_p4 = scmp.lt.s32.totalorder %s2673_s27, %s2668_s14 }
  0x6f   : > { %p2671_p0 = pnand %p2669_p13, %p3002_p7 }
  0x70   : > { %p2676_p6 = por %p2675_p4, %p2674_p3 }
  0x71   : > { %p2672_p1 = pneg %p2671_p0 }
  0x73   : > { %p2677_p11 = pnand %p2676_p6, %p2672_p1 }
  0x75   : > { %2680 = shalt.err (!%p2677_p11)
}
  0x76   : > { %s2883_s0 = smov 64   ;;  %s2884_s12 = smov 4  }
  0x77   : > { %2442 = dma.hbm_to_vmem [thread:$0]  (!%p2990_p5), %s415_s1, 8192, %s417_s23, %s405_s7, %s2883_s0, %s2883_s0, %s2884_s12  }
  0x78   : > { %s3109_s15 = sshll.u32 %s2878_s24, 6  ;;  %s447_s25 = scalar_lea.vmem [#allocation12], %s3092_s2 }
  0x79   : > { %s452_s18 = scalar_lea.hbm %s3406_s6, %s3109_s15  ;;  %s455_s14 = sshll.u32 %s447_s25, 4  ;;  %s456_s14 = int_to_ptr.vmem [resolvable:$true] %s455_s14 }
  0x7a   : > { %s453_s19 = sshll.u32 %s452_s18, 4  ;;  %s2703_s23 = scalar_lea.hbm %s3406_s6, 576  ;;  %s454_s19 = int_to_ptr.hbm [resolvable:$true] %s453_s19 }
  0x7b   : > { %s2696_s26 = sshra.s32 %s454_s19, 4  ;;  %s2697_s26 = int_to_ptr.hbm [resolvable:$true] %s2696_s26 }
  0x7c   : > { %s2698_s27 = scalar_lea.hbm %s2697_s26, 64  ;;  %p2704_p1 = scmp.lt.s32.totalorder %s2697_s26, %s3406_s6 }
  0x7d   : > { %p2699_p12 = scmp.ne.s32.totalorder %s2697_s26, %s2698_s27  ;;  %p2705_p3 = scmp.lt.s32.totalorder %s2703_s23, %s2698_s27 }
  0x7f   : > { %p2701_p13 = pnand %p2699_p12, %p3002_p7  ;;  %p2706_p4 = por %p2705_p3, %p2704_p1 }
  0x81   : > { %p2702_p0 = pneg %p2701_p13 }
  0x83   : > { %p2707_p6 = pnand %p2706_p4, %p2702_p0 }
  0x85   : > { %2710 = shalt.err (!%p2707_p6)
}
  0x86   : > { %s3442_s21 = scalar_lea.sflag [#allocation11], %s2988_s30  ;;  %s491_s25 = scalar_lea.hbm %s3408_s8, %s3109_s15 }
  0x87   : > { %2448 = dma.hbm_to_vmem [thread:$0]  (!%p2990_p5), %s454_s19, 1024, %s456_s14, %s3442_s21, %s2883_s0, %s2883_s0, %s2884_s12  }
  0x88   : > { %s486_s26 = scalar_lea.vmem [#allocation15], %s3092_s2  ;;  %s492_s1 = sshll.u32 %s491_s25, 4  ;;  %s493_s1 = int_to_ptr.hbm [resolvable:$true] %s492_s1 }
  0x89   : > { %s494_s27 = sshll.u32 %s486_s26, 4  ;;  %s2726_s7 = sshra.s32 %s493_s1, 4  ;;  %s495_s27 = int_to_ptr.vmem [resolvable:$true] %s494_s27  ;;  %s2727_s7 = int_to_ptr.hbm [resolvable:$true] %s2726_s7 }
  0x8a   : > { %s2728_s23 = scalar_lea.hbm %s2727_s7, 64  ;;  %s2733_s14 = scalar_lea.hbm %s3408_s8, 576 }
  0x8b   : > { %p2729_p11 = scmp.ne.s32.totalorder %s2727_s7, %s2728_s23  ;;  %p2734_p0 = scmp.lt.s32.totalorder %s2727_s7, %s3408_s8 }
  0x8c   : > { %p2735_p1 = scmp.lt.s32.totalorder %s2733_s14, %s2728_s23 }
  0x8d   : > { %p2731_p12 = pnand %p2729_p11, %p3002_p7 }
  0x8e   : > { %p2736_p3 = por %p2735_p1, %p2734_p0 }
  0x8f   : > { %p2732_p13 = pneg %p2731_p12 }
  0x91   : > { %p2737_p4 = pnand %p2736_p3, %p2732_p13 }
  0x93   : > { %2740 = shalt.err (!%p2737_p4)
}
  0x94   : > { %s3443_s9 = scalar_lea.sflag [#allocation14], %s2988_s30  ;;  %s530_s26 = scalar_lea.hbm %s3410_s10, %s3109_s15 }
  0x95   : > { %2454 = dma.hbm_to_vmem [thread:$0]  (!%p2990_p5), %s493_s1, 1024, %s495_s27, %s3443_s9, %s2883_s0, %s2883_s0, %s2884_s12  }
  0x96   : > { %s525_s7 = scalar_lea.vmem [#allocation18], %s3092_s2  ;;  %s531_s17 = sshll.u32 %s530_s26, 4  ;;  %s532_s17 = int_to_ptr.hbm [resolvable:$true] %s531_s17 }
  0x97   : > { %s533_s23 = sshll.u32 %s525_s7, 4  ;;  %s2756_s3 = sshra.s32 %s532_s17, 4  ;;  %s534_s23 = int_to_ptr.vmem [resolvable:$true] %s533_s23  ;;  %s2757_s3 = int_to_ptr.hbm [resolvable:$true] %s2756_s3 }
  0x98   : > { %s2758_s14 = scalar_lea.hbm %s2757_s3, 64  ;;  %s2763_s27 = scalar_lea.hbm %s3410_s10, 576 }
  0x99   : > { %p2759_p6 = scmp.ne.s32.totalorder %s2757_s3, %s2758_s14  ;;  %p2764_p13 = scmp.lt.s32.totalorder %s2757_s3, %s3410_s10 }
  0x9a   : > { %p2765_p0 = scmp.lt.s32.totalorder %s2763_s27, %s2758_s14 }
  0x9b   : > { %p2761_p11 = pnand %p2759_p6, %p3002_p7 }
  0x9c   : > { %p2766_p1 = por %p2765_p0, %p2764_p13 }
  0x9d   : > { %p2762_p12 = pneg %p2761_p11 }
  0x9f   : > { %p2767_p3 = pnand %p2766_p1, %p2762_p12 }
  0xa1   : > { %2770 = shalt.err (!%p2767_p3)
}
  0xa2   : > { %s3444_s2 = scalar_lea.sflag [#allocation17], %s2988_s30  ;;  %s549_s25 = scalar_lea.hbm %s3411_s11, %s2878_s24 }
  0xa3   : > { %2460 = dma.hbm_to_vmem [thread:$0]  (!%p2990_p5), %s532_s17, 1024, %s534_s23, %s3444_s2, %s2883_s0, %s2883_s0, %s2884_s12  }
  0xa4   : > { %s551_s26 = sshll.u32 %s549_s25, 4  ;;  %s546_s7 = scalar_lea.vmem [#allocation19], %s2985_s29  ;;  %s552_s26 = int_to_ptr.hbm [resolvable:$true] %s551_s26 }
  0xa5   : > { %s553_s3 = sshll.u32 %s546_s7, 4  ;;  %s544_s14 = scalar_lea.sflag [#allocation20], %s2985_s29  ;;  %s554_s3 = int_to_ptr.vmem [resolvable:$true] %s553_s3 }
  0xa6   : > { %s2786_s19 = sshra.s32 %s552_s26, 4  ;;  %s2793_s0 = scalar_lea.hbm %s3411_s11, 9  ;;  %s2787_s19 = int_to_ptr.hbm [resolvable:$true] %s2786_s19 }
  0xa7   : > { %s2788_s21 = scalar_lea.hbm %s2787_s19, 1  ;;  %p2794_p12 = scmp.lt.s32.totalorder %s2787_s19, %s3411_s11 }
  0xa8   : > { %p2789_p4 = scmp.ne.s32.totalorder %s2787_s19, %s2788_s21  ;;  %p2795_p13 = scmp.lt.s32.totalorder %s2793_s0, %s2788_s21 }
  0xaa   : > { %p2791_p6 = pnand %p2789_p4, %p3002_p7  ;;  %p2796_p0 = por %p2795_p13, %p2794_p12 }
  0xac   : > { %p2792_p11 = pneg %p2791_p6 }
  0xae   : > { %p2797_p1 = pnand %p2796_p0, %p2792_p11 }
  0xb0   : > { %2800 = shalt.err (!%p2797_p1)
}
  0xb1   : > { %2463 = dma.hbm_to_vmem [thread:$0]  (!%p2990_p5), %s552_s26, 16, %s554_s3, %s544_s14  }
  0xb2   : > { %562 = sbr.rel (%p3072_p10) target bundleno = 909 (0x38d), region = 68 }
  0xb7   : > { %2833 = dma.done.wait (%p145_p2), [#allocation5], 16  }
  0xb8   : > { %2835 = vsyncadd (%p145_p2), [#allocation5], 4294967280 }
  0xb9   : > { %2837 = dma.done.wait (%p145_p2), [#allocation7], 16  }
  0xba   : > { %2839 = vsyncadd (%p145_p2), [#allocation7], 4294967280 }
  0xbb   : > { %2841 = dma.done.wait (%p145_p2), [#allocation4], 16  }
  0xbc   : > { %2843 = vsyncadd (%p145_p2), [#allocation4], 4294967280  ;;  %s3202_s24 = sand.u32 1, %s2870_s22  }
  0xbd   : > { %s1947_s28 = sshll.u32 %s3202_s24, 9  ;;  %s580_s29 = scalar_lea.sflag [#allocation3], %s3202_s24 }
  0xbe   : > { %s3206_s13 = scalar_lea.vmem [#allocation9], %s1947_s28 }
  0xbf   : > { %2845 = dma.done.wait (%p3065_p9), %s580_s29, 8192  }
  0xc0   : > { %2847 = vsyncadd (%p3065_p9), %s580_s29, 4294959104  ;;  %s589_s16 = sand.u32 1, %s3055_s20   ;;  %s592_s1 = scalar_lea.vmem [#allocation10], %s3202_s24 }
  0xc1   : > { %s590_s17 = scalar_lea.sflag [#allocation11], %s589_s16 }
  0xc2   : > { %2849 = dma.done.wait (%p3065_p9), %s590_s17, 1040  }
  0xc3   : > { %2851 = vsyncadd (%p3065_p9), %s590_s17, 4294966256  ;;  %s1948_s9 = sshll.u32 %s3202_s24, 6  ;;  %s609_s15 = scalar_lea.sflag [#allocation14], %s589_s16 }
  0xc4   : > { %s3219_s2 = scalar_lea.vmem [#allocation12], %s1948_s9  ;;  %s611_s18 = scalar_lea.vmem [#allocation13], %s3202_s24 }
  0xc5   : > { %2853 = dma.done.wait (%p3065_p9), %s609_s15, 1040  }
  0xc6   : > { %2855 = vsyncadd (%p3065_p9), %s609_s15, 4294966256  ;;  %s3226_s25 = scalar_lea.vmem [#allocation15], %s1948_s9  ;;  %s628_s26 = scalar_lea.sflag [#allocation17], %s589_s16 }
  0xc7   : > { %s630_s7 = scalar_lea.vmem [#allocation16], %s3202_s24 }
  0xc8   : > { %2857 = dma.done.wait (%p3065_p9), %s628_s26, 1040  }
  0xc9   : > { %2859 = vsyncadd (%p3065_p9), %s628_s26, 4294966256  ;;  %s3233_s3 = scalar_lea.vmem [#allocation18], %s1948_s9  ;;  %s647_s14 = scalar_lea.sflag [#allocation20], %s3202_s24 }
  0xca   : > { %s649_s19 = scalar_lea.vmem [#allocation19], %s3202_s24 }
  0xcb   : > { %2861 = dma.done.wait (%p3065_p9), %s647_s14, 16  }
  0xcc   : > { %2863 = vsyncadd (%p3065_p9), %s647_s14, 4294967280 }
  0xcd   : > { %655 = sfence }
  0xce   : > { %721 = sbr.rel (%p1927_p8) target bundleno = 213 (0xd5), region = 116  ;;  %s3445_s27 = sld [smem:[#allocation39_spill]] (!%p1927_p8) }
  0xd3   : > { %v2885_v0 = vmov 0.0  }
  0xd4   : > { %722 = vst [vmem:[%s3445_s27] sm:$0xff] %v2885_v0 }
  0xd5 PF: > { %v2320_v1 = vld [vmem:[%s3206_s13 + $0x38] sm:$0xff]  ;;  %v2319_v5 = vld [vmem:[%s3206_s13 + $0x30] sm:$0xff]  ;;  %v2318_v9 = vld [vmem:[%s3206_s13 + $0x28] sm:$0xff]  ;;  %s3446_s12 = sld [smem:[#allocation35_spill]] }
  0xd6   : > { %v2328_v2 = vld [vmem:[%s3206_s13 + $0x78] sm:$0xff]  ;;  %1274 = vmatpush.bf16.msra.mxu0 %v2320_v1  ;;  %v2327_v6 = vld [vmem:[%s3206_s13 + $0x70] sm:$0xff]  ;;  %v2326_v10 = vld [vmem:[%s3206_s13 + $0x68] sm:$0xff]  ;;  %s3356_s15 = sld [smem:[#allocation8 + %s3055_s20]] }
  0xd7   : > { %v2336_v3 = vld [vmem:[%s3206_s13 + $0xb8] sm:$0xff]  ;;  %1287 = vmatpush.bf16.msra.mxu1 %v2328_v2  ;;  %v2335_v7 = vld [vmem:[%s3206_s13 + $0xb0] sm:$0xff]  ;;  %v2334_v11 = vld [vmem:[%s3206_s13 + $0xa8] sm:$0xff]  ;;  %s3451_s14 = sld [smem:[#allocation39_spill]] }
  0xd8   : > { %v2344_v4 = vld [vmem:[%s3206_s13 + $0xf8] sm:$0xff]  ;;  %1300 = vmatpush.bf16.msra.mxu2 %v2336_v3  ;;  %v2343_v8 = vld [vmem:[%s3206_s13 + $0xf0] sm:$0xff]  ;;  %v2342_v12 = vld [vmem:[%s3206_s13 + $0xe8] sm:$0xff] }
  0xd9   : > { %1313 = vmatpush.bf16.msra.mxu3 %v2344_v4  ;;  %v2317_v13 = vld [vmem:[%s3206_s13 + $0x20] sm:$0xff]  ;;  %v2316_v17 = vld [vmem:[%s3206_s13 + $0x18] sm:$0xff]  ;;  %v2315_v21 = vld [vmem:[%s3206_s13 + $0x10] sm:$0xff] }
  0xda   : > { %1275 = vmatpush.bf16.msra.mxu0 %v2319_v5  ;;  %v2325_v14 = vld [vmem:[%s3206_s13 + $0x60] sm:$0xff]  ;;  %v2324_v18 = vld [vmem:[%s3206_s13 + $0x58] sm:$0xff]  ;;  %v2323_v22 = vld [vmem:[%s3206_s13 + $0x50] sm:$0xff] }
  0xdb   : > { %1288 = vmatpush.bf16.msra.mxu1 %v2327_v6  ;;  %v2333_v15 = vld [vmem:[%s3206_s13 + $0xa0] sm:$0xff]  ;;  %v2332_v19 = vld [vmem:[%s3206_s13 + $0x98] sm:$0xff]  ;;  %v2331_v23 = vld [vmem:[%s3206_s13 + $0x90] sm:$0xff] }
  0xdc   : > { %1301 = vmatpush.bf16.msra.mxu2 %v2335_v7  ;;  %v2341_v16 = vld [vmem:[%s3206_s13 + $0xe0] sm:$0xff]  ;;  %v2340_v20 = vld [vmem:[%s3206_s13 + $0xd8] sm:$0xff]  ;;  %v2339_v24 = vld [vmem:[%s3206_s13 + $0xd0] sm:$0xff]  ;;  %p1514_p2 = scmp.ge.s32.totalorder %s3356_s15, 3  ;;  %p1624_p8 = scmp.ge.s32.totalorder %s3356_s15, 4 }
  0xdd   : > { %1314 = vmatpush.bf16.msra.mxu3 %v2343_v8  ;;  %v2314_v25 = vld [vmem:[%s3206_s13 + $0x8] sm:$0xff]  ;;  %v726_v30 = vld [vmem:[%s3446_s12] sm:$0xff]  ;;  %v2352_v39 = vld [vmem:[%s3206_s13 + $0x138] sm:$0xff] }
  0xde   : > { %1276 = vmatpush.bf16.msra.mxu0 %v2318_v9  ;;  %v2322_v26 = vld [vmem:[%s3206_s13 + $0x48] sm:$0xff]  ;;  %v2313_v31 = vld [vmem:[%s3206_s13] sm:$0xff]  ;;  %v866_v34 = vunpack.c.l.b16 %v726_v30  ;;  %v867_v38 = vunpack.c.h.b16 %v726_v30  ;;  %v2360_v40 = vld [vmem:[%s3206_s13 + $0x178] sm:$0xff]  ;;  %s1515_s26 = scalar_select %p1514_p2, 1, 0 }
  0xdf   : > { %1289 = vmatpush.bf16.msra.mxu1 %v2326_v10  ;;  %v2330_v27 = vld [vmem:[%s3206_s13 + $0x88] sm:$0xff]  ;;  %v2321_v32 = vld [vmem:[%s3206_s13 + $0x40] sm:$0xff]  ;;  %v2368_v41 = vld [vmem:[%s3206_s13 + $0x1b8] sm:$0xff] }
  0xe0   : > { %1302 = vmatpush.bf16.msra.mxu2 %v2334_v11  ;;  %v2338_v28 = vld [vmem:[%s3206_s13 + $0xc8] sm:$0xff]  ;;  %v2329_v35 = vld [vmem:[%s3206_s13 + $0x80] sm:$0xff]  ;;  %v2376_v42 = vld [vmem:[%s3206_s13 + $0x1f8] sm:$0xff]  ;;  %v874_v44 = vpack.c.b16 %v866_v34, %v866_v34  ;;  %v875_v46 = vpack.c.b16 %v867_v38, %v867_v38 }
  0xe1   : > { %1315 = vmatpush.bf16.msra.mxu3 %v2342_v12  ;;  %v727_v29 = vld [vmem:[%s3446_s12 + $0x8] sm:$0xff]  ;;  %v2337_v36 = vld [vmem:[%s3206_s13 + $0xc0] sm:$0xff]  ;;  %v2351_v47 = vld [vmem:[%s3206_s13 + $0x130] sm:$0xff] }
  0xe2   : > { %1277 = vmatpush.bf16.msra.mxu0 %v2317_v13  ;;  %v868_v33 = vunpack.c.l.b16 %v727_v29  ;;  %v869_v37 = vunpack.c.h.b16 %v727_v29  ;;  %v2359_v48 = vld [vmem:[%s3206_s13 + $0x170] sm:$0xff]  ;;  %v2350_v51 = vld [vmem:[%s3206_s13 + $0x128] sm:$0xff]  ;;  %v2349_v55 = vld [vmem:[%s3206_s13 + $0x120] sm:$0xff] }
  0xe3   : > { %1290 = vmatpush.bf16.msra.mxu1 %v2325_v14  ;;  %v2367_v49 = vld [vmem:[%s3206_s13 + $0x1b0] sm:$0xff]  ;;  %v2358_v52 = vld [vmem:[%s3206_s13 + $0x168] sm:$0xff]  ;;  %v2357_v56 = vld [vmem:[%s3206_s13 + $0x160] sm:$0xff] }
  0xe4   : > { %1303 = vmatpush.bf16.msra.mxu2 %v2333_v15  ;;  %v876_v43 = vpack.c.b16 %v868_v33, %v868_v33  ;;  %v877_v45 = vpack.c.b16 %v869_v37, %v869_v37  ;;  %v2375_v50 = vld [vmem:[%s3206_s13 + $0x1f0] sm:$0xff]  ;;  %v2366_v53 = vld [vmem:[%s3206_s13 + $0x1a8] sm:$0xff]  ;;  %v2365_v57 = vld [vmem:[%s3206_s13 + $0x1a0] sm:$0xff] }
  0xe5   : > { %1316 = vmatpush.bf16.msra.mxu3 %v2341_v16  ;;  %v2374_v54 = vld [vmem:[%s3206_s13 + $0x1e8] sm:$0xff]  ;;  %v2373_v58 = vld [vmem:[%s3206_s13 + $0x1e0] sm:$0xff]  ;;  %v2348_v59 = vld [vmem:[%s3206_s13 + $0x118] sm:$0xff] }
  0xe6   : > { %1278 = vmatpush.bf16.msra.mxu0 %v2316_v17  ;;  %v2356_v60 = vld [vmem:[%s3206_s13 + $0x158] sm:$0xff]  ;;  %v2347_v63 = vld [vmem:[%s3206_s13 + $0x110] sm:$0xff]  ;;  %v2346_v3 = vld [vmem:[%s3206_s13 + $0x108] sm:$0xff] }
  0xe7   : > { %1291 = vmatpush.bf16.msra.mxu1 %v2324_v18  ;;  %v2364_v61 = vld [vmem:[%s3206_s13 + $0x198] sm:$0xff]  ;;  %v2355_v0 = vld [vmem:[%s3206_s13 + $0x150] sm:$0xff]  ;;  %v2354_v4 = vld [vmem:[%s3206_s13 + $0x148] sm:$0xff] }
  0xe8   : > { %1304 = vmatpush.bf16.msra.mxu2 %v2332_v19  ;;  %v2372_v62 = vld [vmem:[%s3206_s13 + $0x1d8] sm:$0xff]  ;;  %v2363_v1 = vld [vmem:[%s3206_s13 + $0x190] sm:$0xff]  ;;  %v2362_v6 = vld [vmem:[%s3206_s13 + $0x188] sm:$0xff] }
  0xe9   : > { %1317 = vmatpush.bf16.msra.mxu3 %v2340_v20  ;;  %v2371_v2 = vld [vmem:[%s3206_s13 + $0x1d0] sm:$0xff]  ;;  %v2370_v7 = vld [vmem:[%s3206_s13 + $0x1c8] sm:$0xff]  ;;  %v729_v8 = vld [vmem:[%s3446_s12 + $0x18] sm:$0xff] }
  0xea   : > { %1279 = vmatpush.bf16.msra.mxu0 %v2315_v21  ;;  %v728_v5 = vld [vmem:[%s3446_s12 + $0x10] sm:$0xff]  ;;  %v2345_v11 = vld [vmem:[%s3206_s13 + $0x100] sm:$0xff]  ;;  %v872_v13 = vunpack.c.l.b16 %v729_v8  ;;  %v873_v14 = vunpack.c.h.b16 %v729_v8 }
  0xeb   : > { %1292 = vmatpush.bf16.msra.mxu1 %v2323_v22  ;;  %v870_v9 = vunpack.c.l.b16 %v728_v5  ;;  %v871_v10 = vunpack.c.h.b16 %v728_v5  ;;  %v2353_v12 = vld [vmem:[%s3206_s13 + $0x140] sm:$0xff]  ;;  %v2379_v38 = vld [vmem:[%s3219_s2 + $0x10] sm:$0xff] }
  0xec   : > { %1305 = vmatpush.bf16.msra.mxu2 %v2331_v23  ;;  %v2361_v15 = vld [vmem:[%s3206_s13 + $0x180] sm:$0xff]  ;;  %v880_v19 = vpack.c.b16 %v872_v13, %v872_v13  ;;  %v881_v20 = vpack.c.b16 %v873_v14, %v873_v14  ;;  %v2391_v13 = vld [vmem:[%s3226_s25 + $0x30] sm:$0xff]  ;;  %v2390_v14 = vld [vmem:[%s3226_s25 + $0x28] sm:$0xff] }
  0xed   : > { %1318 = vmatpush.bf16.msra.mxu3 %v2339_v24  ;;  %v2369_v16 = vld [vmem:[%s3206_s13 + $0x1c0] sm:$0xff]  ;;  %v878_v17 = vpack.c.b16 %v870_v9, %v870_v9  ;;  %v879_v18 = vpack.c.b16 %v871_v10, %v871_v10  ;;  %s724_s13 = sld [smem:[#allocation6 + %s3055_s20]] }
  0xee   : > { %1280 = vmatpush.bf16.msra.mxu0 %v2314_v25  ;;  %v2509_v29 = vld [vmem:[%s592_s1] ss:$0 sm:$0xff]  ;;  %v2381_v34 = vld [vmem:[%s3219_s2 + $0x20] sm:$0xff] }
  0xef   : > { %1293 = vmatpush.bf16.msra.mxu1 %v2322_v26  ;;  %v2384_v26 = vld [vmem:[%s3219_s2 + $0x38] sm:$0xff] }
  0xf0   : > { %1306 = vmatpush.bf16.msra.mxu2 %v2330_v27 }
  0xf1   : > { %1319 = vmatpush.bf16.msra.mxu3 %v2338_v28  ;;  %v2383_v28 = vld [vmem:[%s3219_s2 + $0x30] sm:$0xff] }
  0xf2   : > { %1281 = vmatpush.bf16.msra.mxu0 %v2313_v31 }
  0xf3   : > { %1294 = vmatpush.bf16.msra.mxu1 %v2321_v32  ;;  %v2382_v32 = vld [vmem:[%s3219_s2 + $0x28] sm:$0xff]  ;;  %p1400_p5 = scmp.eq.s32.totalorder %s724_s13, 1  ;;  %p1399_p7 = scmp.eq.s32.totalorder %s724_s13, 0 }
  0xf4   : > { %1307 = vmatpush.bf16.msra.mxu2 %v2329_v35 }
  0xf5   : > { %1320 = vmatpush.bf16.msra.mxu3 %v2337_v36  ;;  %1282 = vmatmul.bf16.vlgmr.msra.gmra.mxu0 %v874_v44  ;;  %v2380_v36 = vld [vmem:[%s3219_s2 + $0x18] sm:$0xff]  ;;  %v2377_v44 = vld [vmem:[%s3219_s2] sm:$0xff]  ;;  %s1401_s1 = scalar_select %p1400_p5, 1, 0 }
  0xf6   : > { %1326 = vmatpush.bf16.msrb.mxu0 %v2352_v39  ;;  %1295 = vmatmul.bf16.vlgmr.msra.gmra.mxu1 %v875_v46 }
  0xf7   : > { %1339 = vmatpush.bf16.msrb.mxu1 %v2360_v40  ;;  %1308 = vmatmul.bf16.vlgmr.msra.gmra.mxu2 %v876_v43 }
  0xf8   : > { %1352 = vmatpush.bf16.msrb.mxu2 %v2368_v41  ;;  %1321 = vmatmul.bf16.vlgmr.msra.gmra.mxu3 %v877_v45 }
  0xf9   : > { %1365 = vmatpush.bf16.msrb.mxu3 %v2376_v42  ;;  %v2378_v42 = vld [vmem:[%s3219_s2 + $0x8] sm:$0xff]  ;;  %s1405_s2 = scalar_select %p1399_p7, 1, 0 }
  0xfa   : > { %1327 = vmatpush.bf16.msrb.mxu0 %v2351_v47 }
  0xfb   : > { %1340 = vmatpush.bf16.msrb.mxu1 %v2359_v48 }
  0xfc   : > { %1353 = vmatpush.bf16.msrb.mxu2 %v2367_v49 }
  0xfd   : > { %1366 = vmatpush.bf16.msrb.mxu3 %v2375_v50 }
  0xfe   : > { %1328 = vmatpush.bf16.msrb.mxu0 %v2350_v51 }
  0xff   : > { %1341 = vmatpush.bf16.msrb.mxu1 %v2358_v52 }
 0x100   : > { %1354 = vmatpush.bf16.msrb.mxu2 %v2366_v53 }
 0x101   : > { %1367 = vmatpush.bf16.msrb.mxu3 %v2374_v54 }
 0x102   : > { %1329 = vmatpush.bf16.msrb.mxu0 %v2349_v55 }
 0x103   : > { %1342 = vmatpush.bf16.msrb.mxu1 %v2357_v56 }
 0x104   : > { %1355 = vmatpush.bf16.msrb.mxu2 %v2365_v57 }
 0x105   : > { %1368 = vmatpush.bf16.msrb.mxu3 %v2373_v58 }
 0x106   : > { %1330 = vmatpush.bf16.msrb.mxu0 %v2348_v59 }
 0x107   : > { %1343 = vmatpush.bf16.msrb.mxu1 %v2356_v60 }
 0x108   : > { %1356 = vmatpush.bf16.msrb.mxu2 %v2364_v61 }
 0x109   : > { %1369 = vmatpush.bf16.msrb.mxu3 %v2372_v62 }
 0x10a   : > { %1331 = vmatpush.bf16.msrb.mxu0 %v2347_v63  ;;  %v1402_v63 = vstv %s1401_s1 }
 0x10b   : > { %1344 = vmatpush.bf16.msrb.mxu1 %v2355_v0  ;;  %v1406_v0 = vstv %s1405_s2  ;;  %vm3333_vm3 = vcmp.eq.s32.totalorder %v1402_v63, 1 }
 0x10c   : > { %1357 = vmatpush.bf16.msrb.mxu2 %v2363_v1  ;;  %vm3337_vm5 = vcmp.eq.s32.totalorder %v1406_v0, 1 }
 0x10d   : > { %1370 = vmatpush.bf16.msrb.mxu3 %v2371_v2 }
 0x10e   : > { %1332 = vmatpush.bf16.msrb.mxu0 %v2346_v3 }
 0x10f   : > { %1345 = vmatpush.bf16.msrb.mxu1 %v2354_v4 }
 0x110   : > { %1358 = vmatpush.bf16.msrb.mxu2 %v2362_v6 }
 0x111   : > { %1371 = vmatpush.bf16.msrb.mxu3 %v2370_v7 }
 0x112   : > { %1333 = vmatpush.bf16.msrb.mxu0 %v2345_v11 }
 0x113   : > { %1346 = vmatpush.bf16.msrb.mxu1 %v2353_v12  ;;  %v2392_v12 = vld [vmem:[%s3226_s25 + $0x38] sm:$0xff] }
 0x114   : > { %1359 = vmatpush.bf16.msrb.mxu2 %v2361_v15  ;;  %v2389_v15 = vld [vmem:[%s3226_s25 + $0x20] sm:$0xff] }
 0x115   : > { %1372 = vmatpush.bf16.msrb.mxu3 %v2369_v16  ;;  %1334 = vmatmul.bf16.vlgmr.msrb.gmra.mxu0 %v878_v17  ;;  %v2388_v16 = vld [vmem:[%s3226_s25 + $0x18] sm:$0xff]  ;;  %v2387_v17 = vld [vmem:[%s3226_s25 + $0x10] sm:$0xff] }
 0x116   : > { %1347 = vmatmul.bf16.vlgmr.msrb.gmra.mxu1 %v879_v18  ;;  %1478 = vmatpush.bf16.msra.mxu0 %v2384_v26  ;;  %v2386_v18 = vld [vmem:[%s3226_s25 + $0x8] sm:$0xff] }
 0x117   : > { %1360 = vmatmul.bf16.vlgmr.msrb.gmra.mxu2 %v880_v19  ;;  %1588 = vmatpush.bf16.msra.mxu1 %v2392_v12  ;;  %v2510_v19 = vld [vmem:[%s611_s18] ss:$0 sm:$0xff]  ;;  %s1625_s18 = scalar_select %p1624_p8, 1, 0 }
 0x118   : > { %1373 = vmatmul.bf16.vlgmr.msrb.gmra.mxu3 %v881_v20  ;;  %v2385_v20 = vld [vmem:[%s3226_s25] sm:$0xff]  ;;  %s723_s25 = sld [smem:[#allocation2 + %s3055_s20]] }
 0x11a   : > { %1479 = vmatpush.bf16.msra.mxu0 %v2383_v28 }
 0x11b   : > { %1589 = vmatpush.bf16.msra.mxu1 %v2391_v13 }
 0x11e   : > { %1480 = vmatpush.bf16.msra.mxu0 %v2382_v32 }
 0x11f   : > { %1590 = vmatpush.bf16.msra.mxu1 %v2390_v14  ;;  %v2512_v14 = vld [vmem:[%s649_s19] ss:$0 sm:$0xff] }
 0x122   : > { %1481 = vmatpush.bf16.msra.mxu0 %v2381_v34  ;;  %v1516_v34 = vstv %s1515_s26 }
 0x123   : > { %1591 = vmatpush.bf16.msra.mxu1 %v2389_v15  ;;  %vm1517_vm10 = vcmp.eq.s32.totalorder %v1516_v34, 1 }
 0x126   : > { %1482 = vmatpush.bf16.msra.mxu0 %v2380_v36 }
 0x127   : > { %1592 = vmatpush.bf16.msra.mxu1 %v2388_v16  ;;  %v1712_v16 = vstv %s723_s25 }
 0x12a   : > { %1483 = vmatpush.bf16.msra.mxu0 %v2379_v38 }
 0x12b   : > { %1593 = vmatpush.bf16.msra.mxu1 %v2387_v17 }
 0x12e   : > { %1484 = vmatpush.bf16.msra.mxu0 %v2378_v42 }
 0x12f   : > { %1594 = vmatpush.bf16.msra.mxu1 %v2386_v18  ;;  %v1711_v18 = vld [vmem:[%s3451_s14] sm:$0xff] }
 0x132   : > { %1485 = vmatpush.bf16.msra.mxu0 %v2377_v44  ;;  %v2400_v44 = vld [vmem:[%s3233_s3 + $0x38] sm:$0xff] }
 0x133   : > { %1595 = vmatpush.bf16.msra.mxu1 %v2385_v20  ;;  %1698 = vmatpush.bf16.msra.mxu2 %v2400_v44 }
 0x172   : > { %v1283_v21 = vpop.f32.mrf.mxu0 }
 0x173   : > { %v1296_v22 = vpop.f32.mrf.mxu1  ;;  %v1284_v33 = vadd.f32 %v2509_v29, %v1283_v21 }
 0x175   : > { %v1297_v35 = vadd.f32 %v1296_v22, %v1284_v33 }
 0x17a   : > { %v1309_v23 = vpop.f32.mrf.mxu2  ;;  %v1285_v25 = vpop.f32.mrf.mxu0 }
 0x17b   : > { %v1322_v24 = vpop.f32.mrf.mxu3  ;;  %v1298_v27 = vpop.f32.mrf.mxu1  ;;  %v1310_v37 = vadd.f32 %v1309_v23, %v1297_v35 }
 0x17d   : > { %v1323_v39 = vadd.f32 %v1322_v24, %v1310_v37 }
 0x182   : > { %v1311_v30 = vpop.f32.mrf.mxu2 }
 0x183   : > { %v1324_v31 = vpop.f32.mrf.mxu3 }
 0x192   : > { %v1335_v40 = vpop.f32.mrf.mxu0 }
 0x193   : > { %v1348_v41 = vpop.f32.mrf.mxu1  ;;  %v1336_v43 = vadd.f32 %v1335_v40, %v1323_v39 }
 0x195   : > { %v1349_v45 = vadd.f32 %v1348_v41, %v1336_v43 }
 0x19a   : > { %v1361_v46 = vpop.f32.mrf.mxu2  ;;  %v1337_v49 = vpop.f32.mrf.mxu0 }
 0x19b   : > { %v1374_v47 = vpop.f32.mrf.mxu3  ;;  %v1362_v48 = vadd.f32 %v1361_v46, %v1349_v45  ;;  %v1350_v50 = vpop.f32.mrf.mxu1  ;;  %v2399_v45 = vld [vmem:[%s3233_s3 + $0x30] sm:$0xff]  ;;  %v2398_v46 = vld [vmem:[%s3233_s3 + $0x28] sm:$0xff] }
 0x19c   : > { %1699 = vmatpush.bf16.msra.mxu2 %v2399_v45  ;;  %v2395_v49 = vld [vmem:[%s3233_s3 + $0x10] sm:$0xff]  ;;  %v2394_v50 = vld [vmem:[%s3233_s3 + $0x8] sm:$0xff] }
 0x19d   : > { %v1375_v51 = vadd.f32 %v1374_v47, %v1362_v48  ;;  %v2397_v47 = vld [vmem:[%s3233_s3 + $0x20] sm:$0xff]  ;;  %v2396_v48 = vld [vmem:[%s3233_s3 + $0x18] sm:$0xff] }
 0x19f   : > { %v2208_v52 = vmul.f32 -1.442695, %v1375_v51  ;;  %v1378_v7 = vmax.f32 %v1375_v51, 0.0 }
 0x1a0   : > { %1700 = vmatpush.bf16.msra.mxu2 %v2398_v46 }
 0x1a1   : > { %2513 = vpow2.f32 %v2208_v52  ;;  %v2393_v52 = vld [vmem:[%s3233_s3] sm:$0xff] }
 0x1a2   : > { %v1363_v53 = vpop.f32.mrf.mxu2 }
 0x1a3   : > { %v1376_v54 = vpop.f32.mrf.mxu3 }
 0x1a4   : > { %1701 = vmatpush.bf16.msra.mxu2 %v2397_v47 }
 0x1a7   : > { %v2514_v55 = vpop.eup %2513 }
 0x1a8   : > { %v1383_v56 = vadd.f32 1.0, %v2514_v55  ;;  %1702 = vmatpush.bf16.msra.mxu2 %v2396_v48 }
 0x1aa   : > { %2515 = vrcp.f32 %v1383_v56  ;;  %v1395_v60 = vand.u32 2147483648, %v1383_v56  ;;  %v1393_v62 = vand.u32 2147483647, %v1383_v56  ;;  %vm1389_vm1 = vweird.f32 %v1383_v56 }
 0x1ab   : > { %2517 = vtanh.f32 %v1375_v51  ;;  %v2511_v51 = vld [vmem:[%s630_s7] ss:$0 sm:$0xff] }
 0x1ac   : > { %v1396_v2 = vor.u32 1.1754944e-38, %v1395_v60  ;;  %vm1394_vm4 = vcmp.eq.f32.partialorder %v1393_v62, 8.507059e+37  ;;  %1703 = vmatpush.bf16.msra.mxu2 %v2395_v49 }
 0x1b0   : > { %v2516_v57 = vpop.eup %2515  ;;  %1704 = vmatpush.bf16.msra.mxu2 %v2394_v50 }
 0x1b1   : > { %v1385_v58 = vmul.f32 %v2516_v57, %v1383_v56  ;;  %vm1390_vm0 = vweird.f32 %v2516_v57  ;;  %v2518_v6 = vpop.eup %2517 }
 0x1b2   : > { %vm1391_vm2 = vmor %vm1389_vm1, %vm1390_vm0 }
 0x1b3   : > { %v1386_v59 = vsub.f32 1.0, %v1385_v58 }
 0x1b4   : > { %1705 = vmatpush.bf16.msra.mxu2 %v2393_v52 }
 0x1b5   : > { %v1387_v61 = vmul.f32 %v2516_v57, %v1386_v59 }
 0x1b7   : > { %v1388_v1 = vadd.f32 %v2516_v57, %v1387_v61 }
 0x1b9   : > { %v1392_v4 = vsel %vm1391_vm2, %v2516_v57, %v1388_v1 }
 0x1ba   : > { %v1397_v8 = vsel %vm1394_vm4, %v1396_v2, %v1392_v4  ;;  %v1626_v2 = vstv %s1625_s18 }
 0x1bb   : > { %v1404_v9 = vsel %vm3333_vm3, %v2518_v6, %v1397_v8  ;;  %vm1627_vm15 = vcmp.eq.s32.totalorder %v1626_v2, 1 }
 0x1bc   : > { %v1408_v10 = vsel %vm3337_vm5, %v1378_v7, %v1404_v9 }
 0x1bd   : > { %v1409_v11 = vpack.c.bf16 %v1408_v10, %v1408_v10 }
 0x1bf   : > { %1486 = vmatmul.bf16.vlgmr.msra.gmra.mxu0 %v1409_v11 }
 0x23c   : > { %v1487_v21 = vpop.f32.mrf.mxu0 }
 0x23d   : > { %v1488_v22 = vadd.f32 %v2510_v19, %v1487_v21 }
 0x23f   : > { %v2241_v23 = vmul.f32 -1.442695, %v1488_v22  ;;  %v1491_v38 = vmax.f32 %v1488_v22, 0.0 }
 0x241   : > { %2519 = vpow2.f32 %v2241_v23 }
 0x244   : > { %v1489_v24 = vpop.f32.mrf.mxu0 }
 0x247   : > { %v2520_v25 = vpop.eup %2519 }
 0x248   : > { %v1496_v26 = vadd.f32 1.0, %v2520_v25 }
 0x24a   : > { %2521 = vrcp.f32 %v1496_v26  ;;  %v1508_v30 = vand.u32 2147483648, %v1496_v26  ;;  %v1506_v32 = vand.u32 2147483647, %v1496_v26  ;;  %vm1502_vm7 = vweird.f32 %v1496_v26 }
 0x24b   : > { %2523 = vtanh.f32 %v1488_v22 }
 0x24c   : > { %v1509_v35 = vor.u32 1.1754944e-38, %v1508_v30  ;;  %vm1507_vm9 = vcmp.eq.f32.partialorder %v1506_v32, 8.507059e+37 }
 0x250   : > { %v2522_v27 = vpop.eup %2521 }
 0x251   : > { %v1498_v28 = vmul.f32 %v2522_v27, %v1496_v26  ;;  %vm1503_vm6 = vweird.f32 %v2522_v27  ;;  %v2524_v37 = vpop.eup %2523 }
 0x252   : > { %vm1504_vm8 = vmor %vm1502_vm7, %vm1503_vm6 }
 0x253   : > { %v1499_v29 = vsub.f32 1.0, %v1498_v28 }
 0x255   : > { %v1500_v31 = vmul.f32 %v2522_v27, %v1499_v29 }
 0x257   : > { %v1501_v33 = vadd.f32 %v2522_v27, %v1500_v31 }
 0x259   : > { %v1505_v36 = vsel %vm1504_vm8, %v2522_v27, %v1501_v33 }
 0x25a   : > { %v1510_v39 = vsel %vm1507_vm9, %v1509_v35, %v1505_v36 }
 0x25b   : > { %v1512_v40 = vsel %vm3333_vm3, %v2524_v37, %v1510_v39 }
 0x25c   : > { %v1513_v41 = vsel %vm3337_vm5, %v1491_v38, %v1512_v40 }
 0x25d   : > { %v1518_v42 = vsel %vm1517_vm10, %v1513_v41, %v1408_v10 }
 0x25e   : > { %v1519_v43 = vpack.c.bf16 %v1518_v42, %v1518_v42 }
 0x260   : > { %1596 = vmatmul.bf16.vlgmr.msra.gmra.mxu1 %v1519_v43 }
 0x2dd   : > { %v1597_v53 = vpop.f32.mrf.mxu1 }
 0x2de   : > { %v1598_v54 = vadd.f32 %v2511_v51, %v1597_v53 }
 0x2e0   : > { %v2274_v55 = vmul.f32 -1.442695, %v1598_v54  ;;  %v1601_v8 = vmax.f32 %v1598_v54, 0.0 }
 0x2e2   : > { %2525 = vpow2.f32 %v2274_v55 }
 0x2e5   : > { %v1599_v56 = vpop.f32.mrf.mxu1 }
 0x2e8   : > { %v2526_v57 = vpop.eup %2525 }
 0x2e9   : > { %v1606_v58 = vadd.f32 1.0, %v2526_v57 }
 0x2eb   : > { %2527 = vrcp.f32 %v1606_v58  ;;  %v1618_v62 = vand.u32 2147483648, %v1606_v58  ;;  %v1616_v0 = vand.u32 2147483647, %v1606_v58  ;;  %vm1612_vm12 = vweird.f32 %v1606_v58 }
 0x2ec   : > { %2529 = vtanh.f32 %v1598_v54 }
 0x2ed   : > { %v1619_v4 = vor.u32 1.1754944e-38, %v1618_v62  ;;  %vm1617_vm14 = vcmp.eq.f32.partialorder %v1616_v0, 8.507059e+37 }
 0x2f1   : > { %v2528_v59 = vpop.eup %2527 }
 0x2f2   : > { %v1608_v60 = vmul.f32 %v2528_v59, %v1606_v58  ;;  %vm1613_vm11 = vweird.f32 %v2528_v59  ;;  %v2530_v7 = vpop.eup %2529 }
 0x2f3   : > { %vm1614_vm13 = vmor %vm1612_vm12, %vm1613_vm11 }
 0x2f4   : > { %v1609_v61 = vsub.f32 1.0, %v1608_v60 }
 0x2f6   : > { %v1610_v63 = vmul.f32 %v2528_v59, %v1609_v61 }
 0x2f8   : > { %v1611_v1 = vadd.f32 %v2528_v59, %v1610_v63 }
 0x2fa   : > { %v1615_v6 = vsel %vm1614_vm13, %v2528_v59, %v1611_v1 }
 0x2fb   : > { %v1620_v9 = vsel %vm1617_vm14, %v1619_v4, %v1615_v6 }
 0x2fc   : > { %v1622_v10 = vsel %vm3333_vm3, %v2530_v7, %v1620_v9 }
 0x2fd   : > { %v1623_v11 = vsel %vm3337_vm5, %v1601_v8, %v1622_v10 }
 0x2fe   : > { %v1628_v12 = vsel %vm1627_vm15, %v1623_v11, %v1518_v42 }
 0x2ff   : > { %v1629_v13 = vpack.c.bf16 %v1628_v12, %v1628_v12 }
 0x301   : > { %1706 = vmatmul.bf16.vlgmr.msra.gmra.mxu2 %v1629_v13 }
 0x384   : > { %v1707_v15 = vpop.f32.mrf.mxu2 }
 0x385   : > { %v1708_v17 = vadd.f32 %v2512_v14, %v1707_v15 }
 0x387   : > { %v1713_v19 = vmul.f32 %v1712_v16, %v1708_v17 }
 0x389   : > { %v1714_v20 = vadd.f32 %v1713_v19, %v1711_v18 }
 0x38b   : > { %1715 = vst [vmem:[%s3451_s14] sm:$0xff] %v1714_v20 }
 0x38c   : > { %v1709_v3 = vpop.f32.mrf.mxu2 }
 0x38d PF: > { %s3452_s24 = sld [smem:[#allocation30_spill]]  ;;  %s3455_s21 = smov %s2870_s22 }
 0x38e   : > { %s3453_s20 = sld [smem:[#allocation29_spill]] }
 0x38f   : > { %s3454_s23 = sld [smem:[#allocation31_spill]] }
 0x393   : > { %p37_p9 = scmp.ge.s32.totalorder %s3452_s24, 11  }
 0x394   : > { %s3456_s22 = smov %s3453_s20 }
 0x395   :  { %39 = sbr.rel (!%p37_p9) target bundleno = 23 (0x17), region = 207 }
 0x39a   :  { %1727 = vsyncpa [#allocation3], 1 }
 0x39b   :  { %1729 = vsyncpa [#allocation3 + $0x1], 1 }
 0x39c   :  { %1730 = vsyncpa [#allocation11], 1 }
 0x39d   :  { %1732 = vsyncpa [#allocation11 + $0x1], 1 }
 0x39e   :  { %1733 = vsyncpa [#allocation14], 1 }
 0x39f   :  { %1735 = vsyncpa [#allocation14 + $0x1], 1 }
 0x3a0   :  { %1736 = vsyncpa [#allocation17], 1 }
 0x3a1   :  { %1738 = vsyncpa [#allocation17 + $0x1], 1 }
 0x3a2   :  { %1739 = vsyncpa [#allocation20], 1 }
 0x3a3   :  { %1741 = vsyncpa [#allocation20 + $0x1], 1 }
 0x3a4   :  { %1742 = vsyncpa [#allocation4], 1 }
 0x3a5   :  { %1744 = vsyncpa [#allocation4 + $0x1], 1 }
 0x3a6   :  { %1745 = vsyncpa [#allocation5], 1 }
 0x3a7   :  { %1747 = vsyncpa [#allocation5 + $0x1], 1 }
 0x3a8   :  { %1748 = vsyncpa [#allocation7], 1 }

// kernel: darts_forward.9
= control target key start
LH: loop header
LB: loop body
LE: loop exit
PB: predicated region body
PF: predicated region fallthrough
CT: control target
= control target key end

     0   :  { %s4877_s0 = inlined_call_operand.vmem [shape: f32[9], index: 0, kind: input, shape index: {}]   ;;  %s4878_s1 = inlined_call_operand.hbm [shape: s32[9], index: 1, kind: input, shape index: {}]   ;;  %s4879_s2 = inlined_call_operand.hbm [shape: s32[9], index: 2, kind: input, shape index: {}]   ;;  %s4880_s3 = inlined_call_operand.vmem [shape: bf16[8,1024], index: 3, kind: input, shape index: {}]   ;;  %s4881_s4 = inlined_call_operand.vmem [shape: bf16[9,1024,256], index: 4, kind: input, shape index: {}]   ;;  %s4882_s5 = inlined_call_operand.vmem [shape: f32[9,1,256], index: 5, kind: input, shape index: {}]   ;;  %s4883_s6 = inlined_call_operand.hbm [shape: bf16[9,256,256], index: 6, kind: input, shape index: {}]   ;;  %s4884_s7 = inlined_call_operand.vmem [shape: f32[9,1,256], index: 7, kind: input, shape index: {}]   ;;  %s4885_s8 = inlined_call_operand.hbm [shape: bf16[9,256,256], index: 8, kind: input, shape index: {}]   ;;  %s4886_s9 = inlined_call_operand.vmem [shape: f32[9,1,256], index: 9, kind: input, shape index: {}]   ;;  %s4887_s10 = inlined_call_operand.vmem [shape: bf16[9,256,128], index: 10, kind: input, shape index: {}]   ;;  %s4888_s11 = inlined_call_operand.hbm [shape: f32[9,1,128], index: 11, kind: input, shape index: {}]   ;;  %s4889_s12 = inlined_call_operand.vmem [shape: f32[8,128], index: 12, kind: output, shape index: {}]  }
   0x1   :  { %4899 = sst [smem:[#allocation21_spill]] %s4877_s0 }
   0x2   :  { %4900 = sst [smem:[#allocation22_spill]] %s4878_s1 }
   0x3   :  { %4901 = sst [smem:[#allocation23_spill]] %s4879_s2 }
   0x4   :  { %4902 = sst [smem:[#allocation24_spill]] %s4880_s3 }
   0x5   :  { %4903 = sst [smem:[#allocation25_spill]] %s4885_s8 }
   0x6   :  { %4904 = sst [smem:[#allocation26_spill]] %s4889_s12 }
   0x7   :  { %17 = vsyncpa [#allocation5], 0 }
   0x8   :  { %18 = vsyncpa [#allocation4], 0 }
   0x9   :  { %19 = vsyncpa [#allocation8], 0 }
   0xa   :  { %20 = vsyncpa [#allocation3], 0 }
   0xb   :  { %22 = vsyncpa [#allocation3 + $0x1], 0 }
   0xc   :  { %23 = vsyncpa [#allocation11], 0 }
   0xd   :  { %25 = vsyncpa [#allocation11 + $0x1], 0  ;;  %s4103_s21 = smov 0   ;;  %s4105_s22 = smov 0  }
   0xe   :  { %s4107_s23 = smov 0   ;;  %s4109_s24 = smov 0  }
   0xf LB: > { %4905 = sst [smem:[#allocation18_spill]] %s4026_s23  ;;  %s4124_s25 = sadd.s32 1, %s4030_s24   ;;  %s4030_s24 = sphi %s4109_s24, %s4930_s24   ;;  %s4026_s23 = sphi %s4107_s23, %s4932_s23   ;;  %s4022_s22 = sphi %s4105_s22, %s4934_s22   ;;  %s4018_s21 = sphi %s4103_s21, %s4933_s21  }
  0x10   : > { %4906 = sst [smem:[#allocation19_spill]] %s4124_s25  ;;  %s174_s26 = sadd.s32 1, %s4026_s23 }
  0x11   : > { %s171_s27 = ssub.s32 %s4030_s24, %s4124_s25  ;;  %p181_p0 = scmp.ne.s32.totalorder %s4026_s23, %s4022_s22 }
  0x12   : > { %p172_p1 = scmp.eq.s32.totalorder %s171_s27, 0  ;;  %p182_p2 = scmp.eq.s32.totalorder %s4030_s24, 0 }
  0x13   : > { %p3766_p3 = scmp.lt.s32.totalorder %s4030_s24, 9  ;;  %s4137_s29 = sand.u32 1, %s4026_s23  }
  0x14   : > { %s4134_s28 = scalar_select %p172_p1, %s4026_s23, %s174_s26  }
  0x15   : > { %p183_p4 = por %p182_p2, %p181_p0  ;;  %s4891_s30 = sshll.u32 %s4137_s29, 8 }
  0x16   : > { %4907 = sst [smem:[#allocation20_spill]] %s4134_s28  ;;  %s4892_s13 = sshll.u32 %s4030_s24, 8 }
  0x17   : > { %p4141_p5 = pnand %p3766_p3, %p183_p4  ;;  %s439_s15 = sand.u32 1, %s4030_s24  }
  0x18   : > { %s4909_s8 = sld [smem:[#allocation25_spill]]  ;;  %s443_s20 = scalar_lea.vmem [#allocation10], %s4891_s30 }
  0x19   : > { %s451_s26 = sshll.u32 %s443_s20, 4  ;;  %s4153_s27 = scalar_lea.sflag [#allocation11], %s439_s15  ;;  %s452_s26 = int_to_ptr.vmem [resolvable:$true] %s451_s26 }
  0x1a   : > { %p3849_p7 = pneg %p4141_p5 }
  0x1e   : > { %s448_s18 = scalar_lea.hbm %s4909_s8, %s4892_s13 }
  0x1f   : > { %s449_s19 = sshll.u32 %s448_s18, 4  ;;  %s3852_s18 = scalar_lea.hbm %s4909_s8, 2304  ;;  %s450_s19 = int_to_ptr.hbm [resolvable:$true] %s449_s19 }
  0x20   : > { %s3845_s28 = sshra.s32 %s450_s19, 4  ;;  %s3846_s28 = int_to_ptr.hbm [resolvable:$true] %s3845_s28 }
  0x21   : > { %s3847_s23 = scalar_lea.hbm %s3846_s28, 256  ;;  %p3853_p10 = scmp.lt.s32.totalorder %s3846_s28, %s4909_s8 }
  0x22   : > { %p3848_p6 = scmp.ne.s32.totalorder %s3846_s28, %s3847_s23  ;;  %p3854_p11 = scmp.lt.s32.totalorder %s3852_s18, %s3847_s23 }
  0x24   : > { %p3850_p8 = pnand %p3849_p7, %p3848_p6  ;;  %p3855_p12 = por %p3854_p11, %p3853_p10 }
  0x26   : > { %p3851_p9 = pneg %p3850_p8 }
  0x28   : > { %p3856_p13 = pnand %p3855_p12, %p3851_p9 }
  0x2a   : > { %3859 = shalt.err (!%p3856_p13)
}
  0x2b   : > { %s4893_s15 = smov 128   ;;  %s4894_s13 = smov 8  }
  0x2c   : > { %3759 = dma.hbm_to_vmem [thread:$0]  (!%p4141_p5), %s450_s19, 4096, %s452_s26, %s4153_s27, %s4893_s15, %s4893_s15, %s4894_s13  }
  0x2d   : > { %s4173_s30 = sadd.s32 4294967295, %s4030_s24   ;;  %p187_p1 = scmp.ne.s32.totalorder %s4022_s22, %s4018_s21 }
  0x2e   : > { %p188_p0 = scmp.eq.s32.totalorder %s4173_s30, 0  ;;  %p2648_p2 = scmp.ge.s32.totalorder %s4030_s24, 1 }
  0x2f   : > { %p349_p3 = scmp.lt.s32.totalorder %s4030_s24, 10  ;;  %p2649_p4 = scmp.ne.s32.totalorder %s4173_s30, 0 }
  0x30   : > { %p4183_p6 = por %p188_p0, %p187_p1  ;;  %s4911_s0 = sld [smem:[#allocation21_spill]] }
  0x31   : > { %p4190_p8 = pnand %p2648_p2, %p349_p3  ;;  %s4913_s1 = sld [smem:[#allocation22_spill]] }
  0x32   : > { %s4914_s2 = sld [smem:[#allocation23_spill]]  ;;  %s4034_s16 = smov [#allocation2]  }
  0x33   : > { %p3743_p9 = pneg %p4190_p8  ;;  %s4035_s13 = smov [#allocation6]  }
  0x34   : > { %s4915_s21 = sshll.u32 %s4030_s24, 8  ;;  %s4916_s25 = sshll.u32 %s4137_s29, 8 }
  0x35   : > { %p3744_p10 = pnand %p3743_p9, %p188_p0  ;;  %s419_s8 = scalar_lea.hbm %s4883_s6, %s4915_s21 }
  0x36   : > { %s361_s19 = sshll.u32 %s4911_s0, 4  ;;  %s4036_s0 = smov [#allocation7]   ;;  %s362_s19 = int_to_ptr.vmem [resolvable:$true] %s361_s19 }
  0x37   : > { %s371_s18 = sshll.u32 %s4913_s1, 4  ;;  %s414_s3 = scalar_lea.vmem [#allocation9], %s4916_s25  ;;  %s372_s18 = int_to_ptr.hbm [resolvable:$true] %s371_s18 }
  0x38   : > { %s381_s28 = sshll.u32 %s4914_s2, 4  ;;  %s422_s15 = sshll.u32 %s414_s3, 4  ;;  %s382_s28 = int_to_ptr.hbm [resolvable:$true] %s381_s28  ;;  %s423_s15 = int_to_ptr.vmem [resolvable:$true] %s422_s15 }
  0x39   : > { %3746 = dma.vmem_to_smem (!%p3744_p10), %s362_s19, 16, %s4034_s16, [#allocation5]  }
  0x3a   : > { %3749 = dma.hbm_to_smem (!%p3744_p10), %s372_s18, 16, %s4035_s13, [#allocation4]  }
  0x3b   : > { %3752 = dma.hbm_to_smem (!%p3744_p10), %s382_s28, 16, %s4036_s0, [#allocation8]  }
  0x3c   : > { %s420_s20 = sshll.u32 %s419_s8, 4  ;;  %s411_s2 = scalar_lea.sflag [#allocation3], %s4137_s29  ;;  %s421_s20 = int_to_ptr.hbm [resolvable:$true] %s420_s20 }
  0x3d   : > { %s3920_s12 = sshra.s32 %s421_s20, 4  ;;  %s3927_s1 = scalar_lea.hbm %s4883_s6, 2304  ;;  %s3921_s12 = int_to_ptr.hbm [resolvable:$true] %s3920_s12 }
  0x3e   : > { %s3922_s19 = scalar_lea.hbm %s3921_s12, 256  ;;  %p3928_p1 = scmp.lt.s32.totalorder %s3921_s12, %s4883_s6 }
  0x3f   : > { %p3923_p11 = scmp.ne.s32.totalorder %s3921_s12, %s3922_s19  ;;  %p3929_p2 = scmp.lt.s32.totalorder %s3927_s1, %s3922_s19 }
  0x41   : > { %p3925_p12 = pnand %p3923_p11, %p3849_p7  ;;  %p3930_p3 = por %p3929_p2, %p3928_p1 }
  0x43   : > { %p3926_p13 = pneg %p3925_p12 }
  0x45   : > { %p3931_p9 = pnand %p3930_p3, %p3926_p13 }
  0x47   : > { %3934 = shalt.err (!%p3931_p9)
}
  0x48   : > { %s4917_s3 = smov 8   ;;  %s4918_s8 = smov 128  }
  0x49   : > { %3756 = dma.hbm_to_vmem [thread:$0]  (!%p4141_p5), %s421_s20, 4096, %s423_s15, %s411_s2, %s4918_s8, %s4918_s8, %s4917_s3  }
  0x4a   : > { %s482_s21 = scalar_lea.hbm %s4888_s11, %s4030_s24  ;;  %s479_s17 = scalar_lea.vmem [#allocation12], %s4137_s29 }
  0x4b   : > { %s486_s0 = sshll.u32 %s479_s17, 4  ;;  %s484_s12 = sshll.u32 %s482_s21, 4  ;;  %s487_s0 = int_to_ptr.vmem [resolvable:$true] %s486_s0  ;;  %s485_s12 = int_to_ptr.hbm [resolvable:$true] %s484_s12 }
  0x4c   : > { %s3950_s19 = sshra.s32 %s485_s12, 4  ;;  %s3957_s2 = scalar_lea.hbm %s4888_s11, 9  ;;  %s3951_s19 = int_to_ptr.hbm [resolvable:$true] %s3950_s19 }
  0x4d   : > { %s3952_s13 = scalar_lea.hbm %s3951_s19, 1  ;;  %p3958_p13 = scmp.lt.s32.totalorder %s3951_s19, %s4888_s11 }
  0x4e   : > { %p3953_p10 = scmp.ne.s32.totalorder %s3951_s19, %s3952_s13  ;;  %p3959_p1 = scmp.lt.s32.totalorder %s3957_s2, %s3952_s13 }
  0x50   : > { %p3955_p11 = pnand %p3953_p10, %p3849_p7  ;;  %p3960_p2 = por %p3959_p1, %p3958_p13 }
  0x52   : > { %p3956_p12 = pneg %p3955_p11 }
  0x54   : > { %p3961_p3 = pnand %p3960_p2, %p3956_p12 }
  0x56   : > { %3964 = shalt.err (!%p3961_p3)
}
  0x57   : > { %3762 = dma.hbm_to_vmem [thread:$0]  (!%p4141_p5), %s485_s12, 16, %s487_s0, %s4153_s27  }
  0x58   : > { %495 = sbr.rel (%p4190_p8) target bundleno = 889 (0x379), region = 68 }
  0x5d   : > { %3997 = dma.done.wait (%p188_p0), [#allocation5], 16  }
  0x5e   : > { %3999 = vsyncadd (%p188_p0), [#allocation5], 4294967280 }
  0x5f   : > { %4001 = dma.done.wait (%p188_p0), [#allocation4], 16  }
  0x60   : > { %4003 = vsyncadd (%p188_p0), [#allocation4], 4294967280 }
  0x61   : > { %4005 = dma.done.wait (%p188_p0), [#allocation8], 16  }
  0x62   : > { %4007 = vsyncadd (%p188_p0), [#allocation8], 4294967280  ;;  %s4258_s24 = sand.u32 1, %s4022_s22  }
  0x63   : > { %s2663_s29 = sshll.u32 %s4258_s24, 8  ;;  %s513_s14 = scalar_lea.sflag [#allocation3], %s4258_s24 }
  0x64   : > { %s4262_s27 = scalar_lea.vmem [#allocation9], %s2663_s29 }
  0x65   : > { %4009 = dma.done.wait (%p4183_p6), %s513_s14, 4096  }
  0x66   : > { %4011 = vsyncadd (%p4183_p6), %s513_s14, 4294963200  ;;  %s522_s26 = sand.u32 1, %s4173_s30   ;;  %s4269_s3 = scalar_lea.vmem [#allocation10], %s2663_s29 }
  0x67   : > { %s523_s28 = scalar_lea.sflag [#allocation11], %s522_s26 }
  0x68   : > { %4013 = dma.done.wait (%p4183_p6), %s523_s28, 4112  }
  0x69   : > { %4015 = vsyncadd (%p4183_p6), %s523_s28, 4294963184  ;;  %s535_s8 = scalar_lea.vmem [#allocation12], %s4258_s24 }
  0x6a   : > { %541 = sfence }
  0x6b   : > { %p604_p5 = scmp.lt.s32.totalorder %s4173_s30, 8  ;;  %s4919_s23 = sld [smem:[#allocation26_spill]] (!%p2649_p4) }
  0x6d   : > { %s605_s25 = scalar_select %p604_p5, %s4173_s30, 8 }
  0x6f   : > { %s3515_s16 = sshll.u32 %s605_s25, 10  ;;  %s4278_s21 = sshll.u32 %s605_s25, 1 }
  0x70   : > { %s4283_s12 = scalar_lea.vmem %s4881_s4, %s3515_s16  ;;  %s612_s13 = scalar_lea.vmem %s4882_s5, %s4278_s21 }
  0x71   : > { %s616_s2 = scalar_lea.vmem %s4884_s7, %s4278_s21  ;;  %s620_s29 = scalar_lea.vmem %s4886_s9, %s4278_s21 }
  0x72   : > { %s3516_s14 = sshll.u32 %s605_s25, 7  ;;  %629 = sbr.rel (%p2649_p4) target bundleno = 121 (0x79), region = 96 }
  0x73   : > { %s4300_s17 = scalar_lea.vmem %s4887_s10, %s3516_s14 }
  0x77   : > { %v4037_v0 = vmov 0.0  }
  0x78   : > { %630 = vst [vmem:[%s4919_s23] sm:$0xff] %v4037_v0 }
  0x79 PF: > { %v2731_v1 = vld [vmem:[%s4283_s12 + $0x70] sm:$0xf]  ;;  %v3532_v2 = vld [vmem:[%s4283_s12 + $0x74] sm:$0xf0]  ;;  %v2723_v12 = vld [vmem:[%s4283_s12 + $0x60] sm:$0xf] }
  0x7a   : > { %v2795_v3 = vld [vmem:[%s4283_s12 + $0xf0] sm:$0xf]  ;;  %v2732_v4 = vor.u32 %v3532_v2, %v2731_v1  ;;  %v3548_v5 = vld [vmem:[%s4283_s12 + $0xf4] sm:$0xf0]  ;;  %v3530_v14 = vld [vmem:[%s4283_s12 + $0x64] sm:$0xf0] }
  0x7b   : > { %v2859_v6 = vld [vmem:[%s4283_s12 + $0x170] sm:$0xf]  ;;  %v3564_v7 = vld [vmem:[%s4283_s12 + $0x174] sm:$0xf0]  ;;  %v2796_v8 = vor.u32 %v3548_v5, %v2795_v3  ;;  %v2787_v15 = vld [vmem:[%s4283_s12 + $0xe0] sm:$0xf]  ;;  %v2724_v17 = vor.u32 %v3530_v14, %v2723_v12 }
  0x7c   : > { %v2860_v9 = vor.u32 %v3564_v7, %v2859_v6  ;;  %v2923_v10 = vld [vmem:[%s4283_s12 + $0x1f0] sm:$0xf]  ;;  %v3580_v11 = vld [vmem:[%s4283_s12 + $0x1f4] sm:$0xf0]  ;;  %1440 = vmatpush.bf16.msra.mxu0 %v2732_v4  ;;  %v3546_v16 = vld [vmem:[%s4283_s12 + $0xe4] sm:$0xf0] }
  0x7d   : > { %v2924_v13 = vor.u32 %v3580_v11, %v2923_v10  ;;  %1453 = vmatpush.bf16.msra.mxu1 %v2796_v8  ;;  %v2788_v18 = vor.u32 %v3546_v16, %v2787_v15  ;;  %v2851_v19 = vld [vmem:[%s4283_s12 + $0x160] sm:$0xf]  ;;  %v3562_v20 = vld [vmem:[%s4283_s12 + $0x164] sm:$0xf0]  ;;  %v2715_v24 = vld [vmem:[%s4283_s12 + $0x50] sm:$0xf] }
  0x7e   : > { %1466 = vmatpush.bf16.msra.mxu2 %v2860_v9  ;;  %v2915_v21 = vld [vmem:[%s4283_s12 + $0x1e0] sm:$0xf]  ;;  %v2852_v22 = vor.u32 %v3562_v20, %v2851_v19  ;;  %v3578_v23 = vld [vmem:[%s4283_s12 + $0x1e4] sm:$0xf0]  ;;  %v3528_v25 = vld [vmem:[%s4283_s12 + $0x54] sm:$0xf0] }
  0x7f   : > { %1479 = vmatpush.bf16.msra.mxu3 %v2924_v13  ;;  %v2916_v26 = vor.u32 %v3578_v23, %v2915_v21  ;;  %v2779_v27 = vld [vmem:[%s4283_s12 + $0xd0] sm:$0xf]  ;;  %v3544_v28 = vld [vmem:[%s4283_s12 + $0xd4] sm:$0xf0]  ;;  %v2716_v30 = vor.u32 %v3528_v25, %v2715_v24  ;;  %v2707_v36 = vld [vmem:[%s4283_s12 + $0x40] sm:$0xf] }
  0x80   : > { %v2843_v29 = vld [vmem:[%s4283_s12 + $0x150] sm:$0xf]  ;;  %1441 = vmatpush.bf16.msra.mxu0 %v2724_v17  ;;  %v3560_v31 = vld [vmem:[%s4283_s12 + $0x154] sm:$0xf0]  ;;  %v2780_v34 = vor.u32 %v3544_v28, %v2779_v27  ;;  %v3526_v37 = vld [vmem:[%s4283_s12 + $0x44] sm:$0xf0] }
  0x81   : > { %v2907_v32 = vld [vmem:[%s4283_s12 + $0x1d0] sm:$0xf]  ;;  %v3576_v33 = vld [vmem:[%s4283_s12 + $0x1d4] sm:$0xf0]  ;;  %1454 = vmatpush.bf16.msra.mxu1 %v2788_v18  ;;  %v2844_v35 = vor.u32 %v3560_v31, %v2843_v29  ;;  %v2771_v38 = vld [vmem:[%s4283_s12 + $0xc0] sm:$0xf]  ;;  %v2708_v45 = vor.u32 %v3526_v37, %v2707_v36 }
  0x82   : > { %1467 = vmatpush.bf16.msra.mxu2 %v2852_v22  ;;  %v2908_v39 = vor.u32 %v3576_v33, %v2907_v32  ;;  %v3542_v40 = vld [vmem:[%s4283_s12 + $0xc4] sm:$0xf0]  ;;  %v2835_v41 = vld [vmem:[%s4283_s12 + $0x140] sm:$0xf]  ;;  %v2699_v48 = vld [vmem:[%s4283_s12 + $0x30] sm:$0xf] }
  0x83   : > { %1480 = vmatpush.bf16.msra.mxu3 %v2916_v26  ;;  %v3558_v42 = vld [vmem:[%s4283_s12 + $0x144] sm:$0xf0]  ;;  %v2899_v43 = vld [vmem:[%s4283_s12 + $0x1c0] sm:$0xf]  ;;  %v2772_v46 = vor.u32 %v3542_v40, %v2771_v38  ;;  %v3524_v49 = vld [vmem:[%s4283_s12 + $0x34] sm:$0xf0] }
  0x84   : > { %v3574_v44 = vld [vmem:[%s4283_s12 + $0x1c4] sm:$0xf0]  ;;  %1442 = vmatpush.bf16.msra.mxu0 %v2716_v30  ;;  %v2836_v47 = vor.u32 %v3558_v42, %v2835_v41  ;;  %v2763_v50 = vld [vmem:[%s4283_s12 + $0xb0] sm:$0xf]  ;;  %v3540_v52 = vld [vmem:[%s4283_s12 + $0xb4] sm:$0xf0]  ;;  %v2700_v57 = vor.u32 %v3524_v49, %v2699_v48 }
  0x85   : > { %1455 = vmatpush.bf16.msra.mxu1 %v2780_v34  ;;  %v2900_v51 = vor.u32 %v3574_v44, %v2899_v43  ;;  %v2827_v53 = vld [vmem:[%s4283_s12 + $0x130] sm:$0xf]  ;;  %v3556_v54 = vld [vmem:[%s4283_s12 + $0x134] sm:$0xf0]  ;;  %v2764_v58 = vor.u32 %v3540_v52, %v2763_v50  ;;  %v2691_v60 = vld [vmem:[%s4283_s12 + $0x20] sm:$0xf] }
  0x86   : > { %1468 = vmatpush.bf16.msra.mxu2 %v2844_v35  ;;  %v2891_v55 = vld [vmem:[%s4283_s12 + $0x1b0] sm:$0xf]  ;;  %v3572_v56 = vld [vmem:[%s4283_s12 + $0x1b4] sm:$0xf0]  ;;  %v2828_v59 = vor.u32 %v3556_v54, %v2827_v53  ;;  %v3522_v61 = vld [vmem:[%s4283_s12 + $0x24] sm:$0xf0] }
  0x87   : > { %1481 = vmatpush.bf16.msra.mxu3 %v2908_v39  ;;  %v2755_v62 = vld [vmem:[%s4283_s12 + $0xa0] sm:$0xf]  ;;  %v2892_v63 = vor.u32 %v3572_v56, %v2891_v55  ;;  %v3538_v0 = vld [vmem:[%s4283_s12 + $0xa4] sm:$0xf0]  ;;  %v2692_v5 = vor.u32 %v3522_v61, %v2691_v60  ;;  %v2683_v8 = vld [vmem:[%s4283_s12 + $0x10] sm:$0xf] }
  0x88   : > { %1443 = vmatpush.bf16.msra.mxu0 %v2708_v45  ;;  %v2819_v1 = vld [vmem:[%s4283_s12 + $0x120] sm:$0xf]  ;;  %v3554_v2 = vld [vmem:[%s4283_s12 + $0x124] sm:$0xf0]  ;;  %v2756_v6 = vor.u32 %v3538_v0, %v2755_v62  ;;  %v3520_v9 = vld [vmem:[%s4283_s12 + $0x14] sm:$0xf0] }
  0x89   : > { %1456 = vmatpush.bf16.msra.mxu1 %v2772_v46  ;;  %v2883_v3 = vld [vmem:[%s4283_s12 + $0x1a0] sm:$0xf]  ;;  %v3570_v4 = vld [vmem:[%s4283_s12 + $0x1a4] sm:$0xf0]  ;;  %v2820_v7 = vor.u32 %v3554_v2, %v2819_v1  ;;  %v2747_v10 = vld [vmem:[%s4283_s12 + $0x90] sm:$0xf]  ;;  %v2684_v17 = vor.u32 %v3520_v9, %v2683_v8 }
  0x8a   : > { %1469 = vmatpush.bf16.msra.mxu2 %v2836_v47  ;;  %v2884_v11 = vor.u32 %v3570_v4, %v2883_v3  ;;  %v3536_v12 = vld [vmem:[%s4283_s12 + $0x94] sm:$0xf0]  ;;  %v2811_v13 = vld [vmem:[%s4283_s12 + $0x110] sm:$0xf]  ;;  %v2675_v18 = vld [vmem:[%s4283_s12] sm:$0xf] }
  0x8b   : > { %1482 = vmatpush.bf16.msra.mxu3 %v2900_v51  ;;  %v3552_v14 = vld [vmem:[%s4283_s12 + $0x114] sm:$0xf0]  ;;  %v2875_v15 = vld [vmem:[%s4283_s12 + $0x190] sm:$0xf]  ;;  %v3518_v19 = vld [vmem:[%s4283_s12 + $0x4] sm:$0xf0]  ;;  %v2748_v20 = vor.u32 %v3536_v12, %v2747_v10 }
  0x8c   : > { %1444 = vmatpush.bf16.msra.mxu0 %v2700_v57  ;;  %v3568_v16 = vld [vmem:[%s4283_s12 + $0x194] sm:$0xf0]  ;;  %v2812_v21 = vor.u32 %v3552_v14, %v2811_v13  ;;  %v2739_v22 = vld [vmem:[%s4283_s12 + $0x80] sm:$0xf]  ;;  %v3534_v23 = vld [vmem:[%s4283_s12 + $0x84] sm:$0xf0]  ;;  %v2676_v32 = vor.u32 %v3518_v19, %v2675_v18 }
  0x8d   : > { %1457 = vmatpush.bf16.msra.mxu1 %v2764_v58  ;;  %v2803_v24 = vld [vmem:[%s4283_s12 + $0x100] sm:$0xf]  ;;  %v2876_v25 = vor.u32 %v3568_v16, %v2875_v15  ;;  %v3550_v26 = vld [vmem:[%s4283_s12 + $0x104] sm:$0xf0]  ;;  %v2987_v29 = vld [vmem:[%s4283_s12 + $0x270] sm:$0xf]  ;;  %v2740_v36 = vor.u32 %v3534_v23, %v2739_v22 }
  0x8e   : > { %1470 = vmatpush.bf16.msra.mxu2 %v2828_v59  ;;  %v2867_v27 = vld [vmem:[%s4283_s12 + $0x180] sm:$0xf]  ;;  %v3566_v28 = vld [vmem:[%s4283_s12 + $0x184] sm:$0xf0]  ;;  %v3596_v30 = vld [vmem:[%s4283_s12 + $0x274] sm:$0xf0]  ;;  %v2804_v37 = vor.u32 %v3550_v26, %v2803_v24 }
  0x8f   : > { %1483 = vmatpush.bf16.msra.mxu3 %v2892_v63  ;;  %v3051_v31 = vld [vmem:[%s4283_s12 + $0x2f0] sm:$0xf]  ;;  %v3612_v33 = vld [vmem:[%s4283_s12 + $0x2f4] sm:$0xf0]  ;;  %v2868_v40 = vor.u32 %v3566_v28, %v2867_v27  ;;  %v2988_v41 = vor.u32 %v3596_v30, %v2987_v29  ;;  %v2979_v44 = vld [vmem:[%s4283_s12 + $0x260] sm:$0xf] }
  0x90   : > { %1445 = vmatpush.bf16.msra.mxu0 %v2692_v5  ;;  %v3115_v34 = vld [vmem:[%s4283_s12 + $0x370] sm:$0xf]  ;;  %v3628_v35 = vld [vmem:[%s4283_s12 + $0x374] sm:$0xf0]  ;;  %v3052_v42 = vor.u32 %v3612_v33, %v3051_v31  ;;  %v3594_v45 = vld [vmem:[%s4283_s12 + $0x264] sm:$0xf0] }
  0x91   : > { %1458 = vmatpush.bf16.msra.mxu1 %v2756_v6  ;;  %v3179_v38 = vld [vmem:[%s4283_s12 + $0x3f0] sm:$0xf]  ;;  %v3644_v39 = vld [vmem:[%s4283_s12 + $0x3f4] sm:$0xf0]  ;;  %v3116_v43 = vor.u32 %v3628_v35, %v3115_v34  ;;  %v3043_v46 = vld [vmem:[%s4283_s12 + $0x2e0] sm:$0xf]  ;;  %v2980_v54 = vor.u32 %v3594_v45, %v2979_v44 }
  0x92   : > { %1471 = vmatpush.bf16.msra.mxu2 %v2820_v7  ;;  %v3180_v47 = vor.u32 %v3644_v39, %v3179_v38  ;;  %v3610_v48 = vld [vmem:[%s4283_s12 + $0x2e4] sm:$0xf0]  ;;  %v3107_v49 = vld [vmem:[%s4283_s12 + $0x360] sm:$0xf]  ;;  %s4920_s1 = sld [smem:[#allocation24_spill]] }
  0x93   : > { %1484 = vmatpush.bf16.msra.mxu3 %v2884_v11  ;;  %v3626_v50 = vld [vmem:[%s4283_s12 + $0x364] sm:$0xf0]  ;;  %v3171_v51 = vld [vmem:[%s4283_s12 + $0x3e0] sm:$0xf]  ;;  %v2971_v55 = vld [vmem:[%s4283_s12 + $0x250] sm:$0xf]  ;;  %v3044_v58 = vor.u32 %v3610_v48, %v3043_v46 }
  0x94   : > { %1446 = vmatpush.bf16.msra.mxu0 %v2684_v17  ;;  %v3642_v52 = vld [vmem:[%s4283_s12 + $0x3e4] sm:$0xf0]  ;;  %v3108_v59 = vor.u32 %v3626_v50, %v3107_v49  ;;  %v3592_v60 = vld [vmem:[%s4283_s12 + $0x254] sm:$0xf0]  ;;  %v3035_v61 = vld [vmem:[%s4283_s12 + $0x2d0] sm:$0xf] }
  0x95   : > { %1459 = vmatpush.bf16.msra.mxu1 %v2748_v20  ;;  %v3608_v62 = vld [vmem:[%s4283_s12 + $0x2d4] sm:$0xf0]  ;;  %v3172_v63 = vor.u32 %v3642_v52, %v3171_v51  ;;  %v3099_v0 = vld [vmem:[%s4283_s12 + $0x350] sm:$0xf]  ;;  %v2972_v9 = vor.u32 %v3592_v60, %v2971_v55  ;;  %v2963_v12 = vld [vmem:[%s4283_s12 + $0x240] sm:$0xf] }
  0x96   : > { %1472 = vmatpush.bf16.msra.mxu2 %v2812_v21  ;;  %v3624_v1 = vld [vmem:[%s4283_s12 + $0x354] sm:$0xf0]  ;;  %v3163_v4 = vld [vmem:[%s4283_s12 + $0x3d0] sm:$0xf]  ;;  %v3036_v10 = vor.u32 %v3608_v62, %v3035_v61  ;;  %v3590_v13 = vld [vmem:[%s4283_s12 + $0x244] sm:$0xf0] }
  0x97   : > { %1485 = vmatpush.bf16.msra.mxu3 %v2876_v25  ;;  %v3640_v5 = vld [vmem:[%s4283_s12 + $0x3d4] sm:$0xf0]  ;;  %v3100_v11 = vor.u32 %v3624_v1, %v3099_v0  ;;  %v3027_v14 = vld [vmem:[%s4283_s12 + $0x2c0] sm:$0xf]  ;;  %v3606_v18 = vld [vmem:[%s4283_s12 + $0x2c4] sm:$0xf0]  ;;  %v2964_v23 = vor.u32 %v3590_v13, %v2963_v12 }
  0x98   : > { %1447 = vmatpush.bf16.msra.mxu0 %v2676_v32  ;;  %v635_v53 = vld [vmem:[%s4920_s1 + $0x8] sm:$0xff]  ;;  %v634_v3 = vld [vmem:[%s4920_s1] sm:$0xff]  ;;  %v3164_v17 = vor.u32 %v3640_v5, %v3163_v4  ;;  %v3028_v24 = vor.u32 %v3606_v18, %v3027_v14  ;;  %v2955_v26 = vld [vmem:[%s4283_s12 + $0x230] sm:$0xf]  ;;  %s4929_s20 = sld [smem:[#allocation26_spill]] }
  0x99   : > { %1460 = vmatpush.bf16.msra.mxu1 %v2740_v36  ;;  %v778_v56 = vunpack.c.l.b16 %v635_v53  ;;  %v779_v57 = vunpack.c.h.b16 %v635_v53  ;;  %v776_v6 = vunpack.c.l.b16 %v634_v3  ;;  %v777_v8 = vunpack.c.h.b16 %v634_v3  ;;  %v3091_v19 = vld [vmem:[%s4283_s12 + $0x340] sm:$0xf]  ;;  %v3622_v20 = vld [vmem:[%s4283_s12 + $0x344] sm:$0xf0]  ;;  %v3588_v27 = vld [vmem:[%s4283_s12 + $0x234] sm:$0xf0] }
  0x9a   : > { %1473 = vmatpush.bf16.msra.mxu2 %v2804_v37  ;;  %v3155_v21 = vld [vmem:[%s4283_s12 + $0x3c0] sm:$0xf]  ;;  %v3638_v22 = vld [vmem:[%s4283_s12 + $0x3c4] sm:$0xf0]  ;;  %v3092_v25 = vor.u32 %v3622_v20, %v3091_v19  ;;  %v3019_v28 = vld [vmem:[%s4283_s12 + $0x2b0] sm:$0xf]  ;;  %v2956_v35 = vor.u32 %v3588_v27, %v2955_v26 }
  0x9b   : > { %1486 = vmatpush.bf16.msra.mxu3 %v2868_v40  ;;  %v4396_v2 = vpack.c.b16 %v778_v56, %v778_v56  ;;  %v4403_v7 = vpack.c.b16 %v779_v57, %v779_v57  ;;  %v4409_v15 = vpack.c.b16 %v776_v6, %v776_v6  ;;  %v4411_v16 = vpack.c.b16 %v777_v8, %v777_v8  ;;  %v3604_v30 = vld [vmem:[%s4283_s12 + $0x2b4] sm:$0xf0]  ;;  %v3083_v31 = vld [vmem:[%s4283_s12 + $0x330] sm:$0xf]  ;;  %v2947_v38 = vld [vmem:[%s4283_s12 + $0x220] sm:$0xf] }
  0x9c   : > { %1492 = vmatpush.bf16.msrb.mxu0 %v2988_v41  ;;  %v3156_v29 = vor.u32 %v3638_v22, %v3155_v21  ;;  %v3620_v32 = vld [vmem:[%s4283_s12 + $0x334] sm:$0xf0]  ;;  %v3147_v33 = vld [vmem:[%s4283_s12 + $0x3b0] sm:$0xf]  ;;  %v3020_v36 = vor.u32 %v3604_v30, %v3019_v28  ;;  %v3586_v39 = vld [vmem:[%s4283_s12 + $0x224] sm:$0xf0] }
  0x9d   : > { %1505 = vmatpush.bf16.msrb.mxu1 %v3052_v42  ;;  %1474 = vmatmul.bf16.vlgmr.msra.gmra.mxu2 %v4396_v2  ;;  %v3636_v34 = vld [vmem:[%s4283_s12 + $0x3b4] sm:$0xf0]  ;;  %v3084_v37 = vor.u32 %v3620_v32, %v3083_v31  ;;  %v3011_v40 = vld [vmem:[%s4283_s12 + $0x2a0] sm:$0xf]  ;;  %v3602_v42 = vld [vmem:[%s4283_s12 + $0x2a4] sm:$0xf0] }
  0x9e   : > { %1518 = vmatpush.bf16.msrb.mxu2 %v3116_v43  ;;  %1448 = vmatmul.bf16.vlgmr.msra.gmra.mxu0 %v4409_v15  ;;  %v3148_v41 = vor.u32 %v3636_v34, %v3147_v33  ;;  %v3075_v43 = vld [vmem:[%s4283_s12 + $0x320] sm:$0xf]  ;;  %v3618_v44 = vld [vmem:[%s4283_s12 + $0x324] sm:$0xf0]  ;;  %v3012_v48 = vor.u32 %v3602_v42, %v3011_v40  ;;  %v2939_v50 = vld [vmem:[%s4283_s12 + $0x210] sm:$0xf] }
  0x9f   : > { %1531 = vmatpush.bf16.msrb.mxu3 %v3180_v47  ;;  %1461 = vmatmul.bf16.vlgmr.msra.gmra.mxu1 %v4411_v16  ;;  %v3139_v45 = vld [vmem:[%s4283_s12 + $0x3a0] sm:$0xf]  ;;  %v3634_v46 = vld [vmem:[%s4283_s12 + $0x3a4] sm:$0xf0]  ;;  %v2948_v47 = vor.u32 %v3586_v39, %v2947_v38  ;;  %v3076_v49 = vor.u32 %v3618_v44, %v3075_v43  ;;  %v3584_v51 = vld [vmem:[%s4283_s12 + $0x214] sm:$0xf0] }
  0xa0   : > { %1493 = vmatpush.bf16.msrb.mxu0 %v2980_v54  ;;  %1487 = vmatmul.bf16.vlgmr.msra.gmra.mxu3 %v4403_v7  ;;  %v3003_v52 = vld [vmem:[%s4283_s12 + $0x290] sm:$0xf]  ;;  %v3140_v53 = vor.u32 %v3634_v46, %v3139_v45  ;;  %v3600_v54 = vld [vmem:[%s4283_s12 + $0x294] sm:$0xf0]  ;;  %v2940_v60 = vor.u32 %v3584_v51, %v2939_v50  ;;  %v3582_v61 = vld [vmem:[%s4283_s12 + $0x204] sm:$0xf0] }
  0xa1   : > { %1506 = vmatpush.bf16.msrb.mxu1 %v3044_v58  ;;  %v3067_v55 = vld [vmem:[%s4283_s12 + $0x310] sm:$0xf]  ;;  %v3616_v56 = vld [vmem:[%s4283_s12 + $0x314] sm:$0xf0]  ;;  %v2995_v62 = vld [vmem:[%s4283_s12 + $0x280] sm:$0xf]  ;;  %v3004_v0 = vor.u32 %v3600_v54, %v3003_v52 }
  0xa2   : > { %1519 = vmatpush.bf16.msrb.mxu2 %v3108_v59  ;;  %v3131_v57 = vld [vmem:[%s4283_s12 + $0x390] sm:$0xf]  ;;  %v3632_v58 = vld [vmem:[%s4283_s12 + $0x394] sm:$0xf0]  ;;  %v2931_v59 = vld [vmem:[%s4283_s12 + $0x200] sm:$0xf]  ;;  %v3068_v1 = vor.u32 %v3616_v56, %v3067_v55 }
  0xa3   : > { %1532 = vmatpush.bf16.msrb.mxu3 %v3172_v63  ;;  %v3598_v63 = vld [vmem:[%s4283_s12 + $0x284] sm:$0xf0]  ;;  %v3059_v3 = vld [vmem:[%s4283_s12 + $0x300] sm:$0xf]  ;;  %v637_v5 = vld [vmem:[%s4920_s1 + $0x18] sm:$0xff]  ;;  %v3132_v6 = vor.u32 %v3632_v58, %v3131_v57  ;;  %v2932_v14 = vor.u32 %v3582_v61, %v2931_v59 }
  0xa4   : > { %1494 = vmatpush.bf16.msrb.mxu0 %v2972_v9  ;;  %v3614_v4 = vld [vmem:[%s4283_s12 + $0x304] sm:$0xf0]  ;;  %v3123_v8 = vld [vmem:[%s4283_s12 + $0x380] sm:$0xf]  ;;  %v2733_v12 = vld [vmem:[%s4283_s12 + $0x78] sm:$0xf0]  ;;  %v782_v20 = vunpack.c.l.b16 %v637_v5  ;;  %v2996_v21 = vor.u32 %v3598_v63, %v2995_v62  ;;  %v783_v26 = vunpack.c.h.b16 %v637_v5 }
  0xa5   : > { %1507 = vmatpush.bf16.msrb.mxu1 %v3036_v10  ;;  %v3630_v9 = vld [vmem:[%s4283_s12 + $0x384] sm:$0xf0]  ;;  %v636_v10 = vld [vmem:[%s4920_s1 + $0x10] sm:$0xff]  ;;  %v2861_v19 = vld [vmem:[%s4283_s12 + $0x178] sm:$0xf0]  ;;  %v3060_v22 = vor.u32 %v3614_v4, %v3059_v3 }
  0xa6   : > { %1520 = vmatpush.bf16.msrb.mxu2 %v3100_v11  ;;  %v3531_v11 = vld [vmem:[%s4283_s12 + $0x74] sm:$0xf]  ;;  %v3124_v27 = vor.u32 %v3630_v9, %v3123_v8  ;;  %v3529_v32 = vld [vmem:[%s4283_s12 + $0x64] sm:$0xf]  ;;  %v2725_v33 = vld [vmem:[%s4283_s12 + $0x68] sm:$0xf0] }
  0xa7   : > { %1533 = vmatpush.bf16.msrb.mxu3 %v3164_v17  ;;  %v3547_v13 = vld [vmem:[%s4283_s12 + $0xf4] sm:$0xf]  ;;  %v2797_v17 = vld [vmem:[%s4283_s12 + $0xf8] sm:$0xf0]  ;;  %v2736_v28 = vor.u32 %v3531_v11, %v2733_v12  ;;  %v3545_v34 = vld [vmem:[%s4283_s12 + $0xe4] sm:$0xf]  ;;  %v2728_v44 = vor.u32 %v3529_v32, %v2725_v33 }
  0xa8   : > { %1495 = vmatpush.bf16.msrb.mxu0 %v2964_v23  ;;  %v3563_v18 = vld [vmem:[%s4283_s12 + $0x174] sm:$0xf]  ;;  %v2800_v30 = vor.u32 %v3547_v13, %v2797_v17  ;;  %v3561_v38 = vld [vmem:[%s4283_s12 + $0x164] sm:$0xf]  ;;  %v2853_v39 = vld [vmem:[%s4283_s12 + $0x168] sm:$0xf0] }
  0xa9   : > { %1508 = vmatpush.bf16.msrb.mxu1 %v3028_v24  ;;  %v3579_v23 = vld [vmem:[%s4283_s12 + $0x1f4] sm:$0xf]  ;;  %v2925_v24 = vld [vmem:[%s4283_s12 + $0x1f8] sm:$0xf0]  ;;  %v2864_v31 = vor.u32 %v3563_v18, %v2861_v19  ;;  %v3577_v42 = vld [vmem:[%s4283_s12 + $0x1e4] sm:$0xf] }
  0xaa   : > { %1521 = vmatpush.bf16.msrb.mxu2 %v3092_v25  ;;  %v780_v25 = vunpack.c.l.b16 %v636_v10  ;;  %v2917_v43 = vld [vmem:[%s4283_s12 + $0x1e8] sm:$0xf0]  ;;  %v3543_v50 = vld [vmem:[%s4283_s12 + $0xd4] sm:$0xf]  ;;  %v2781_v52 = vld [vmem:[%s4283_s12 + $0xd8] sm:$0xf0] }
  0xab   : > { %1534 = vmatpush.bf16.msrb.mxu3 %v3156_v29  ;;  %v781_v29 = vunpack.c.h.b16 %v636_v10  ;;  %v2920_v51 = vor.u32 %v3577_v42, %v2917_v43  ;;  %v2845_v54 = vld [vmem:[%s4283_s12 + $0x158] sm:$0xf0]  ;;  %v3575_v55 = vld [vmem:[%s4283_s12 + $0x1d4] sm:$0xf]  ;;  %v2784_v58 = vor.u32 %v3543_v50, %v2781_v52  ;;  %v2709_v61 = vld [vmem:[%s4283_s12 + $0x48] sm:$0xf0] }
  0xac   : > { %1496 = vmatpush.bf16.msrb.mxu0 %v2956_v35  ;;  %v2928_v35 = vor.u32 %v3579_v23, %v2925_v24  ;;  %v4475_v40 = vpack.c.b16 %v780_v25, %v780_v25  ;;  %v2909_v56 = vld [vmem:[%s4283_s12 + $0x1d8] sm:$0xf0]  ;;  %v3541_v62 = vld [vmem:[%s4283_s12 + $0xc4] sm:$0xf]  ;;  %v2837_v3 = vld [vmem:[%s4283_s12 + $0x148] sm:$0xf0] }
  0xad   : > { %1509 = vmatpush.bf16.msrb.mxu1 %v3020_v36  ;;  %v4470_v36 = vpack.c.b16 %v782_v20, %v782_v20  ;;  %v4481_v45 = vpack.c.b16 %v781_v29, %v781_v29  ;;  %v2912_v63 = vor.u32 %v3575_v55, %v2909_v56  ;;  %v3573_v4 = vld [vmem:[%s4283_s12 + $0x1c4] sm:$0xf]  ;;  %v2901_v5 = vld [vmem:[%s4283_s12 + $0x1c8] sm:$0xf0]  ;;  %v3523_v10 = vld [vmem:[%s4283_s12 + $0x34] sm:$0xf] }
  0xae   : > { %1522 = vmatpush.bf16.msrb.mxu2 %v3084_v37  ;;  %v2789_v37 = vld [vmem:[%s4283_s12 + $0xe8] sm:$0xf0]  ;;  %v2701_v11 = vld [vmem:[%s4283_s12 + $0x38] sm:$0xf0]  ;;  %v3539_v12 = vld [vmem:[%s4283_s12 + $0xb4] sm:$0xf]  ;;  %v2904_v13 = vor.u32 %v3573_v4, %v2901_v5 }
  0xaf   : > { %1535 = vmatpush.bf16.msrb.mxu3 %v3148_v41  ;;  %v4477_v41 = vpack.c.b16 %v783_v26, %v783_v26  ;;  %v2792_v46 = vor.u32 %v3545_v34, %v2789_v37  ;;  %v3555_v17 = vld [vmem:[%s4283_s12 + $0x134] sm:$0xf]  ;;  %v2829_v18 = vld [vmem:[%s4283_s12 + $0x138] sm:$0xf0]  ;;  %v3521_v24 = vld [vmem:[%s4283_s12 + $0x24] sm:$0xf] }
  0xb0   : > { %1497 = vmatpush.bf16.msrb.mxu0 %v2948_v47  ;;  %v2856_v47 = vor.u32 %v3561_v38, %v2853_v39  ;;  %v3571_v19 = vld [vmem:[%s4283_s12 + $0x1b4] sm:$0xf]  ;;  %v2893_v20 = vld [vmem:[%s4283_s12 + $0x1b8] sm:$0xf0]  ;;  %v2832_v23 = vor.u32 %v3555_v17, %v2829_v18  ;;  %v2693_v25 = vld [vmem:[%s4283_s12 + $0x28] sm:$0xf0] }
  0xb1   : > { %1510 = vmatpush.bf16.msrb.mxu1 %v3012_v48  ;;  %v3527_v48 = vld [vmem:[%s4283_s12 + $0x54] sm:$0xf]  ;;  %v3537_v26 = vld [vmem:[%s4283_s12 + $0xa4] sm:$0xf]  ;;  %v2885_v32 = vld [vmem:[%s4283_s12 + $0x1a8] sm:$0xf0]  ;;  %v2696_v33 = vor.u32 %v3521_v24, %v2693_v25 }
  0xb2   : > { %1523 = vmatpush.bf16.msrb.mxu2 %v3076_v49  ;;  %v2717_v49 = vld [vmem:[%s4283_s12 + $0x58] sm:$0xf0]  ;;  %v3553_v29 = vld [vmem:[%s4283_s12 + $0x124] sm:$0xf]  ;;  %v3519_v37 = vld [vmem:[%s4283_s12 + $0x14] sm:$0xf] }
  0xb3   : > { %1536 = vmatpush.bf16.msrb.mxu3 %v3140_v53  ;;  %v3559_v53 = vld [vmem:[%s4283_s12 + $0x154] sm:$0xf]  ;;  %v2720_v57 = vor.u32 %v3527_v48, %v2717_v49  ;;  %v2685_v38 = vld [vmem:[%s4283_s12 + $0x18] sm:$0xf0]  ;;  %v3517_v50 = vld [vmem:[%s4283_s12 + $0x4] sm:$0xf] }
  0xb4   : > { %1498 = vmatpush.bf16.msrb.mxu0 %v2940_v60  ;;  %v2848_v59 = vor.u32 %v3559_v53, %v2845_v54  ;;  %v3525_v60 = vld [vmem:[%s4283_s12 + $0x44] sm:$0xf]  ;;  %v3535_v39 = vld [vmem:[%s4283_s12 + $0x94] sm:$0xf]  ;;  %v2749_v43 = vld [vmem:[%s4283_s12 + $0x98] sm:$0xf0]  ;;  %v2688_v49 = vor.u32 %v3519_v37, %v2685_v38 }
  0xb5   : > { %1511 = vmatpush.bf16.msrb.mxu1 %v3004_v0  ;;  %v2773_v0 = vld [vmem:[%s4283_s12 + $0xc8] sm:$0xf0]  ;;  %v2877_v48 = vld [vmem:[%s4283_s12 + $0x198] sm:$0xf0]  ;;  %v2752_v52 = vor.u32 %v3535_v39, %v2749_v43  ;;  %v3533_v54 = vld [vmem:[%s4283_s12 + $0x84] sm:$0xf] }
  0xb6   : > { %1524 = vmatpush.bf16.msrb.mxu2 %v3068_v1  ;;  %v3557_v1 = vld [vmem:[%s4283_s12 + $0x144] sm:$0xf]  ;;  %v2776_v8 = vor.u32 %v3541_v62, %v2773_v0  ;;  %v2741_v55 = vld [vmem:[%s4283_s12 + $0x88] sm:$0xf0]  ;;  %v2989_v62 = vld [vmem:[%s4283_s12 + $0x278] sm:$0xf0] }
  0xb7   : > { %1537 = vmatpush.bf16.msrb.mxu3 %v3132_v6  ;;  %v2712_v6 = vor.u32 %v3525_v60, %v2709_v61  ;;  %v2840_v9 = vor.u32 %v3557_v1, %v2837_v3  ;;  %v3549_v56 = vld [vmem:[%s4283_s12 + $0x104] sm:$0xf]  ;;  %v2869_v60 = vld [vmem:[%s4283_s12 + $0x188] sm:$0xf0]  ;;  %v3595_v61 = vld [vmem:[%s4283_s12 + $0x274] sm:$0xf]  ;;  %v2744_v5 = vor.u32 %v3533_v54, %v2741_v55 }
  0xb8   : > { %1499 = vmatpush.bf16.msrb.mxu0 %v2932_v14  ;;  %v2765_v14 = vld [vmem:[%s4283_s12 + $0xb8] sm:$0xf0]  ;;  %v3627_v3 = vld [vmem:[%s4283_s12 + $0x374] sm:$0xf]  ;;  %v2981_v17 = vld [vmem:[%s4283_s12 + $0x268] sm:$0xf0] }
  0xb9   : > { %1512 = vmatpush.bf16.msrb.mxu1 %v2996_v21  ;;  %v2704_v21 = vor.u32 %v3523_v10, %v2701_v11  ;;  %v3053_v1 = vld [vmem:[%s4283_s12 + $0x2f8] sm:$0xf0]  ;;  %v2992_v11 = vor.u32 %v3595_v61, %v2989_v62  ;;  %v3609_v18 = vld [vmem:[%s4283_s12 + $0x2e4] sm:$0xf]  ;;  %v3173_v24 = vld [vmem:[%s4283_s12 + $0x3e8] sm:$0xf0] }
  0xba   : > { %1525 = vmatpush.bf16.msrb.mxu2 %v3060_v22  ;;  %v2768_v22 = vor.u32 %v3539_v12, %v2765_v14  ;;  %v3117_v4 = vld [vmem:[%s4283_s12 + $0x378] sm:$0xf0]  ;;  %v3593_v14 = vld [vmem:[%s4283_s12 + $0x264] sm:$0xf]  ;;  %v2965_v43 = vld [vmem:[%s4283_s12 + $0x248] sm:$0xf0] }
  0xbb   : > { %1538 = vmatpush.bf16.msrb.mxu3 %v3124_v27  ;;  %1500 = vmatmul.bf16.vlgmr.msrb.gmra.mxu0 %v4475_v40  ;;  %v2896_v27 = vor.u32 %v3571_v19, %v2893_v20  ;;  %v3045_v20 = vld [vmem:[%s4283_s12 + $0x2e8] sm:$0xf0]  ;;  %v2984_v25 = vor.u32 %v3593_v14, %v2981_v17  ;;  %v3165_v37 = vld [vmem:[%s4283_s12 + $0x3d8] sm:$0xf0]  ;;  %v3603_v54 = vld [vmem:[%s4283_s12 + $0x2b4] sm:$0xf] }
  0xbc   : > { %1544 = vmatpush.bf16.msra.mxu0 %v2736_v28  ;;  %1513 = vmatmul.bf16.vlgmr.msrb.gmra.mxu1 %v4481_v45  ;;  %v2757_v28 = vld [vmem:[%s4283_s12 + $0xa8] sm:$0xf0]  ;;  %v3583_v14 = vld [vmem:[%s4283_s12 + $0x214] sm:$0xf]  ;;  %v2941_v17 = vld [vmem:[%s4283_s12 + $0x218] sm:$0xf0] }
  0xbd   : > { %1557 = vmatpush.bf16.msra.mxu1 %v2800_v30  ;;  %1526 = vmatmul.bf16.vlgmr.msrb.gmra.mxu2 %v4470_v36  ;;  %v2821_v30 = vld [vmem:[%s4283_s12 + $0x128] sm:$0xf0]  ;;  %v2760_v34 = vor.u32 %v3537_v26, %v2757_v28  ;;  %v3048_v26 = vor.u32 %v3609_v18, %v3045_v20  ;;  %v3591_v28 = vld [vmem:[%s4283_s12 + $0x254] sm:$0xf]  ;;  %v3005_v20 = vld [vmem:[%s4283_s12 + $0x298] sm:$0xf0] }
  0xbe   : > { %1570 = vmatpush.bf16.msra.mxu2 %v2864_v31  ;;  %1539 = vmatmul.bf16.vlgmr.msrb.gmra.mxu3 %v4477_v41  ;;  %v3569_v31 = vld [vmem:[%s4283_s12 + $0x1a4] sm:$0xf]  ;;  %v3599_v18 = vld [vmem:[%s4283_s12 + $0x294] sm:$0xf] }
  0xbf   : > { %1583 = vmatpush.bf16.msra.mxu3 %v2928_v35  ;;  %v2824_v35 = vor.u32 %v3553_v29, %v2821_v30  ;;  %v2888_v42 = vor.u32 %v3569_v31, %v2885_v32  ;;  %v2973_v29 = vld [vmem:[%s4283_s12 + $0x258] sm:$0xf0]  ;;  %v3607_v30 = vld [vmem:[%s4283_s12 + $0x2d4] sm:$0xf] }
  0xc0   : > { %1545 = vmatpush.bf16.msra.mxu0 %v2728_v44  ;;  %v3551_v44 = vld [vmem:[%s4283_s12 + $0x114] sm:$0xf]  ;;  %v3037_v32 = vld [vmem:[%s4283_s12 + $0x2d8] sm:$0xf0]  ;;  %v2976_v38 = vor.u32 %v3591_v28, %v2973_v29  ;;  %v3581_v28 = vld [vmem:[%s4283_s12 + $0x204] sm:$0xf] }
  0xc1   : > { %1558 = vmatpush.bf16.msra.mxu1 %v2792_v46  ;;  %v2813_v46 = vld [vmem:[%s4283_s12 + $0x118] sm:$0xf0]  ;;  %v2933_v29 = vld [vmem:[%s4283_s12 + $0x208] sm:$0xf0] }
  0xc2   : > { %1571 = vmatpush.bf16.msra.mxu2 %v2856_v47  ;;  %v3567_v47 = vld [vmem:[%s4283_s12 + $0x194] sm:$0xf]  ;;  %v2816_v53 = vor.u32 %v3551_v44, %v2813_v46  ;;  %v3605_v44 = vld [vmem:[%s4283_s12 + $0x2c4] sm:$0xf]  ;;  %v3029_v46 = vld [vmem:[%s4283_s12 + $0x2c8] sm:$0xf0] }
  0xc3   : > { %1584 = vmatpush.bf16.msra.mxu3 %v2920_v51  ;;  %v2677_v51 = vld [vmem:[%s4283_s12 + $0x8] sm:$0xf0] }
  0xc4   : > { %1546 = vmatpush.bf16.msra.mxu0 %v2720_v57  ;;  %v2880_v57 = vor.u32 %v3567_v47, %v2877_v48  ;;  %v2680_v0 = vor.u32 %v3517_v50, %v2677_v51  ;;  %v3093_v47 = vld [vmem:[%s4283_s12 + $0x348] sm:$0xf0]  ;;  %v3637_v48 = vld [vmem:[%s4283_s12 + $0x3c4] sm:$0xf]  ;;  %v3032_v50 = vor.u32 %v3605_v44, %v3029_v46  ;;  %v4612_v46 = vld [vmem:[%s612_s13] sm:$0x3] }
  0xc5   : > { %1559 = vmatpush.bf16.msra.mxu1 %v2784_v58  ;;  %v2805_v58 = vld [vmem:[%s4283_s12 + $0x108] sm:$0xf0]  ;;  %s632_s13 = sld [smem:[#allocation6 + %s4173_s30]] }
  0xc6   : > { %1572 = vmatpush.bf16.msra.mxu2 %v2848_v59  ;;  %v3565_v59 = vld [vmem:[%s4283_s12 + $0x184] sm:$0xf] }
  0xc7   : > { %1585 = vmatpush.bf16.msra.mxu3 %v2912_v63  ;;  %v3611_v63 = vld [vmem:[%s4283_s12 + $0x2f4] sm:$0xf]  ;;  %v2872_v10 = vor.u32 %v3565_v59, %v2869_v60  ;;  %v3149_v60 = vld [vmem:[%s4283_s12 + $0x3b8] sm:$0xf0] }
  0xc8   : > { %1547 = vmatpush.bf16.msra.mxu0 %v2712_v6  ;;  %v2808_v6 = vor.u32 %v3549_v56, %v2805_v58  ;;  %v3056_v12 = vor.u32 %v3611_v63, %v3053_v1  ;;  %v3021_v56 = vld [vmem:[%s4283_s12 + $0x2b8] sm:$0xf0]  ;;  %v3635_v59 = vld [vmem:[%s4283_s12 + $0x3b4] sm:$0xf]  ;;  %v2949_v1 = vld [vmem:[%s4283_s12 + $0x228] sm:$0xf0] }
  0xc9   : > { %1560 = vmatpush.bf16.msra.mxu1 %v2776_v8  ;;  %v3643_v8 = vld [vmem:[%s4283_s12 + $0x3f4] sm:$0xf]  ;;  %v3085_v58 = vld [vmem:[%s4283_s12 + $0x338] sm:$0xf0]  ;;  %v3024_v62 = vor.u32 %v3603_v54, %v3021_v56 }
  0xca   : > { %1573 = vmatpush.bf16.msra.mxu2 %v2840_v9  ;;  %v3181_v9 = vld [vmem:[%s4283_s12 + $0x3f8] sm:$0xf0] }
  0xcb   : > { %1586 = vmatpush.bf16.msra.mxu3 %v2904_v13  ;;  %v3120_v13 = vor.u32 %v3627_v3, %v3117_v4  ;;  %v3184_v19 = vor.u32 %v3643_v8, %v3181_v9  ;;  %v3601_v3 = vld [vmem:[%s4283_s12 + $0x2a4] sm:$0xf]  ;;  %v3152_v4 = vor.u32 %v3635_v59, %v3149_v60  ;;  %v3077_v8 = vld [vmem:[%s4283_s12 + $0x328] sm:$0xf0]  ;;  %v3229_v59 = vld [vmem:[%s4262_s27 + $0x50] sm:$0xf] }
  0xcc   : > { %1548 = vmatpush.bf16.msra.mxu0 %v2704_v21  ;;  %v3625_v21 = vld [vmem:[%s4283_s12 + $0x364] sm:$0xf]  ;;  %v3656_v60 = vld [vmem:[%s4262_s27 + $0x54] sm:$0xf0]  ;;  %p1691_p7 = scmp.eq.s32.totalorder %s632_s13, 1  ;;  %p1690_p0 = scmp.eq.s32.totalorder %s632_s13, 0 }
  0xcd   : > { %1561 = vmatpush.bf16.msra.mxu1 %v2768_v22  ;;  %v3109_v22 = vld [vmem:[%s4283_s12 + $0x368] sm:$0xf0]  ;;  %v3633_v9 = vld [vmem:[%s4283_s12 + $0x3a4] sm:$0xf] }
  0xce   : > { %1574 = vmatpush.bf16.msra.mxu2 %v2832_v23  ;;  %v3641_v23 = vld [vmem:[%s4283_s12 + $0x3e4] sm:$0xf]  ;;  %s1692_s0 = scalar_select %p1691_p7, 1, 0 }
  0xcf   : > { %1587 = vmatpush.bf16.msra.mxu3 %v2896_v27  ;;  %v3112_v27 = vor.u32 %v3625_v21, %v3109_v22  ;;  %v3176_v31 = vor.u32 %v3641_v23, %v3173_v24  ;;  %v3615_v21 = vld [vmem:[%s4283_s12 + $0x314] sm:$0xf]  ;;  %v3069_v22 = vld [vmem:[%s4283_s12 + $0x318] sm:$0xf0]  ;;  %s1697_s23 = scalar_select %p1690_p0, 1, 0 }
  0xd0   : > { %1549 = vmatpush.bf16.msra.mxu0 %v2696_v33  ;;  %v3623_v33 = vld [vmem:[%s4283_s12 + $0x354] sm:$0xf]  ;;  %v3133_v24 = vld [vmem:[%s4283_s12 + $0x398] sm:$0xf0] }
  0xd1   : > { %1562 = vmatpush.bf16.msra.mxu1 %v2760_v34  ;;  %v3101_v34 = vld [vmem:[%s4283_s12 + $0x358] sm:$0xf0]  ;;  %v3631_v23 = vld [vmem:[%s4283_s12 + $0x394] sm:$0xf] }
  0xd2   : > { %1575 = vmatpush.bf16.msra.mxu2 %v2824_v35  ;;  %v3639_v35 = vld [vmem:[%s4283_s12 + $0x3d4] sm:$0xf]  ;;  %v3104_v39 = vor.u32 %v3623_v33, %v3101_v34  ;;  %v3613_v33 = vld [vmem:[%s4283_s12 + $0x304] sm:$0xf]  ;;  %v3061_v34 = vld [vmem:[%s4283_s12 + $0x308] sm:$0xf0] }
  0xd3   : > { %1588 = vmatpush.bf16.msra.mxu3 %v2888_v42  ;;  %v3589_v42 = vld [vmem:[%s4283_s12 + $0x244] sm:$0xf] }
  0xd4   : > { %1550 = vmatpush.bf16.msra.mxu0 %v2688_v49  ;;  %v2968_v49 = vor.u32 %v3589_v42, %v2965_v43 }
  0xd5   : > { %1563 = vmatpush.bf16.msra.mxu1 %v2752_v52  ;;  %v3587_v52 = vld [vmem:[%s4283_s12 + $0x234] sm:$0xf] }
  0xd6   : > { %1576 = vmatpush.bf16.msra.mxu2 %v2816_v53  ;;  %v2957_v53 = vld [vmem:[%s4283_s12 + $0x238] sm:$0xf0] }
  0xd7   : > { %1589 = vmatpush.bf16.msra.mxu3 %v2880_v57  ;;  %v3619_v57 = vld [vmem:[%s4283_s12 + $0x334] sm:$0xf]  ;;  %v2960_v61 = vor.u32 %v3587_v52, %v2957_v53  ;;  %v3658_v52 = vld [vmem:[%s4262_s27 + $0x64] sm:$0xf0]  ;;  %v3657_v53 = vld [vmem:[%s4262_s27 + $0x64] sm:$0xf] }
  0xd8   : > { %1551 = vmatpush.bf16.msra.mxu0 %v2680_v0  ;;  %v3088_v63 = vor.u32 %v3619_v57, %v3085_v58  ;;  %v3585_v0 = vld [vmem:[%s4283_s12 + $0x224] sm:$0xf] }
  0xd9   : > { %1564 = vmatpush.bf16.msra.mxu1 %v2744_v5  ;;  %v3013_v5 = vld [vmem:[%s4283_s12 + $0x2a8] sm:$0xf0] }
  0xda   : > { %1577 = vmatpush.bf16.msra.mxu2 %v2808_v6  ;;  %v3617_v6 = vld [vmem:[%s4283_s12 + $0x324] sm:$0xf] }
  0xdb   : > { %1590 = vmatpush.bf16.msra.mxu3 %v2872_v10  ;;  %1552 = vmatmul.bf16.vlgmr.msra.gmra.mxu0 %v4409_v15  ;;  %v3168_v15 = vor.u32 %v3639_v35, %v3165_v37  ;;  %v3141_v10 = vld [vmem:[%s4283_s12 + $0x3a8] sm:$0xf0]  ;;  %v3629_v35 = vld [vmem:[%s4283_s12 + $0x384] sm:$0xf] }
  0xdc   : > { %1596 = vmatpush.bf16.msrb.mxu0 %v2992_v11  ;;  %1565 = vmatmul.bf16.vlgmr.msra.gmra.mxu1 %v4411_v16  ;;  %v3157_v16 = vld [vmem:[%s4283_s12 + $0x3c8] sm:$0xf0]  ;;  %v2952_v11 = vor.u32 %v3585_v0, %v2949_v1  ;;  %v3231_v0 = vld [vmem:[%s4262_s27 + $0x58] sm:$0xf0] }
  0xdd   : > { %1609 = vmatpush.bf16.msrb.mxu1 %v3056_v12  ;;  %1578 = vmatmul.bf16.vlgmr.msra.gmra.mxu2 %v4396_v2  ;;  %v3040_v2 = vor.u32 %v3607_v30, %v3037_v32  ;;  %v3160_v55 = vor.u32 %v3637_v48, %v3157_v16  ;;  %v3016_v12 = vor.u32 %v3601_v3, %v3013_v5  ;;  %v3597_v30 = vld [vmem:[%s4283_s12 + $0x284] sm:$0xf]  ;;  %v2997_v32 = vld [vmem:[%s4283_s12 + $0x288] sm:$0xf0]  ;;  %v3247_v48 = vld [vmem:[%s4262_s27 + $0x78] sm:$0xf0] }
  0xde   : > { %1622 = vmatpush.bf16.msrb.mxu2 %v3120_v13  ;;  %1591 = vmatmul.bf16.vlgmr.msra.gmra.mxu3 %v4403_v7  ;;  %v3621_v7 = vld [vmem:[%s4283_s12 + $0x344] sm:$0xf]  ;;  %v3080_v13 = vor.u32 %v3617_v6, %v3077_v8  ;;  %v3125_v37 = vld [vmem:[%s4283_s12 + $0x388] sm:$0xf0]  ;;  %v3654_v5 = vld [vmem:[%s4262_s27 + $0x44] sm:$0xf0] }
  0xdf   : > { %1635 = vmatpush.bf16.msrb.mxu3 %v3184_v19  ;;  %v3096_v51 = vor.u32 %v3621_v7, %v3093_v47  ;;  %v3144_v19 = vor.u32 %v3633_v9, %v3141_v10  ;;  %v3128_v42 = vor.u32 %v3629_v35, %v3125_v37  ;;  %v3245_v7 = vld [vmem:[%s4262_s27 + $0x70] sm:$0xf]  ;;  %v3653_v6 = vld [vmem:[%s4262_s27 + $0x44] sm:$0xf]  ;;  %v3223_v9 = vld [vmem:[%s4262_s27 + $0x48] sm:$0xf0] }
  0xe0   : > { %1597 = vmatpush.bf16.msrb.mxu0 %v2984_v25  ;;  %v2944_v25 = vor.u32 %v3583_v14, %v2941_v17  ;;  %v3651_v14 = vld [vmem:[%s4262_s27 + $0x34] sm:$0xf] }
  0xe1   : > { %1610 = vmatpush.bf16.msrb.mxu1 %v3048_v26  ;;  %v3008_v26 = vor.u32 %v3599_v18, %v3005_v20  ;;  %v3215_v18 = vld [vmem:[%s4262_s27 + $0x38] sm:$0xf0] }
  0xe2   : > { %1623 = vmatpush.bf16.msrb.mxu2 %v3112_v27  ;;  %v3072_v27 = vor.u32 %v3615_v21, %v3069_v22  ;;  %v3218_v20 = vor.u32 %v3651_v14, %v3215_v18  ;;  %v3205_v21 = vld [vmem:[%s4262_s27 + $0x20] sm:$0xf]  ;;  %v3650_v22 = vld [vmem:[%s4262_s27 + $0x24] sm:$0xf0] }
  0xe3   : > { %1636 = vmatpush.bf16.msrb.mxu3 %v3176_v31  ;;  %v3136_v31 = vor.u32 %v3631_v23, %v3133_v24  ;;  %v3649_v23 = vld [vmem:[%s4262_s27 + $0x24] sm:$0xf]  ;;  %v3206_v24 = vor.u32 %v3650_v22, %v3205_v21  ;;  %v3301_v22 = vld [vmem:[%s4262_s27 + $0xe0] sm:$0xf] }
  0xe4   : > { %1598 = vmatpush.bf16.msrb.mxu0 %v2976_v38  ;;  %v2936_v38 = vor.u32 %v3581_v28, %v2933_v29  ;;  %v3648_v29 = vld [vmem:[%s4262_s27 + $0x14] sm:$0xf0] }
  0xe5   : > { %1611 = vmatpush.bf16.msrb.mxu1 %v3040_v2  ;;  %v3000_v2 = vor.u32 %v3597_v30, %v2997_v32  ;;  %v3647_v30 = vld [vmem:[%s4262_s27 + $0x14] sm:$0xf] }
  0xe6   : > { %1624 = vmatpush.bf16.msrb.mxu2 %v3104_v39  ;;  %v3064_v39 = vor.u32 %v3613_v33, %v3061_v34 }
  0xe7   : > { %1637 = vmatpush.bf16.msrb.mxu3 %v3168_v15 }
  0xe8   : > { %1599 = vmatpush.bf16.msrb.mxu0 %v2968_v49 }
  0xe9   : > { %1612 = vmatpush.bf16.msrb.mxu1 %v3032_v50 }
  0xea   : > { %1625 = vmatpush.bf16.msrb.mxu2 %v3096_v51  ;;  %v3237_v51 = vld [vmem:[%s4262_s27 + $0x60] sm:$0xf] }
  0xeb   : > { %1638 = vmatpush.bf16.msrb.mxu3 %v3160_v55  ;;  %v3238_v54 = vor.u32 %v3658_v52, %v3237_v51  ;;  %v3239_v55 = vld [vmem:[%s4262_s27 + $0x68] sm:$0xf0] }
  0xec   : > { %1600 = vmatpush.bf16.msrb.mxu0 %v2960_v61  ;;  %v3242_v58 = vor.u32 %v3657_v53, %v3239_v55  ;;  %v3655_v61 = vld [vmem:[%s4262_s27 + $0x54] sm:$0xf] }
  0xed   : > { %1613 = vmatpush.bf16.msrb.mxu1 %v3024_v62  ;;  %v3234_v3 = vor.u32 %v3655_v61, %v3231_v0  ;;  %v2470_v0 = vld [vmem:[%s4929_s20] sm:$0xff] }
  0xee   : > { %1626 = vmatpush.bf16.msrb.mxu2 %v3088_v63  ;;  %v3230_v63 = vor.u32 %v3656_v60, %v3229_v59  ;;  %v1698_v60 = vstv %s1697_s23 }
  0xef   : > { %1639 = vmatpush.bf16.msrb.mxu3 %v3152_v4  ;;  %v3221_v4 = vld [vmem:[%s4262_s27 + $0x40] sm:$0xf]  ;;  %vm4652_vm5 = vcmp.eq.s32.totalorder %v1698_v60, 1  ;;  %v3263_v60 = vld [vmem:[%s4262_s27 + $0x98] sm:$0xf0] }
  0xf0   : > { %1601 = vmatpush.bf16.msrb.mxu0 %v2952_v11  ;;  %v3222_v8 = vor.u32 %v3654_v5, %v3221_v4  ;;  %v3226_v11 = vor.u32 %v3653_v6, %v3223_v9  ;;  %v3309_v9 = vld [vmem:[%s4262_s27 + $0xf0] sm:$0xf] }
  0xf1   : > { %1614 = vmatpush.bf16.msrb.mxu1 %v3016_v12  ;;  %v3213_v12 = vld [vmem:[%s4262_s27 + $0x30] sm:$0xf] }
  0xf2   : > { %1627 = vmatpush.bf16.msrb.mxu2 %v3080_v13  ;;  %v3652_v13 = vld [vmem:[%s4262_s27 + $0x34] sm:$0xf0] }
  0xf3   : > { %1640 = vmatpush.bf16.msrb.mxu3 %v3144_v19  ;;  %v3214_v17 = vor.u32 %v3652_v13, %v3213_v12 }
  0xf4   : > { %1602 = vmatpush.bf16.msrb.mxu0 %v2944_v25  ;;  %v3207_v25 = vld [vmem:[%s4262_s27 + $0x28] sm:$0xf0] }
  0xf5   : > { %1615 = vmatpush.bf16.msrb.mxu1 %v3008_v26  ;;  %v3197_v26 = vld [vmem:[%s4262_s27 + $0x10] sm:$0xf]  ;;  %v3210_v28 = vor.u32 %v3649_v23, %v3207_v25  ;;  %v3674_v23 = vld [vmem:[%s4262_s27 + $0xe4] sm:$0xf0]  ;;  %v769_v25 = vperm.slane %v4612_v46, 1 }
  0xf6   : > { %1628 = vmatpush.bf16.msrb.mxu2 %v3072_v27  ;;  %v3198_v34 = vor.u32 %v3648_v29, %v3197_v26  ;;  %v3302_v26 = vor.u32 %v3674_v23, %v3301_v22 }
  0xf7   : > { %1641 = vmatpush.bf16.msrb.mxu3 %v3136_v31  ;;  %v3199_v31 = vld [vmem:[%s4262_s27 + $0x18] sm:$0xf0] }
  0xf8   : > { %1603 = vmatpush.bf16.msrb.mxu0 %v2936_v38  ;;  %v3202_v37 = vor.u32 %v3647_v30, %v3199_v31  ;;  %v3189_v38 = vld [vmem:[%s4262_s27] sm:$0xf]  ;;  %v3293_v31 = vld [vmem:[%s4262_s27 + $0xd0] sm:$0xf] }
  0xf9   : > { %1616 = vmatpush.bf16.msrb.mxu1 %v3000_v2  ;;  %v3646_v2 = vld [vmem:[%s4262_s27 + $0x4] sm:$0xf0] }
  0xfa   : > { %1629 = vmatpush.bf16.msrb.mxu2 %v3064_v39  ;;  %v3645_v39 = vld [vmem:[%s4262_s27 + $0x4] sm:$0xf] }
  0xfb   : > { %1642 = vmatpush.bf16.msrb.mxu3 %v3128_v42  ;;  %1604 = vmatmul.bf16.vlgmr.msrb.gmra.mxu0 %v4475_v40  ;;  %v3660_v40 = vld [vmem:[%s4262_s27 + $0x74] sm:$0xf0] }
  0xfc   : > { %1617 = vmatmul.bf16.vlgmr.msrb.gmra.mxu1 %v4481_v45  ;;  %v3659_v45 = vld [vmem:[%s4262_s27 + $0x74] sm:$0xf] }
  0xfd   : > { %1630 = vmatmul.bf16.vlgmr.msrb.gmra.mxu2 %v4470_v36  ;;  %v3246_v36 = vor.u32 %v3660_v40, %v3245_v7  ;;  %v3250_v16 = vor.u32 %v3659_v45, %v3247_v48  ;;  %v3190_v7 = vor.u32 %v3646_v2, %v3189_v38  ;;  %v3285_v38 = vld [vmem:[%s4262_s27 + $0xc0] sm:$0xf]  ;;  %v3670_v2 = vld [vmem:[%s4262_s27 + $0xc4] sm:$0xf0] }
  0xfe   : > { %1643 = vmatmul.bf16.vlgmr.msrb.gmra.mxu3 %v4477_v41  ;;  %v768_v41 = vperm.slane %v4612_v46, 0 }
  0xff   : > { %1902 = vmatpush.bf16.msra.mxu0 %v3246_v36  ;;  %1928 = vmatpush.bf16.msra.mxu2 %v3250_v16 }
 0x103   : > { %1903 = vmatpush.bf16.msra.mxu0 %v3238_v54  ;;  %1929 = vmatpush.bf16.msra.mxu2 %v3242_v58 }
 0x107   : > { %1904 = vmatpush.bf16.msra.mxu0 %v3230_v63  ;;  %1930 = vmatpush.bf16.msra.mxu2 %v3234_v3 }
 0x10b   : > { %1905 = vmatpush.bf16.msra.mxu0 %v3222_v8  ;;  %1931 = vmatpush.bf16.msra.mxu2 %v3226_v11  ;;  %v3675_v11 = vld [vmem:[%s4262_s27 + $0xf4] sm:$0xf] }
 0x10f   : > { %1906 = vmatpush.bf16.msra.mxu0 %v3214_v17  ;;  %1932 = vmatpush.bf16.msra.mxu2 %v3218_v20  ;;  %v3311_v17 = vld [vmem:[%s4262_s27 + $0xf8] sm:$0xf0] }
 0x110   : > { %v3314_v20 = vor.u32 %v3675_v11, %v3311_v17 }
 0x112   : > { %1941 = vmatpush.bf16.msra.mxu3 %v3314_v20 }
 0x113   : > { %1907 = vmatpush.bf16.msra.mxu0 %v3206_v24  ;;  %1933 = vmatpush.bf16.msra.mxu2 %v3210_v28  ;;  %v3673_v24 = vld [vmem:[%s4262_s27 + $0xe4] sm:$0xf] }
 0x117   : > { %1908 = vmatpush.bf16.msra.mxu0 %v3198_v34  ;;  %1934 = vmatpush.bf16.msra.mxu2 %v3202_v37 }
 0x11b   : > { %v1449_v43 = vpop.f32.mrf.mxu0  ;;  %1909 = vmatpush.bf16.msra.mxu0 %v3190_v7  ;;  %v3277_v7 = vld [vmem:[%s4262_s27 + $0xb0] sm:$0xf] }
 0x11c   : > { %v1462_v44 = vpop.f32.mrf.mxu1  ;;  %v1450_v56 = vadd.f32 %v1449_v43, %v768_v41  ;;  %v3191_v43 = vld [vmem:[%s4262_s27 + $0x8] sm:$0xf0] }
 0x11d   : > { %v3194_v40 = vor.u32 %v3645_v39, %v3191_v43  ;;  %v3669_v39 = vld [vmem:[%s4262_s27 + $0xc4] sm:$0xf]  ;;  %v3286_v43 = vor.u32 %v3670_v2, %v3285_v38 }
 0x11e   : > { %v1463_v1 = vadd.f32 %v1462_v44, %v1450_v56 }
 0x11f   : > { %1935 = vmatpush.bf16.msra.mxu2 %v3194_v40  ;;  %v3668_v40 = vld [vmem:[%s4262_s27 + $0xb4] sm:$0xf0] }
 0x120   : > { %v1475_v15 = vpop.f32.mrf.mxu2 }
 0x121   : > { %v1476_v10 = vadd.f32 %v1475_v15, %v1463_v1 }
 0x123   : > { %v1488_v47 = vpop.f32.mrf.mxu3  ;;  %v1451_v49 = vpop.f32.mrf.mxu0 }
 0x124   : > { %v1464_v50 = vpop.f32.mrf.mxu1  ;;  %v1489_v19 = vadd.f32 %v1488_v47, %v1476_v10  ;;  %v3676_v10 = vld [vmem:[%s4262_s27 + $0xf4] sm:$0xf0] }
 0x125   : > { %v3310_v14 = vor.u32 %v3676_v10, %v3309_v9 }
 0x127   : > { %1915 = vmatpush.bf16.msra.mxu1 %v3310_v14 }
 0x128   : > { %v1477_v57 = vpop.f32.mrf.mxu2 }
 0x129   : > { %v1693_v57 = vstv %s1692_s0 }
 0x12a   : > { %vm4648_vm3 = vcmp.eq.s32.totalorder %v1693_v57, 1 }
 0x12b   : > { %v1490_v62 = vpop.f32.mrf.mxu3  ;;  %1916 = vmatpush.bf16.msra.mxu1 %v3302_v26 }
 0x138   : > { %v1501_v27 = vpop.f32.mrf.mxu0 }
 0x139   : > { %v1502_v32 = vadd.f32 %v1501_v27, %v1489_v19  ;;  %v1514_v33 = vpop.f32.mrf.mxu1  ;;  %v3303_v27 = vld [vmem:[%s4262_s27 + $0xe8] sm:$0xf0] }
 0x13a   : > { %v3306_v29 = vor.u32 %v3673_v24, %v3303_v27 }
 0x13b   : > { %v1515_v35 = vadd.f32 %v1514_v33, %v1502_v32  ;;  %v3672_v32 = vld [vmem:[%s4262_s27 + $0xd4] sm:$0xf0]  ;;  %v3671_v33 = vld [vmem:[%s4262_s27 + $0xd4] sm:$0xf] }
 0x13c   : > { %1942 = vmatpush.bf16.msra.mxu3 %v3306_v29  ;;  %v3294_v46 = vor.u32 %v3672_v32, %v3293_v31 }
 0x13e   : > { %1917 = vmatpush.bf16.msra.mxu1 %v3294_v46 }
 0x140   : > { %v1527_v42 = vpop.f32.mrf.mxu2  ;;  %v1503_v47 = vpop.f32.mrf.mxu0 }
 0x141   : > { %v1528_v44 = vadd.f32 %v1527_v42, %v1515_v35  ;;  %v1540_v15 = vpop.f32.mrf.mxu3  ;;  %v1516_v36 = vpop.f32.mrf.mxu1  ;;  %v3295_v35 = vld [vmem:[%s4262_s27 + $0xd8] sm:$0xf0] }
 0x142   : > { %v3298_v37 = vor.u32 %v3671_v33, %v3295_v35  ;;  %1918 = vmatpush.bf16.msra.mxu1 %v3286_v43  ;;  %v3278_v36 = vor.u32 %v3668_v40, %v3277_v7  ;;  %v3692_v7 = vld [vmem:[%s4269_s3 + $0x74] sm:$0xf0]  ;;  %v3691_v40 = vld [vmem:[%s4269_s3 + $0x74] sm:$0xf] }
 0x143   : > { %v1541_v45 = vadd.f32 %v1540_v15, %v1528_v44  ;;  %v3287_v44 = vld [vmem:[%s4262_s27 + $0xc8] sm:$0xf0] }
 0x144   : > { %1943 = vmatpush.bf16.msra.mxu3 %v3298_v37  ;;  %v3290_v15 = vor.u32 %v3669_v39, %v3287_v44 }
 0x145   : > { %v3185_v48 = vmul.f32 -1.442695, %v1541_v45  ;;  %v1648_v1 = vmax.f32 %v1541_v45, 0.0 }
 0x146   : > { %1919 = vmatpush.bf16.msra.mxu1 %v3278_v36 }
 0x147   : > { %3809 = vpow2.f32 %v3185_v48  ;;  %v3279_v48 = vld [vmem:[%s4262_s27 + $0xb8] sm:$0xf0] }
 0x148   : > { %v1529_v41 = vpop.f32.mrf.mxu2  ;;  %1944 = vmatpush.bf16.msra.mxu3 %v3290_v15  ;;  %v3375_v15 = vld [vmem:[%s4269_s3 + $0x70] sm:$0xf] }
 0x149   : > { %v1542_v16 = vpop.f32.mrf.mxu3 }
 0x14a   : > { %v3269_v16 = vld [vmem:[%s4262_s27 + $0xa0] sm:$0xf] }
 0x14d   : > { %v3810_v49 = vpop.eup %3809 }
 0x14e   : > { %v1658_v50 = vadd.f32 1.0, %v3810_v49  ;;  %v3666_v49 = vld [vmem:[%s4262_s27 + $0xa4] sm:$0xf0] }
 0x150   : > { %3811 = vrcp.f32 %v1658_v50  ;;  %v1671_v56 = vand.u32 2147483648, %v1658_v50  ;;  %vm1665_vm0 = vweird.f32 %v1658_v50  ;;  %v1669_v59 = vand.u32 2147483647, %v1658_v50 }
 0x151   : > { %3813 = vtanh.f32 %v1541_v45  ;;  %v3667_v45 = vld [vmem:[%s4262_s27 + $0xb4] sm:$0xf] }
 0x152   : > { %v1672_v63 = vor.u32 1.1754944e-38, %v1671_v56  ;;  %vm1670_vm4 = vcmp.eq.f32.partialorder %v1669_v59, 8.507059e+37  ;;  %v3282_v41 = vor.u32 %v3667_v45, %v3279_v48  ;;  %v3664_v56 = vld [vmem:[%s4262_s27 + $0x94] sm:$0xf0]  ;;  %v3663_v59 = vld [vmem:[%s4262_s27 + $0x94] sm:$0xf]  ;;  %v3376_v45 = vor.u32 %v3692_v7, %v3375_v15 }
 0x153   : > { %v3367_v48 = vld [vmem:[%s4269_s3 + $0x60] sm:$0xf]  ;;  %v3337_v7 = vld [vmem:[%s4269_s3 + $0x28] sm:$0xf0] }
 0x154   : > { %1945 = vmatpush.bf16.msra.mxu3 %v3282_v41  ;;  %2206 = vmatpush.bf16.msrb.mxu0 %v3376_v45  ;;  %v3690_v41 = vld [vmem:[%s4269_s3 + $0x64] sm:$0xf0]  ;;  %v3407_v45 = vld [vmem:[%s4269_s3 + $0xb0] sm:$0xf] }
 0x156   : > { %v3812_v51 = vpop.eup %3811 }
 0x157   : > { %v1661_v52 = vmul.f32 %v3812_v51, %v1658_v50  ;;  %vm1666_vm1 = vweird.f32 %v3812_v51  ;;  %v3814_v6 = vpop.eup %3813  ;;  %v3665_v50 = vld [vmem:[%s4262_s27 + $0xa4] sm:$0xf] }
 0x158   : > { %v1553_v54 = vpop.f32.mrf.mxu0  ;;  %vm1667_vm2 = vmor %vm1665_vm0, %vm1666_vm1 }
 0x159   : > { %v1662_v53 = vsub.f32 1.0, %v1661_v52  ;;  %v1566_v55 = vpop.f32.mrf.mxu1  ;;  %v1554_v34 = vadd.f32 %v1553_v54, %v769_v25  ;;  %v3271_v54 = vld [vmem:[%s4262_s27 + $0xa8] sm:$0xf0] }
 0x15b   : > { %v1663_v58 = vmul.f32 %v3812_v51, %v1662_v53  ;;  %v1567_v42 = vadd.f32 %v1566_v55, %v1554_v34  ;;  %v3270_v53 = vor.u32 %v3666_v49, %v3269_v16  ;;  %v3261_v55 = vld [vmem:[%s4262_s27 + $0x90] sm:$0xf]  ;;  %v3689_v16 = vld [vmem:[%s4269_s3 + $0x64] sm:$0xf]  ;;  %v3368_v49 = vor.u32 %v3690_v41, %v3367_v48 }
 0x15d   : > { %v1664_v61 = vadd.f32 %v3812_v51, %v1663_v58  ;;  %v3274_v58 = vor.u32 %v3665_v50, %v3271_v54  ;;  %1920 = vmatpush.bf16.msra.mxu1 %v3270_v53  ;;  %v3369_v50 = vld [vmem:[%s4269_s3 + $0x68] sm:$0xf0]  ;;  %v3708_v53 = vld [vmem:[%s4269_s3 + $0xf4] sm:$0xf0]  ;;  %v3707_v54 = vld [vmem:[%s4269_s3 + $0xf4] sm:$0xf]  ;;  %2207 = vmatpush.bf16.msrb.mxu0 %v3368_v49 }
 0x15f   : > { %v1668_v4 = vsel %vm1667_vm2, %v3812_v51, %v1664_v61  ;;  %1946 = vmatpush.bf16.msra.mxu3 %v3274_v58  ;;  %v3359_v58 = vld [vmem:[%s4269_s3 + $0x50] sm:$0xf] }
 0x160   : > { %v1579_v62 = vpop.f32.mrf.mxu2  ;;  %v1673_v8 = vsel %vm1670_vm4, %v1672_v63, %v1668_v4  ;;  %v1555_v13 = vpop.f32.mrf.mxu0  ;;  %v3266_v63 = vor.u32 %v3663_v59, %v3263_v60  ;;  %v3662_v4 = vld [vmem:[%s4262_s27 + $0x84] sm:$0xf0]  ;;  %v3688_v59 = vld [vmem:[%s4269_s3 + $0x54] sm:$0xf0]  ;;  %v3687_v60 = vld [vmem:[%s4269_s3 + $0x54] sm:$0xf] }
 0x161   : > { %v1592_v3 = vpop.f32.mrf.mxu3  ;;  %v1695_v12 = vsel %vm4648_vm3, %v3814_v6, %v1673_v8  ;;  %v1568_v19 = vpop.f32.mrf.mxu1  ;;  %v1580_v47 = vadd.f32 %v1579_v62, %v1567_v42  ;;  %v3262_v62 = vor.u32 %v3664_v56, %v3261_v55  ;;  %v3255_v6 = vld [vmem:[%s4262_s27 + $0x88] sm:$0xf0]  ;;  %v3441_v56 = vld [vmem:[%s4269_s3 + $0xf8] sm:$0xf0] }
 0x162   : > { %v4664_v18 = vsel %vm4652_vm5, %v1648_v1, %v1695_v12  ;;  %v3253_v1 = vld [vmem:[%s4262_s27 + $0x80] sm:$0xf] }
 0x163   : > { %v1702_v21 = vpack.c.bf16 %v4664_v18, %v4664_v18  ;;  %v1593_v51 = vadd.f32 %v1592_v3, %v1580_v47  ;;  %v3661_v3 = vld [vmem:[%s4262_s27 + $0x84] sm:$0xf]  ;;  %1921 = vmatpush.bf16.msra.mxu1 %v3262_v62  ;;  %v3254_v9 = vor.u32 %v3662_v4, %v3253_v1  ;;  %1947 = vmatpush.bf16.msra.mxu3 %v3266_v63  ;;  %v3377_v47 = vld [vmem:[%s4269_s3 + $0x78] sm:$0xf0]  ;;  %v3431_v1 = vld [vmem:[%s4269_s3 + $0xe0] sm:$0xf] }
 0x164   : > { %v3258_v11 = vor.u32 %v3661_v3, %v3255_v6  ;;  %v3380_v36 = vor.u32 %v3691_v40, %v3377_v47  ;;  %v3361_v62 = vld [vmem:[%s4269_s3 + $0x58] sm:$0xf0]  ;;  %v3706_v4 = vld [vmem:[%s4269_s3 + $0xe4] sm:$0xf0]  ;;  %v3705_v3 = vld [vmem:[%s4269_s3 + $0xe4] sm:$0xf] }
 0x165   : > { %1910 = vmatmul.bf16.vlgmr.msra.gmra.mxu0 %v1702_v21  ;;  %1936 = vmatmul.bf16.vlgmr.msra.gmra.mxu2 %v1702_v21  ;;  %v3364_v63 = vor.u32 %v3687_v60, %v3361_v62  ;;  %v3432_v6 = vor.u32 %v3706_v4, %v3431_v1  ;;  %v3700_v47 = vld [vmem:[%s4269_s3 + $0xb4] sm:$0xf0]  ;;  %v3401_v60 = vld [vmem:[%s4269_s3 + $0xa8] sm:$0xf0]  ;;  %v3678_v1 = vld [vmem:[%s4269_s3 + $0x4] sm:$0xf0] }
 0x166   : > { %2232 = vmatpush.bf16.msrb.mxu2 %v3380_v36  ;;  %v3699_v36 = vld [vmem:[%s4269_s3 + $0xb4] sm:$0xf]  ;;  %v3408_v41 = vor.u32 %v3700_v47, %v3407_v45  ;;  %v3677_v4 = vld [vmem:[%s4269_s3 + $0x4] sm:$0xf] }
 0x167   : > { %1922 = vmatpush.bf16.msra.mxu1 %v3254_v9  ;;  %1948 = vmatpush.bf16.msra.mxu3 %v3258_v11  ;;  %v3686_v11 = vld [vmem:[%s4269_s3 + $0x44] sm:$0xf0] }
 0x168   : > { %v1581_v28 = vpop.f32.mrf.mxu2 }
 0x169   : > { %v1594_v30 = vpop.f32.mrf.mxu3 }
 0x178   : > { %v1605_v52 = vpop.f32.mrf.mxu0 }
 0x179   : > { %v1618_v57 = vpop.f32.mrf.mxu1  ;;  %v1606_v61 = vadd.f32 %v1605_v52, %v1593_v51  ;;  %v3372_v51 = vor.u32 %v3689_v16, %v3369_v50  ;;  %v3439_v52 = vld [vmem:[%s4269_s3 + $0xf0] sm:$0xf]  ;;  %v3409_v16 = vld [vmem:[%s4269_s3 + $0xb8] sm:$0xf0] }
 0x17a   : > { %v3440_v55 = vor.u32 %v3708_v53, %v3439_v52  ;;  %v3412_v49 = vor.u32 %v3699_v36, %v3409_v16  ;;  %v3327_v50 = vld [vmem:[%s4269_s3 + $0x10] sm:$0xf]  ;;  %v3679_v52 = vld [vmem:[%s4269_s3 + $0x14] sm:$0xf] }
 0x17b   : > { %v1619_v8 = vadd.f32 %v1618_v57, %v1606_v61  ;;  %2233 = vmatpush.bf16.msrb.mxu2 %v3372_v51  ;;  %v3444_v57 = vor.u32 %v3707_v54, %v3441_v56  ;;  %v3360_v61 = vor.u32 %v3688_v59, %v3359_v58  ;;  %v3680_v51 = vld [vmem:[%s4269_s3 + $0x14] sm:$0xf0]  ;;  %v3329_v54 = vld [vmem:[%s4269_s3 + $0x18] sm:$0xf0]  ;;  %v3399_v56 = vld [vmem:[%s4269_s3 + $0xa0] sm:$0xf] }
 0x17c   : > { %2219 = vmatpush.bf16.msrb.mxu1 %v3440_v55  ;;  %v3328_v53 = vor.u32 %v3680_v51, %v3327_v50  ;;  %v3332_v55 = vor.u32 %v3679_v52, %v3329_v54  ;;  %v3697_v58 = vld [vmem:[%s4269_s3 + $0xa4] sm:$0xf] }
 0x17d   : > { %2245 = vmatpush.bf16.msrb.mxu3 %v3444_v57  ;;  %2208 = vmatpush.bf16.msrb.mxu0 %v3360_v61  ;;  %v3698_v57 = vld [vmem:[%s4269_s3 + $0xa4] sm:$0xf0]  ;;  %v3404_v62 = vor.u32 %v3697_v58, %v3401_v60 }
 0x17e   : > { %v3400_v59 = vor.u32 %v3698_v57, %v3399_v56 }
 0x17f   : > { %2234 = vmatpush.bf16.msrb.mxu2 %v3364_v63  ;;  %v3319_v63 = vld [vmem:[%s4269_s3] sm:$0xf] }
 0x180   : > { %v1631_v10 = vpop.f32.mrf.mxu2  ;;  %v1607_v14 = vpop.f32.mrf.mxu0  ;;  %2220 = vmatpush.bf16.msrb.mxu1 %v3432_v6 }
 0x181   : > { %v1632_v12 = vadd.f32 %v1631_v10, %v1619_v8  ;;  %v1644_v13 = vpop.f32.mrf.mxu3  ;;  %v1620_v17 = vpop.f32.mrf.mxu1  ;;  %v3433_v8 = vld [vmem:[%s4269_s3 + $0xe8] sm:$0xf0]  ;;  %v3351_v10 = vld [vmem:[%s4269_s3 + $0x40] sm:$0xf] }
 0x182   : > { %v3436_v9 = vor.u32 %v3705_v3, %v3433_v8  ;;  %v3353_v14 = vld [vmem:[%s4269_s3 + $0x48] sm:$0xf0]  ;;  %v3320_v8 = vor.u32 %v3678_v1, %v3319_v63 }
 0x183   : > { %v1645_v19 = vadd.f32 %v1644_v13, %v1632_v12  ;;  %v3685_v12 = vld [vmem:[%s4269_s3 + $0x44] sm:$0xf]  ;;  %v3352_v13 = vor.u32 %v3686_v11, %v3351_v10 }
 0x184   : > { %2246 = vmatpush.bf16.msrb.mxu3 %v3436_v9  ;;  %v3356_v17 = vor.u32 %v3685_v12, %v3353_v14  ;;  %v3321_v9 = vld [vmem:[%s4269_s3 + $0x8] sm:$0xf0]  ;;  %v3696_v12 = vld [vmem:[%s4269_s3 + $0x94] sm:$0xf0] }
 0x185   : > { %v3186_v20 = vmul.f32 -1.442695, %v1645_v19  ;;  %v1649_v46 = vmax.f32 %v1645_v19, 0.0  ;;  %2209 = vmatpush.bf16.msrb.mxu0 %v3352_v13  ;;  %v3324_v11 = vor.u32 %v3677_v4, %v3321_v9  ;;  %v3695_v13 = vld [vmem:[%s4269_s3 + $0x94] sm:$0xf] }
 0x186   : > { %2235 = vmatpush.bf16.msrb.mxu2 %v3356_v17  ;;  %v3393_v17 = vld [vmem:[%s4269_s3 + $0x98] sm:$0xf0]  ;;  %v3715_v9 = vld [vmem:[%s4300_s17 + $0x30] sm:$0xff] }
 0x187   : > { %3815 = vpow2.f32 %v3186_v20  ;;  %v3704_v20 = vld [vmem:[%s4269_s3 + $0xd4] sm:$0xf0] }
 0x188   : > { %v1633_v21 = vpop.f32.mrf.mxu2 }
 0x189   : > { %v1646_v22 = vpop.f32.mrf.mxu3  ;;  %v3703_v21 = vld [vmem:[%s4269_s3 + $0xd4] sm:$0xf] }
 0x18d   : > { %v3816_v23 = vpop.eup %3815 }
 0x18e   : > { %v1659_v24 = vadd.f32 1.0, %v3816_v23  ;;  %v3425_v23 = vld [vmem:[%s4269_s3 + $0xd8] sm:$0xf0] }
 0x190   : > { %3817 = vrcp.f32 %v1659_v24  ;;  %v1686_v28 = vand.u32 2147483648, %v1659_v24  ;;  %v1684_v30 = vand.u32 2147483647, %v1659_v24  ;;  %vm1680_vm7 = vweird.f32 %v1659_v24 }
 0x191   : > { %3819 = vtanh.f32 %v1645_v19  ;;  %v3423_v19 = vld [vmem:[%s4269_s3 + $0xd0] sm:$0xf] }
 0x192   : > { %v1687_v32 = vor.u32 1.1754944e-38, %v1686_v28  ;;  %vm1685_vm9 = vcmp.eq.f32.partialorder %v1684_v30, 8.507059e+37  ;;  %v3424_v22 = vor.u32 %v3704_v20, %v3423_v19  ;;  %v3396_v20 = vor.u32 %v3695_v13, %v3393_v17  ;;  %v3712_v13 = vld [vmem:[%s4300_s17 + $0x18] sm:$0xff]  ;;  %v2040_v17 = vld [vmem:[%s620_s29] sm:$0x3]  ;;  %s631_s29 = sld [smem:[#allocation2 + %s4173_s30]] }
 0x194   : > { %2221 = vmatpush.bf16.msrb.mxu1 %v3424_v22  ;;  %v3383_v22 = vld [vmem:[%s4269_s3 + $0x80] sm:$0xf] }
 0x196   : > { %v3818_v25 = vpop.eup %3817 }
 0x197   : > { %v1676_v26 = vmul.f32 %v3818_v25, %v1659_v24  ;;  %vm1681_vm6 = vweird.f32 %v3818_v25  ;;  %v3820_v34 = vpop.eup %3819  ;;  %v3428_v24 = vor.u32 %v3703_v21, %v3425_v23  ;;  %v3694_v23 = vld [vmem:[%s4269_s3 + $0x84] sm:$0xf0] }
 0x198   : > { %vm1682_vm8 = vmor %vm1680_vm7, %vm1681_vm6 }
 0x199   : > { %v1677_v27 = vsub.f32 1.0, %v1676_v26  ;;  %v3684_v26 = vld [vmem:[%s4269_s3 + $0x34] sm:$0xf0]  ;;  %2247 = vmatpush.bf16.msrb.mxu3 %v3428_v24  ;;  %v3693_v24 = vld [vmem:[%s4269_s3 + $0x84] sm:$0xf] }
 0x19b   : > { %v1678_v29 = vmul.f32 %v3818_v25, %v1677_v27  ;;  %v3683_v27 = vld [vmem:[%s4269_s3 + $0x34] sm:$0xf] }
 0x19d   : > { %v1679_v31 = vadd.f32 %v3818_v25, %v1678_v29  ;;  %v3345_v29 = vld [vmem:[%s4269_s3 + $0x38] sm:$0xf0] }
 0x19e   : > { %v3348_v30 = vor.u32 %v3683_v27, %v3345_v29  ;;  %v3385_v27 = vld [vmem:[%s4269_s3 + $0x88] sm:$0xf0] }
 0x19f   : > { %v1683_v33 = vsel %vm1682_vm8, %v3818_v25, %v1679_v31  ;;  %v3343_v25 = vld [vmem:[%s4269_s3 + $0x30] sm:$0xf]  ;;  %v3415_v31 = vld [vmem:[%s4269_s3 + $0xc0] sm:$0xf]  ;;  %v3388_v29 = vor.u32 %v3693_v24, %v3385_v27 }
 0x1a0   : > { %v1688_v35 = vsel %vm1685_vm9, %v1687_v32, %v1683_v33  ;;  %v3344_v28 = vor.u32 %v3684_v26, %v3343_v25  ;;  %v3702_v32 = vld [vmem:[%s4269_s3 + $0xc4] sm:$0xf0]  ;;  %v3701_v33 = vld [vmem:[%s4269_s3 + $0xc4] sm:$0xf]  ;;  %2236 = vmatpush.bf16.msrb.mxu2 %v3348_v30  ;;  %v3384_v26 = vor.u32 %v3694_v23, %v3383_v22  ;;  %v2042_v22 = vperm.slane %v2040_v17, 0  ;;  %v3719_v24 = vld [vmem:[%s4300_s17 + $0x50] sm:$0xff] }
 0x1a1   : > { %v1696_v37 = vsel %vm4648_vm3, %v3820_v34, %v1688_v35  ;;  %v1736_v34 = vld [vmem:[%s616_s2] sm:$0x3]  ;;  %v3417_v35 = vld [vmem:[%s4269_s3 + $0xc8] sm:$0xf0]  ;;  %s4784_s2 = sld [smem:[#allocation7 + %s4173_s30]] }
 0x1a2   : > { %v4701_v38 = vsel %vm4652_vm5, %v1649_v46, %v1696_v37  ;;  %2210 = vmatpush.bf16.msrb.mxu0 %v3344_v28  ;;  %v3416_v46 = vor.u32 %v3702_v32, %v3415_v31  ;;  %v3420_v37 = vor.u32 %v3701_v33, %v3417_v35  ;;  %v1738_v48 = vperm.slane %v1736_v34, 0  ;;  %v3710_v23 = vld [vmem:[%s4300_s17 + $0x8] sm:$0xff] }
 0x1a3   : > { %v1703_v2 = vpack.c.bf16 %v4701_v38, %v4701_v38  ;;  %v1739_v3 = vperm.slane %v1736_v34, 1 }
 0x1a4   : > { %2222 = vmatpush.bf16.msrb.mxu1 %v3416_v46  ;;  %2248 = vmatpush.bf16.msrb.mxu3 %v3420_v37 }
 0x1a5   : > { %1923 = vmatmul.bf16.vlgmr.msra.gmra.mxu1 %v1703_v2  ;;  %1949 = vmatmul.bf16.vlgmr.msra.gmra.mxu3 %v1703_v2  ;;  %v3335_v2 = vld [vmem:[%s4269_s3 + $0x20] sm:$0xf] }
 0x1a7   : > { %p2000_p4 = scmp.ge.s32.totalorder %s4784_s2, 3  ;;  %p2304_p6 = scmp.ge.s32.totalorder %s4784_s2, 4 }
 0x1a8   : > { %2223 = vmatpush.bf16.msrb.mxu1 %v3408_v41  ;;  %2249 = vmatpush.bf16.msrb.mxu3 %v3412_v49 }
 0x1a9   : > { %s2305_s21 = scalar_select %p2304_p6, 1, 0 }
 0x1ac   : > { %2224 = vmatpush.bf16.msrb.mxu1 %v3400_v59  ;;  %2250 = vmatpush.bf16.msrb.mxu3 %v3404_v62 }
 0x1b0   : > { %2251 = vmatpush.bf16.msrb.mxu3 %v3396_v20 }
 0x1b4   : > { %2252 = vmatpush.bf16.msrb.mxu3 %v3388_v29 }
 0x1e2   : > { %v4705_v39 = vpop.f32.mrf.mxu0 }
 0x1e3   : > { %v1912_v61 = vadd.f32 %v4705_v39, %v1738_v48  ;;  %v3391_v39 = vld [vmem:[%s4269_s3 + $0x90] sm:$0xf] }
 0x1e4   : > { %v3392_v14 = vor.u32 %v3696_v12, %v3391_v39  ;;  %v3713_v39 = vld [vmem:[%s4300_s17 + $0x20] sm:$0xff]  ;;  %v3722_v12 = vld [vmem:[%s4300_s17 + $0x68] sm:$0xff] }
 0x1e6   : > { %2225 = vmatpush.bf16.msrb.mxu1 %v3392_v14  ;;  %v3721_v14 = vld [vmem:[%s4300_s17 + $0x60] sm:$0xff] }
 0x1e8   : > { %v4707_v42 = vpop.f32.mrf.mxu2 }
 0x1e9   : > { %v1938_v21 = vadd.f32 %v4707_v42, %v1739_v3 }
 0x1ea   : > { %v1913_v43 = vpop.f32.mrf.mxu0  ;;  %2226 = vmatpush.bf16.msrb.mxu1 %v3384_v26 }
 0x1eb   : > { %v3682_v43 = vld [vmem:[%s4269_s3 + $0x24] sm:$0xf0] }
 0x1ec   : > { %v3336_v15 = vor.u32 %v3682_v43, %v3335_v2 }
 0x1ee   : > { %2211 = vmatpush.bf16.msrb.mxu0 %v3336_v15 }
 0x1f0   : > { %v1939_v44 = vpop.f32.mrf.mxu2 }
 0x1f1   : > { %v3681_v44 = vld [vmem:[%s4269_s3 + $0x24] sm:$0xf]  ;;  %s2001_s3 = scalar_select %p2000_p4, 1, 0 }
 0x1f2   : > { %v3340_v40 = vor.u32 %v3681_v44, %v3337_v7  ;;  %2212 = vmatpush.bf16.msrb.mxu0 %v3328_v53 }
 0x1f4   : > { %2237 = vmatpush.bf16.msrb.mxu2 %v3340_v40  ;;  %v2002_v40 = vstv %s2001_s3 }
 0x1f5   : > { %vm4788_vm14 = vcmp.eq.s32.totalorder %v2002_v40, 1 }
 0x1f6   : > { %2213 = vmatpush.bf16.msrb.mxu0 %v3320_v8  ;;  %v3716_v8 = vld [vmem:[%s4300_s17 + $0x38] sm:$0xff] }
 0x1f8   : > { %2238 = vmatpush.bf16.msrb.mxu2 %v3332_v55 }
 0x1fa   : > { %2444 = vmatpush.bf16.msra.mxu0 %v3716_v8 }
 0x1fc   : > { %2239 = vmatpush.bf16.msrb.mxu2 %v3324_v11  ;;  %v3714_v11 = vld [vmem:[%s4300_s17 + $0x28] sm:$0xff] }
 0x1fe   : > { %2445 = vmatpush.bf16.msra.mxu0 %v3715_v9 }
 0x202   : > { %2446 = vmatpush.bf16.msra.mxu0 %v3714_v11 }
 0x206   : > { %2447 = vmatpush.bf16.msra.mxu0 %v3713_v39 }
 0x20a   : > { %2448 = vmatpush.bf16.msra.mxu0 %v3712_v13 }
 0x222   : > { %v1924_v6 = vpop.f32.mrf.mxu1 }
 0x223   : > { %v4771_v10 = vadd.f32 %v1924_v6, %v1912_v61 }
 0x225   : > { %v3315_v19 = vmul.f32 -1.442695, %v4771_v10  ;;  %v1954_v50 = vmax.f32 %v4771_v10, 0.0 }
 0x227   : > { %3821 = vpow2.f32 %v3315_v19  ;;  %v3711_v19 = vld [vmem:[%s4300_s17 + $0x10] sm:$0xff] }
 0x228   : > { %v1950_v25 = vpop.f32.mrf.mxu3  ;;  %2449 = vmatpush.bf16.msra.mxu0 %v3711_v19 }
 0x229   : > { %v1951_v28 = vadd.f32 %v1950_v25, %v1938_v21  ;;  %v3720_v21 = vld [vmem:[%s4300_s17 + $0x58] sm:$0xff] }
 0x22a   : > { %v1926_v30 = vpop.f32.mrf.mxu1 }
 0x22b   : > { %v3316_v31 = vmul.f32 -1.442695, %v1951_v28  ;;  %v1955_v63 = vmax.f32 %v1951_v28, 0.0  ;;  %v2043_v30 = vperm.slane %v2040_v17, 1 }
 0x22c   : > { %2450 = vmatpush.bf16.msra.mxu0 %v3710_v23  ;;  %v2471_v23 = vstv %s631_s29 }
 0x22d   : > { %v3822_v32 = vpop.eup %3821  ;;  %3823 = vpow2.f32 %v3316_v31 }
 0x22e   : > { %v1964_v42 = vadd.f32 1.0, %v3822_v32  ;;  %v3718_v32 = vld [vmem:[%s4300_s17 + $0x48] sm:$0xff] }
 0x230   : > { %3825 = vrcp.f32 %v1964_v42  ;;  %v1952_v33 = vpop.f32.mrf.mxu3  ;;  %v1977_v43 = vand.u32 2147483648, %v1964_v42  ;;  %v1975_v15 = vand.u32 2147483647, %v1964_v42  ;;  %vm1971_vm11 = vweird.f32 %v1964_v42 }
 0x232   : > { %v1978_v36 = vor.u32 1.1754944e-38, %v1977_v43  ;;  %vm1976_vm13 = vcmp.eq.f32.partialorder %v1975_v15, 8.507059e+37 }
 0x233   : > { %v3824_v34 = vpop.eup %3823 }
 0x234   : > { %v1965_v46 = vadd.f32 1.0, %v3824_v34 }
 0x236   : > { %v3826_v35 = vpop.eup %3825  ;;  %3827 = vrcp.f32 %v1965_v46  ;;  %v1992_v52 = vand.u32 2147483648, %v1965_v46  ;;  %v1990_v55 = vand.u32 2147483647, %v1965_v46  ;;  %vm1986_vm0 = vweird.f32 %v1965_v46 }
 0x237   : > { %v1967_v37 = vmul.f32 %v3826_v35, %v1964_v42  ;;  %3829 = vtanh.f32 %v4771_v10  ;;  %vm1972_vm10 = vweird.f32 %v3826_v35  ;;  %v3724_v10 = vld [vmem:[%s4300_s17 + $0x78] sm:$0xff] }
 0x238   : > { %vm1973_vm12 = vmor %vm1971_vm11, %vm1972_vm10  ;;  %3831 = vtanh.f32 %v1951_v28  ;;  %v1993_v59 = vor.u32 1.1754944e-38, %v1992_v52  ;;  %vm1991_vm2 = vcmp.eq.f32.partialorder %v1990_v55, 8.507059e+37  ;;  %2457 = vmatpush.bf16.msra.mxu1 %v3724_v10  ;;  %v3709_v28 = vld [vmem:[%s4300_s17] sm:$0xff] }
 0x239   : > { %v1968_v2 = vsub.f32 1.0, %v1967_v37  ;;  %2451 = vmatpush.bf16.msra.mxu0 %v3709_v28 }
 0x23b   : > { %v1969_v44 = vmul.f32 %v3826_v35, %v1968_v2 }
 0x23c   : > { %v3828_v7 = vpop.eup %3827 }
 0x23d   : > { %v1970_v45 = vadd.f32 %v3826_v35, %v1969_v44  ;;  %v1982_v47 = vmul.f32 %v3828_v7, %v1965_v46  ;;  %v3830_v49 = vpop.eup %3829  ;;  %vm1987_vm15 = vweird.f32 %v3828_v7  ;;  %v3717_v46 = vld [vmem:[%s4300_s17 + $0x40] sm:$0xff] }
 0x23e   : > { %vm1988_vm1 = vmor %vm1986_vm0, %vm1987_vm15  ;;  %v3832_v62 = vpop.eup %3831 }
 0x23f   : > { %v1974_v48 = vsel %vm1973_vm12, %v3826_v35, %v1970_v45  ;;  %v1983_v41 = vsub.f32 1.0, %v1982_v47 }
 0x240   : > { %v1979_v51 = vsel %vm1976_vm13, %v1978_v36, %v1974_v48 }
 0x241   : > { %v1996_v53 = vsel %vm4648_vm3, %v3830_v49, %v1979_v51  ;;  %v1984_v54 = vmul.f32 %v3828_v7, %v1983_v41  ;;  %v2306_v51 = vstv %s2305_s21 }
 0x242   : > { %v1998_v56 = vsel %vm4652_vm5, %v1954_v50, %v1996_v53  ;;  %vm4837_vm9 = vcmp.eq.s32.totalorder %v2306_v51, 1 }
 0x243   : > { %v1985_v57 = vadd.f32 %v3828_v7, %v1984_v54  ;;  %v4800_v58 = vsel %vm4788_vm14, %v1998_v56, %v4664_v18 }
 0x244   : > { %v2006_v60 = vpack.c.bf16 %v4800_v58, %v4800_v58 }
 0x245   : > { %v1989_v61 = vsel %vm1988_vm1, %v3828_v7, %v1985_v57 }
 0x246   : > { %v1994_v1 = vsel %vm1991_vm2, %v1993_v59, %v1989_v61  ;;  %2214 = vmatmul.bf16.vlgmr.msrb.gmra.mxu0 %v2006_v60  ;;  %2240 = vmatmul.bf16.vlgmr.msrb.gmra.mxu2 %v2006_v60 }
 0x247   : > { %v1997_v18 = vsel %vm4648_vm3, %v3832_v62, %v1994_v1 }
 0x248   : > { %v1999_v4 = vsel %vm4652_vm5, %v1955_v63, %v1997_v18 }
 0x249   : > { %v4811_v3 = vsel %vm4788_vm14, %v1999_v4, %v4701_v38  ;;  %v3723_v38 = vld [vmem:[%s4300_s17 + $0x70] sm:$0xff] }
 0x24a   : > { %v2007_v6 = vpack.c.bf16 %v4811_v3, %v4811_v3  ;;  %2458 = vmatpush.bf16.msra.mxu1 %v3723_v38 }
 0x24c   : > { %2227 = vmatmul.bf16.vlgmr.msrb.gmra.mxu1 %v2007_v6  ;;  %2253 = vmatmul.bf16.vlgmr.msrb.gmra.mxu3 %v2007_v6 }
 0x24e   : > { %2459 = vmatpush.bf16.msra.mxu1 %v3722_v12 }
 0x252   : > { %2460 = vmatpush.bf16.msra.mxu1 %v3721_v14 }
 0x256   : > { %2461 = vmatpush.bf16.msra.mxu1 %v3720_v21 }
 0x25a   : > { %2462 = vmatpush.bf16.msra.mxu1 %v3719_v24 }
 0x25e   : > { %2463 = vmatpush.bf16.msra.mxu1 %v3718_v32 }
 0x262   : > { %2464 = vmatpush.bf16.msra.mxu1 %v3717_v46 }
 0x2c3   : > { %v2215_v20 = vpop.f32.mrf.mxu0 }
 0x2c4   : > { %v2216_v25 = vadd.f32 %v2215_v20, %v2042_v22  ;;  %v3808_v20 = vld [vmem:[%s535_s8] ss:$0 sm:$0xff] }
 0x2c9   : > { %v2228_v26 = vpop.f32.mrf.mxu1  ;;  %v2241_v27 = vpop.f32.mrf.mxu2 }
 0x2ca   : > { %v2229_v29 = vadd.f32 %v2228_v26, %v2216_v25  ;;  %v2242_v33 = vadd.f32 %v2241_v27, %v2043_v30 }
 0x2cb   : > { %v2217_v31 = vpop.f32.mrf.mxu0 }
 0x2cc   : > { %v3445_v42 = vmul.f32 -1.442695, %v2229_v29  ;;  %v2258_v60 = vmax.f32 %v2229_v29, 0.0 }
 0x2ce   : > { %3833 = vpow2.f32 %v3445_v42 }
 0x2cf   : > { %v2254_v34 = vpop.f32.mrf.mxu3 }
 0x2d0   : > { %v2255_v35 = vadd.f32 %v2254_v34, %v2242_v33 }
 0x2d1   : > { %v2230_v37 = vpop.f32.mrf.mxu1  ;;  %v2243_v2 = vpop.f32.mrf.mxu2 }
 0x2d2   : > { %v3446_v43 = vmul.f32 -1.442695, %v2255_v35  ;;  %v2259_v39 = vmax.f32 %v2255_v35, 0.0 }
 0x2d4   : > { %v3834_v44 = vpop.eup %3833  ;;  %3835 = vpow2.f32 %v3446_v43 }
 0x2d5   : > { %v2268_v15 = vadd.f32 1.0, %v3834_v44 }
 0x2d7   : > { %3837 = vrcp.f32 %v2268_v15  ;;  %v2256_v7 = vpop.f32.mrf.mxu3  ;;  %v2281_v41 = vand.u32 2147483648, %v2268_v15  ;;  %v2279_v49 = vand.u32 2147483647, %v2268_v15  ;;  %vm2275_vm6 = vweird.f32 %v2268_v15 }
 0x2d9   : > { %v2282_v54 = vor.u32 1.1754944e-38, %v2281_v41  ;;  %vm2280_vm8 = vcmp.eq.f32.partialorder %v2279_v49, 8.507059e+37 }
 0x2da   : > { %v3836_v40 = vpop.eup %3835 }
 0x2db   : > { %v2269_v45 = vadd.f32 1.0, %v3836_v40 }
 0x2dd   : > { %v3838_v47 = vpop.eup %3837  ;;  %3839 = vrcp.f32 %v2269_v45  ;;  %v2296_v62 = vand.u32 2147483648, %v2269_v45  ;;  %v2294_v18 = vand.u32 2147483647, %v2269_v45  ;;  %vm2290_vm11 = vweird.f32 %v2269_v45 }
 0x2de   : > { %v2271_v36 = vmul.f32 %v3838_v47, %v2268_v15  ;;  %3841 = vtanh.f32 %v2229_v29  ;;  %vm2276_vm4 = vweird.f32 %v3838_v47 }
 0x2df   : > { %vm2277_vm7 = vmor %vm2275_vm6, %vm2276_vm4  ;;  %3843 = vtanh.f32 %v2255_v35  ;;  %v2297_v9 = vor.u32 1.1754944e-38, %v2296_v62  ;;  %vm2295_vm13 = vcmp.eq.f32.partialorder %v2294_v18, 8.507059e+37 }
 0x2e0   : > { %v2272_v48 = vsub.f32 1.0, %v2271_v36 }
 0x2e2   : > { %v2273_v16 = vmul.f32 %v3838_v47, %v2272_v48 }
 0x2e3   : > { %v3840_v50 = vpop.eup %3839 }
 0x2e4   : > { %v2274_v52 = vadd.f32 %v3838_v47, %v2273_v16  ;;  %v2286_v53 = vmul.f32 %v3840_v50, %v2269_v45  ;;  %v3842_v59 = vpop.eup %3841  ;;  %vm2291_vm10 = vweird.f32 %v3840_v50 }
 0x2e5   : > { %vm2292_vm12 = vmor %vm2290_vm11, %vm2291_vm10  ;;  %v3844_v38 = vpop.eup %3843 }
 0x2e6   : > { %v2278_v55 = vsel %vm2277_vm7, %v3838_v47, %v2274_v52  ;;  %v2287_v56 = vsub.f32 1.0, %v2286_v53 }
 0x2e7   : > { %v2283_v61 = vsel %vm2280_vm8, %v2282_v54, %v2278_v55 }
 0x2e8   : > { %v2300_v63 = vsel %vm4648_vm3, %v3842_v59, %v2283_v61  ;;  %v2288_v1 = vmul.f32 %v3840_v50, %v2287_v56 }
 0x2e9   : > { %v2302_v4 = vsel %vm4652_vm5, %v2258_v60, %v2300_v63 }
 0x2ea   : > { %v2289_v6 = vadd.f32 %v3840_v50, %v2288_v1  ;;  %v2308_v8 = vsel %vm4837_vm9, %v2302_v4, %v4800_v58 }
 0x2eb   : > { %v2310_v10 = vpack.c.bf16 %v2308_v8, %v2308_v8 }
 0x2ec   : > { %v2293_v11 = vsel %vm2292_vm12, %v3840_v50, %v2289_v6 }
 0x2ed   : > { %v2298_v12 = vsel %vm2295_vm13, %v2297_v9, %v2293_v11  ;;  %2452 = vmatmul.bf16.vlgmr.msra.gmra.mxu0 %v2310_v10 }
 0x2ee   : > { %v2301_v13 = vsel %vm4648_vm3, %v3844_v38, %v2298_v12 }
 0x2ef   : > { %v2303_v14 = vsel %vm4652_vm5, %v2259_v39, %v2301_v13 }
 0x2f0   : > { %v2309_v58 = vsel %vm4837_vm9, %v2303_v14, %v4811_v3 }
 0x2f1   : > { %v2311_v17 = vpack.c.bf16 %v2309_v58, %v2309_v58 }
 0x2f3   : > { %2465 = vmatmul.bf16.vlgmr.msra.gmra.mxu1 %v2311_v17 }
 0x36a   : > { %v2453_v19 = vpop.f32.mrf.mxu0 }
 0x36b   : > { %v2454_v21 = vadd.f32 %v3808_v20, %v2453_v19 }
 0x370   : > { %v2466_v22 = vpop.f32.mrf.mxu1 }
 0x371   : > { %v2467_v24 = vadd.f32 %v2466_v22, %v2454_v21 }
 0x372   : > { %v2455_v5 = vpop.f32.mrf.mxu0 }
 0x373   : > { %v2472_v25 = vmul.f32 %v2471_v23, %v2467_v24 }
 0x375   : > { %v2473_v26 = vadd.f32 %v2472_v25, %v2470_v0 }
 0x377   : > { %2474 = vst [vmem:[%s4929_s20] sm:$0xff] %v2473_v26 }
 0x378   : > { %v2468_v3 = vpop.f32.mrf.mxu1 }
 0x379 PF: > { %s4930_s24 = sld [smem:[#allocation19_spill]]  ;;  %s4933_s21 = smov %s4022_s22 }
 0x37a   : > { %s4931_s30 = sld [smem:[#allocation18_spill]] }
 0x37b   : > { %s4932_s23 = sld [smem:[#allocation20_spill]] }
 0x37f   : > { %p28_p8 = scmp.ge.s32.totalorder %s4930_s24, 11  }
 0x380   : > { %s4934_s22 = smov %s4931_s30 }
 0x381   :  { %30 = sbr.rel (!%p28_p8) target bundleno = 15 (0xf), region = 161 }
 0x386   :  { %2486 = vsyncpa [#allocation3], 1 }
 0x387   :  { %2488 = vsyncpa [#allocation3 + $0x1], 1 }
 0x388   :  { %2489 = vsyncpa [#allocation11], 1 }
 0x389   :  { %2491 = vsyncpa [#allocation11 + $0x1], 1 }
 0x38a   :  { %2492 = vsyncpa [#allocation4], 1 }
 0x38b   :  { %2494 = vsyncpa [#allocation4 + $0x1], 1 }
 0x38c   :  { %2495 = vsyncpa [#allocation8], 1 }
 0x38d   :  { %2496 = vsyncpa [#allocation5], 1 }
 0x38e   :  { %2498 = vsyncpa [#allocation5 + $0x1], 1 }

</bundles_post_ra>
